<compile_context>
chip_gen: v7x
topology: tpu7x:2x2x1
jax: 0.10.0
libtpu: 0.0.40
codegen_flags: <defaults>
</compile_context>

<pallas_src>
import math

import jax
import jax.numpy as jnp
from jax.experimental import pallas as pl
from jax.experimental.pallas import tpu as pltpu


# --------------------- fused Conv2d(5x5, pad=2) + MaxPool2d(2) ---------------------

def _conv_pool_kernel(p_ref, w_ref, b_ref, o_ref):
    # p_ref: (4, Mt, KKp) bf16 im2col slabs (one per 2x2 pool tap)
    # w_ref: (KKp, 128) bf16,  b_ref: (1, 128) f32,  o_ref: (Mt, 128)
    taps, mt, kkp = p_ref.shape
    y = jnp.dot(p_ref[...].reshape(taps * mt, kkp), w_ref[...],
                preferred_element_type=jnp.float32)          # one stacked MXU matmul
    y = y.reshape(taps, mt, -1)
    m = jnp.maximum(jnp.maximum(y[0], y[1]), jnp.maximum(y[2], y[3]))   # 2x2 max-pool
    o_ref[...] = (m + b_ref[...]).astype(o_ref.dtype)                    # bias once (f32)


def _pooled_patches(x, K=5, row_order="nhw", n_pad=None):
    """x: (N,H,W,Cin) -> (4, rows, K*K*Cin) im2col slabs at pooled resolution.

    row_order="nhw": rows ordered (n, ph, pw)   (conv1 / conv2)
    row_order="hwn": rows ordered (ph, pw, n), batch padded to n_pad (fused conv3+head)
    """
    N, H, W, Cin = x.shape
    PH, PW = H // 2, W // 2
    xp = jnp.pad(x, ((0, 0), (2, 2), (2, 2), (0, 0)))
    slabs = []
    for r in range(2):
        for c in range(2):
            cols = []
            for kh in range(K):
                for kw in range(K):
                    cols.append(xp[:, r + kh:r + kh + H:2, c + kw:c + kw + W:2, :])
            t = jnp.concatenate(cols, axis=-1)                 # (N, PH, PW, K*K*Cin)
            if row_order == "hwn":
                t = jnp.transpose(t, (1, 2, 0, 3))             # (PH, PW, N, KK)
                if n_pad is not None and n_pad != N:
                    t = jnp.pad(t, ((0, 0), (0, 0), (0, n_pad - N), (0, 0)))
                t = t.reshape(PH * PW * t.shape[2], -1)
            else:
                t = t.reshape(N * PH * PW, -1)
            slabs.append(t)
    return jnp.stack(slabs, axis=0)


def conv5_pool2(x, w_p, b_p, cout, *, tile_cap=512):
    """x: (N,H,W,Cin) bf16; w_p: (KKp,128) bf16; b_p: (1,128) f32 -> (N,H/2,W/2,cout) bf16."""
    N, H, W, Cin = x.shape
    PH, PW = H // 2, W // 2
    M = N * PH * PW
    patches = _pooled_patches(x)                               # (4, M, 25*Cin)
    KKp, Coutp = w_p.shape
    KK = patches.shape[-1]
    if KKp != KK:                                              # lane-align contraction dim
        patches = jnp.pad(patches, ((0, 0), (0, 0), (0, KKp - KK)))
    mt = math.gcd(M, tile_cap)                                 # M is always a multiple of 64
    out = pl.pallas_call(
        _conv_pool_kernel,
        out_shape=jax.ShapeDtypeStruct((M, Coutp), jnp.bfloat16),
        grid=(M // mt,),
        in_specs=[
            pl.BlockSpec((4, mt, KKp), lambda i: (0, i, 0)),
            pl.BlockSpec((KKp, Coutp), lambda i: (0, 0)),      # weights resident
            pl.BlockSpec((1, Coutp), lambda i: (0, 0)),
        ],
        out_specs=pl.BlockSpec((mt, Coutp), lambda i: (i, 0)),
        compiler_params=pltpu.CompilerParams(
            dimension_semantics=("parallel",),
            vmem_limit_bytes=32 * 1024 * 1024),
    )(patches, w_p, b_p)
    return out[:, :cout].reshape(N, PH, PW, cout)


# ---------- fused conv3 + MaxPool + Flatten + ReLU + Linear(1024,64) + Linear(64,10) ----------

def _conv3_head_kernel(p_ref, w3_ref, b3_ref, w1_ref, b1_ref, w2_ref, b2_ref, o_ref):
    # p_ref: (4, 16*Npad, KKp) bf16, rows ordered (spatial, batch)
    # w3_ref: (KKp,128) bf16; w1_ref: (16,128,128) bf16; w2_ref: (128,128) bf16
    # b*_ref: (1,128) f32; o_ref: (Npad, 128) f32
    taps, m3, kkp = p_ref.shape
    npad, _ = o_ref.shape
    nsp = m3 // npad                                           # 16 spatial positions
    cp = w3_ref.shape[1]

    y = jnp.dot(p_ref[...].reshape(taps * m3, kkp), w3_ref[...],
                preferred_element_type=jnp.float32)
    y = y.reshape(taps, m3, cp)
    y = jnp.maximum(jnp.maximum(y[0], y[1]), jnp.maximum(y[2], y[3])) + b3_ref[...]
    act = jnp.maximum(y, 0.0).astype(jnp.bfloat16)             # ReLU after Flatten (PyTorch)

    # Flatten + Linear(1024,64): batched matmul over the 16 spatial positions,
    # then sum — equivalent to the NCHW flatten because wl1 rows were permuted
    # to (ph, pw, c)-major in prepare_params.
    act3 = act.reshape(nsp, npad, cp)                          # (16, Npad, 128)
    h1 = jnp.einsum("pnc,pch->pnh", act3, w1_ref[...],
                    preferred_element_type=jnp.float32)        # (16, Npad, 128)
    h1 = jnp.sum(h1, axis=0) + b1_ref[...]                     # (Npad, 128)

    z = jnp.dot(h1.astype(jnp.bfloat16), w2_ref[...],
                preferred_element_type=jnp.float32) + b2_ref[...]
    o_ref[...] = z


def conv3_head(x, w3_p, b3_p, w1_p, b1_p, w2_p, b2_p):
    """x: (N,8,8,32) bf16 -> logits (N,10) f32; conv3+pool+flatten+ReLU+both Linears fused."""
    N, H, W, Cin = x.shape
    PH, PW = H // 2, W // 2
    npad = -(-N // 16) * 16                                    # bf16 sublane tile = 16 rows
    patches = _pooled_patches(x, row_order="hwn", n_pad=npad)  # (4, 16*npad, 800)
    KKp = w3_p.shape[0]
    KK = patches.shape[-1]
    if KKp != KK:
        patches = jnp.pad(patches, ((0, 0), (0, 0), (0, KKp - KK)))
    M3 = PH * PW * npad
    out = pl.pallas_call(
        _conv3_head_kernel,
        out_shape=jax.ShapeDtypeStruct((npad, 128), jnp.float32),
        grid=(1,),
        in_specs=[
            pl.BlockSpec((4, M3, KKp), lambda i: (0, 0, 0)),
            pl.BlockSpec((KKp, 128), lambda i: (0, 0)),
            pl.BlockSpec((1, 128), lambda i: (0, 0)),
            pl.BlockSpec((PH * PW, 128, 128), lambda i: (0, 0, 0)),
            pl.BlockSpec((1, 128), lambda i: (0, 0)),
            pl.BlockSpec((128, 128), lambda i: (0, 0)),
            pl.BlockSpec((1, 128), lambda i: (0, 0)),
        ],
        out_specs=pl.BlockSpec((npad, 128), lambda i: (0, 0)),
        compiler_params=pltpu.CompilerParams(dimension_semantics=("arbitrary",)),
    )(patches, w3_p, b3_p, w1_p, b1_p, w2_p, b2_p)
    return out[:N, :10]


# ----------------------------- parameters & forward -----------------------------

def init_params(key):
    ks = jax.random.split(key, 10)

    def conv_w(k, cin, cout):
        bound = 1.0 / jnp.sqrt(cin * 25.0)
        return jax.random.uniform(k, (5, 5, cin, cout), jnp.float32, -bound, bound)

    def lin_w(k, din, dout):
        bound = 1.0 / jnp.sqrt(float(din))
        return jax.random.uniform(k, (din, dout), jnp.float32, -bound, bound)

    def bias(k, n, fan_in):
        bound = 1.0 / jnp.sqrt(float(fan_in))
        return jax.random.uniform(k, (n,), jnp.float32, -bound, bound)

    return {
        "w1": conv_w(ks[0], 3, 32),  "b1": bias(ks[1], 32, 3 * 25),
        "w2": conv_w(ks[2], 32, 32), "b2": bias(ks[3], 32, 32 * 25),
        "w3": conv_w(ks[4], 32, 64), "b3": bias(ks[5], 64, 32 * 25),
        "wl1": lin_w(ks[6], 1024, 64), "bl1": bias(ks[7], 64, 1024),
        "wl2": lin_w(ks[8], 64, 10),   "bl2": bias(ks[9], 10, 64),
    }


def prepare_params(params):
    """One-time prep: lane-dense (128) channel padding, K padded to 128x, bf16 weights,
    and wl1 row-permuted from NCHW-flatten order to (spatial, channel) blocks."""
    def convw(w):
        kk, cout = 25 * w.shape[2], w.shape[3]
        kkp = -(-kk // 128) * 128
        w2 = w.reshape(kk, cout)
        return jnp.pad(w2, ((0, kkp - kk), (0, 128 - cout))).astype(jnp.bfloat16)

    def convb(b):
        return jnp.pad(b.reshape(1, -1), ((0, 0), (0, 128 - b.shape[0]))).astype(jnp.float32)

    # wl1: (1024, 64); PyTorch flatten index d = c*16 + ph*4 + pw  ->  (ph,pw,c)-major blocks
    wl1 = params["wl1"].reshape(64, 4, 4, 64)          # (C, PH, PW, H1)
    wl1 = jnp.transpose(wl1, (1, 2, 0, 3))             # (PH, PW, C, H1)
    wl1 = wl1.reshape(16, 64, 64)                      # (spatial, C, H1)
    wl1 = jnp.pad(wl1, ((0, 0), (0, 64), (0, 64)))     # pad C->128, H1->128
    wl2 = jnp.pad(params["wl2"], ((0, 64), (0, 118)))  # (128, 128): H1->128 rows, 10->128 cols

    return {
        "w1": convw(params["w1"]), "b1": convb(params["b1"]),
        "w2": convw(params["w2"]), "b2": convb(params["b2"]),
        "w3": convw(params["w3"]), "b3": convb(params["b3"]),
        "wl1": wl1.astype(jnp.bfloat16),
        "bl1": jnp.pad(params["bl1"].reshape(1, -1), ((0, 0), (0, 64))).astype(jnp.float32),
        "wl2": wl2.astype(jnp.bfloat16),
        "bl2": jnp.pad(params["bl2"].reshape(1, -1), ((0, 0), (0, 118))).astype(jnp.float32),
    }


@jax.jit
def tudui_forward(x_nchw, prep):
    # NCHW (PyTorch) -> NHWC; bf16 activations (matmul operands are bf16)
    x = jnp.transpose(x_nchw, (0, 2, 3, 1)).astype(jnp.bfloat16)
    x = conv5_pool2(x, prep["w1"], prep["b1"], 32)     # (N, 16, 16, 32)
    x = conv5_pool2(x, prep["w2"], prep["b2"], 32)     # (N,  8,  8, 32)
    # conv3 + MaxPool + Flatten + ReLU + Linear(1024,64) + Linear(64,10), one kernel
    return conv3_head(x, prep["w3"], prep["b3"],
                      prep["wl1"], prep["bl1"], prep["wl2"], prep["bl2"])


if __name__ == "__main__":
    key = jax.random.PRNGKey(0)
    kx, kp = jax.random.split(key)
    # Linear(1024, 64) forces 32x32 spatial input (64 * 4 * 4 = 1024) -> NCHW (2, 3, 32, 32)
    x = jax.random.normal(kx, (2, 3, 32, 32), jnp.float32)
    params = init_params(kp)
    prep = prepare_params(params)
    out = jax.block_until_ready(tudui_forward(x, prep))
    assert out.shape == (2, 10) and out.dtype == jnp.float32
    print("KERNEL_OK")
</pallas_src>

<mosaic_0001>
module attributes {stable_mosaic.version = 11 : i64} {
  func.func @_conv_pool_kernel(%arg0: i32, %arg1: memref<4x512x128xbf16, #tpu.memory_space<vmem>>, %arg2: memref<128x128xbf16, #tpu.memory_space<vmem>>, %arg3: memref<1x128xf32, #tpu.memory_space<vmem>>, %arg4: memref<512x128xbf16, #tpu.memory_space<vmem>>) attributes {dimension_semantics = [#tpu.dimension_semantics<parallel>], iteration_bounds = array<i64: 1>, scalar_prefetch = 0 : i64, scratch_operands = 0 : i64, tpu.core_type = #tpu.core_type<tc>, window_params = [{transform_indices = @transform_0, window_bounds = array<i64: 4, 512, 128>}, {pipeline_mode = #tpu.pipeline_mode<synchronous>, transform_indices = @transform_1, window_bounds = array<i64: 128, 128>}, {pipeline_mode = #tpu.pipeline_mode<synchronous>, transform_indices = @transform_2, window_bounds = array<i64: 1, 128>}, {transform_indices = @transform_3, window_bounds = array<i64: 512, 128>}]} {
    %c0 = arith.constant 0 : index
    %c0_0 = arith.constant 0 : index
    %c0_1 = arith.constant 0 : index
    %0 = vector.load %arg1[%c0, %c0_0, %c0_1] : memref<4x512x128xbf16, #tpu.memory_space<vmem>>, vector<4x512x128xbf16>
    %1 = vector.shape_cast %0 : vector<4x512x128xbf16> to vector<2048x128xbf16>
    %c0_2 = arith.constant 0 : index
    %c0_3 = arith.constant 0 : index
    %2 = vector.load %arg2[%c0_2, %c0_3] : memref<128x128xbf16, #tpu.memory_space<vmem>>, vector<128x128xbf16>
    %cst = arith.constant dense<0.000000e+00> : vector<2048x128xf32>
    %3 = tpu.matmul %1, %2, %cst {dimension_numbers = #tpu.dot_dimension_numbers<[1], [0], [0], [1], [0, 0, 1, 1], [], []>} : vector<2048x128xbf16>, vector<128x128xbf16>, vector<2048x128xf32> -> vector<2048x128xf32>
    %4 = vector.shape_cast %3 : vector<2048x128xf32> to vector<4x512x128xf32>
    %5 = vector.extract_strided_slice %4 {offsets = [0, 0, 0], sizes = [1, 512, 128], strides = [1, 1, 1]} : vector<4x512x128xf32> to vector<1x512x128xf32>
    %6 = vector.shape_cast %5 : vector<1x512x128xf32> to vector<512x128xf32>
    %7 = vector.extract_strided_slice %4 {offsets = [1, 0, 0], sizes = [1, 512, 128], strides = [1, 1, 1]} : vector<4x512x128xf32> to vector<1x512x128xf32>
    %8 = vector.shape_cast %7 : vector<1x512x128xf32> to vector<512x128xf32>
    %9 = arith.maximumf %6, %8 : vector<512x128xf32>
    %10 = vector.extract_strided_slice %4 {offsets = [2, 0, 0], sizes = [1, 512, 128], strides = [1, 1, 1]} : vector<4x512x128xf32> to vector<1x512x128xf32>
    %11 = vector.shape_cast %10 : vector<1x512x128xf32> to vector<512x128xf32>
    %12 = vector.extract_strided_slice %4 {offsets = [3, 0, 0], sizes = [1, 512, 128], strides = [1, 1, 1]} : vector<4x512x128xf32> to vector<1x512x128xf32>
    %13 = vector.shape_cast %12 : vector<1x512x128xf32> to vector<512x128xf32>
    %14 = arith.maximumf %11, %13 : vector<512x128xf32>
    %15 = arith.maximumf %9, %14 : vector<512x128xf32>
    %c0_4 = arith.constant 0 : index
    %c0_5 = arith.constant 0 : index
    %16 = vector.load %arg3[%c0_4, %c0_5] : memref<1x128xf32, #tpu.memory_space<vmem>>, vector<1x128xf32>
    %17 = vector.broadcast %16 : vector<1x128xf32> to vector<512x128xf32>
    %18 = arith.addf %15, %17 : vector<512x128xf32>
    %19 = arith.truncf %18 : vector<512x128xf32> to vector<512x128xbf16>
    %c0_6 = arith.constant 0 : index
    %c0_7 = arith.constant 0 : index
    %20 = vector.load %arg4[%c0_6, %c0_7] : memref<512x128xbf16, #tpu.memory_space<vmem>>, vector<512x128xbf16>
    tpu.vector_store %arg4[%c0_6, %c0_7], %19 {strides = array<i32>} : memref<512x128xbf16, #tpu.memory_space<vmem>>, vector<512x128xbf16>,
    return
  }
  func.func @transform_0(%arg0: i32) -> (i32, i32, i32) {
    %c0_i32 = arith.constant 0 : i32
    %c0_i32_0 = arith.constant 0 : i32
    %c0_i32_1 = arith.constant 0 : i32
    return %c0_i32, %arg0, %c0_i32_0 : i32, i32, i32
  }
  func.func @transform_1(%arg0: i32) -> (i32, i32) {
    %c0_i32 = arith.constant 0 : i32
    %c0_i32_0 = arith.constant 0 : i32
    %c0_i32_1 = arith.constant 0 : i32
    return %c0_i32, %c0_i32_0 : i32, i32
  }
  func.func @transform_2(%arg0: i32) -> (i32, i32) {
    %c0_i32 = arith.constant 0 : i32
    %c0_i32_0 = arith.constant 0 : i32
    %c0_i32_1 = arith.constant 0 : i32
    return %c0_i32, %c0_i32_0 : i32, i32
  }
  func.func @transform_3(%arg0: i32) -> (i32, i32) {
    %c0_i32 = arith.constant 0 : i32
    %c0_i32_0 = arith.constant 0 : i32
    return %arg0, %c0_i32 : i32, i32
  }
}

module attributes {stable_mosaic.version = 11 : i64} {
  func.func @_conv_pool_kernel(%arg0: i32, %arg1: memref<4x128x896xbf16, #tpu.memory_space<vmem>>, %arg2: memref<896x128xbf16, #tpu.memory_space<vmem>>, %arg3: memref<1x128xf32, #tpu.memory_space<vmem>>, %arg4: memref<128x128xbf16, #tpu.memory_space<vmem>>) attributes {dimension_semantics = [#tpu.dimension_semantics<parallel>], iteration_bounds = array<i64: 1>, scalar_prefetch = 0 : i64, scratch_operands = 0 : i64, tpu.core_type = #tpu.core_type<tc>, window_params = [{transform_indices = @transform_0, window_bounds = array<i64: 4, 128, 896>}, {pipeline_mode = #tpu.pipeline_mode<synchronous>, transform_indices = @transform_1, window_bounds = array<i64: 896, 128>}, {pipeline_mode = #tpu.pipeline_mode<synchronous>, transform_indices = @transform_2, window_bounds = array<i64: 1, 128>}, {transform_indices = @transform_3, window_bounds = array<i64: 128, 128>}]} {
    %c0 = arith.constant 0 : index
    %c0_0 = arith.constant 0 : index
    %c0_1 = arith.constant 0 : index
    %0 = vector.load %arg1[%c0, %c0_0, %c0_1] : memref<4x128x896xbf16, #tpu.memory_space<vmem>>, vector<4x128x896xbf16>
    %1 = vector.shape_cast %0 : vector<4x128x896xbf16> to vector<512x896xbf16>
    %c0_2 = arith.constant 0 : index
    %c0_3 = arith.constant 0 : index
    %2 = vector.load %arg2[%c0_2, %c0_3] : memref<896x128xbf16, #tpu.memory_space<vmem>>, vector<896x128xbf16>
    %cst = arith.constant dense<0.000000e+00> : vector<512x128xf32>
    %3 = tpu.matmul %1, %2, %cst {dimension_numbers = #tpu.dot_dimension_numbers<[1], [0], [0], [1], [0, 0, 1, 1], [], []>} : vector<512x896xbf16>, vector<896x128xbf16>, vector<512x128xf32> -> vector<512x128xf32>
    %4 = vector.shape_cast %3 : vector<512x128xf32> to vector<4x128x128xf32>
    %5 = vector.extract_strided_slice %4 {offsets = [0, 0, 0], sizes = [1, 128, 128], strides = [1, 1, 1]} : vector<4x128x128xf32> to vector<1x128x128xf32>
    %6 = vector.shape_cast %5 : vector<1x128x128xf32> to vector<128x128xf32>
    %7 = vector.extract_strided_slice %4 {offsets = [1, 0, 0], sizes = [1, 128, 128], strides = [1, 1, 1]} : vector<4x128x128xf32> to vector<1x128x128xf32>
    %8 = vector.shape_cast %7 : vector<1x128x128xf32> to vector<128x128xf32>
    %9 = arith.maximumf %6, %8 : vector<128x128xf32>
    %10 = vector.extract_strided_slice %4 {offsets = [2, 0, 0], sizes = [1, 128, 128], strides = [1, 1, 1]} : vector<4x128x128xf32> to vector<1x128x128xf32>
    %11 = vector.shape_cast %10 : vector<1x128x128xf32> to vector<128x128xf32>
    %12 = vector.extract_strided_slice %4 {offsets = [3, 0, 0], sizes = [1, 128, 128], strides = [1, 1, 1]} : vector<4x128x128xf32> to vector<1x128x128xf32>
    %13 = vector.shape_cast %12 : vector<1x128x128xf32> to vector<128x128xf32>
    %14 = arith.maximumf %11, %13 : vector<128x128xf32>
    %15 = arith.maximumf %9, %14 : vector<128x128xf32>
    %c0_4 = arith.constant 0 : index
    %c0_5 = arith.constant 0 : index
    %16 = vector.load %arg3[%c0_4, %c0_5] : memref<1x128xf32, #tpu.memory_space<vmem>>, vector<1x128xf32>
    %17 = vector.broadcast %16 : vector<1x128xf32> to vector<128x128xf32>
    %18 = arith.addf %15, %17 : vector<128x128xf32>
    %19 = arith.truncf %18 : vector<128x128xf32> to vector<128x128xbf16>
    %c0_6 = arith.constant 0 : index
    %c0_7 = arith.constant 0 : index
    %20 = vector.load %arg4[%c0_6, %c0_7] : memref<128x128xbf16, #tpu.memory_space<vmem>>, vector<128x128xbf16>
    tpu.vector_store %arg4[%c0_6, %c0_7], %19 {strides = array<i32>} : memref<128x128xbf16, #tpu.memory_space<vmem>>, vector<128x128xbf16>,
    return
  }
  func.func @transform_0(%arg0: i32) -> (i32, i32, i32) {
    %c0_i32 = arith.constant 0 : i32
    %c0_i32_0 = arith.constant 0 : i32
    %c0_i32_1 = arith.constant 0 : i32
    return %c0_i32, %arg0, %c0_i32_0 : i32, i32, i32
  }
  func.func @transform_1(%arg0: i32) -> (i32, i32) {
    %c0_i32 = arith.constant 0 : i32
    %c0_i32_0 = arith.constant 0 : i32
    %c0_i32_1 = arith.constant 0 : i32
    return %c0_i32, %c0_i32_0 : i32, i32
  }
  func.func @transform_2(%arg0: i32) -> (i32, i32) {
    %c0_i32 = arith.constant 0 : i32
    %c0_i32_0 = arith.constant 0 : i32
    %c0_i32_1 = arith.constant 0 : i32
    return %c0_i32, %c0_i32_0 : i32, i32
  }
  func.func @transform_3(%arg0: i32) -> (i32, i32) {
    %c0_i32 = arith.constant 0 : i32
    %c0_i32_0 = arith.constant 0 : i32
    return %arg0, %c0_i32 : i32, i32
  }
}

module attributes {stable_mosaic.version = 11 : i64} {
  func.func @_conv3_head_kernel(%arg0: i32, %arg1: memref<4x256x896xbf16, #tpu.memory_space<vmem>>, %arg2: memref<896x128xbf16, #tpu.memory_space<vmem>>, %arg3: memref<1x128xf32, #tpu.memory_space<vmem>>, %arg4: memref<16x128x128xbf16, #tpu.memory_space<vmem>>, %arg5: memref<1x128xf32, #tpu.memory_space<vmem>>, %arg6: memref<128x128xbf16, #tpu.memory_space<vmem>>, %arg7: memref<1x128xf32, #tpu.memory_space<vmem>>, %arg8: memref<16x128xf32, #tpu.memory_space<vmem>>) attributes {dimension_semantics = [#tpu.dimension_semantics<arbitrary>], iteration_bounds = array<i64: 1>, scalar_prefetch = 0 : i64, scratch_operands = 0 : i64, tpu.core_type = #tpu.core_type<tc>, window_params = [{pipeline_mode = #tpu.pipeline_mode<synchronous>, transform_indices = @transform_0, window_bounds = array<i64: 4, 256, 896>}, {pipeline_mode = #tpu.pipeline_mode<synchronous>, transform_indices = @transform_1, window_bounds = array<i64: 896, 128>}, {pipeline_mode = #tpu.pipeline_mode<synchronous>, transform_indices = @transform_2, window_bounds = array<i64: 1, 128>}, {pipeline_mode = #tpu.pipeline_mode<synchronous>, transform_indices = @transform_3, window_bounds = array<i64: 16, 128, 128>}, {pipeline_mode = #tpu.pipeline_mode<synchronous>, transform_indices = @transform_4, window_bounds = array<i64: 1, 128>}, {pipeline_mode = #tpu.pipeline_mode<synchronous>, transform_indices = @transform_5, window_bounds = array<i64: 128, 128>}, {pipeline_mode = #tpu.pipeline_mode<synchronous>, transform_indices = @transform_6, window_bounds = array<i64: 1, 128>}, {pipeline_mode = #tpu.pipeline_mode<synchronous>, transform_indices = @transform_7, window_bounds = array<i64: 16, 128>}]} {
    %c0 = arith.constant 0 : index
    %c0_0 = arith.constant 0 : index
    %c0_1 = arith.constant 0 : index
    %0 = vector.load %arg1[%c0, %c0_0, %c0_1] : memref<4x256x896xbf16, #tpu.memory_space<vmem>>, vector<4x256x896xbf16>
    %1 = vector.shape_cast %0 : vector<4x256x896xbf16> to vector<1024x896xbf16>
    %c0_2 = arith.constant 0 : index
    %c0_3 = arith.constant 0 : index
    %2 = vector.load %arg2[%c0_2, %c0_3] : memref<896x128xbf16, #tpu.memory_space<vmem>>, vector<896x128xbf16>
    %cst = arith.constant dense<0.000000e+00> : vector<1024x128xf32>
    %3 = tpu.matmul %1, %2, %cst {dimension_numbers = #tpu.dot_dimension_numbers<[1], [0], [0], [1], [0, 0, 1, 1], [], []>} : vector<1024x896xbf16>, vector<896x128xbf16>, vector<1024x128xf32> -> vector<1024x128xf32>
    %4 = vector.shape_cast %3 : vector<1024x128xf32> to vector<4x256x128xf32>
    %5 = vector.extract_strided_slice %4 {offsets = [0, 0, 0], sizes = [1, 256, 128], strides = [1, 1, 1]} : vector<4x256x128xf32> to vector<1x256x128xf32>
    %6 = vector.shape_cast %5 : vector<1x256x128xf32> to vector<256x128xf32>
    %7 = vector.extract_strided_slice %4 {offsets = [1, 0, 0], sizes = [1, 256, 128], strides = [1, 1, 1]} : vector<4x256x128xf32> to vector<1x256x128xf32>
    %8 = vector.shape_cast %7 : vector<1x256x128xf32> to vector<256x128xf32>
    %9 = arith.maximumf %6, %8 : vector<256x128xf32>
    %10 = vector.extract_strided_slice %4 {offsets = [2, 0, 0], sizes = [1, 256, 128], strides = [1, 1, 1]} : vector<4x256x128xf32> to vector<1x256x128xf32>
    %11 = vector.shape_cast %10 : vector<1x256x128xf32> to vector<256x128xf32>
    %12 = vector.extract_strided_slice %4 {offsets = [3, 0, 0], sizes = [1, 256, 128], strides = [1, 1, 1]} : vector<4x256x128xf32> to vector<1x256x128xf32>
    %13 = vector.shape_cast %12 : vector<1x256x128xf32> to vector<256x128xf32>
    %14 = arith.maximumf %11, %13 : vector<256x128xf32>
    %15 = arith.maximumf %9, %14 : vector<256x128xf32>
    %c0_4 = arith.constant 0 : index
    %c0_5 = arith.constant 0 : index
    %16 = vector.load %arg3[%c0_4, %c0_5] : memref<1x128xf32, #tpu.memory_space<vmem>>, vector<1x128xf32>
    %17 = vector.broadcast %16 : vector<1x128xf32> to vector<256x128xf32>
    %18 = arith.addf %15, %17 : vector<256x128xf32>
    %cst_6 = arith.constant 0.000000e+00 : f32
    %19 = vector.broadcast %cst_6 : f32 to vector<256x128xf32>
    %20 = arith.maximumf %18, %19 : vector<256x128xf32>
    %21 = arith.truncf %20 : vector<256x128xf32> to vector<256x128xbf16>
    %22 = vector.shape_cast %21 : vector<256x128xbf16> to vector<16x16x128xbf16>
    %c0_7 = arith.constant 0 : index
    %c0_8 = arith.constant 0 : index
    %c0_9 = arith.constant 0 : index
    %23 = vector.load %arg4[%c0_7, %c0_8, %c0_9] : memref<16x128x128xbf16, #tpu.memory_space<vmem>>, vector<16x128x128xbf16>
    "tpu.trace_start"() <{level = 10 : i32, message = "pnc,pch->pnh"}> : () -> ()
    %cst_10 = arith.constant dense<0.000000e+00> : vector<16x16x128xf32>
    %24 = tpu.matmul %22, %23, %cst_10 {dimension_numbers = #tpu.dot_dimension_numbers<[2], [1], [1], [2], [0, 0, 0, 1, 1, 2], [0], [0]>} : vector<16x16x128xbf16>, vector<16x128x128xbf16>, vector<16x16x128xf32> -> vector<16x16x128xf32>
    "tpu.trace_stop"() : () -> ()
    %cst_11 = arith.constant dense<0.000000e+00> : vector<16x128xf32>
    %25 = vector.multi_reduction <add>, %24, %cst_11 [0] : vector<16x16x128xf32> to vector<16x128xf32>
    %c0_12 = arith.constant 0 : index
    %c0_13 = arith.constant 0 : index
    %26 = vector.load %arg5[%c0_12, %c0_13] : memref<1x128xf32, #tpu.memory_space<vmem>>, vector<1x128xf32>
    %27 = vector.broadcast %26 : vector<1x128xf32> to vector<16x128xf32>
    %28 = arith.addf %25, %27 : vector<16x128xf32>
    %29 = arith.truncf %28 : vector<16x128xf32> to vector<16x128xbf16>
    %c0_14 = arith.constant 0 : index
    %c0_15 = arith.constant 0 : index
    %30 = vector.load %arg6[%c0_14, %c0_15] : memref<128x128xbf16, #tpu.memory_space<vmem>>, vector<128x128xbf16>
    %cst_16 = arith.constant dense<0.000000e+00> : vector<16x128xf32>
    %31 = tpu.matmul %29, %30, %cst_16 {dimension_numbers = #tpu.dot_dimension_numbers<[1], [0], [0], [1], [0, 0, 1, 1], [], []>} : vector<16x128xbf16>, vector<128x128xbf16>, vector<16x128xf32> -> vector<16x128xf32>
    %c0_17 = arith.constant 0 : index
    %c0_18 = arith.constant 0 : index
    %32 = vector.load %arg7[%c0_17, %c0_18] : memref<1x128xf32, #tpu.memory_space<vmem>>, vector<1x128xf32>
    %33 = vector.broadcast %32 : vector<1x128xf32> to vector<16x128xf32>
    %34 = arith.addf %31, %33 : vector<16x128xf32>
    %c0_19 = arith.constant 0 : index
    %c0_20 = arith.constant 0 : index
    %35 = vector.load %arg8[%c0_19, %c0_20] : memref<16x128xf32, #tpu.memory_space<vmem>>, vector<16x128xf32>
    tpu.vector_store %arg8[%c0_19, %c0_20], %34 {strides = array<i32>} : memref<16x128xf32, #tpu.memory_space<vmem>>, vector<16x128xf32>,
    return
  }
  func.func @transform_0(%arg0: i32) -> (i32, i32, i32) {
    %c0_i32 = arith.constant 0 : i32
    %c0_i32_0 = arith.constant 0 : i32
    %c0_i32_1 = arith.constant 0 : i32
    %c0_i32_2 = arith.constant 0 : i32
    return %c0_i32, %c0_i32_0, %c0_i32_1 : i32, i32, i32
  }
  func.func @transform_1(%arg0: i32) -> (i32, i32) {
    %c0_i32 = arith.constant 0 : i32
    %c0_i32_0 = arith.constant 0 : i32
    %c0_i32_1 = arith.constant 0 : i32
    return %c0_i32, %c0_i32_0 : i32, i32
  }
  func.func @transform_2(%arg0: i32) -> (i32, i32) {
    %c0_i32 = arith.constant 0 : i32
    %c0_i32_0 = arith.constant 0 : i32
    %c0_i32_1 = arith.constant 0 : i32
    return %c0_i32, %c0_i32_0 : i32, i32
  }
  func.func @transform_3(%arg0: i32) -> (i32, i32, i32) {
    %c0_i32 = arith.constant 0 : i32
    %c0_i32_0 = arith.constant 0 : i32
    %c0_i32_1 = arith.constant 0 : i32
    %c0_i32_2 = arith.constant 0 : i32
    return %c0_i32, %c0_i32_0, %c0_i32_1 : i32, i32, i32
  }
  func.func @transform_4(%arg0: i32) -> (i32, i32) {
    %c0_i32 = arith.constant 0 : i32
    %c0_i32_0 = arith.constant 0 : i32
    %c0_i32_1 = arith.constant 0 : i32
    return %c0_i32, %c0_i32_0 : i32, i32
  }
  func.func @transform_5(%arg0: i32) -> (i32, i32) {
    %c0_i32 = arith.constant 0 : i32
    %c0_i32_0 = arith.constant 0 : i32
    %c0_i32_1 = arith.constant 0 : i32
    return %c0_i32, %c0_i32_0 : i32, i32
  }
  func.func @transform_6(%arg0: i32) -> (i32, i32) {
    %c0_i32 = arith.constant 0 : i32
    %c0_i32_0 = arith.constant 0 : i32
    %c0_i32_1 = arith.constant 0 : i32
    return %c0_i32, %c0_i32_0 : i32, i32
  }
  func.func @transform_7(%arg0: i32) -> (i32, i32) {
    %c0_i32 = arith.constant 0 : i32
    %c0_i32_0 = arith.constant 0 : i32
    %c0_i32_1 = arith.constant 0 : i32
    return %c0_i32, %c0_i32_0 : i32, i32
  }
}

</mosaic_0001>

<bundles_post_ra>
// kernel: tudui_forward.3
= control target key start
LH: loop header
LB: loop body
LE: loop exit
PB: predicated region body
PF: predicated region fallthrough
CT: control target
= control target key end

     0   :  { %s4740_s1 = inlined_call_operand.vmem [shape: bf16[128,128], index: 1, kind: input, shape index: {}]   ;;  %s4741_s0 = inlined_call_operand.vmem [shape: bf16[4,512,128], index: 0, kind: input, shape index: {}]   ;;  %s4742_s2 = inlined_call_operand.vmem [shape: f32[1,128], index: 2, kind: input, shape index: {}]   ;;  %s4743_s3 = inlined_call_operand.vmem [shape: bf16[512,128], index: 3, kind: output, shape index: {}]  }
   0x1   :  { %v3627_v0 = vld [vmem:[%s4740_s1] sm:$0xff]   ;;  %v3628_v1 = vld [vmem:[%s4740_s1 + $0x8] sm:$0xff]   ;;  %v3629_v2 = vld [vmem:[%s4740_s1 + $0x10] sm:$0xff]  }
   0x2   :  { %3339 = vmatprep.subr.bf16.mxu0 %v3627_v0  ;;  %3611 = vmatprep.subr.bf16.mxu1 %v3627_v0  ;;  %v3630_v3 = vld [vmem:[%s4740_s1 + $0x18] sm:$0xff]   ;;  %v3635_v4 = vld [vmem:[%s4741_s0] sm:$0xff]   ;;  %v3632_v7 = vld [vmem:[%s4740_s1 + $0x28] sm:$0xff]  }
   0x3   :  { %3340 = vmatpush3.bf16.msra.mxu0 %v3627_v0  ;;  %3619 = vmatpush3.bf16.msra.mxu1 %v3627_v0  ;;  %v3636_v5 = vld [vmem:[%s4741_s0 + $0x200] sm:$0xff]   ;;  %v3633_v8 = vld [vmem:[%s4740_s1 + $0x30] sm:$0xff]   ;;  %v3634_v9 = vld [vmem:[%s4740_s1 + $0x38] sm:$0xff]  }
   0x4   :  { %3341 = vmatprep.subr.bf16.mxu0 %v3628_v1  ;;  %3612 = vmatprep.subr.bf16.mxu1 %v3628_v1  ;;  %v3631_v6 = vld [vmem:[%s4740_s1 + $0x20] sm:$0xff]   ;;  %v3637_v10 = vld [vmem:[%s4741_s0 + $0x8] sm:$0xff]   ;;  %v3639_v12 = vld [vmem:[%s4741_s0 + $0x10] sm:$0xff]  }
   0x5   :  { %3355 = vmatprep.mubr.bf16.mxu0 %v3635_v4  ;;  %3483 = vmatprep.mubr.bf16.mxu1 %v3636_v5  ;;  %v3638_v11 = vld [vmem:[%s4741_s0 + $0x208] sm:$0xff]   ;;  %v3640_v13 = vld [vmem:[%s4741_s0 + $0x210] sm:$0xff]   ;;  %v3641_v14 = vld [vmem:[%s4741_s0 + $0x18] sm:$0xff]  }
   0x6   :  { %v3642_v15 = vld [vmem:[%s4741_s0 + $0x218] sm:$0xff]   ;;  %v3643_v16 = vld [vmem:[%s4741_s0 + $0x20] sm:$0xff]   ;;  %v3645_v18 = vld [vmem:[%s4741_s0 + $0x28] sm:$0xff]  }
   0x7   :  { %3342 = vmatpush3.bf16.msra.mxu0 %v3628_v1  ;;  %3620 = vmatpush3.bf16.msra.mxu1 %v3628_v1  ;;  %v3644_v17 = vld [vmem:[%s4741_s0 + $0x220] sm:$0xff]   ;;  %v3646_v19 = vld [vmem:[%s4741_s0 + $0x228] sm:$0xff]   ;;  %v3647_v20 = vld [vmem:[%s4741_s0 + $0x30] sm:$0xff]  }
   0x8   :  { %3343 = vmatprep.subr.bf16.mxu0 %v3629_v2  ;;  %3613 = vmatprep.subr.bf16.mxu1 %v3629_v2  ;;  %v3648_v21 = vld [vmem:[%s4741_s0 + $0x230] sm:$0xff]   ;;  %v3649_v22 = vld [vmem:[%s4741_s0 + $0x38] sm:$0xff]   ;;  %v3651_v24 = vld [vmem:[%s4741_s0 + $0x40] sm:$0xff]  }
   0x9   :  { %v3650_v23 = vld [vmem:[%s4741_s0 + $0x238] sm:$0xff]   ;;  %v3652_v25 = vld [vmem:[%s4741_s0 + $0x240] sm:$0xff]   ;;  %v3653_v26 = vld [vmem:[%s4741_s0 + $0x48] sm:$0xff]  }
   0xa   :  { %v3654_v27 = vld [vmem:[%s4741_s0 + $0x248] sm:$0xff]   ;;  %v3655_v28 = vld [vmem:[%s4741_s0 + $0x50] sm:$0xff]   ;;  %v3657_v30 = vld [vmem:[%s4741_s0 + $0x58] sm:$0xff]  }
   0xb   :  { %3344 = vmatpush3.bf16.msra.mxu0 %v3629_v2  ;;  %3621 = vmatpush3.bf16.msra.mxu1 %v3629_v2  ;;  %v3656_v29 = vld [vmem:[%s4741_s0 + $0x250] sm:$0xff]   ;;  %v3658_v31 = vld [vmem:[%s4741_s0 + $0x258] sm:$0xff]   ;;  %v3659_v32 = vld [vmem:[%s4741_s0 + $0x60] sm:$0xff]  }
   0xc   :  { %3345 = vmatprep.subr.bf16.mxu0 %v3630_v3  ;;  %3614 = vmatprep.subr.bf16.mxu1 %v3630_v3  ;;  %v3660_v33 = vld [vmem:[%s4741_s0 + $0x260] sm:$0xff]   ;;  %v3661_v34 = vld [vmem:[%s4741_s0 + $0x68] sm:$0xff]   ;;  %v3663_v36 = vld [vmem:[%s4741_s0 + $0x70] sm:$0xff]  }
   0xd   :  { %v3662_v35 = vld [vmem:[%s4741_s0 + $0x268] sm:$0xff]   ;;  %v3664_v37 = vld [vmem:[%s4741_s0 + $0x270] sm:$0xff]   ;;  %v3665_v38 = vld [vmem:[%s4741_s0 + $0x78] sm:$0xff]  }
   0xe   :  { %v3666_v39 = vld [vmem:[%s4741_s0 + $0x278] sm:$0xff]   ;;  %v3667_v40 = vld [vmem:[%s4741_s0 + $0x80] sm:$0xff]   ;;  %v3669_v42 = vld [vmem:[%s4741_s0 + $0x88] sm:$0xff]  }
   0xf   :  { %3346 = vmatpush3.bf16.msra.mxu0 %v3630_v3  ;;  %3622 = vmatpush3.bf16.msra.mxu1 %v3630_v3  ;;  %v3668_v41 = vld [vmem:[%s4741_s0 + $0x280] sm:$0xff]   ;;  %v3670_v43 = vld [vmem:[%s4741_s0 + $0x288] sm:$0xff]   ;;  %v3671_v44 = vld [vmem:[%s4741_s0 + $0x90] sm:$0xff]  }
  0x10   :  { %3347 = vmatprep.subr.bf16.mxu0 %v3631_v6  ;;  %3615 = vmatprep.subr.bf16.mxu1 %v3631_v6  ;;  %v3672_v45 = vld [vmem:[%s4741_s0 + $0x290] sm:$0xff]   ;;  %v3673_v46 = vld [vmem:[%s4741_s0 + $0x98] sm:$0xff]   ;;  %v3675_v48 = vld [vmem:[%s4741_s0 + $0xa0] sm:$0xff]  }
  0x11   :  { %v3674_v47 = vld [vmem:[%s4741_s0 + $0x298] sm:$0xff]   ;;  %v3676_v49 = vld [vmem:[%s4741_s0 + $0x2a0] sm:$0xff]   ;;  %v3677_v50 = vld [vmem:[%s4741_s0 + $0xa8] sm:$0xff]  }
  0x12   :  { %v3678_v51 = vld [vmem:[%s4741_s0 + $0x2a8] sm:$0xff]   ;;  %v3679_v52 = vld [vmem:[%s4741_s0 + $0xb0] sm:$0xff]   ;;  %v3681_v54 = vld [vmem:[%s4741_s0 + $0xb8] sm:$0xff]  }
  0x13   :  { %3348 = vmatpush3.bf16.msra.mxu0 %v3631_v6  ;;  %3623 = vmatpush3.bf16.msra.mxu1 %v3631_v6  ;;  %v3680_v53 = vld [vmem:[%s4741_s0 + $0x2b0] sm:$0xff]   ;;  %v3682_v55 = vld [vmem:[%s4741_s0 + $0x2b8] sm:$0xff]   ;;  %v3683_v56 = vld [vmem:[%s4741_s0 + $0xc0] sm:$0xff]  }
  0x14   :  { %3349 = vmatprep.subr.bf16.mxu0 %v3632_v7  ;;  %3616 = vmatprep.subr.bf16.mxu1 %v3632_v7  ;;  %v3684_v57 = vld [vmem:[%s4741_s0 + $0x2c0] sm:$0xff]   ;;  %v3685_v58 = vld [vmem:[%s4741_s0 + $0xc8] sm:$0xff]   ;;  %v3687_v60 = vld [vmem:[%s4741_s0 + $0xd0] sm:$0xff]  }
  0x15   :  { %v3686_v59 = vld [vmem:[%s4741_s0 + $0x2c8] sm:$0xff]   ;;  %v3688_v61 = vld [vmem:[%s4741_s0 + $0x2d0] sm:$0xff]   ;;  %v3689_v62 = vld [vmem:[%s4741_s0 + $0xd8] sm:$0xff]  }
  0x16   :  { %v3690_v63 = vld [vmem:[%s4741_s0 + $0x2d8] sm:$0xff]   ;;  %v3691_v0 = vld [vmem:[%s4741_s0 + $0xe0] sm:$0xff]   ;;  %v3693_v2 = vld [vmem:[%s4741_s0 + $0xe8] sm:$0xff]  }
  0x17   :  { %3350 = vmatpush3.bf16.msra.mxu0 %v3632_v7  ;;  %3624 = vmatpush3.bf16.msra.mxu1 %v3632_v7  ;;  %v3692_v1 = vld [vmem:[%s4741_s0 + $0x2e0] sm:$0xff]   ;;  %v3694_v3 = vld [vmem:[%s4741_s0 + $0x2e8] sm:$0xff]   ;;  %v3695_v4 = vld [vmem:[%s4741_s0 + $0xf0] sm:$0xff]  }
  0x18   :  { %3351 = vmatprep.subr.bf16.mxu0 %v3633_v8  ;;  %3617 = vmatprep.subr.bf16.mxu1 %v3633_v8  ;;  %v3696_v5 = vld [vmem:[%s4741_s0 + $0x2f0] sm:$0xff]   ;;  %v3697_v6 = vld [vmem:[%s4741_s0 + $0xf8] sm:$0xff]  }
  0x19   :  { %v3698_v7 = vld [vmem:[%s4741_s0 + $0x2f8] sm:$0xff]  }
  0x1b   :  { %3352 = vmatpush3.bf16.msra.mxu0 %v3633_v8  ;;  %3625 = vmatpush3.bf16.msra.mxu1 %v3633_v8  ;;  %v3699_v8 = vld [vmem:[%s4741_s0 + $0x100] sm:$0xff]  }
  0x1c   :  { %3353 = vmatprep.subr.bf16.mxu0 %v3634_v9  ;;  %3618 = vmatprep.subr.bf16.mxu1 %v3634_v9 }
  0x1f   :  { %3354 = vmatpush3.bf16.msra.mxu0 %v3634_v9  ;;  %3626 = vmatpush3.bf16.msra.mxu1 %v3634_v9  ;;  %v3700_v9 = vld [vmem:[%s4741_s0 + $0x300] sm:$0xff]  }
  0x22   :  { %3356 = vmatmul.mubr.bf16.vlgmr.msra.gmra.mrb[0].mxu0 %v3637_v10  ;;  %3484 = vmatmul.mubr.bf16.vlgmr.msra.gmra.mrb[0].mxu1 %v3638_v11  ;;  %v3701_v10 = vld [vmem:[%s4741_s0 + $0x108] sm:$0xff]  }
  0x23   :  { %3359 = vmatprep.mubr.bf16.mxu0 %v3639_v12  ;;  %3487 = vmatprep.mubr.bf16.mxu1 %v3640_v13  ;;  %v3702_v11 = vld [vmem:[%s4741_s0 + $0x308] sm:$0xff]   ;;  %v3703_v12 = vld [vmem:[%s4741_s0 + $0x110] sm:$0xff]  }
  0x24   :  { %v3704_v13 = vld [vmem:[%s4741_s0 + $0x310] sm:$0xff]  }
  0x2a   :  { %3360 = vmatmul.mubr.bf16.gmra.mrb[4].mxu0 %v3641_v14  ;;  %3488 = vmatmul.mubr.bf16.gmra.mrb[4].mxu1 %v3642_v15  ;;  %v3705_v14 = vld [vmem:[%s4741_s0 + $0x118] sm:$0xff]  }
  0x2b   :  { %3363 = vmatprep.mubr.bf16.mxu0 %v3643_v16  ;;  %3491 = vmatprep.mubr.bf16.mxu1 %v3644_v17  ;;  %v3706_v15 = vld [vmem:[%s4741_s0 + $0x318] sm:$0xff]   ;;  %v3707_v16 = vld [vmem:[%s4741_s0 + $0x120] sm:$0xff]  }
  0x2c   :  { %v3708_v17 = vld [vmem:[%s4741_s0 + $0x320] sm:$0xff]  }
  0x32   :  { %3364 = vmatmul.mubr.bf16.gmra.mrb[8].mxu0 %v3645_v18  ;;  %3492 = vmatmul.mubr.bf16.gmra.mrb[8].mxu1 %v3646_v19  ;;  %v3709_v18 = vld [vmem:[%s4741_s0 + $0x128] sm:$0xff]  }
  0x33   :  { %3367 = vmatprep.mubr.bf16.mxu0 %v3647_v20  ;;  %3495 = vmatprep.mubr.bf16.mxu1 %v3648_v21  ;;  %v3710_v19 = vld [vmem:[%s4741_s0 + $0x328] sm:$0xff]   ;;  %v3711_v20 = vld [vmem:[%s4741_s0 + $0x130] sm:$0xff]  }
  0x34   :  { %v3712_v21 = vld [vmem:[%s4741_s0 + $0x330] sm:$0xff]  }
  0x3a   :  { %3368 = vmatmul.mubr.bf16.gmra.mrb[12].mxu0 %v3649_v22  ;;  %3496 = vmatmul.mubr.bf16.gmra.mrb[12].mxu1 %v3650_v23  ;;  %v3713_v22 = vld [vmem:[%s4741_s0 + $0x138] sm:$0xff]  }
  0x3b   :  { %3371 = vmatprep.mubr.bf16.mxu0 %v3651_v24  ;;  %3499 = vmatprep.mubr.bf16.mxu1 %v3652_v25  ;;  %v3714_v23 = vld [vmem:[%s4741_s0 + $0x338] sm:$0xff]   ;;  %v3715_v24 = vld [vmem:[%s4741_s0 + $0x140] sm:$0xff]  }
  0x3c   :  { %v3716_v25 = vld [vmem:[%s4741_s0 + $0x340] sm:$0xff]  }
  0x42   :  { %3372 = vmatmul.mubr.bf16.gmra.mrb[16].mxu0 %v3653_v26  ;;  %3500 = vmatmul.mubr.bf16.gmra.mrb[16].mxu1 %v3654_v27  ;;  %v3717_v26 = vld [vmem:[%s4741_s0 + $0x148] sm:$0xff]  }
  0x43   :  { %3375 = vmatprep.mubr.bf16.mxu0 %v3655_v28  ;;  %3503 = vmatprep.mubr.bf16.mxu1 %v3656_v29  ;;  %v3718_v27 = vld [vmem:[%s4741_s0 + $0x348] sm:$0xff]   ;;  %v3719_v28 = vld [vmem:[%s4741_s0 + $0x150] sm:$0xff]  }
  0x44   :  { %v3720_v29 = vld [vmem:[%s4741_s0 + $0x350] sm:$0xff]  }
  0x4a   :  { %3376 = vmatmul.mubr.bf16.gmra.mrb[20].mxu0 %v3657_v30  ;;  %3504 = vmatmul.mubr.bf16.gmra.mrb[20].mxu1 %v3658_v31  ;;  %v3721_v30 = vld [vmem:[%s4741_s0 + $0x158] sm:$0xff]  }
  0x4b   :  { %3379 = vmatprep.mubr.bf16.mxu0 %v3659_v32  ;;  %3507 = vmatprep.mubr.bf16.mxu1 %v3660_v33  ;;  %v3722_v31 = vld [vmem:[%s4741_s0 + $0x358] sm:$0xff]   ;;  %v3723_v32 = vld [vmem:[%s4741_s0 + $0x160] sm:$0xff]  }
  0x4c   :  { %v3724_v33 = vld [vmem:[%s4741_s0 + $0x360] sm:$0xff]  }
  0x52   :  { %3380 = vmatmul.mubr.bf16.gmra.mrb[24].mxu0 %v3661_v34  ;;  %3508 = vmatmul.mubr.bf16.gmra.mrb[24].mxu1 %v3662_v35  ;;  %v3725_v34 = vld [vmem:[%s4741_s0 + $0x168] sm:$0xff]  }
  0x53   :  { %3383 = vmatprep.mubr.bf16.mxu0 %v3663_v36  ;;  %3511 = vmatprep.mubr.bf16.mxu1 %v3664_v37  ;;  %v3726_v35 = vld [vmem:[%s4741_s0 + $0x368] sm:$0xff]   ;;  %v3727_v36 = vld [vmem:[%s4741_s0 + $0x170] sm:$0xff]  }
  0x54   :  { %v3728_v37 = vld [vmem:[%s4741_s0 + $0x370] sm:$0xff]  }
  0x5a   :  { %3384 = vmatmul.mubr.bf16.gmra.mrb[28].mxu0 %v3665_v38  ;;  %3512 = vmatmul.mubr.bf16.gmra.mrb[28].mxu1 %v3666_v39  ;;  %v3729_v38 = vld [vmem:[%s4741_s0 + $0x178] sm:$0xff]  }
  0x5b   :  { %3387 = vmatprep.mubr.bf16.mxu0 %v3667_v40  ;;  %3515 = vmatprep.mubr.bf16.mxu1 %v3668_v41  ;;  %v3730_v39 = vld [vmem:[%s4741_s0 + $0x378] sm:$0xff]   ;;  %v3731_v40 = vld [vmem:[%s4741_s0 + $0x180] sm:$0xff]  }
  0x5c   :  { %v3732_v41 = vld [vmem:[%s4741_s0 + $0x380] sm:$0xff]  }
  0x62   :  { %3388 = vmatmul.mubr.bf16.gmra.mrb[32].mxu0 %v3669_v42  ;;  %3516 = vmatmul.mubr.bf16.gmra.mrb[32].mxu1 %v3670_v43  ;;  %v3733_v42 = vld [vmem:[%s4741_s0 + $0x188] sm:$0xff]  }
  0x63   :  { %3391 = vmatprep.mubr.bf16.mxu0 %v3671_v44  ;;  %3519 = vmatprep.mubr.bf16.mxu1 %v3672_v45  ;;  %v3734_v43 = vld [vmem:[%s4741_s0 + $0x388] sm:$0xff]   ;;  %v3735_v44 = vld [vmem:[%s4741_s0 + $0x190] sm:$0xff]  }
  0x64   :  { %v3736_v45 = vld [vmem:[%s4741_s0 + $0x390] sm:$0xff]  }
  0x6a   :  { %3392 = vmatmul.mubr.bf16.gmra.mrb[36].mxu0 %v3673_v46  ;;  %3520 = vmatmul.mubr.bf16.gmra.mrb[36].mxu1 %v3674_v47  ;;  %v3737_v46 = vld [vmem:[%s4741_s0 + $0x198] sm:$0xff]  }
  0x6b   :  { %3395 = vmatprep.mubr.bf16.mxu0 %v3675_v48  ;;  %3523 = vmatprep.mubr.bf16.mxu1 %v3676_v49  ;;  %v3738_v47 = vld [vmem:[%s4741_s0 + $0x398] sm:$0xff]   ;;  %v3739_v48 = vld [vmem:[%s4741_s0 + $0x1a0] sm:$0xff]  }
  0x6c   :  { %v3740_v49 = vld [vmem:[%s4741_s0 + $0x3a0] sm:$0xff]  }
  0x72   :  { %3396 = vmatmul.mubr.bf16.gmra.mrb[40].mxu0 %v3677_v50  ;;  %3524 = vmatmul.mubr.bf16.gmra.mrb[40].mxu1 %v3678_v51  ;;  %v3741_v50 = vld [vmem:[%s4741_s0 + $0x1a8] sm:$0xff]  }
  0x73   :  { %3399 = vmatprep.mubr.bf16.mxu0 %v3679_v52  ;;  %3527 = vmatprep.mubr.bf16.mxu1 %v3680_v53  ;;  %v3742_v51 = vld [vmem:[%s4741_s0 + $0x3a8] sm:$0xff]   ;;  %v3743_v52 = vld [vmem:[%s4741_s0 + $0x1b0] sm:$0xff]  }
  0x74   :  { %v3744_v53 = vld [vmem:[%s4741_s0 + $0x3b0] sm:$0xff]  }
  0x7a   :  { %3400 = vmatmul.mubr.bf16.gmra.mrb[44].mxu0 %v3681_v54  ;;  %3528 = vmatmul.mubr.bf16.gmra.mrb[44].mxu1 %v3682_v55 }
  0x7b   :  { %3403 = vmatprep.mubr.bf16.mxu0 %v3683_v56  ;;  %3531 = vmatprep.mubr.bf16.mxu1 %v3684_v57 }
  0x82   :  { %3404 = vmatmul.mubr.bf16.gmra.mrb[48].mxu0 %v3685_v58  ;;  %3532 = vmatmul.mubr.bf16.gmra.mrb[48].mxu1 %v3686_v59  ;;  %v3745_v58 = vld [vmem:[%s4741_s0 + $0x1b8] sm:$0xff]  }
  0x83   :  { %3407 = vmatprep.mubr.bf16.mxu0 %v3687_v60  ;;  %3535 = vmatprep.mubr.bf16.mxu1 %v3688_v61  ;;  %v3746_v59 = vld [vmem:[%s4741_s0 + $0x3b8] sm:$0xff]  }
  0x8a   :  { %3408 = vmatmul.mubr.bf16.gmra.mrb[52].mxu0 %v3689_v62  ;;  %3536 = vmatmul.mubr.bf16.gmra.mrb[52].mxu1 %v3690_v63  ;;  %v3747_v62 = vld [vmem:[%s4741_s0 + $0x1c0] sm:$0xff]  }
  0x8b   :  { %3411 = vmatprep.mubr.bf16.mxu0 %v3691_v0  ;;  %3539 = vmatprep.mubr.bf16.mxu1 %v3692_v1  ;;  %v3748_v63 = vld [vmem:[%s4741_s0 + $0x3c0] sm:$0xff]  }
  0x92   :  { %3412 = vmatmul.mubr.bf16.gmra.mrb[56].mxu0 %v3693_v2  ;;  %3540 = vmatmul.mubr.bf16.gmra.mrb[56].mxu1 %v3694_v3 }
  0x93   :  { %3415 = vmatprep.mubr.bf16.mxu0 %v3695_v4  ;;  %3543 = vmatprep.mubr.bf16.mxu1 %v3696_v5 }
  0x9a   :  { %3416 = vmatmul.mubr.bf16.gmra.mrb[60].mxu0 %v3697_v6  ;;  %3544 = vmatmul.mubr.bf16.gmra.mrb[60].mxu1 %v3698_v7  ;;  %v3749_v6 = vld [vmem:[%s4741_s0 + $0x1c8] sm:$0xff]  }
  0x9b   :  { %3419 = vmatprep.mubr.bf16.mxu0 %v3699_v8  ;;  %3547 = vmatprep.mubr.bf16.mxu1 %v3700_v9  ;;  %v3750_v7 = vld [vmem:[%s4741_s0 + $0x3c8] sm:$0xff]  }
  0xa2   :  { %3420 = vmatmul.mubr.bf16.gmra.mrb[64].mxu0 %v3701_v10  ;;  %3548 = vmatmul.mubr.bf16.gmra.mrb[64].mxu1 %v3702_v11  ;;  %v3751_v10 = vld [vmem:[%s4741_s0 + $0x1d0] sm:$0xff]  }
  0xa3   :  { %3423 = vmatprep.mubr.bf16.mxu0 %v3703_v12  ;;  %3551 = vmatprep.mubr.bf16.mxu1 %v3704_v13  ;;  %v3752_v11 = vld [vmem:[%s4741_s0 + $0x3d0] sm:$0xff]  }
  0xaa   :  { %3424 = vmatmul.mubr.bf16.gmra.mrb[68].mxu0 %v3705_v14  ;;  %3552 = vmatmul.mubr.bf16.gmra.mrb[68].mxu1 %v3706_v15 }
  0xab   :  { %3427 = vmatprep.mubr.bf16.mxu0 %v3707_v16  ;;  %3555 = vmatprep.mubr.bf16.mxu1 %v3708_v17 }
  0xb2   :  { %3428 = vmatmul.mubr.bf16.gmra.mrb[72].mxu0 %v3709_v18  ;;  %3556 = vmatmul.mubr.bf16.gmra.mrb[72].mxu1 %v3710_v19  ;;  %v3753_v18 = vld [vmem:[%s4741_s0 + $0x1d8] sm:$0xff]  }
  0xb3   :  { %3431 = vmatprep.mubr.bf16.mxu0 %v3711_v20  ;;  %3559 = vmatprep.mubr.bf16.mxu1 %v3712_v21  ;;  %v3754_v19 = vld [vmem:[%s4741_s0 + $0x3d8] sm:$0xff]  }
  0xba   :  { %3432 = vmatmul.mubr.bf16.gmra.mrb[76].mxu0 %v3713_v22  ;;  %3560 = vmatmul.mubr.bf16.gmra.mrb[76].mxu1 %v3714_v23  ;;  %v3755_v22 = vld [vmem:[%s4741_s0 + $0x1e0] sm:$0xff]  }
  0xbb   :  { %3435 = vmatprep.mubr.bf16.mxu0 %v3715_v24  ;;  %3563 = vmatprep.mubr.bf16.mxu1 %v3716_v25  ;;  %v3756_v23 = vld [vmem:[%s4741_s0 + $0x3e0] sm:$0xff]  }
  0xc2   :  { %3436 = vmatmul.mubr.bf16.gmra.mrb[80].mxu0 %v3717_v26  ;;  %3564 = vmatmul.mubr.bf16.gmra.mrb[80].mxu1 %v3718_v27 }
  0xc3   :  { %3439 = vmatprep.mubr.bf16.mxu0 %v3719_v28  ;;  %3567 = vmatprep.mubr.bf16.mxu1 %v3720_v29 }
  0xca   :  { %3440 = vmatmul.mubr.bf16.gmra.mrb[84].mxu0 %v3721_v30  ;;  %3568 = vmatmul.mubr.bf16.gmra.mrb[84].mxu1 %v3722_v31  ;;  %v3757_v30 = vld [vmem:[%s4741_s0 + $0x1e8] sm:$0xff]  }
  0xcb   :  { %3443 = vmatprep.mubr.bf16.mxu0 %v3723_v32  ;;  %3571 = vmatprep.mubr.bf16.mxu1 %v3724_v33  ;;  %v3758_v31 = vld [vmem:[%s4741_s0 + $0x3e8] sm:$0xff]  }
  0xd2   :  { %3444 = vmatmul.mubr.bf16.gmra.mrb[88].mxu0 %v3725_v34  ;;  %3572 = vmatmul.mubr.bf16.gmra.mrb[88].mxu1 %v3726_v35  ;;  %v3759_v34 = vld [vmem:[%s4741_s0 + $0x1f0] sm:$0xff]  }
  0xd3   :  { %3447 = vmatprep.mubr.bf16.mxu0 %v3727_v36  ;;  %3575 = vmatprep.mubr.bf16.mxu1 %v3728_v37  ;;  %v3760_v35 = vld [vmem:[%s4741_s0 + $0x3f0] sm:$0xff]  }
  0xda   :  { %3448 = vmatmul.mubr.bf16.gmra.mrb[92].mxu0 %v3729_v38  ;;  %3576 = vmatmul.mubr.bf16.gmra.mrb[92].mxu1 %v3730_v39 }
  0xdb   :  { %3451 = vmatprep.mubr.bf16.mxu0 %v3731_v40  ;;  %3579 = vmatprep.mubr.bf16.mxu1 %v3732_v41 }
  0xe2   :  { %3452 = vmatmul.mubr.bf16.gmra.mrb[96].mxu0 %v3733_v42  ;;  %3580 = vmatmul.mubr.bf16.gmra.mrb[96].mxu1 %v3734_v43  ;;  %v3761_v42 = vld [vmem:[%s4741_s0 + $0x1f8] sm:$0xff]  }
  0xe3   :  { %3455 = vmatprep.mubr.bf16.mxu0 %v3735_v44  ;;  %3583 = vmatprep.mubr.bf16.mxu1 %v3736_v45  ;;  %v3762_v43 = vld [vmem:[%s4741_s0 + $0x3f8] sm:$0xff]  }
  0xea   :  { %3456 = vmatmul.mubr.bf16.gmra.mrb[100].mxu0 %v3737_v46  ;;  %3584 = vmatmul.mubr.bf16.gmra.mrb[100].mxu1 %v3738_v47 }
  0xeb   :  { %3459 = vmatprep.mubr.bf16.mxu0 %v3739_v48  ;;  %3587 = vmatprep.mubr.bf16.mxu1 %v3740_v49 }
  0xf2   :  { %3460 = vmatmul.mubr.bf16.gmra.mrb[104].mxu0 %v3741_v50  ;;  %3588 = vmatmul.mubr.bf16.gmra.mrb[104].mxu1 %v3742_v51 }
  0xf3   :  { %3463 = vmatprep.mubr.bf16.mxu0 %v3743_v52  ;;  %3591 = vmatprep.mubr.bf16.mxu1 %v3744_v53 }
  0xf5   :  { %v4137_v54 = vpop.f32.mrb[0].mxu0  ;;  %v4139_v55 = vpop.f32.mrb[0].mxu1 }
  0xf6   :  { %v4141_v56 = vpop.f32.mrb[1].mxu0  ;;  %v4143_v57 = vpop.f32.mrb[1].mxu1 }
  0xf7   :  { %v4151_v60 = vpop.f32.mrb[2].mxu0  ;;  %v4153_v61 = vpop.f32.mrb[2].mxu1 }
  0xf8   :  { %v4161_v0 = vpop.f32.mrb[3].mxu0  ;;  %v4163_v1 = vpop.f32.mrb[3].mxu1 }
  0xfa   :  { %3464 = vmatmul.mubr.bf16.gmra.mrb[108].mxu0 %v3745_v58  ;;  %3592 = vmatmul.mubr.bf16.gmra.mrb[108].mxu1 %v3746_v59 }
  0xfb   :  { %3467 = vmatprep.mubr.bf16.mxu0 %v3747_v62  ;;  %3595 = vmatprep.mubr.bf16.mxu1 %v3748_v63 }
  0xfd   :  { %v4165_v2 = vpop.f32.mrb[4].mxu0  ;;  %v4167_v3 = vpop.f32.mrb[4].mxu1 }
  0xfe   :  { %v4169_v4 = vpop.f32.mrb[5].mxu0  ;;  %v4171_v5 = vpop.f32.mrb[5].mxu1 }
  0xff   :  { %v4179_v8 = vpop.f32.mrb[6].mxu0  ;;  %v4181_v9 = vpop.f32.mrb[6].mxu1 }
 0x100   :  { %v4189_v12 = vpop.f32.mrb[7].mxu0  ;;  %v4191_v13 = vpop.f32.mrb[7].mxu1 }
 0x102   :  { %3468 = vmatmul.mubr.bf16.gmra.mrb[112].mxu0 %v3749_v6  ;;  %3596 = vmatmul.mubr.bf16.gmra.mrb[112].mxu1 %v3750_v7 }
 0x103   :  { %3471 = vmatprep.mubr.bf16.mxu0 %v3751_v10  ;;  %3599 = vmatprep.mubr.bf16.mxu1 %v3752_v11 }
 0x105   :  { %v4193_v14 = vpop.f32.mrb[8].mxu0  ;;  %v4195_v15 = vpop.f32.mrb[8].mxu1 }
 0x106   :  { %v4197_v16 = vpop.f32.mrb[9].mxu0  ;;  %v4199_v17 = vpop.f32.mrb[9].mxu1 }
 0x107   :  { %v4207_v20 = vpop.f32.mrb[10].mxu0  ;;  %v4209_v21 = vpop.f32.mrb[10].mxu1 }
 0x108   :  { %v4217_v24 = vpop.f32.mrb[11].mxu0  ;;  %v4219_v25 = vpop.f32.mrb[11].mxu1 }
 0x10a   :  { %3472 = vmatmul.mubr.bf16.gmra.mrb[116].mxu0 %v3753_v18  ;;  %3600 = vmatmul.mubr.bf16.gmra.mrb[116].mxu1 %v3754_v19 }
 0x10b   :  { %3475 = vmatprep.mubr.bf16.mxu0 %v3755_v22  ;;  %3603 = vmatprep.mubr.bf16.mxu1 %v3756_v23 }
 0x10d   :  { %v4221_v26 = vpop.f32.mrb[12].mxu0  ;;  %v4223_v27 = vpop.f32.mrb[12].mxu1 }
 0x10e   :  { %v4225_v28 = vpop.f32.mrb[13].mxu0  ;;  %v4227_v29 = vpop.f32.mrb[13].mxu1 }
 0x10f   :  { %v4235_v32 = vpop.f32.mrb[14].mxu0  ;;  %v4237_v33 = vpop.f32.mrb[14].mxu1 }
 0x110   :  { %v4245_v36 = vpop.f32.mrb[15].mxu0  ;;  %v4247_v37 = vpop.f32.mrb[15].mxu1 }
 0x112   :  { %3476 = vmatmul.mubr.bf16.gmra.mrb[120].mxu0 %v3757_v30  ;;  %3604 = vmatmul.mubr.bf16.gmra.mrb[120].mxu1 %v3758_v31 }
 0x113   :  { %3479 = vmatprep.mubr.bf16.mxu0 %v3759_v34  ;;  %3607 = vmatprep.mubr.bf16.mxu1 %v3760_v35 }
 0x115   :  { %v4249_v38 = vpop.f32.mrb[16].mxu0  ;;  %v4251_v39 = vpop.f32.mrb[16].mxu1 }
 0x116   :  { %v4253_v40 = vpop.f32.mrb[17].mxu0  ;;  %v4255_v41 = vpop.f32.mrb[17].mxu1 }
 0x117   :  { %v4263_v44 = vpop.f32.mrb[18].mxu0  ;;  %v4265_v45 = vpop.f32.mrb[18].mxu1 }
 0x118   :  { %v4267_v46 = vpop.f32.mrb[19].mxu0  ;;  %v4269_v47 = vpop.f32.mrb[19].mxu1 }
 0x11a   :  { %3480 = vmatmul.mubr.bf16.gmra.mrb[124].mxu0 %v3761_v42  ;;  %3608 = vmatmul.mubr.bf16.gmra.mrb[124].mxu1 %v3762_v43 }
 0x11d   :  { %v4271_v48 = vpop.f32.mrb[20].mxu0  ;;  %v4273_v49 = vpop.f32.mrb[20].mxu1 }
 0x11e   :  { %v4275_v50 = vpop.f32.mrb[21].mxu0  ;;  %v4277_v51 = vpop.f32.mrb[21].mxu1 }
 0x11f   :  { %v4279_v52 = vpop.f32.mrb[22].mxu0  ;;  %v4281_v53 = vpop.f32.mrb[22].mxu1 }
 0x120   :  { %v4283_v58 = vpop.f32.mrb[23].mxu0  ;;  %v4285_v59 = vpop.f32.mrb[23].mxu1 }
 0x125   :  { %v4287_v62 = vpop.f32.mrb[24].mxu0  ;;  %v4289_v63 = vpop.f32.mrb[24].mxu1 }
 0x126   :  { %4744 = vst [vmem:[#allocation2_spill] sm:$0xff] %v4289_v63  ;;  %v4291_v6 = vpop.f32.mrb[25].mxu0  ;;  %v4293_v7 = vpop.f32.mrb[25].mxu1 }
 0x127   :  { %4745 = vst [vmem:[#allocation3_spill] sm:$0xff] %v4291_v6  ;;  %4746 = vst [vmem:[#allocation4_spill] sm:$0xff] %v4293_v7  ;;  %v4295_v10 = vpop.f32.mrb[26].mxu0  ;;  %v4297_v11 = vpop.f32.mrb[26].mxu1 }
 0x128   :  { %4747 = vst [vmem:[#allocation5_spill] sm:$0xff] %v4295_v10  ;;  %4748 = vst [vmem:[#allocation6_spill] sm:$0xff] %v4297_v11  ;;  %v4299_v18 = vpop.f32.mrb[27].mxu0  ;;  %v4301_v19 = vpop.f32.mrb[27].mxu1 }
 0x129   :  { %4749 = vst [vmem:[#allocation7_spill] sm:$0xff] %v4299_v18  ;;  %4750 = vst [vmem:[#allocation8_spill] sm:$0xff] %v4301_v19 }
 0x12d   :  { %v4303_v22 = vpop.f32.mrb[28].mxu0  ;;  %v4305_v23 = vpop.f32.mrb[28].mxu1 }
 0x12e   :  { %4751 = vst [vmem:[#allocation9_spill] sm:$0xff] %v4303_v22  ;;  %4752 = vst [vmem:[#allocation10_spill] sm:$0xff] %v4305_v23  ;;  %v4307_v30 = vpop.f32.mrb[29].mxu0  ;;  %v4309_v31 = vpop.f32.mrb[29].mxu1 }
 0x12f   :  { %4753 = vst [vmem:[#allocation11_spill] sm:$0xff] %v4307_v30  ;;  %4754 = vst [vmem:[#allocation12_spill] sm:$0xff] %v4309_v31  ;;  %v4311_v34 = vpop.f32.mrb[30].mxu0  ;;  %v4313_v35 = vpop.f32.mrb[30].mxu1 }
 0x130   :  { %4755 = vst [vmem:[#allocation13_spill] sm:$0xff] %v4311_v34  ;;  %4756 = vst [vmem:[#allocation14_spill] sm:$0xff] %v4313_v35  ;;  %v4315_v42 = vpop.f32.mrb[31].mxu0  ;;  %v4317_v43 = vpop.f32.mrb[31].mxu1 }
 0x131   :  { %4757 = vst [vmem:[#allocation15_spill] sm:$0xff] %v4315_v42  ;;  %4758 = vst [vmem:[#allocation16_spill] sm:$0xff] %v4317_v43 }
 0x135   :  { %v4319_v11 = vpop.f32.mrb[32].mxu0  ;;  %v4321_v18 = vpop.f32.mrb[32].mxu1 }
 0x136   :  { %4759 = vst [vmem:[#allocation17_spill] sm:$0xff] %v4319_v11  ;;  %4760 = vst [vmem:[#allocation18_spill] sm:$0xff] %v4321_v18  ;;  %v4323_v19 = vpop.f32.mrb[33].mxu0  ;;  %v4325_v22 = vpop.f32.mrb[33].mxu1 }
 0x137   :  { %4761 = vst [vmem:[#allocation19_spill] sm:$0xff] %v4323_v19  ;;  %4762 = vst [vmem:[#allocation20_spill] sm:$0xff] %v4325_v22  ;;  %v4327_v23 = vpop.f32.mrb[34].mxu0  ;;  %v4329_v30 = vpop.f32.mrb[34].mxu1 }
 0x138   :  { %4763 = vst [vmem:[#allocation21_spill] sm:$0xff] %v4327_v23  ;;  %4764 = vst [vmem:[#allocation22_spill] sm:$0xff] %v4329_v30  ;;  %v4331_v31 = vpop.f32.mrb[35].mxu0  ;;  %v4333_v34 = vpop.f32.mrb[35].mxu1 }
 0x139   :  { %4765 = vst [vmem:[#allocation23_spill] sm:$0xff] %v4331_v31  ;;  %4766 = vst [vmem:[#allocation24_spill] sm:$0xff] %v4333_v34 }
 0x13d   :  { %v4335_v35 = vpop.f32.mrb[36].mxu0  ;;  %v4337_v42 = vpop.f32.mrb[36].mxu1 }
 0x13e   :  { %4767 = vst [vmem:[#allocation25_spill] sm:$0xff] %v4335_v35  ;;  %4768 = vst [vmem:[#allocation26_spill] sm:$0xff] %v4337_v42  ;;  %v4339_v43 = vpop.f32.mrb[37].mxu0  ;;  %v4341_v11 = vpop.f32.mrb[37].mxu1 }
 0x13f   :  { %4769 = vst [vmem:[#allocation27_spill] sm:$0xff] %v4339_v43  ;;  %4770 = vst [vmem:[#allocation28_spill] sm:$0xff] %v4341_v11  ;;  %v4343_v18 = vpop.f32.mrb[38].mxu0  ;;  %v4345_v19 = vpop.f32.mrb[38].mxu1 }
 0x140   :  { %4771 = vst [vmem:[#allocation29_spill] sm:$0xff] %v4343_v18  ;;  %4772 = vst [vmem:[#allocation30_spill] sm:$0xff] %v4345_v19  ;;  %v4347_v22 = vpop.f32.mrb[39].mxu0  ;;  %v4349_v23 = vpop.f32.mrb[39].mxu1 }
 0x141   :  { %4773 = vst [vmem:[#allocation31_spill] sm:$0xff] %v4347_v22  ;;  %4774 = vst [vmem:[#allocation32_spill] sm:$0xff] %v4349_v23 }
 0x145   :  { %v4351_v30 = vpop.f32.mrb[40].mxu0  ;;  %v4353_v31 = vpop.f32.mrb[40].mxu1 }
 0x146   :  { %4775 = vst [vmem:[#allocation33_spill] sm:$0xff] %v4351_v30  ;;  %4776 = vst [vmem:[#allocation34_spill] sm:$0xff] %v4353_v31  ;;  %v4355_v34 = vpop.f32.mrb[41].mxu0  ;;  %v4357_v35 = vpop.f32.mrb[41].mxu1 }
 0x147   :  { %4777 = vst [vmem:[#allocation35_spill] sm:$0xff] %v4355_v34  ;;  %4778 = vst [vmem:[#allocation36_spill] sm:$0xff] %v4357_v35  ;;  %v4359_v42 = vpop.f32.mrb[42].mxu0  ;;  %v4361_v43 = vpop.f32.mrb[42].mxu1 }
 0x148   :  { %4779 = vst [vmem:[#allocation37_spill] sm:$0xff] %v4359_v42  ;;  %4780 = vst [vmem:[#allocation38_spill] sm:$0xff] %v4361_v43  ;;  %v4363_v11 = vpop.f32.mrb[43].mxu0  ;;  %v4365_v18 = vpop.f32.mrb[43].mxu1 }
 0x149   :  { %4781 = vst [vmem:[#allocation39_spill] sm:$0xff] %v4363_v11  ;;  %4782 = vst [vmem:[#allocation40_spill] sm:$0xff] %v4365_v18 }
 0x14d   :  { %v4367_v19 = vpop.f32.mrb[44].mxu0  ;;  %v4369_v22 = vpop.f32.mrb[44].mxu1 }
 0x14e   :  { %4783 = vst [vmem:[#allocation41_spill] sm:$0xff] %v4367_v19  ;;  %4784 = vst [vmem:[#allocation42_spill] sm:$0xff] %v4369_v22  ;;  %v4371_v23 = vpop.f32.mrb[45].mxu0  ;;  %v4373_v30 = vpop.f32.mrb[45].mxu1 }
 0x14f   :  { %4785 = vst [vmem:[#allocation43_spill] sm:$0xff] %v4371_v23  ;;  %4786 = vst [vmem:[#allocation44_spill] sm:$0xff] %v4373_v30  ;;  %v4375_v31 = vpop.f32.mrb[46].mxu0  ;;  %v4377_v34 = vpop.f32.mrb[46].mxu1 }
 0x150   :  { %4787 = vst [vmem:[#allocation45_spill] sm:$0xff] %v4375_v31  ;;  %4788 = vst [vmem:[#allocation46_spill] sm:$0xff] %v4377_v34  ;;  %v4379_v35 = vpop.f32.mrb[47].mxu0  ;;  %v4381_v42 = vpop.f32.mrb[47].mxu1 }
 0x151   :  { %4789 = vst [vmem:[#allocation47_spill] sm:$0xff] %v4379_v35  ;;  %4790 = vst [vmem:[#allocation48_spill] sm:$0xff] %v4381_v42 }
 0x155   :  { %v4383_v43 = vpop.f32.mrb[48].mxu0  ;;  %v4385_v11 = vpop.f32.mrb[48].mxu1 }
 0x156   :  { %4791 = vst [vmem:[#allocation49_spill] sm:$0xff] %v4383_v43  ;;  %4792 = vst [vmem:[#allocation50_spill] sm:$0xff] %v4385_v11  ;;  %v4387_v18 = vpop.f32.mrb[49].mxu0  ;;  %v4389_v19 = vpop.f32.mrb[49].mxu1 }
 0x157   :  { %4793 = vst [vmem:[#allocation51_spill] sm:$0xff] %v4387_v18  ;;  %4794 = vst [vmem:[#allocation52_spill] sm:$0xff] %v4389_v19  ;;  %v4391_v22 = vpop.f32.mrb[50].mxu0  ;;  %v4393_v23 = vpop.f32.mrb[50].mxu1 }
 0x158   :  { %4795 = vst [vmem:[#allocation53_spill] sm:$0xff] %v4391_v22  ;;  %4796 = vst [vmem:[#allocation54_spill] sm:$0xff] %v4393_v23  ;;  %v4395_v30 = vpop.f32.mrb[51].mxu0  ;;  %v4397_v31 = vpop.f32.mrb[51].mxu1 }
 0x159   :  { %4797 = vst [vmem:[#allocation55_spill] sm:$0xff] %v4395_v30  ;;  %4798 = vst [vmem:[#allocation56_spill] sm:$0xff] %v4397_v31 }
 0x15d   :  { %v4399_v34 = vpop.f32.mrb[52].mxu0  ;;  %v4401_v35 = vpop.f32.mrb[52].mxu1 }
 0x15e   :  { %4799 = vst [vmem:[#allocation57_spill] sm:$0xff] %v4399_v34  ;;  %4800 = vst [vmem:[#allocation58_spill] sm:$0xff] %v4401_v35  ;;  %v4403_v42 = vpop.f32.mrb[53].mxu0  ;;  %v4405_v43 = vpop.f32.mrb[53].mxu1 }
 0x15f   :  { %4801 = vst [vmem:[#allocation59_spill] sm:$0xff] %v4403_v42  ;;  %4802 = vst [vmem:[#allocation60_spill] sm:$0xff] %v4405_v43  ;;  %v4407_v11 = vpop.f32.mrb[54].mxu0  ;;  %v4409_v18 = vpop.f32.mrb[54].mxu1 }
 0x160   :  { %4803 = vst [vmem:[#allocation61_spill] sm:$0xff] %v4407_v11  ;;  %4804 = vst [vmem:[#allocation62_spill] sm:$0xff] %v4409_v18  ;;  %v4411_v19 = vpop.f32.mrb[55].mxu0  ;;  %v4413_v22 = vpop.f32.mrb[55].mxu1 }
 0x161   :  { %4805 = vst [vmem:[#allocation63_spill] sm:$0xff] %v4411_v19  ;;  %4806 = vst [vmem:[#allocation64_spill] sm:$0xff] %v4413_v22 }
 0x165   :  { %v4415_v23 = vpop.f32.mrb[56].mxu0  ;;  %v4417_v30 = vpop.f32.mrb[56].mxu1 }
 0x166   :  { %4807 = vst [vmem:[#allocation65_spill] sm:$0xff] %v4415_v23  ;;  %4808 = vst [vmem:[#allocation66_spill] sm:$0xff] %v4417_v30  ;;  %v4419_v31 = vpop.f32.mrb[57].mxu0  ;;  %v4421_v34 = vpop.f32.mrb[57].mxu1 }
 0x167   :  { %4809 = vst [vmem:[#allocation67_spill] sm:$0xff] %v4419_v31  ;;  %4810 = vst [vmem:[#allocation68_spill] sm:$0xff] %v4421_v34  ;;  %v4423_v35 = vpop.f32.mrb[58].mxu0  ;;  %v4425_v42 = vpop.f32.mrb[58].mxu1 }
 0x168   :  { %4811 = vst [vmem:[#allocation69_spill] sm:$0xff] %v4423_v35  ;;  %4812 = vst [vmem:[#allocation70_spill] sm:$0xff] %v4425_v42  ;;  %v4427_v43 = vpop.f32.mrb[59].mxu0  ;;  %v4429_v11 = vpop.f32.mrb[59].mxu1 }
 0x169   :  { %4813 = vst [vmem:[#allocation71_spill] sm:$0xff] %v4427_v43  ;;  %4814 = vst [vmem:[#allocation72_spill] sm:$0xff] %v4429_v11 }
 0x16d   :  { %v4431_v18 = vpop.f32.mrb[60].mxu0  ;;  %v4433_v19 = vpop.f32.mrb[60].mxu1 }
 0x16e   :  { %4815 = vst [vmem:[#allocation73_spill] sm:$0xff] %v4431_v18  ;;  %4816 = vst [vmem:[#allocation74_spill] sm:$0xff] %v4433_v19  ;;  %v4435_v22 = vpop.f32.mrb[61].mxu0  ;;  %v4437_v23 = vpop.f32.mrb[61].mxu1 }
 0x16f   :  { %4817 = vst [vmem:[#allocation75_spill] sm:$0xff] %v4435_v22  ;;  %4818 = vst [vmem:[#allocation76_spill] sm:$0xff] %v4437_v23  ;;  %v4439_v30 = vpop.f32.mrb[62].mxu0  ;;  %v4441_v31 = vpop.f32.mrb[62].mxu1 }
 0x170   :  { %4819 = vst [vmem:[#allocation77_spill] sm:$0xff] %v4439_v30  ;;  %4820 = vst [vmem:[#allocation78_spill] sm:$0xff] %v4441_v31  ;;  %v4443_v34 = vpop.f32.mrb[63].mxu0  ;;  %v4445_v35 = vpop.f32.mrb[63].mxu1 }
 0x171   :  { %4821 = vst [vmem:[#allocation79_spill] sm:$0xff] %v4443_v34  ;;  %4822 = vst [vmem:[#allocation80_spill] sm:$0xff] %v4445_v35 }
 0x175   :  { %v3421_v42 = vpop.f32.mrb[64].mxu0  ;;  %v3549_v43 = vpop.f32.mrb[64].mxu1 }
 0x176   :  { %v2162_v11 = vmax.f32 %v4137_v54, %v3421_v42  ;;  %v2226_v18 = vmax.f32 %v4139_v55, %v3549_v43  ;;  %v1393_v10 = vpop.f32.mrb[65].mxu0  ;;  %v1905_v19 = vpop.f32.mrb[65].mxu1  ;;  %v4456_v54 = vld [vmem:[%s4742_s2] ss:$0 sm:$0xff] }
 0x177   :  { %v2160_v22 = vmax.f32 %v4141_v56, %v1393_v10  ;;  %v2224_v23 = vmax.f32 %v4143_v57, %v1905_v19  ;;  %v3422_v7 = vpop.f32.mrb[66].mxu0  ;;  %v3550_v30 = vpop.f32.mrb[66].mxu1 }
 0x178   :  { %v2290_v6 = vmax.f32 %v2162_v11, %v2226_v18  ;;  %v2163_v31 = vmax.f32 %v4151_v60, %v3422_v7  ;;  %v2227_v34 = vmax.f32 %v4153_v61, %v3550_v30  ;;  %v1396_v35 = vpop.f32.mrb[67].mxu0  ;;  %v1908_v63 = vpop.f32.mrb[67].mxu1 }
 0x179   :  { %v2288_v55 = vmax.f32 %v2160_v22, %v2224_v23  ;;  %v2161_v42 = vmax.f32 %v4161_v0, %v1396_v35  ;;  %v2225_v56 = vmax.f32 %v4163_v1, %v1908_v63 }
 0x17a   :  { %v2291_v57 = vmax.f32 %v2163_v31, %v2227_v34  ;;  %v2361_v11 = vadd.f32 %v4456_v54, %v2290_v6 }
 0x17b   :  { %v2289_v10 = vmax.f32 %v2161_v42, %v2225_v56  ;;  %v2359_v61 = vadd.f32 %v4456_v54, %v2288_v55 }
 0x17c   :  { %v2362_v60 = vadd.f32 %v4456_v54, %v2291_v57 }
 0x17d   :  { %v2360_v7 = vadd.f32 %v4456_v54, %v2289_v10  ;;  %v3425_v18 = vpop.f32.mrb[68].mxu0  ;;  %v3553_v19 = vpop.f32.mrb[68].mxu1 }
 0x17e   :  { %v3020_v30 = vpack.c.bf16 %v2362_v60, %v2361_v11  ;;  %v2166_v43 = vmax.f32 %v4165_v2, %v3425_v18  ;;  %v2230_v22 = vmax.f32 %v4167_v3, %v3553_v19  ;;  %v1409_v0 = vpop.f32.mrb[69].mxu0  ;;  %v1921_v23 = vpop.f32.mrb[69].mxu1 }
 0x17f   :  { %v3015_v1 = vpack.c.bf16 %v2360_v7, %v2359_v61  ;;  %v2164_v63 = vmax.f32 %v4169_v4, %v1409_v0  ;;  %v2228_v6 = vmax.f32 %v4171_v5, %v1921_v23  ;;  %v3426_v31 = vpop.f32.mrb[70].mxu0  ;;  %v3554_v34 = vpop.f32.mrb[70].mxu1 }
 0x180   :  { %3172 = vst [vmem:[%s4743_s3 + $0x8] sm:$0xff] %v3020_v30   ;;  %v2294_v35 = vmax.f32 %v2166_v43, %v2230_v22  ;;  %v2167_v55 = vmax.f32 %v4179_v8, %v3426_v31  ;;  %v2231_v2 = vmax.f32 %v4181_v9, %v3554_v34  ;;  %v1412_v42 = vpop.f32.mrb[71].mxu0  ;;  %v1924_v3 = vpop.f32.mrb[71].mxu1 }
 0x181   :  { %3016 = vst [vmem:[%s4743_s3] sm:$0xff] %v3015_v1   ;;  %v2292_v4 = vmax.f32 %v2164_v63, %v2228_v6  ;;  %v2165_v5 = vmax.f32 %v4189_v12, %v1412_v42  ;;  %v2229_v56 = vmax.f32 %v4191_v13, %v1924_v3 }
 0x182   :  { %v2295_v57 = vmax.f32 %v2167_v55, %v2231_v2  ;;  %v2365_v11 = vadd.f32 %v4456_v54, %v2294_v35 }
 0x183   :  { %v2293_v10 = vmax.f32 %v2165_v5, %v2229_v56  ;;  %v2363_v8 = vadd.f32 %v4456_v54, %v2292_v4 }
 0x184   :  { %v2366_v60 = vadd.f32 %v4456_v54, %v2295_v57 }
 0x185   :  { %v2364_v9 = vadd.f32 %v4456_v54, %v2293_v10  ;;  %v3429_v61 = vpop.f32.mrb[72].mxu0  ;;  %v3557_v7 = vpop.f32.mrb[72].mxu1 }
 0x186   :  { %v3030_v18 = vpack.c.bf16 %v2366_v60, %v2365_v11  ;;  %v2170_v19 = vmax.f32 %v4193_v14, %v3429_v61  ;;  %v2234_v30 = vmax.f32 %v4195_v15, %v3557_v7  ;;  %v1425_v12 = vpop.f32.mrb[73].mxu0  ;;  %v1937_v43 = vpop.f32.mrb[73].mxu1 }
 0x187   :  { %v3025_v13 = vpack.c.bf16 %v2364_v9, %v2363_v8  ;;  %v2168_v22 = vmax.f32 %v4197_v16, %v1425_v12  ;;  %v2232_v0 = vmax.f32 %v4199_v17, %v1937_v43  ;;  %v3430_v23 = vpop.f32.mrb[74].mxu0  ;;  %v3558_v1 = vpop.f32.mrb[74].mxu1 }
 0x188   :  { %3174 = vst [vmem:[%s4743_s3 + $0x18] sm:$0xff] %v3030_v18   ;;  %v2298_v63 = vmax.f32 %v2170_v19, %v2234_v30  ;;  %v2171_v6 = vmax.f32 %v4207_v20, %v3430_v23  ;;  %v2235_v14 = vmax.f32 %v4209_v21, %v3558_v1  ;;  %v1428_v31 = vpop.f32.mrb[75].mxu0  ;;  %v1940_v15 = vpop.f32.mrb[75].mxu1 }
 0x189   :  { %3173 = vst [vmem:[%s4743_s3 + $0x10] sm:$0xff] %v3025_v13   ;;  %v2296_v16 = vmax.f32 %v2168_v22, %v2232_v0  ;;  %v2169_v17 = vmax.f32 %v4217_v24, %v1428_v31  ;;  %v2233_v34 = vmax.f32 %v4219_v25, %v1940_v15 }
 0x18a   :  { %v2299_v35 = vmax.f32 %v2171_v6, %v2235_v14  ;;  %v2369_v2 = vadd.f32 %v4456_v54, %v2298_v63 }
 0x18b   :  { %v2297_v55 = vmax.f32 %v2169_v17, %v2233_v34  ;;  %v2367_v20 = vadd.f32 %v4456_v54, %v2296_v16 }
 0x18c   :  { %v2370_v42 = vadd.f32 %v4456_v54, %v2299_v35 }
 0x18d   :  { %v2368_v21 = vadd.f32 %v4456_v54, %v2297_v55  ;;  %v3433_v3 = vpop.f32.mrb[76].mxu0  ;;  %v3561_v4 = vpop.f32.mrb[76].mxu1 }
 0x18e   :  { %v3040_v5 = vpack.c.bf16 %v2370_v42, %v2369_v2  ;;  %v2174_v56 = vmax.f32 %v4221_v26, %v3433_v3  ;;  %v2238_v57 = vmax.f32 %v4223_v27, %v3561_v4  ;;  %v1441_v24 = vpop.f32.mrb[77].mxu0  ;;  %v1953_v10 = vpop.f32.mrb[77].mxu1 }
 0x18f   :  { %v3035_v25 = vpack.c.bf16 %v2368_v21, %v2367_v20  ;;  %v2172_v11 = vmax.f32 %v4225_v28, %v1441_v24  ;;  %v2236_v60 = vmax.f32 %v4227_v29, %v1953_v10  ;;  %v3434_v8 = vpop.f32.mrb[78].mxu0  ;;  %v3562_v9 = vpop.f32.mrb[78].mxu1 }
 0x190   :  { %3176 = vst [vmem:[%s4743_s3 + $0x28] sm:$0xff] %v3040_v5   ;;  %v2302_v61 = vmax.f32 %v2174_v56, %v2238_v57  ;;  %v2175_v7 = vmax.f32 %v4235_v32, %v3434_v8  ;;  %v2239_v26 = vmax.f32 %v4237_v33, %v3562_v9  ;;  %v1444_v18 = vpop.f32.mrb[79].mxu0  ;;  %v1956_v27 = vpop.f32.mrb[79].mxu1 }
 0x191   :  { %3175 = vst [vmem:[%s4743_s3 + $0x20] sm:$0xff] %v3035_v25   ;;  %v2300_v28 = vmax.f32 %v2172_v11, %v2236_v60  ;;  %v2173_v29 = vmax.f32 %v4245_v36, %v1444_v18  ;;  %v2237_v19 = vmax.f32 %v4247_v37, %v1956_v27 }
 0x192   :  { %v2303_v30 = vmax.f32 %v2175_v7, %v2239_v26  ;;  %v2373_v43 = vadd.f32 %v4456_v54, %v2302_v61 }
 0x193   :  { %v2301_v12 = vmax.f32 %v2173_v29, %v2237_v19  ;;  %v2371_v32 = vadd.f32 %v4456_v54, %v2300_v28 }
 0x194   :  { %v2374_v13 = vadd.f32 %v4456_v54, %v2303_v30 }
 0x195   :  { %v2372_v33 = vadd.f32 %v4456_v54, %v2301_v12  ;;  %v3437_v22 = vpop.f32.mrb[80].mxu0  ;;  %v3565_v0 = vpop.f32.mrb[80].mxu1 }
 0x196   :  { %v3050_v23 = vpack.c.bf16 %v2374_v13, %v2373_v43  ;;  %v2178_v1 = vmax.f32 %v4249_v38, %v3437_v22  ;;  %v2242_v63 = vmax.f32 %v4251_v39, %v3565_v0  ;;  %v1457_v36 = vpop.f32.mrb[81].mxu0  ;;  %v1969_v6 = vpop.f32.mrb[81].mxu1  ;;  %v4823_v43 = vld [vmem:[#allocation2_spill] sm:$0xff]  ;;  %v4825_v0 = vld [vmem:[#allocation4_spill] sm:$0xff] }
 0x197   :  { %v3045_v37 = vpack.c.bf16 %v2372_v33, %v2371_v32  ;;  %v2176_v14 = vmax.f32 %v4253_v40, %v1457_v36  ;;  %v2240_v31 = vmax.f32 %v4255_v41, %v1969_v6  ;;  %v3438_v15 = vpop.f32.mrb[82].mxu0  ;;  %v3566_v16 = vpop.f32.mrb[82].mxu1  ;;  %v4824_v33 = vld [vmem:[#allocation3_spill] sm:$0xff]  ;;  %v4826_v6 = vld [vmem:[#allocation5_spill] sm:$0xff] }
 0x198   :  { %3178 = vst [vmem:[%s4743_s3 + $0x38] sm:$0xff] %v3050_v23   ;;  %v2306_v17 = vmax.f32 %v2178_v1, %v2242_v63  ;;  %v2179_v34 = vmax.f32 %v4263_v44, %v3438_v15  ;;  %v2243_v38 = vmax.f32 %v4265_v45, %v3566_v16  ;;  %v1460_v35 = vpop.f32.mrb[83].mxu0  ;;  %v1972_v39 = vpop.f32.mrb[83].mxu1 }
 0x199   :  { %3177 = vst [vmem:[%s4743_s3 + $0x30] sm:$0xff] %v3045_v37   ;;  %v2304_v40 = vmax.f32 %v2176_v14, %v2240_v31  ;;  %v2177_v41 = vmax.f32 %v4267_v46, %v1460_v35  ;;  %v2241_v55 = vmax.f32 %v4269_v47, %v1972_v39  ;;  %v4827_v14 = vld [vmem:[#allocation6_spill] sm:$0xff] }
 0x19a   :  { %v2307_v2 = vmax.f32 %v2179_v34, %v2243_v38  ;;  %v2377_v20 = vadd.f32 %v4456_v54, %v2306_v17  ;;  %v4828_v17 = vld [vmem:[#allocation7_spill] sm:$0xff]  ;;  %v4829_v38 = vld [vmem:[#allocation8_spill] sm:$0xff] }
 0x19b   :  { %v2305_v42 = vmax.f32 %v2177_v41, %v2241_v55  ;;  %v2375_v44 = vadd.f32 %v4456_v54, %v2304_v40 }
 0x19c   :  { %v2378_v21 = vadd.f32 %v4456_v54, %v2307_v2 }
 0x19d   :  { %v2376_v45 = vadd.f32 %v4456_v54, %v2305_v42  ;;  %v3441_v3 = vpop.f32.mrb[84].mxu0  ;;  %v3569_v4 = vpop.f32.mrb[84].mxu1 }
 0x19e   :  { %v3060_v5 = vpack.c.bf16 %v2378_v21, %v2377_v20  ;;  %v2182_v56 = vmax.f32 %v4271_v48, %v3441_v3  ;;  %v2246_v57 = vmax.f32 %v4273_v49, %v3569_v4  ;;  %v1473_v46 = vpop.f32.mrb[85].mxu0  ;;  %v1985_v24 = vpop.f32.mrb[85].mxu1  ;;  %v4831_v4 = vld [vmem:[#allocation10_spill] sm:$0xff] }
 0x19f   :  { %v3055_v47 = vpack.c.bf16 %v2376_v45, %v2375_v44  ;;  %v2180_v10 = vmax.f32 %v4275_v50, %v1473_v46  ;;  %v2244_v25 = vmax.f32 %v4277_v51, %v1985_v24  ;;  %v3442_v11 = vpop.f32.mrb[86].mxu0  ;;  %v3570_v60 = vpop.f32.mrb[86].mxu1  ;;  %v4830_v45 = vld [vmem:[#allocation9_spill] sm:$0xff]  ;;  %v4832_v24 = vld [vmem:[#allocation11_spill] sm:$0xff] }
 0x1a0   :  { %3180 = vst [vmem:[%s4743_s3 + $0x48] sm:$0xff] %v3060_v5   ;;  %v2310_v8 = vmax.f32 %v2182_v56, %v2246_v57  ;;  %v2183_v9 = vmax.f32 %v4279_v52, %v3442_v11  ;;  %v2247_v48 = vmax.f32 %v4281_v53, %v3570_v60  ;;  %v1476_v61 = vpop.f32.mrb[87].mxu0  ;;  %v1988_v49 = vpop.f32.mrb[87].mxu1 }
 0x1a1   :  { %3179 = vst [vmem:[%s4743_s3 + $0x40] sm:$0xff] %v3055_v47   ;;  %v2308_v50 = vmax.f32 %v2180_v10, %v2244_v25  ;;  %v2181_v51 = vmax.f32 %v4283_v58, %v1476_v61  ;;  %v2245_v7 = vmax.f32 %v4285_v59, %v1988_v49  ;;  %v4833_v10 = vld [vmem:[#allocation12_spill] sm:$0xff]  ;;  %v4835_v61 = vld [vmem:[#allocation14_spill] sm:$0xff] }
 0x1a2   :  { %v2311_v26 = vmax.f32 %v2183_v9, %v2247_v48  ;;  %v2381_v27 = vadd.f32 %v4456_v54, %v2310_v8  ;;  %v4834_v9 = vld [vmem:[#allocation13_spill] sm:$0xff] }
 0x1a3   :  { %v2309_v18 = vmax.f32 %v2181_v51, %v2245_v7  ;;  %v2379_v52 = vadd.f32 %v4456_v54, %v2308_v50 }
 0x1a4   :  { %v2382_v28 = vadd.f32 %v4456_v54, %v2311_v26  ;;  %v4836_v26 = vld [vmem:[#allocation15_spill] sm:$0xff] }
 0x1a5   :  { %v2380_v53 = vadd.f32 %v4456_v54, %v2309_v18  ;;  %v3445_v29 = vpop.f32.mrb[88].mxu0  ;;  %v3573_v19 = vpop.f32.mrb[88].mxu1 }
 0x1a6   :  { %v3070_v30 = vpack.c.bf16 %v2382_v28, %v2381_v27  ;;  %v2186_v12 = vmax.f32 %v4287_v62, %v3445_v29  ;;  %v2250_v13 = vmax.f32 %v4823_v43, %v3573_v19  ;;  %v1489_v58 = vpop.f32.mrb[89].mxu0  ;;  %v2001_v32 = vpop.f32.mrb[89].mxu1  ;;  %v4837_v27 = vld [vmem:[#allocation16_spill] sm:$0xff] }
 0x1a7   :  { %v3065_v59 = vpack.c.bf16 %v2380_v53, %v2379_v52  ;;  %v2184_v22 = vmax.f32 %v4824_v33, %v1489_v58  ;;  %v2248_v23 = vmax.f32 %v4825_v0, %v2001_v32  ;;  %v3446_v1 = vpop.f32.mrb[90].mxu0  ;;  %v3574_v63 = vpop.f32.mrb[90].mxu1  ;;  %v4838_v32 = vld [vmem:[#allocation17_spill] sm:$0xff]  ;;  %v4839_v33 = vld [vmem:[#allocation18_spill] sm:$0xff] }
 0x1a8   :  { %3182 = vst [vmem:[%s4743_s3 + $0x58] sm:$0xff] %v3070_v30   ;;  %v2314_v36 = vmax.f32 %v2186_v12, %v2250_v13  ;;  %v2187_v37 = vmax.f32 %v4826_v6, %v3446_v1  ;;  %v2251_v62 = vmax.f32 %v4827_v14, %v3574_v63  ;;  %v1492_v31 = vpop.f32.mrb[91].mxu0  ;;  %v2004_v15 = vpop.f32.mrb[91].mxu1  ;;  %v4840_v63 = vld [vmem:[#allocation19_spill] sm:$0xff]  ;;  %v4841_v6 = vld [vmem:[#allocation20_spill] sm:$0xff] }
 0x1a9   :  { %3181 = vst [vmem:[%s4743_s3 + $0x50] sm:$0xff] %v3065_v59   ;;  %v2312_v16 = vmax.f32 %v2184_v22, %v2248_v23  ;;  %v2185_v34 = vmax.f32 %v4828_v17, %v1492_v31  ;;  %v2249_v35 = vmax.f32 %v4829_v38, %v2004_v15  ;;  %v4842_v15 = vld [vmem:[#allocation21_spill] sm:$0xff]  ;;  %v4843_v17 = vld [vmem:[#allocation22_spill] sm:$0xff] }
 0x1aa   :  { %v2315_v39 = vmax.f32 %v2187_v37, %v2251_v62  ;;  %v2385_v41 = vadd.f32 %v4456_v54, %v2314_v36 }
 0x1ab   :  { %v2313_v40 = vmax.f32 %v2185_v34, %v2249_v35  ;;  %v2383_v2 = vadd.f32 %v4456_v54, %v2312_v16 }
 0x1ac   :  { %v2386_v55 = vadd.f32 %v4456_v54, %v2315_v39 }
 0x1ad   :  { %v2384_v42 = vadd.f32 %v4456_v54, %v2313_v40  ;;  %v3449_v20 = vpop.f32.mrb[92].mxu0  ;;  %v3577_v21 = vpop.f32.mrb[92].mxu1  ;;  %v4844_v40 = vld [vmem:[#allocation23_spill] sm:$0xff] }
 0x1ae   :  { %v3080_v44 = vpack.c.bf16 %v2386_v55, %v2385_v41  ;;  %v2190_v3 = vmax.f32 %v4830_v45, %v3449_v20  ;;  %v2254_v5 = vmax.f32 %v4831_v4, %v3577_v21  ;;  %v1505_v56 = vpop.f32.mrb[93].mxu0  ;;  %v2017_v57 = vpop.f32.mrb[93].mxu1  ;;  %v4845_v55 = vld [vmem:[#allocation24_spill] sm:$0xff] }
 0x1af   :  { %v3075_v46 = vpack.c.bf16 %v2384_v42, %v2383_v2  ;;  %v2188_v47 = vmax.f32 %v4832_v24, %v1505_v56  ;;  %v2252_v25 = vmax.f32 %v4833_v10, %v2017_v57  ;;  %v3450_v11 = vpop.f32.mrb[94].mxu0  ;;  %v3578_v60 = vpop.f32.mrb[94].mxu1  ;;  %v4846_v57 = vld [vmem:[#allocation25_spill] sm:$0xff]  ;;  %v4847_v24 = vld [vmem:[#allocation26_spill] sm:$0xff] }
 0x1b0   :  { %3184 = vst [vmem:[%s4743_s3 + $0x68] sm:$0xff] %v3080_v44   ;;  %v2318_v8 = vmax.f32 %v2190_v3, %v2254_v5  ;;  %v2191_v48 = vmax.f32 %v4834_v9, %v3450_v11  ;;  %v2255_v49 = vmax.f32 %v4835_v61, %v3578_v60  ;;  %v1508_v50 = vpop.f32.mrb[95].mxu0  ;;  %v2020_v51 = vpop.f32.mrb[95].mxu1  ;;  %v4848_v60 = vld [vmem:[#allocation27_spill] sm:$0xff]  ;;  %v4849_v9 = vld [vmem:[#allocation28_spill] sm:$0xff] }
 0x1b1   :  { %3183 = vst [vmem:[%s4743_s3 + $0x60] sm:$0xff] %v3075_v46   ;;  %v2316_v7 = vmax.f32 %v2188_v47, %v2252_v25  ;;  %v2189_v18 = vmax.f32 %v4836_v26, %v1508_v50  ;;  %v2253_v28 = vmax.f32 %v4837_v27, %v2020_v51  ;;  %v4850_v51 = vld [vmem:[#allocation29_spill] sm:$0xff]  ;;  %v4851_v26 = vld [vmem:[#allocation30_spill] sm:$0xff] }
 0x1b2   :  { %v2319_v52 = vmax.f32 %v2191_v48, %v2255_v49  ;;  %v2389_v29 = vadd.f32 %v4456_v54, %v2318_v8 }
 0x1b3   :  { %v2317_v53 = vmax.f32 %v2189_v18, %v2253_v28  ;;  %v2387_v30 = vadd.f32 %v4456_v54, %v2316_v7 }
 0x1b4   :  { %v2390_v19 = vadd.f32 %v4456_v54, %v2319_v52 }
 0x1b5   :  { %v2388_v12 = vadd.f32 %v4456_v54, %v2317_v53  ;;  %v3453_v43 = vpop.f32.mrb[96].mxu0  ;;  %v3581_v13 = vpop.f32.mrb[96].mxu1  ;;  %v4852_v53 = vld [vmem:[#allocation31_spill] sm:$0xff] }
 0x1b6   :  { %v3090_v58 = vpack.c.bf16 %v2390_v19, %v2389_v29  ;;  %v2194_v59 = vmax.f32 %v4838_v32, %v3453_v43  ;;  %v2258_v22 = vmax.f32 %v4839_v33, %v3581_v13  ;;  %v1521_v0 = vpop.f32.mrb[97].mxu0  ;;  %v2033_v23 = vpop.f32.mrb[97].mxu1  ;;  %v4853_v19 = vld [vmem:[#allocation32_spill] sm:$0xff] }
 0x1b7   :  { %v3085_v1 = vpack.c.bf16 %v2388_v12, %v2387_v30  ;;  %v2192_v36 = vmax.f32 %v4840_v63, %v1521_v0  ;;  %v2256_v37 = vmax.f32 %v4841_v6, %v2033_v23  ;;  %v3454_v14 = vpop.f32.mrb[98].mxu0  ;;  %v3582_v62 = vpop.f32.mrb[98].mxu1  ;;  %v4854_v23 = vld [vmem:[#allocation33_spill] sm:$0xff]  ;;  %v4855_v63 = vld [vmem:[#allocation34_spill] sm:$0xff] }
 0x1b8   :  { %3186 = vst [vmem:[%s4743_s3 + $0x78] sm:$0xff] %v3090_v58   ;;  %v2322_v31 = vmax.f32 %v2194_v59, %v2258_v22  ;;  %v2195_v16 = vmax.f32 %v4842_v15, %v3454_v14  ;;  %v2259_v34 = vmax.f32 %v4843_v17, %v3582_v62  ;;  %v1524_v38 = vpop.f32.mrb[99].mxu0  ;;  %v2036_v35 = vpop.f32.mrb[99].mxu1  ;;  %v4856_v62 = vld [vmem:[#allocation35_spill] sm:$0xff]  ;;  %v4857_v15 = vld [vmem:[#allocation36_spill] sm:$0xff] }
 0x1b9   :  { %3185 = vst [vmem:[%s4743_s3 + $0x70] sm:$0xff] %v3085_v1   ;;  %v2320_v39 = vmax.f32 %v2192_v36, %v2256_v37  ;;  %v2193_v41 = vmax.f32 %v4844_v40, %v1524_v38  ;;  %v2257_v2 = vmax.f32 %v4845_v55, %v2036_v35  ;;  %v4858_v35 = vld [vmem:[#allocation37_spill] sm:$0xff]  ;;  %v4859_v40 = vld [vmem:[#allocation38_spill] sm:$0xff] }
 0x1ba   :  { %v2323_v42 = vmax.f32 %v2195_v16, %v2259_v34  ;;  %v2393_v21 = vadd.f32 %v4456_v54, %v2322_v31 }
 0x1bb   :  { %v2321_v20 = vmax.f32 %v2193_v41, %v2257_v2  ;;  %v2391_v45 = vadd.f32 %v4456_v54, %v2320_v39 }
 0x1bc   :  { %v2394_v44 = vadd.f32 %v4456_v54, %v2323_v42 }
 0x1bd   :  { %v2392_v3 = vadd.f32 %v4456_v54, %v2321_v20  ;;  %v3457_v4 = vpop.f32.mrb[100].mxu0  ;;  %v3585_v5 = vpop.f32.mrb[100].mxu1  ;;  %v4860_v20 = vld [vmem:[#allocation39_spill] sm:$0xff] }
 0x1be   :  { %v3100_v56 = vpack.c.bf16 %v2394_v44, %v2393_v21  ;;  %v2198_v46 = vmax.f32 %v4846_v57, %v3457_v4  ;;  %v2262_v47 = vmax.f32 %v4847_v24, %v3585_v5  ;;  %v1537_v10 = vpop.f32.mrb[101].mxu0  ;;  %v2049_v25 = vpop.f32.mrb[101].mxu1  ;;  %v4861_v44 = vld [vmem:[#allocation40_spill] sm:$0xff] }
 0x1bf   :  { %v3095_v11 = vpack.c.bf16 %v2392_v3, %v2391_v45  ;;  %v2196_v8 = vmax.f32 %v4848_v60, %v1537_v10  ;;  %v2260_v48 = vmax.f32 %v4849_v9, %v2049_v25  ;;  %v3458_v61 = vpop.f32.mrb[102].mxu0  ;;  %v3586_v49 = vpop.f32.mrb[102].mxu1  ;;  %v4862_v25 = vld [vmem:[#allocation41_spill] sm:$0xff]  ;;  %v4863_v60 = vld [vmem:[#allocation42_spill] sm:$0xff] }
 0x1c0   :  { %3188 = vst [vmem:[%s4743_s3 + $0x88] sm:$0xff] %v3100_v56   ;;  %v2326_v50 = vmax.f32 %v2198_v46, %v2262_v47  ;;  %v2199_v7 = vmax.f32 %v4850_v51, %v3458_v61  ;;  %v2263_v18 = vmax.f32 %v4851_v26, %v3586_v49  ;;  %v1540_v27 = vpop.f32.mrb[103].mxu0  ;;  %v2052_v28 = vpop.f32.mrb[103].mxu1  ;;  %v4864_v49 = vld [vmem:[#allocation43_spill] sm:$0xff]  ;;  %v4865_v51 = vld [vmem:[#allocation44_spill] sm:$0xff] }
 0x1c1   :  { %3187 = vst [vmem:[%s4743_s3 + $0x80] sm:$0xff] %v3095_v11   ;;  %v2324_v52 = vmax.f32 %v2196_v8, %v2260_v48  ;;  %v2197_v29 = vmax.f32 %v4852_v53, %v1540_v27  ;;  %v2261_v30 = vmax.f32 %v4853_v19, %v2052_v28  ;;  %v4866_v28 = vld [vmem:[#allocation45_spill] sm:$0xff]  ;;  %v4867_v53 = vld [vmem:[#allocation46_spill] sm:$0xff] }
 0x1c2   :  { %v2327_v12 = vmax.f32 %v2199_v7, %v2263_v18  ;;  %v2397_v13 = vadd.f32 %v4456_v54, %v2326_v50 }
 0x1c3   :  { %v2325_v43 = vmax.f32 %v2197_v29, %v2261_v30  ;;  %v2395_v32 = vadd.f32 %v4456_v54, %v2324_v52 }
 0x1c4   :  { %v2398_v58 = vadd.f32 %v4456_v54, %v2327_v12 }
 0x1c5   :  { %v2396_v59 = vadd.f32 %v4456_v54, %v2325_v43  ;;  %v3461_v33 = vpop.f32.mrb[104].mxu0  ;;  %v3589_v22 = vpop.f32.mrb[104].mxu1  ;;  %v4868_v43 = vld [vmem:[#allocation47_spill] sm:$0xff] }
 0x1c6   :  { %v3110_v0 = vpack.c.bf16 %v2398_v58, %v2397_v13  ;;  %v2202_v1 = vmax.f32 %v4854_v23, %v3461_v33  ;;  %v2266_v36 = vmax.f32 %v4855_v63, %v3589_v22  ;;  %v1553_v6 = vpop.f32.mrb[105].mxu0  ;;  %v2065_v37 = vpop.f32.mrb[105].mxu1  ;;  %v4869_v58 = vld [vmem:[#allocation48_spill] sm:$0xff] }
 0x1c7   :  { %v3105_v14 = vpack.c.bf16 %v2396_v59, %v2395_v32  ;;  %v2200_v31 = vmax.f32 %v4856_v62, %v1553_v6  ;;  %v2264_v16 = vmax.f32 %v4857_v15, %v2065_v37  ;;  %v3462_v17 = vpop.f32.mrb[106].mxu0  ;;  %v3590_v34 = vpop.f32.mrb[106].mxu1  ;;  %v4870_v37 = vld [vmem:[#allocation49_spill] sm:$0xff]  ;;  %v4871_v62 = vld [vmem:[#allocation50_spill] sm:$0xff] }
 0x1c8   :  { %3190 = vst [vmem:[%s4743_s3 + $0x98] sm:$0xff] %v3110_v0   ;;  %v2330_v38 = vmax.f32 %v2202_v1, %v2266_v36  ;;  %v2203_v39 = vmax.f32 %v4858_v35, %v3462_v17  ;;  %v2267_v41 = vmax.f32 %v4859_v40, %v3590_v34  ;;  %v1556_v55 = vpop.f32.mrb[107].mxu0  ;;  %v2068_v2 = vpop.f32.mrb[107].mxu1  ;;  %v4872_v34 = vld [vmem:[#allocation51_spill] sm:$0xff]  ;;  %v4873_v35 = vld [vmem:[#allocation52_spill] sm:$0xff] }
 0x1c9   :  { %3189 = vst [vmem:[%s4743_s3 + $0x90] sm:$0xff] %v3105_v14   ;;  %v2328_v42 = vmax.f32 %v2200_v31, %v2264_v16  ;;  %v2201_v21 = vmax.f32 %v4860_v20, %v1556_v55  ;;  %v2265_v45 = vmax.f32 %v4861_v44, %v2068_v2  ;;  %v4874_v2 = vld [vmem:[#allocation53_spill] sm:$0xff]  ;;  %v4875_v20 = vld [vmem:[#allocation54_spill] sm:$0xff] }
 0x1ca   :  { %v2331_v3 = vmax.f32 %v2203_v39, %v2267_v41  ;;  %v2401_v5 = vadd.f32 %v4456_v54, %v2330_v38 }
 0x1cb   :  { %v2329_v4 = vmax.f32 %v2201_v21, %v2265_v45  ;;  %v2399_v57 = vadd.f32 %v4456_v54, %v2328_v42 }
 0x1cc   :  { %v2402_v56 = vadd.f32 %v4456_v54, %v2331_v3 }
 0x1cd   :  { %v2400_v46 = vadd.f32 %v4456_v54, %v2329_v4  ;;  %v3465_v24 = vpop.f32.mrb[108].mxu0  ;;  %v3593_v47 = vpop.f32.mrb[108].mxu1  ;;  %v4876_v4 = vld [vmem:[#allocation55_spill] sm:$0xff] }
 0x1ce   :  { %v3120_v10 = vpack.c.bf16 %v2402_v56, %v2401_v5  ;;  %v2206_v11 = vmax.f32 %v4862_v25, %v3465_v24  ;;  %v2270_v8 = vmax.f32 %v4863_v60, %v3593_v47  ;;  %v1569_v9 = vpop.f32.mrb[109].mxu0  ;;  %v2081_v48 = vpop.f32.mrb[109].mxu1  ;;  %v4877_v56 = vld [vmem:[#allocation56_spill] sm:$0xff] }
 0x1cf   :  { %v3115_v61 = vpack.c.bf16 %v2400_v46, %v2399_v57  ;;  %v2204_v50 = vmax.f32 %v4864_v49, %v1569_v9  ;;  %v2268_v7 = vmax.f32 %v4865_v51, %v2081_v48  ;;  %v3466_v26 = vpop.f32.mrb[110].mxu0  ;;  %v3594_v18 = vpop.f32.mrb[110].mxu1  ;;  %v4878_v48 = vld [vmem:[#allocation57_spill] sm:$0xff]  ;;  %v4879_v49 = vld [vmem:[#allocation58_spill] sm:$0xff] }
 0x1d0   :  { %3192 = vst [vmem:[%s4743_s3 + $0xa8] sm:$0xff] %v3120_v10   ;;  %v2334_v27 = vmax.f32 %v2206_v11, %v2270_v8  ;;  %v2207_v52 = vmax.f32 %v4866_v28, %v3466_v26  ;;  %v2271_v29 = vmax.f32 %v4867_v53, %v3594_v18  ;;  %v1572_v19 = vpop.f32.mrb[111].mxu0  ;;  %v2084_v30 = vpop.f32.mrb[111].mxu1  ;;  %v4880_v18 = vld [vmem:[#allocation59_spill] sm:$0xff]  ;;  %v4881_v28 = vld [vmem:[#allocation60_spill] sm:$0xff] }
 0x1d1   :  { %3191 = vst [vmem:[%s4743_s3 + $0xa0] sm:$0xff] %v3115_v61   ;;  %v2332_v12 = vmax.f32 %v2204_v50, %v2268_v7  ;;  %v2205_v13 = vmax.f32 %v4868_v43, %v1572_v19  ;;  %v2269_v32 = vmax.f32 %v4869_v58, %v2084_v30  ;;  %v4882_v30 = vld [vmem:[#allocation61_spill] sm:$0xff]  ;;  %v4883_v43 = vld [vmem:[#allocation62_spill] sm:$0xff] }
 0x1d2   :  { %v2335_v59 = vmax.f32 %v2207_v52, %v2271_v29  ;;  %v2405_v22 = vadd.f32 %v4456_v54, %v2334_v27 }
 0x1d3   :  { %v2333_v33 = vmax.f32 %v2205_v13, %v2269_v32  ;;  %v2403_v23 = vadd.f32 %v4456_v54, %v2332_v12 }
 0x1d4   :  { %v2406_v0 = vadd.f32 %v4456_v54, %v2335_v59 }
 0x1d5   :  { %v2404_v1 = vadd.f32 %v4456_v54, %v2333_v33  ;;  %v3469_v63 = vpop.f32.mrb[112].mxu0  ;;  %v3597_v36 = vpop.f32.mrb[112].mxu1  ;;  %v4884_v33 = vld [vmem:[#allocation63_spill] sm:$0xff] }
 0x1d6   :  { %v3130_v6 = vpack.c.bf16 %v2406_v0, %v2405_v22  ;;  %v2210_v14 = vmax.f32 %v4870_v37, %v3469_v63  ;;  %v2274_v31 = vmax.f32 %v4871_v62, %v3597_v36  ;;  %v1585_v15 = vpop.f32.mrb[113].mxu0  ;;  %v2097_v16 = vpop.f32.mrb[113].mxu1  ;;  %v4885_v0 = vld [vmem:[#allocation64_spill] sm:$0xff] }
 0x1d7   :  { %v3125_v17 = vpack.c.bf16 %v2404_v1, %v2403_v23  ;;  %v2208_v38 = vmax.f32 %v4872_v34, %v1585_v15  ;;  %v2272_v39 = vmax.f32 %v4873_v35, %v2097_v16  ;;  %v3470_v40 = vpop.f32.mrb[114].mxu0  ;;  %v3598_v41 = vpop.f32.mrb[114].mxu1  ;;  %v4886_v16 = vld [vmem:[#allocation65_spill] sm:$0xff]  ;;  %v4887_v34 = vld [vmem:[#allocation66_spill] sm:$0xff] }
 0x1d8   :  { %3194 = vst [vmem:[%s4743_s3 + $0xb8] sm:$0xff] %v3130_v6   ;;  %v2338_v55 = vmax.f32 %v2210_v14, %v2274_v31  ;;  %v2211_v42 = vmax.f32 %v4874_v2, %v3470_v40  ;;  %v2275_v21 = vmax.f32 %v4875_v20, %v3598_v41  ;;  %v1588_v44 = vpop.f32.mrb[115].mxu0  ;;  %v2100_v45 = vpop.f32.mrb[115].mxu1  ;;  %v4888_v41 = vld [vmem:[#allocation67_spill] sm:$0xff]  ;;  %v4889_v2 = vld [vmem:[#allocation68_spill] sm:$0xff] }
 0x1d9   :  { %3193 = vst [vmem:[%s4743_s3 + $0xb0] sm:$0xff] %v3125_v17   ;;  %v2336_v3 = vmax.f32 %v2208_v38, %v2272_v39  ;;  %v2209_v5 = vmax.f32 %v4876_v4, %v1588_v44  ;;  %v2273_v57 = vmax.f32 %v4877_v56, %v2100_v45  ;;  %v4890_v45 = vld [vmem:[#allocation69_spill] sm:$0xff]  ;;  %v4891_v4 = vld [vmem:[#allocation70_spill] sm:$0xff] }
 0x1da   :  { %v2339_v46 = vmax.f32 %v2211_v42, %v2275_v21  ;;  %v2409_v47 = vadd.f32 %v4456_v54, %v2338_v55 }
 0x1db   :  { %v2337_v24 = vmax.f32 %v2209_v5, %v2273_v57  ;;  %v2407_v25 = vadd.f32 %v4456_v54, %v2336_v3 }
 0x1dc   :  { %v2410_v10 = vadd.f32 %v4456_v54, %v2339_v46 }
 0x1dd   :  { %v2408_v11 = vadd.f32 %v4456_v54, %v2337_v24  ;;  %v3473_v60 = vpop.f32.mrb[116].mxu0  ;;  %v3601_v8 = vpop.f32.mrb[116].mxu1  ;;  %v4892_v24 = vld [vmem:[#allocation71_spill] sm:$0xff] }
 0x1de   :  { %v3140_v9 = vpack.c.bf16 %v2410_v10, %v2409_v47  ;;  %v2214_v61 = vmax.f32 %v4878_v48, %v3473_v60  ;;  %v2278_v50 = vmax.f32 %v4879_v49, %v3601_v8  ;;  %v1601_v51 = vpop.f32.mrb[117].mxu0  ;;  %v2113_v7 = vpop.f32.mrb[117].mxu1  ;;  %v4893_v10 = vld [vmem:[#allocation72_spill] sm:$0xff] }
 0x1df   :  { %v3135_v26 = vpack.c.bf16 %v2408_v11, %v2407_v25  ;;  %v2212_v27 = vmax.f32 %v4880_v18, %v1601_v51  ;;  %v2276_v52 = vmax.f32 %v4881_v28, %v2113_v7  ;;  %v3474_v53 = vpop.f32.mrb[118].mxu0  ;;  %v3602_v29 = vpop.f32.mrb[118].mxu1  ;;  %v4894_v7 = vld [vmem:[#allocation73_spill] sm:$0xff]  ;;  %v4895_v18 = vld [vmem:[#allocation74_spill] sm:$0xff] }
 0x1e0   :  { %3196 = vst [vmem:[%s4743_s3 + $0xc8] sm:$0xff] %v3140_v9   ;;  %v2342_v19 = vmax.f32 %v2214_v61, %v2278_v50  ;;  %v2215_v12 = vmax.f32 %v4882_v30, %v3474_v53  ;;  %v2279_v13 = vmax.f32 %v4883_v43, %v3602_v29  ;;  %v1604_v58 = vpop.f32.mrb[119].mxu0  ;;  %v2116_v32 = vpop.f32.mrb[119].mxu1  ;;  %v4896_v29 = vld [vmem:[#allocation75_spill] sm:$0xff]  ;;  %v4897_v30 = vld [vmem:[#allocation76_spill] sm:$0xff] }
 0x1e1   :  { %3195 = vst [vmem:[%s4743_s3 + $0xc0] sm:$0xff] %v3135_v26   ;;  %v2340_v59 = vmax.f32 %v2212_v27, %v2276_v52  ;;  %v2213_v22 = vmax.f32 %v4884_v33, %v1604_v58  ;;  %v2277_v23 = vmax.f32 %v4885_v0, %v2116_v32  ;;  %v4898_v32 = vld [vmem:[#allocation77_spill] sm:$0xff]  ;;  %v4899_v33 = vld [vmem:[#allocation78_spill] sm:$0xff] }
 0x1e2   :  { %v2343_v1 = vmax.f32 %v2215_v12, %v2279_v13  ;;  %v2413_v36 = vadd.f32 %v4456_v54, %v2342_v19 }
 0x1e3   :  { %v2341_v63 = vmax.f32 %v2213_v22, %v2277_v23  ;;  %v2411_v37 = vadd.f32 %v4456_v54, %v2340_v59 }
 0x1e4   :  { %v2414_v6 = vadd.f32 %v4456_v54, %v2343_v1 }
 0x1e5   :  { %v2412_v14 = vadd.f32 %v4456_v54, %v2341_v63  ;;  %v3477_v62 = vpop.f32.mrb[120].mxu0  ;;  %v3605_v31 = vpop.f32.mrb[120].mxu1  ;;  %v4900_v63 = vld [vmem:[#allocation79_spill] sm:$0xff] }
 0x1e6   :  { %v3150_v15 = vpack.c.bf16 %v2414_v6, %v2413_v36  ;;  %v2218_v17 = vmax.f32 %v4886_v16, %v3477_v62  ;;  %v2282_v38 = vmax.f32 %v4887_v34, %v3605_v31  ;;  %v1617_v35 = vpop.f32.mrb[121].mxu0  ;;  %v2129_v39 = vpop.f32.mrb[121].mxu1  ;;  %v4901_v6 = vld [vmem:[#allocation80_spill] sm:$0xff] }
 0x1e7   :  { %v3145_v40 = vpack.c.bf16 %v2412_v14, %v2411_v37  ;;  %v2216_v55 = vmax.f32 %v4888_v41, %v1617_v35  ;;  %v2280_v42 = vmax.f32 %v4889_v2, %v2129_v39  ;;  %v3478_v20 = vpop.f32.mrb[122].mxu0  ;;  %v3606_v21 = vpop.f32.mrb[122].mxu1 }
 0x1e8   :  { %3198 = vst [vmem:[%s4743_s3 + $0xd8] sm:$0xff] %v3150_v15   ;;  %v2346_v44 = vmax.f32 %v2218_v17, %v2282_v38  ;;  %v2219_v3 = vmax.f32 %v4890_v45, %v3478_v20  ;;  %v2283_v5 = vmax.f32 %v4891_v4, %v3606_v21  ;;  %v1620_v56 = vpop.f32.mrb[123].mxu0  ;;  %v2132_v57 = vpop.f32.mrb[123].mxu1 }
 0x1e9   :  { %3197 = vst [vmem:[%s4743_s3 + $0xd0] sm:$0xff] %v3145_v40   ;;  %v2344_v46 = vmax.f32 %v2216_v55, %v2280_v42  ;;  %v2217_v47 = vmax.f32 %v4892_v24, %v1620_v56  ;;  %v2281_v25 = vmax.f32 %v4893_v10, %v2132_v57 }
 0x1ea   :  { %v2347_v11 = vmax.f32 %v2219_v3, %v2283_v5  ;;  %v2417_v8 = vadd.f32 %v4456_v54, %v2346_v44 }
 0x1eb   :  { %v2345_v60 = vmax.f32 %v2217_v47, %v2281_v25  ;;  %v2415_v48 = vadd.f32 %v4456_v54, %v2344_v46 }
 0x1ec   :  { %v2418_v9 = vadd.f32 %v4456_v54, %v2347_v11 }
 0x1ed   :  { %v2416_v61 = vadd.f32 %v4456_v54, %v2345_v60  ;;  %v3481_v49 = vpop.f32.mrb[124].mxu0  ;;  %v3609_v50 = vpop.f32.mrb[124].mxu1 }
 0x1ee   :  { %v3160_v51 = vpack.c.bf16 %v2418_v9, %v2417_v8  ;;  %v2222_v26 = vmax.f32 %v4894_v7, %v3481_v49  ;;  %v2286_v27 = vmax.f32 %v4895_v18, %v3609_v50  ;;  %v1633_v28 = vpop.f32.mrb[125].mxu0  ;;  %v2145_v52 = vpop.f32.mrb[125].mxu1 }
 0x1ef   :  { %v3155_v53 = vpack.c.bf16 %v2416_v61, %v2415_v48  ;;  %v2220_v19 = vmax.f32 %v4896_v29, %v1633_v28  ;;  %v2284_v12 = vmax.f32 %v4897_v30, %v2145_v52  ;;  %v3482_v43 = vpop.f32.mrb[126].mxu0  ;;  %v3610_v13 = vpop.f32.mrb[126].mxu1 }
 0x1f0   :  { %3200 = vst [vmem:[%s4743_s3 + $0xe8] sm:$0xff] %v3160_v51   ;;  %v2350_v58 = vmax.f32 %v2222_v26, %v2286_v27  ;;  %v2223_v59 = vmax.f32 %v4898_v32, %v3482_v43  ;;  %v2287_v22 = vmax.f32 %v4899_v33, %v3610_v13  ;;  %v1636_v0 = vpop.f32.mrb[127].mxu0  ;;  %v2148_v23 = vpop.f32.mrb[127].mxu1 }
 0x1f1   :  { %3199 = vst [vmem:[%s4743_s3 + $0xe0] sm:$0xff] %v3155_v53   ;;  %v2348_v1 = vmax.f32 %v2220_v19, %v2284_v12  ;;  %v2221_v36 = vmax.f32 %v4900_v63, %v1636_v0  ;;  %v2285_v37 = vmax.f32 %v4901_v6, %v2148_v23 }
 0x1f2   :  { %v2351_v14 = vmax.f32 %v2223_v59, %v2287_v22  ;;  %v2421_v31 = vadd.f32 %v4456_v54, %v2350_v58 }
 0x1f3   :  { %v2349_v62 = vmax.f32 %v2221_v36, %v2285_v37  ;;  %v2419_v16 = vadd.f32 %v4456_v54, %v2348_v1 }
 0x1f4   :  { %v2422_v15 = vadd.f32 %v4456_v54, %v2351_v14 }
 0x1f5   :  { %v2420_v17 = vadd.f32 %v4456_v54, %v2349_v62 }
 0x1f6   :  { %v3170_v34 = vpack.c.bf16 %v2422_v15, %v2421_v31 }
 0x1f7   :  { %v3165_v38 = vpack.c.bf16 %v2420_v17, %v2419_v16 }
 0x1f8   :  { %3202 = vst [vmem:[%s4743_s3 + $0xf8] sm:$0xff] %v3170_v34  }
 0x1f9   :  { %3201 = vst [vmem:[%s4743_s3 + $0xf0] sm:$0xff] %v3165_v38  }

// kernel: tudui_forward.4
= control target key start
LH: loop header
LB: loop body
LE: loop exit
PB: predicated region body
PF: predicated region fallthrough
CT: control target
= control target key end

     0   :  { %v4263_v0 = vmov 0   ;;  %s5826_s1 = inlined_call_operand.vmem [shape: bf16[896,128], index: 1, kind: input, shape index: {}]   ;;  %s5827_s0 = inlined_call_operand.vmem [shape: bf16[4,128,896], index: 0, kind: input, shape index: {}]   ;;  %s5828_s2 = inlined_call_operand.vmem [shape: f32[1,128], index: 2, kind: input, shape index: {}]   ;;  %s5829_s3 = inlined_call_operand.vmem [shape: bf16[128,128], index: 3, kind: output, shape index: {}]  }
   0x1   :  { %1871 = vmatprep.subr.bf16.mxu1 %v4263_v0  ;;  %2160 = vmatprep.subr.bf16.mxu0 %v4263_v0  ;;  %v3887_v1 = vld [vmem:[%s5826_s1] sm:$0xff]   ;;  %v3889_v3 = vld [vmem:[%s5826_s1 + $0x8] sm:$0xff]   ;;  %v3891_v5 = vld [vmem:[%s5826_s1 + $0x10] sm:$0xff]  }
   0x2   :  { %v4292_v2 = vld [vmem:[%s5826_s1 + $0x80] sm:$0xff]   ;;  %1872 = vmatpush1.bf16.msra.mxu1 %v3887_v1  ;;  %v4302_v4 = vld [vmem:[%s5826_s1 + $0x88] sm:$0xff]   ;;  %v4313_v6 = vld [vmem:[%s5826_s1 + $0x90] sm:$0xff]  }
   0x3   :  { %2161 = vmatpush1.bf16.msra.mxu0 %v4292_v2  ;;  %1873 = vmatprep.subr.bf16.mxu1 %v4263_v0  ;;  %v3893_v7 = vld [vmem:[%s5826_s1 + $0x18] sm:$0xff]   ;;  %v3895_v9 = vld [vmem:[%s5826_s1 + $0x20] sm:$0xff]   ;;  %v3897_v11 = vld [vmem:[%s5826_s1 + $0x28] sm:$0xff]  }
   0x4   :  { %2162 = vmatprep.subr.bf16.mxu0 %v4263_v0  ;;  %v4324_v8 = vld [vmem:[%s5826_s1 + $0x98] sm:$0xff]   ;;  %v4335_v10 = vld [vmem:[%s5826_s1 + $0xa0] sm:$0xff]   ;;  %v4346_v12 = vld [vmem:[%s5826_s1 + $0xa8] sm:$0xff]  }
   0x5   :  { %v3899_v13 = vld [vmem:[%s5826_s1 + $0x30] sm:$0xff]   ;;  %v3901_v15 = vld [vmem:[%s5826_s1 + $0x38] sm:$0xff]   ;;  %v3903_v17 = vld [vmem:[%s5826_s1 + $0x40] sm:$0xff]  }
   0x6   :  { %1874 = vmatpush1.bf16.msra.mxu1 %v3889_v3  ;;  %v4357_v14 = vld [vmem:[%s5826_s1 + $0xb0] sm:$0xff]   ;;  %v4368_v16 = vld [vmem:[%s5826_s1 + $0xb8] sm:$0xff]   ;;  %v4379_v18 = vld [vmem:[%s5826_s1 + $0xc0] sm:$0xff]  }
   0x7   :  { %2163 = vmatpush1.bf16.msra.mxu0 %v4302_v4  ;;  %1875 = vmatprep.subr.bf16.mxu1 %v4263_v0  ;;  %v3921_v19 = vld [vmem:[%s5827_s0 + $0x4] ss:$28 sps:$4 sm:$0xff]   ;;  %v3905_v20 = vld [vmem:[%s5826_s1 + $0x48] sm:$0xff]   ;;  %v3907_v23 = vld [vmem:[%s5826_s1 + $0x50] sm:$0xff]  }
   0x8   :  { %2164 = vmatprep.subr.bf16.mxu0 %v4263_v0  ;;  %v3924_v21 = vld [vmem:[%s5827_s0 + $0xc] ss:$28 sps:$4 sm:$0xff]   ;;  %1903 = vmatprep.mubr.bf16.mxu1 %v3921_v19  ;;  %v4407_v24 = vld [vmem:[%s5826_s1 + $0xd0] sm:$0xff]   ;;  %v3909_v25 = vld [vmem:[%s5826_s1 + $0x58] sm:$0xff]  }
   0x9   :  { %v4396_v22 = vld [vmem:[%s5826_s1 + $0xc8] sm:$0xff]   ;;  %2192 = vmatprep.mubr.bf16.mxu0 %v3924_v21  ;;  %v4418_v26 = vld [vmem:[%s5826_s1 + $0xd8] sm:$0xff]   ;;  %v3911_v27 = vld [vmem:[%s5826_s1 + $0x60] sm:$0xff]  }
   0xa   :  { %1876 = vmatpush1.bf16.msra.mxu1 %v3891_v5  ;;  %v4429_v28 = vld [vmem:[%s5826_s1 + $0xe0] sm:$0xff]   ;;  %v3913_v29 = vld [vmem:[%s5826_s1 + $0x68] sm:$0xff]   ;;  %v3915_v31 = vld [vmem:[%s5826_s1 + $0x70] sm:$0xff]  }
   0xb   :  { %2165 = vmatpush1.bf16.msra.mxu0 %v4313_v6  ;;  %1877 = vmatprep.subr.bf16.mxu1 %v4263_v0  ;;  %v4440_v30 = vld [vmem:[%s5826_s1 + $0xe8] sm:$0xff]   ;;  %v4451_v32 = vld [vmem:[%s5826_s1 + $0xf0] sm:$0xff]   ;;  %v3917_v33 = vld [vmem:[%s5826_s1 + $0x78] sm:$0xff]  }
   0xc   :  { %2166 = vmatprep.subr.bf16.mxu0 %v4263_v0  ;;  %v4462_v34 = vld [vmem:[%s5826_s1 + $0xf8] sm:$0xff]   ;;  %v3922_v36 = vld [vmem:[%s5827_s0 + $0x8] ss:$28 sps:$4 sm:$0xff]   ;;  %v3933_v43 = vld [vmem:[%s5827_s0 + $0x74] ss:$28 sps:$4 sm:$0xff]  }
   0xd   :  { %v3919_v35 = vld [vmem:[%s5827_s0] ss:$28 sps:$4 sm:$0xff]   ;;  %v3932_v40 = vld [vmem:[%s5826_s1 + $0x108] sm:$0xff]   ;;  %v3930_v41 = vld [vmem:[%s5827_s0 + $0x38] ss:$28 sps:$4 sm:$0xff]  }
   0xe   :  { %1878 = vmatpush1.bf16.msra.mxu1 %v3893_v7  ;;  %v3925_v37 = vld [vmem:[%s5826_s1 + $0x100] sm:$0xff]   ;;  %v3926_v38 = vld [vmem:[%s5827_s0 + $0x3c] ss:$28 sps:$4 sm:$0xff]   ;;  %v3945_v45 = vld [vmem:[%s5826_s1 + $0x110] sm:$0xff]  }
   0xf   :  { %2167 = vmatpush1.bf16.msra.mxu0 %v4324_v8  ;;  %1879 = vmatprep.subr.bf16.mxu1 %v4263_v0  ;;  %v3928_v39 = vld [vmem:[%s5827_s0 + $0x44] ss:$28 sps:$4 sm:$0xff]   ;;  %v3935_v44 = vld [vmem:[%s5827_s0 + $0x7c] ss:$28 sps:$4 sm:$0xff]   ;;  %v3937_v47 = vld [vmem:[%s5827_s0 + $0x70] ss:$28 sps:$4 sm:$0xff]  }
  0x10   :  { %2168 = vmatprep.subr.bf16.mxu0 %v4263_v0  ;;  %v3931_v42 = vld [vmem:[%s5827_s0 + $0x40] ss:$28 sps:$4 sm:$0xff]   ;;  %v3938_v48 = vld [vmem:[%s5827_s0 + $0x78] ss:$28 sps:$4 sm:$0xff]   ;;  %v3939_v49 = vld [vmem:[%s5827_s0 + $0xac] ss:$28 sps:$4 sm:$0xff]  }
  0x11   :  { %v3952_v46 = vld [vmem:[%s5826_s1 + $0x118] sm:$0xff]   ;;  %v3941_v50 = vld [vmem:[%s5827_s0 + $0xb4] ss:$28 sps:$4 sm:$0xff]   ;;  %v3965_v51 = vld [vmem:[%s5826_s1 + $0x120] sm:$0xff]  }
  0x12   :  { %1880 = vmatpush1.bf16.msra.mxu1 %v3895_v9  ;;  %v3972_v52 = vld [vmem:[%s5826_s1 + $0x128] sm:$0xff]   ;;  %v3946_v55 = vld [vmem:[%s5827_s0 + $0xe4] ss:$28 sps:$4 sm:$0xff]   ;;  %v3985_v57 = vld [vmem:[%s5826_s1 + $0x130] sm:$0xff]  }
  0x13   :  { %2169 = vmatpush1.bf16.msra.mxu0 %v4335_v10  ;;  %1881 = vmatprep.subr.bf16.mxu1 %v4263_v0  ;;  %v3943_v53 = vld [vmem:[%s5827_s0 + $0xa8] ss:$28 sps:$4 sm:$0xff]   ;;  %v3944_v54 = vld [vmem:[%s5827_s0 + $0xb0] ss:$28 sps:$4 sm:$0xff]   ;;  %v3992_v58 = vld [vmem:[%s5826_s1 + $0x138] sm:$0xff]  }
  0x14   :  { %2170 = vmatprep.subr.bf16.mxu0 %v4263_v0  ;;  %v3948_v56 = vld [vmem:[%s5827_s0 + $0xec] ss:$28 sps:$4 sm:$0xff]   ;;  %v3950_v59 = vld [vmem:[%s5827_s0 + $0xe0] ss:$28 sps:$4 sm:$0xff]   ;;  %v3964_v9 = vld [vmem:[%s5827_s0 + $0x158] ss:$28 sps:$4 sm:$0xff]  }
  0x15   :  { %v3951_v60 = vld [vmem:[%s5827_s0 + $0xe8] ss:$28 sps:$4 sm:$0xff]   ;;  %v3953_v61 = vld [vmem:[%s5827_s0 + $0x11c] ss:$28 sps:$4 sm:$0xff]   ;;  %v3963_v7 = vld [vmem:[%s5827_s0 + $0x150] ss:$28 sps:$4 sm:$0xff]  }
  0x16   :  { %1882 = vmatpush1.bf16.msra.mxu1 %v3897_v11  ;;  %v3955_v62 = vld [vmem:[%s5827_s0 + $0x124] ss:$28 sps:$4 sm:$0xff]   ;;  %v4012_v1 = vld [vmem:[%s5826_s1 + $0x148] sm:$0xff]   ;;  %v3961_v5 = vld [vmem:[%s5827_s0 + $0x15c] ss:$28 sps:$4 sm:$0xff]  }
  0x17   :  { %2171 = vmatpush1.bf16.msra.mxu0 %v4346_v12  ;;  %1883 = vmatprep.subr.bf16.mxu1 %v4263_v0  ;;  %v4005_v63 = vld [vmem:[%s5826_s1 + $0x140] sm:$0xff]   ;;  %v3968_v11 = vld [vmem:[%s5827_s0 + $0x194] ss:$28 sps:$4 sm:$0xff]  }
  0x18   :  { %2172 = vmatprep.subr.bf16.mxu0 %v4263_v0  ;;  %v3958_v3 = vld [vmem:[%s5827_s0 + $0x120] ss:$28 sps:$4 sm:$0xff]   ;;  %v3978_v21 = vld [vmem:[%s5827_s0 + $0x1c8] ss:$28 sps:$4 sm:$0xff]  }
  0x19   :  { %v3977_v19 = vld [vmem:[%s5827_s0 + $0x1c0] ss:$28 sps:$4 sm:$0xff]  }
  0x1a   :  { %1884 = vmatpush1.bf16.msra.mxu1 %v3899_v13  ;;  %v3970_v13 = vld [vmem:[%s5827_s0 + $0x188] ss:$28 sps:$4 sm:$0xff]  }
  0x1b   :  { %2173 = vmatpush1.bf16.msra.mxu0 %v4357_v14  ;;  %1885 = vmatprep.subr.bf16.mxu1 %v4263_v0 }
  0x1c   :  { %2174 = vmatprep.subr.bf16.mxu0 %v4263_v0 }
  0x1e   :  { %1886 = vmatpush1.bf16.msra.mxu1 %v3901_v15  ;;  %v3971_v15 = vld [vmem:[%s5827_s0 + $0x190] ss:$28 sps:$4 sm:$0xff]  }
  0x1f   :  { %2175 = vmatpush1.bf16.msra.mxu0 %v4368_v16  ;;  %1887 = vmatprep.subr.bf16.mxu1 %v4263_v0 }
  0x20   :  { %2176 = vmatprep.subr.bf16.mxu0 %v4263_v0 }
  0x22   :  { %1888 = vmatpush1.bf16.msra.mxu1 %v3903_v17  ;;  %v3975_v17 = vld [vmem:[%s5827_s0 + $0x1cc] ss:$28 sps:$4 sm:$0xff]  }
  0x23   :  { %2177 = vmatpush1.bf16.msra.mxu0 %v4379_v18  ;;  %1889 = vmatprep.subr.bf16.mxu1 %v4263_v0 }
  0x24   :  { %2178 = vmatprep.subr.bf16.mxu0 %v4263_v0 }
  0x26   :  { %1890 = vmatpush1.bf16.msra.mxu1 %v3905_v20  ;;  %v4072_v20 = vld [vmem:[%s5826_s1 + $0x178] sm:$0xff]  }
  0x27   :  { %2179 = vmatpush1.bf16.msra.mxu0 %v4396_v22  ;;  %1891 = vmatprep.subr.bf16.mxu1 %v4263_v0 }
  0x28   :  { %2180 = vmatprep.subr.bf16.mxu0 %v4263_v0 }
  0x2a   :  { %1892 = vmatpush1.bf16.msra.mxu1 %v3907_v23  ;;  %v3981_v23 = vld [vmem:[%s5827_s0 + $0x204] ss:$28 sps:$4 sm:$0xff]  }
  0x2b   :  { %2181 = vmatpush1.bf16.msra.mxu0 %v4407_v24  ;;  %1893 = vmatprep.subr.bf16.mxu1 %v4263_v0 }
  0x2c   :  { %2182 = vmatprep.subr.bf16.mxu0 %v4263_v0 }
  0x2e   :  { %1894 = vmatpush1.bf16.msra.mxu1 %v3909_v25  ;;  %v3984_v25 = vld [vmem:[%s5827_s0 + $0x200] ss:$28 sps:$4 sm:$0xff]  }
  0x2f   :  { %2183 = vmatpush1.bf16.msra.mxu0 %v4418_v26  ;;  %1895 = vmatprep.subr.bf16.mxu1 %v4263_v0 }
  0x30   :  { %2184 = vmatprep.subr.bf16.mxu0 %v4263_v0 }
  0x32   :  { %1896 = vmatpush1.bf16.msra.mxu1 %v3911_v27  ;;  %v3990_v27 = vld [vmem:[%s5827_s0 + $0x230] ss:$28 sps:$4 sm:$0xff]  }
  0x33   :  { %2185 = vmatpush1.bf16.msra.mxu0 %v4429_v28  ;;  %1897 = vmatprep.subr.bf16.mxu1 %v4263_v0 }
  0x34   :  { %2186 = vmatprep.subr.bf16.mxu0 %v4263_v0 }
  0x36   :  { %1898 = vmatpush1.bf16.msra.mxu1 %v3913_v29  ;;  %v3993_v29 = vld [vmem:[%s5827_s0 + $0x26c] ss:$28 sps:$4 sm:$0xff]  }
  0x37   :  { %2187 = vmatpush1.bf16.msra.mxu0 %v4440_v30  ;;  %1899 = vmatprep.subr.bf16.mxu1 %v4263_v0 }
  0x38   :  { %2188 = vmatprep.subr.bf16.mxu0 %v4263_v0 }
  0x3a   :  { %1900 = vmatpush1.bf16.msra.mxu1 %v3915_v31  ;;  %v3997_v31 = vld [vmem:[%s5827_s0 + $0x268] ss:$28 sps:$4 sm:$0xff]  }
  0x3b   :  { %2189 = vmatpush1.bf16.msra.mxu0 %v4451_v32  ;;  %1901 = vmatprep.subr.bf16.mxu1 %v4263_v0 }
  0x3c   :  { %2190 = vmatprep.subr.bf16.mxu0 %v4263_v0 }
  0x3e   :  { %1902 = vmatpush1.bf16.msra.mxu1 %v3917_v33  ;;  %v3999_v33 = vld [vmem:[%s5827_s0 + $0x2a4] ss:$28 sps:$4 sm:$0xff]  }
  0x3f   :  { %2191 = vmatpush1.bf16.msra.mxu0 %v4462_v34  ;;  %3662 = vmatprep.subr.bf16.mxu1 %v4263_v0 }
  0x40   :  { %2449 = vmatprep.subr.bf16.mxu0 %v4263_v0 }
  0x41   :  { %1904 = vmatmul.mubr.bf16.vlgmr.msra.gmra.mrb[0].mxu1 %v3919_v35  ;;  %v4003_v35 = vld [vmem:[%s5827_s0 + $0x2a0] ss:$28 sps:$4 sm:$0xff]  }
  0x42   :  { %2193 = vmatmul.mubr.bf16.vlgmr.msra.gmra.mrb[0].mxu0 %v3922_v36  ;;  %3678 = vmatpush1.bf16.msra.mxu1 %v4292_v2  ;;  %v3957_v2 = vld [vmem:[%s5827_s0 + $0x118] ss:$28 sps:$4 sm:$0xff]   ;;  %v4004_v36 = vld [vmem:[%s5827_s0 + $0x2a8] ss:$28 sps:$4 sm:$0xff]  }
  0x43   :  { %2450 = vmatpush1.bf16.msra.mxu0 %v3925_v37  ;;  %1911 = vmatprep.mubr.bf16.mxu1 %v3926_v38  ;;  %v4006_v37 = vld [vmem:[%s5827_s0 + $0x2dc] ss:$28 sps:$4 sm:$0xff]   ;;  %v4008_v38 = vld [vmem:[%s5827_s0 + $0x2e4] ss:$28 sps:$4 sm:$0xff]  }
  0x44   :  { %2200 = vmatprep.mubr.bf16.mxu0 %v3928_v39  ;;  %2451 = vmatprep.subr.bf16.mxu0 %v4263_v0  ;;  %v4010_v39 = vld [vmem:[%s5827_s0 + $0x2d8] ss:$28 sps:$4 sm:$0xff]  }
  0x45   :  { %3663 = vmatprep.subr.bf16.mxu1 %v4263_v0 }
  0x46   :  { %3679 = vmatpush1.bf16.msra.mxu1 %v4302_v4  ;;  %v3959_v4 = vld [vmem:[%s5827_s0 + $0x154] ss:$28 sps:$4 sm:$0xff]  }
  0x47   :  { %2452 = vmatpush1.bf16.msra.mxu0 %v3932_v40  ;;  %3664 = vmatprep.subr.bf16.mxu1 %v4263_v0  ;;  %v4011_v40 = vld [vmem:[%s5827_s0 + $0x2e0] ss:$28 sps:$4 sm:$0xff]  }
  0x48   :  { %2453 = vmatprep.subr.bf16.mxu0 %v4263_v0 }
  0x49   :  { %1912 = vmatmul.mubr.bf16.gmra.mrb[4].mxu1 %v3930_v41  ;;  %v4013_v41 = vld [vmem:[%s5827_s0 + $0x314] ss:$28 sps:$4 sm:$0xff]  }
  0x4a   :  { %2201 = vmatmul.mubr.bf16.gmra.mrb[4].mxu0 %v3931_v42  ;;  %1919 = vmatprep.mubr.bf16.mxu1 %v3933_v43  ;;  %v4015_v42 = vld [vmem:[%s5827_s0 + $0x31c] ss:$28 sps:$4 sm:$0xff]   ;;  %v4017_v43 = vld [vmem:[%s5827_s0 + $0x310] ss:$28 sps:$4 sm:$0xff]  }
  0x4b   :  { %2208 = vmatprep.mubr.bf16.mxu0 %v3935_v44  ;;  %2454 = vmatpush1.bf16.msra.mxu0 %v3945_v45  ;;  %v4018_v44 = vld [vmem:[%s5827_s0 + $0x318] ss:$28 sps:$4 sm:$0xff]   ;;  %v4019_v45 = vld [vmem:[%s5827_s0 + $0x34c] ss:$28 sps:$4 sm:$0xff]  }
  0x4c   :  { %3680 = vmatpush1.bf16.msra.mxu1 %v4313_v6  ;;  %2455 = vmatprep.subr.bf16.mxu0 %v4263_v0  ;;  %v4025_v6 = vld [vmem:[%s5826_s1 + $0x150] sm:$0xff]  }
  0x4d   :  { %3665 = vmatprep.subr.bf16.mxu1 %v4263_v0 }
  0x4f   :  { %2456 = vmatpush1.bf16.msra.mxu0 %v3952_v46  ;;  %v4021_v46 = vld [vmem:[%s5827_s0 + $0x354] ss:$28 sps:$4 sm:$0xff]  }
  0x50   :  { %2457 = vmatprep.subr.bf16.mxu0 %v4263_v0  ;;  %3681 = vmatpush1.bf16.msra.mxu1 %v4324_v8  ;;  %v4032_v8 = vld [vmem:[%s5826_s1 + $0x158] sm:$0xff]  }
  0x51   :  { %1920 = vmatmul.mubr.bf16.gmra.mrb[8].mxu1 %v3937_v47  ;;  %3666 = vmatprep.subr.bf16.mxu1 %v4263_v0  ;;  %v4023_v47 = vld [vmem:[%s5827_s0 + $0x348] ss:$28 sps:$4 sm:$0xff]  }
  0x52   :  { %2209 = vmatmul.mubr.bf16.gmra.mrb[8].mxu0 %v3938_v48  ;;  %1927 = vmatprep.mubr.bf16.mxu1 %v3939_v49  ;;  %v4024_v48 = vld [vmem:[%s5827_s0 + $0x350] ss:$28 sps:$4 sm:$0xff]   ;;  %v4026_v49 = vld [vmem:[%s5827_s0 + $0x384] ss:$28 sps:$4 sm:$0xff]  }
  0x53   :  { %2216 = vmatprep.mubr.bf16.mxu0 %v3941_v50  ;;  %2458 = vmatpush1.bf16.msra.mxu0 %v3965_v51  ;;  %v4028_v50 = vld [vmem:[%s5827_s0 + $0x38c] ss:$28 sps:$4 sm:$0xff]   ;;  %v4030_v51 = vld [vmem:[%s5827_s0 + $0x380] ss:$28 sps:$4 sm:$0xff]  }
  0x54   :  { %2459 = vmatprep.subr.bf16.mxu0 %v4263_v0  ;;  %3682 = vmatpush1.bf16.msra.mxu1 %v4335_v10  ;;  %v3966_v10 = vld [vmem:[%s5827_s0 + $0x18c] ss:$28 sps:$4 sm:$0xff]  }
  0x55   :  { %3667 = vmatprep.subr.bf16.mxu1 %v4263_v0 }
  0x57   :  { %2460 = vmatpush1.bf16.msra.mxu0 %v3972_v52  ;;  %v4031_v52 = vld [vmem:[%s5827_s0 + $0x388] ss:$28 sps:$4 sm:$0xff]  }
  0x58   :  { %2461 = vmatprep.subr.bf16.mxu0 %v4263_v0  ;;  %3683 = vmatpush1.bf16.msra.mxu1 %v4346_v12  ;;  %v4045_v12 = vld [vmem:[%s5826_s1 + $0x160] sm:$0xff]  }
  0x59   :  { %1928 = vmatmul.mubr.bf16.gmra.mrb[12].mxu1 %v3943_v53  ;;  %3668 = vmatprep.subr.bf16.mxu1 %v4263_v0  ;;  %v4033_v53 = vld [vmem:[%s5827_s0 + $0x3bc] ss:$28 sps:$4 sm:$0xff]  }
  0x5a   :  { %2217 = vmatmul.mubr.bf16.gmra.mrb[12].mxu0 %v3944_v54  ;;  %1935 = vmatprep.mubr.bf16.mxu1 %v3946_v55  ;;  %v4035_v54 = vld [vmem:[%s5827_s0 + $0x3c4] ss:$28 sps:$4 sm:$0xff]  }
  0x5b   :  { %2224 = vmatprep.mubr.bf16.mxu0 %v3948_v56  ;;  %2462 = vmatpush1.bf16.msra.mxu0 %v3985_v57  ;;  %v4769_v55 = vld [vmem:[%s5826_s1 + $0x180] sm:$0xff]   ;;  %v4037_v56 = vld [vmem:[%s5827_s0 + $0x3b8] ss:$28 sps:$4 sm:$0xff]  }
  0x5c   :  { %2463 = vmatprep.subr.bf16.mxu0 %v4263_v0  ;;  %3684 = vmatpush1.bf16.msra.mxu1 %v4357_v14  ;;  %v4052_v14 = vld [vmem:[%s5826_s1 + $0x168] sm:$0xff]   ;;  %v4038_v57 = vld [vmem:[%s5827_s0 + $0x3c0] ss:$28 sps:$4 sm:$0xff]  }
  0x5d   :  { %3669 = vmatprep.subr.bf16.mxu1 %v4263_v0 }
  0x5f   :  { %2464 = vmatpush1.bf16.msra.mxu0 %v3992_v58  ;;  %v4039_v58 = vld [vmem:[%s5827_s0 + $0x3f4] ss:$28 sps:$4 sm:$0xff]  }
  0x60   :  { %2465 = vmatprep.subr.bf16.mxu0 %v4263_v0  ;;  %3685 = vmatpush1.bf16.msra.mxu1 %v4368_v16  ;;  %v3973_v16 = vld [vmem:[%s5827_s0 + $0x1c4] ss:$28 sps:$4 sm:$0xff]  }
  0x61   :  { %1936 = vmatmul.mubr.bf16.gmra.mrb[16].mxu1 %v3950_v59  ;;  %3670 = vmatprep.subr.bf16.mxu1 %v4263_v0  ;;  %v4041_v59 = vld [vmem:[%s5827_s0 + $0x3fc] ss:$28 sps:$4 sm:$0xff]  }
  0x62   :  { %2225 = vmatmul.mubr.bf16.gmra.mrb[16].mxu0 %v3951_v60  ;;  %1943 = vmatprep.mubr.bf16.mxu1 %v3953_v61  ;;  %v4043_v60 = vld [vmem:[%s5827_s0 + $0x3f0] ss:$28 sps:$4 sm:$0xff]   ;;  %v4044_v61 = vld [vmem:[%s5827_s0 + $0x3f8] ss:$28 sps:$4 sm:$0xff]  }
  0x63   :  { %2232 = vmatprep.mubr.bf16.mxu0 %v3955_v62  ;;  %2466 = vmatpush1.bf16.msra.mxu0 %v4005_v63  ;;  %v4046_v62 = vld [vmem:[%s5827_s0 + $0x42c] ss:$28 sps:$4 sm:$0xff]   ;;  %v4048_v63 = vld [vmem:[%s5827_s0 + $0x434] ss:$28 sps:$4 sm:$0xff]  }
  0x64   :  { %2467 = vmatprep.subr.bf16.mxu0 %v4263_v0  ;;  %3686 = vmatpush1.bf16.msra.mxu1 %v4379_v18  ;;  %v4065_v18 = vld [vmem:[%s5826_s1 + $0x170] sm:$0xff]  }
  0x65   :  { %3671 = vmatprep.subr.bf16.mxu1 %v4263_v0 }
  0x67   :  { %2468 = vmatpush1.bf16.msra.mxu0 %v4012_v1  ;;  %v4050_v1 = vld [vmem:[%s5827_s0 + $0x428] ss:$28 sps:$4 sm:$0xff]  }
  0x68   :  { %2469 = vmatprep.subr.bf16.mxu0 %v4263_v0  ;;  %3687 = vmatpush1.bf16.msra.mxu1 %v4396_v22  ;;  %v3979_v22 = vld [vmem:[%s5827_s0 + $0x1fc] ss:$28 sps:$4 sm:$0xff]  }
  0x69   :  { %1944 = vmatmul.mubr.bf16.gmra.mrb[20].mxu1 %v3957_v2  ;;  %3672 = vmatprep.subr.bf16.mxu1 %v4263_v0  ;;  %v4051_v2 = vld [vmem:[%s5827_s0 + $0x430] ss:$28 sps:$4 sm:$0xff]  }
  0x6a   :  { %2233 = vmatmul.mubr.bf16.gmra.mrb[20].mxu0 %v3958_v3  ;;  %1951 = vmatprep.mubr.bf16.mxu1 %v3959_v4  ;;  %v4053_v3 = vld [vmem:[%s5827_s0 + $0x464] ss:$28 sps:$4 sm:$0xff]   ;;  %v4055_v4 = vld [vmem:[%s5827_s0 + $0x46c] ss:$28 sps:$4 sm:$0xff]  }
  0x6b   :  { %2240 = vmatprep.mubr.bf16.mxu0 %v3961_v5  ;;  %2470 = vmatpush1.bf16.msra.mxu0 %v4025_v6  ;;  %v4057_v5 = vld [vmem:[%s5827_s0 + $0x460] ss:$28 sps:$4 sm:$0xff]   ;;  %v4058_v6 = vld [vmem:[%s5827_s0 + $0x468] ss:$28 sps:$4 sm:$0xff]  }
  0x6c   :  { %2471 = vmatprep.subr.bf16.mxu0 %v4263_v0  ;;  %3688 = vmatpush1.bf16.msra.mxu1 %v4407_v24  ;;  %v3983_v24 = vld [vmem:[%s5827_s0 + $0x1f8] ss:$28 sps:$4 sm:$0xff]  }
  0x6d   :  { %3673 = vmatprep.subr.bf16.mxu1 %v4263_v0 }
  0x6f   :  { %2472 = vmatpush1.bf16.msra.mxu0 %v4032_v8  ;;  %v4061_v8 = vld [vmem:[%s5827_s0 + $0x4a4] ss:$28 sps:$4 sm:$0xff]  }
  0x70   :  { %2473 = vmatprep.subr.bf16.mxu0 %v4263_v0  ;;  %3689 = vmatpush1.bf16.msra.mxu1 %v4418_v26  ;;  %v3986_v26 = vld [vmem:[%s5827_s0 + $0x234] ss:$28 sps:$4 sm:$0xff]  }
  0x71   :  { %1952 = vmatmul.mubr.bf16.gmra.mrb[24].mxu1 %v3963_v7  ;;  %3674 = vmatprep.subr.bf16.mxu1 %v4263_v0  ;;  %v4059_v7 = vld [vmem:[%s5827_s0 + $0x49c] ss:$28 sps:$4 sm:$0xff]  }
  0x72   :  { %2241 = vmatmul.mubr.bf16.gmra.mrb[24].mxu0 %v3964_v9  ;;  %1959 = vmatprep.mubr.bf16.mxu1 %v3966_v10  ;;  %v4063_v9 = vld [vmem:[%s5827_s0 + $0x498] ss:$28 sps:$4 sm:$0xff]   ;;  %v4064_v10 = vld [vmem:[%s5827_s0 + $0x4a0] ss:$28 sps:$4 sm:$0xff]  }
  0x73   :  { %2248 = vmatprep.mubr.bf16.mxu0 %v3968_v11  ;;  %2474 = vmatpush1.bf16.msra.mxu0 %v4045_v12  ;;  %v4066_v11 = vld [vmem:[%s5827_s0 + $0x4d4] ss:$28 sps:$4 sm:$0xff]   ;;  %v4068_v12 = vld [vmem:[%s5827_s0 + $0x4dc] ss:$28 sps:$4 sm:$0xff]  }
  0x74   :  { %2475 = vmatprep.subr.bf16.mxu0 %v4263_v0  ;;  %3690 = vmatpush1.bf16.msra.mxu1 %v4429_v28  ;;  %v3991_v28 = vld [vmem:[%s5827_s0 + $0x238] ss:$28 sps:$4 sm:$0xff]  }
  0x75   :  { %3675 = vmatprep.subr.bf16.mxu1 %v4263_v0 }
  0x77   :  { %2476 = vmatpush1.bf16.msra.mxu0 %v4052_v14  ;;  %v4071_v14 = vld [vmem:[%s5827_s0 + $0x4d8] ss:$28 sps:$4 sm:$0xff]  }
  0x78   :  { %2477 = vmatprep.subr.bf16.mxu0 %v4263_v0  ;;  %3691 = vmatpush1.bf16.msra.mxu1 %v4440_v30  ;;  %v3995_v30 = vld [vmem:[%s5827_s0 + $0x274] ss:$28 sps:$4 sm:$0xff]  }
  0x79   :  { %1960 = vmatmul.mubr.bf16.gmra.mrb[28].mxu1 %v3970_v13  ;;  %3676 = vmatprep.subr.bf16.mxu1 %v4263_v0  ;;  %v4070_v13 = vld [vmem:[%s5827_s0 + $0x4d0] ss:$28 sps:$4 sm:$0xff]  }
  0x7a   :  { %2249 = vmatmul.mubr.bf16.gmra.mrb[28].mxu0 %v3971_v15  ;;  %1967 = vmatprep.mubr.bf16.mxu1 %v3973_v16  ;;  %v4073_v15 = vld [vmem:[%s5827_s0 + $0x50c] ss:$28 sps:$4 sm:$0xff]   ;;  %v4075_v16 = vld [vmem:[%s5827_s0 + $0x514] ss:$28 sps:$4 sm:$0xff]  }
  0x7b   :  { %2256 = vmatprep.mubr.bf16.mxu0 %v3975_v17  ;;  %2478 = vmatpush1.bf16.msra.mxu0 %v4065_v18  ;;  %v4077_v17 = vld [vmem:[%s5827_s0 + $0x508] ss:$28 sps:$4 sm:$0xff]   ;;  %v4078_v18 = vld [vmem:[%s5827_s0 + $0x510] ss:$28 sps:$4 sm:$0xff]  }
  0x7c   :  { %2479 = vmatprep.subr.bf16.mxu0 %v4263_v0  ;;  %3692 = vmatpush1.bf16.msra.mxu1 %v4451_v32  ;;  %v3998_v32 = vld [vmem:[%s5827_s0 + $0x270] ss:$28 sps:$4 sm:$0xff]  }
  0x7d   :  { %3677 = vmatprep.subr.bf16.mxu1 %v4263_v0  ;;  %v3988_v0 = vld [vmem:[%s5827_s0 + $0x23c] ss:$28 sps:$4 sm:$0xff]  }
  0x7f   :  { %2480 = vmatpush1.bf16.msra.mxu0 %v4072_v20  ;;  %v4083_v20 = vld [vmem:[%s5827_s0 + $0x14] ss:$28 sps:$4 sm:$0xff]  }
  0x80   :  { %3693 = vmatpush1.bf16.msra.mxu1 %v4462_v34  ;;  %v4001_v34 = vld [vmem:[%s5827_s0 + $0x2ac] ss:$28 sps:$4 sm:$0xff]  }
  0x81   :  { %1968 = vmatmul.mubr.bf16.gmra.mrb[32].mxu1 %v3977_v19  ;;  %3582 = vmatprep.subr.bf16.mxu1 %v4769_v55  ;;  %v4079_v19 = vld [vmem:[%s5827_s0 + $0x544] ss:$28 sps:$4 sm:$0xff]  }
  0x82   :  { %2257 = vmatmul.mubr.bf16.gmra.mrb[32].mxu0 %v3978_v21  ;;  %1975 = vmatprep.mubr.bf16.mxu1 %v3979_v22  ;;  %v4084_v21 = vld [vmem:[%s5827_s0 + $0x540] ss:$28 sps:$4 sm:$0xff]   ;;  %v4081_v22 = vld [vmem:[%s5827_s0 + $0x10] ss:$28 sps:$4 sm:$0xff]  }
  0x83   :  { %2264 = vmatprep.mubr.bf16.mxu0 %v3981_v23  ;;  %v4085_v23 = vld [vmem:[%s5827_s0 + $0x57c] ss:$28 sps:$4 sm:$0xff]  }
  0x89   :  { %1976 = vmatmul.mubr.bf16.gmra.mrb[36].mxu1 %v3983_v24  ;;  %v4087_v24 = vld [vmem:[%s5827_s0 + $0x4c] ss:$28 sps:$4 sm:$0xff]  }
  0x8a   :  { %2265 = vmatmul.mubr.bf16.gmra.mrb[36].mxu0 %v3984_v25  ;;  %1983 = vmatprep.mubr.bf16.mxu1 %v3986_v26  ;;  %v4089_v25 = vld [vmem:[%s5827_s0 + $0x578] ss:$28 sps:$4 sm:$0xff]   ;;  %v4090_v26 = vld [vmem:[%s5827_s0 + $0x48] ss:$28 sps:$4 sm:$0xff]  }
  0x8b   :  { %2272 = vmatprep.mubr.bf16.mxu0 %v3988_v0  ;;  %v4091_v0 = vld [vmem:[%s5827_s0 + $0x5b4] ss:$28 sps:$4 sm:$0xff]  }
  0x91   :  { %1984 = vmatmul.mubr.bf16.gmra.mrb[40].mxu1 %v3990_v27  ;;  %v4093_v27 = vld [vmem:[%s5827_s0 + $0x84] ss:$28 sps:$4 sm:$0xff]  }
  0x92   :  { %2273 = vmatmul.mubr.bf16.gmra.mrb[40].mxu0 %v3991_v28  ;;  %1991 = vmatprep.mubr.bf16.mxu1 %v3993_v29  ;;  %v4095_v28 = vld [vmem:[%s5827_s0 + $0x5b0] ss:$28 sps:$4 sm:$0xff]   ;;  %v4096_v29 = vld [vmem:[%s5827_s0 + $0x80] ss:$28 sps:$4 sm:$0xff]  }
  0x93   :  { %2280 = vmatprep.mubr.bf16.mxu0 %v3995_v30  ;;  %v4097_v30 = vld [vmem:[%s5827_s0 + $0x5ec] ss:$28 sps:$4 sm:$0xff]  }
  0x99   :  { %1992 = vmatmul.mubr.bf16.gmra.mrb[44].mxu1 %v3997_v31  ;;  %v4099_v31 = vld [vmem:[%s5827_s0 + $0xbc] ss:$28 sps:$4 sm:$0xff]  }
  0x9a   :  { %2281 = vmatmul.mubr.bf16.gmra.mrb[44].mxu0 %v3998_v32  ;;  %1999 = vmatprep.mubr.bf16.mxu1 %v3999_v33 }
  0x9b   :  { %2288 = vmatprep.mubr.bf16.mxu0 %v4001_v34  ;;  %v4101_v34 = vld [vmem:[%s5827_s0 + $0x5e8] ss:$28 sps:$4 sm:$0xff]  }
  0xa1   :  { %2000 = vmatmul.mubr.bf16.gmra.mrb[48].mxu1 %v4003_v35 }
  0xa2   :  { %2289 = vmatmul.mubr.bf16.gmra.mrb[48].mxu0 %v4004_v36  ;;  %2007 = vmatprep.mubr.bf16.mxu1 %v4006_v37  ;;  %v4102_v36 = vld [vmem:[%s5827_s0 + $0xb8] ss:$28 sps:$4 sm:$0xff]   ;;  %v4103_v37 = vld [vmem:[%s5827_s0 + $0x624] ss:$28 sps:$4 sm:$0xff]  }
  0xa3   :  { %2296 = vmatprep.mubr.bf16.mxu0 %v4008_v38 }
  0xa9   :  { %2008 = vmatmul.mubr.bf16.gmra.mrb[52].mxu1 %v4010_v39  ;;  %v4105_v39 = vld [vmem:[%s5827_s0 + $0xf4] ss:$28 sps:$4 sm:$0xff]  }
  0xaa   :  { %2297 = vmatmul.mubr.bf16.gmra.mrb[52].mxu0 %v4011_v40  ;;  %2015 = vmatprep.mubr.bf16.mxu1 %v4013_v41 }
  0xab   :  { %2304 = vmatprep.mubr.bf16.mxu0 %v4015_v42  ;;  %v4107_v42 = vld [vmem:[%s5827_s0 + $0x620] ss:$28 sps:$4 sm:$0xff]  }
  0xb1   :  { %2016 = vmatmul.mubr.bf16.gmra.mrb[56].mxu1 %v4017_v43 }
  0xb2   :  { %2305 = vmatmul.mubr.bf16.gmra.mrb[56].mxu0 %v4018_v44  ;;  %2023 = vmatprep.mubr.bf16.mxu1 %v4019_v45  ;;  %v4108_v44 = vld [vmem:[%s5827_s0 + $0xf0] ss:$28 sps:$4 sm:$0xff]   ;;  %v4109_v45 = vld [vmem:[%s5827_s0 + $0x65c] ss:$28 sps:$4 sm:$0xff]  }
  0xb3   :  { %2312 = vmatprep.mubr.bf16.mxu0 %v4021_v46 }
  0xb9   :  { %2024 = vmatmul.mubr.bf16.gmra.mrb[60].mxu1 %v4023_v47  ;;  %v4111_v47 = vld [vmem:[%s5827_s0 + $0x12c] ss:$28 sps:$4 sm:$0xff]  }
  0xba   :  { %2313 = vmatmul.mubr.bf16.gmra.mrb[60].mxu0 %v4024_v48  ;;  %2031 = vmatprep.mubr.bf16.mxu1 %v4026_v49 }
  0xbb   :  { %2320 = vmatprep.mubr.bf16.mxu0 %v4028_v50  ;;  %v4113_v50 = vld [vmem:[%s5827_s0 + $0x658] ss:$28 sps:$4 sm:$0xff]  }
  0xc1   :  { %2032 = vmatmul.mubr.bf16.gmra.mrb[64].mxu1 %v4030_v51 }
  0xc2   :  { %2321 = vmatmul.mubr.bf16.gmra.mrb[64].mxu0 %v4031_v52  ;;  %2039 = vmatprep.mubr.bf16.mxu1 %v4033_v53  ;;  %v4114_v52 = vld [vmem:[%s5827_s0 + $0x128] ss:$28 sps:$4 sm:$0xff]   ;;  %v4115_v53 = vld [vmem:[%s5827_s0 + $0x694] ss:$28 sps:$4 sm:$0xff]  }
  0xc3   :  { %2328 = vmatprep.mubr.bf16.mxu0 %v4035_v54 }
  0xc9   :  { %2040 = vmatmul.mubr.bf16.gmra.mrb[68].mxu1 %v4037_v56  ;;  %v4117_v56 = vld [vmem:[%s5827_s0 + $0x164] ss:$28 sps:$4 sm:$0xff]  }
  0xca   :  { %2329 = vmatmul.mubr.bf16.gmra.mrb[68].mxu0 %v4038_v57  ;;  %2047 = vmatprep.mubr.bf16.mxu1 %v4039_v58 }
  0xcb   :  { %2336 = vmatprep.mubr.bf16.mxu0 %v4041_v59  ;;  %v4119_v59 = vld [vmem:[%s5827_s0 + $0x690] ss:$28 sps:$4 sm:$0xff]  }
  0xd1   :  { %2048 = vmatmul.mubr.bf16.gmra.mrb[72].mxu1 %v4043_v60 }
  0xd2   :  { %2337 = vmatmul.mubr.bf16.gmra.mrb[72].mxu0 %v4044_v61  ;;  %2055 = vmatprep.mubr.bf16.mxu1 %v4046_v62  ;;  %v4120_v61 = vld [vmem:[%s5827_s0 + $0x160] ss:$28 sps:$4 sm:$0xff]   ;;  %v4121_v62 = vld [vmem:[%s5827_s0 + $0x6cc] ss:$28 sps:$4 sm:$0xff]  }
  0xd3   :  { %2344 = vmatprep.mubr.bf16.mxu0 %v4048_v63 }
  0xd9   :  { %2056 = vmatmul.mubr.bf16.gmra.mrb[76].mxu1 %v4050_v1  ;;  %v4123_v1 = vld [vmem:[%s5827_s0 + $0x19c] ss:$28 sps:$4 sm:$0xff]  }
  0xda   :  { %2345 = vmatmul.mubr.bf16.gmra.mrb[76].mxu0 %v4051_v2  ;;  %2063 = vmatprep.mubr.bf16.mxu1 %v4053_v3 }
  0xdb   :  { %2352 = vmatprep.mubr.bf16.mxu0 %v4055_v4  ;;  %v4125_v4 = vld [vmem:[%s5827_s0 + $0x6c8] ss:$28 sps:$4 sm:$0xff]  }
  0xe1   :  { %2064 = vmatmul.mubr.bf16.gmra.mrb[80].mxu1 %v4057_v5 }
  0xe2   :  { %2353 = vmatmul.mubr.bf16.gmra.mrb[80].mxu0 %v4058_v6  ;;  %2071 = vmatprep.mubr.bf16.mxu1 %v4059_v7  ;;  %v4126_v6 = vld [vmem:[%s5827_s0 + $0x198] ss:$28 sps:$4 sm:$0xff]   ;;  %v4129_v7 = vld [vmem:[%s5827_s0 + $0x54c] ss:$28 sps:$4 sm:$0xff]  }
  0xe3   :  { %2360 = vmatprep.mubr.bf16.mxu0 %v4061_v8 }
  0xe9   :  { %2072 = vmatmul.mubr.bf16.gmra.mrb[84].mxu1 %v4063_v9  ;;  %v4130_v9 = vld [vmem:[%s5827_s0 + $0x1d4] ss:$28 sps:$4 sm:$0xff]  }
  0xea   :  { %2361 = vmatmul.mubr.bf16.gmra.mrb[84].mxu0 %v4064_v10  ;;  %2079 = vmatprep.mubr.bf16.mxu1 %v4066_v11 }
  0xeb   :  { %2368 = vmatprep.mubr.bf16.mxu0 %v4068_v12  ;;  %v4127_v12 = vld [vmem:[%s5827_s0 + $0x548] ss:$28 sps:$4 sm:$0xff]  }
  0xf1   :  { %2080 = vmatmul.mubr.bf16.gmra.mrb[88].mxu1 %v4070_v13 }
  0xf2   :  { %2369 = vmatmul.mubr.bf16.gmra.mrb[88].mxu0 %v4071_v14  ;;  %2087 = vmatprep.mubr.bf16.mxu1 %v4073_v15  ;;  %v4132_v14 = vld [vmem:[%s5827_s0 + $0x1d0] ss:$28 sps:$4 sm:$0xff]  }
  0xf3   :  { %2376 = vmatprep.mubr.bf16.mxu0 %v4075_v16  ;;  %v4134_v16 = vld [vmem:[%s5827_s0 + $0x584] ss:$28 sps:$4 sm:$0xff]  }
  0xf9   :  { %2088 = vmatmul.mubr.bf16.gmra.mrb[92].mxu1 %v4077_v17  ;;  %v4136_v17 = vld [vmem:[%s5827_s0 + $0x20c] ss:$28 sps:$4 sm:$0xff]  }
  0xfa   :  { %2377 = vmatmul.mubr.bf16.gmra.mrb[92].mxu0 %v4078_v18  ;;  %2095 = vmatprep.mubr.bf16.mxu1 %v4079_v19  ;;  %v4140_v18 = vld [vmem:[%s5826_s1 + $0x188] sm:$0xff]   ;;  %v4147_v19 = vld [vmem:[%s5826_s1 + $0x190] sm:$0xff]  }
  0xfb   :  { %2481 = vmatprep.mubr.bf16.mxu0 %v4083_v20 }
 0x101   :  { %2096 = vmatmul.mubr.bf16.gmra.mrb[96].mxu1 %v4084_v21 }
 0x102   :  { %2482 = vmatmul.mubr.bf16.vlgmr.msra.gmra.mrb[0].mxu0 %v4081_v22  ;;  %2103 = vmatprep.mubr.bf16.mxu1 %v4085_v23  ;;  %v4138_v22 = vld [vmem:[%s5827_s0 + $0x580] ss:$28 sps:$4 sm:$0xff]  }
 0x103   :  { %2489 = vmatprep.mubr.bf16.mxu0 %v4087_v24  ;;  %v4141_v24 = vld [vmem:[%s5827_s0 + $0x5bc] ss:$28 sps:$4 sm:$0xff]  }
 0x109   :  { %2104 = vmatmul.mubr.bf16.gmra.mrb[100].mxu1 %v4089_v25 }
 0x10a   :  { %2490 = vmatmul.mubr.bf16.gmra.mrb[4].mxu0 %v4090_v26  ;;  %2111 = vmatprep.mubr.bf16.mxu1 %v4091_v0  ;;  %v4143_v26 = vld [vmem:[%s5827_s0 + $0x244] ss:$28 sps:$4 sm:$0xff]   ;;  %v4154_v0 = vld [vmem:[%s5826_s1 + $0x198] sm:$0xff]  }
 0x10b   :  { %2497 = vmatprep.mubr.bf16.mxu0 %v4093_v27 }
 0x111   :  { %2112 = vmatmul.mubr.bf16.gmra.mrb[104].mxu1 %v4095_v28  ;;  %v4161_v28 = vld [vmem:[%s5826_s1 + $0x1a0] sm:$0xff]  }
 0x112   :  { %2498 = vmatmul.mubr.bf16.gmra.mrb[8].mxu0 %v4096_v29  ;;  %2119 = vmatprep.mubr.bf16.mxu1 %v4097_v30  ;;  %v4145_v30 = vld [vmem:[%s5827_s0 + $0x5b8] ss:$28 sps:$4 sm:$0xff]  }
 0x113   :  { %2505 = vmatprep.mubr.bf16.mxu0 %v4099_v31 }
 0x114   :  { %v4892_v32 = vpop.f32.mrb[0].mxu1 }
 0x115   :  { %v1907_v33 = vpop.f32.mrb[1].mxu1 }
 0x116   :  { %v4897_v35 = vpop.f32.mrb[2].mxu1  ;;  %v4146_v33 = vld [vmem:[%s5827_s0 + $0x240] ss:$28 sps:$4 sm:$0xff]  }
 0x117   :  { %v1910_v38 = vpop.f32.mrb[3].mxu1 }
 0x118   :  { %v4168_v38 = vld [vmem:[%s5826_s1 + $0x1a8] sm:$0xff]  }
 0x119   :  { %2120 = vmatmul.mubr.bf16.gmra.mrb[108].mxu1 %v4101_v34  ;;  %v4148_v34 = vld [vmem:[%s5827_s0 + $0x5f4] ss:$28 sps:$4 sm:$0xff]  }
 0x11a   :  { %2506 = vmatmul.mubr.bf16.gmra.mrb[12].mxu0 %v4102_v36  ;;  %2127 = vmatprep.mubr.bf16.mxu1 %v4103_v37  ;;  %v4150_v37 = vld [vmem:[%s5827_s0 + $0x27c] ss:$28 sps:$4 sm:$0xff]  }
 0x11b   :  { %2513 = vmatprep.mubr.bf16.mxu0 %v4105_v39 }
 0x11c   :  { %v4908_v40 = vpop.f32.mrb[4].mxu1 }
 0x11d   :  { %v1915_v41 = vpop.f32.mrb[5].mxu1 }
 0x11e   :  { %v4913_v43 = vpop.f32.mrb[6].mxu1  ;;  %v4175_v41 = vld [vmem:[%s5826_s1 + $0x1b0] sm:$0xff]  }
 0x11f   :  { %v1918_v46 = vpop.f32.mrb[7].mxu1 }
 0x120   :  { %v4153_v46 = vld [vmem:[%s5827_s0 + $0x278] ss:$28 sps:$4 sm:$0xff]  }
 0x121   :  { %2128 = vmatmul.mubr.bf16.gmra.mrb[112].mxu1 %v4107_v42 }
 0x122   :  { %2514 = vmatmul.mubr.bf16.gmra.mrb[16].mxu0 %v4108_v44  ;;  %2135 = vmatprep.mubr.bf16.mxu1 %v4109_v45  ;;  %v4152_v44 = vld [vmem:[%s5827_s0 + $0x5f0] ss:$28 sps:$4 sm:$0xff]  }
 0x123   :  { %2521 = vmatprep.mubr.bf16.mxu0 %v4111_v47  ;;  %v4155_v47 = vld [vmem:[%s5827_s0 + $0x62c] ss:$28 sps:$4 sm:$0xff]  }
 0x124   :  { %v4924_v48 = vpop.f32.mrb[8].mxu1 }
 0x125   :  { %v1923_v49 = vpop.f32.mrb[9].mxu1 }
 0x126   :  { %v4929_v51 = vpop.f32.mrb[10].mxu1 }
 0x127   :  { %v1926_v54 = vpop.f32.mrb[11].mxu1 }
 0x129   :  { %2136 = vmatmul.mubr.bf16.gmra.mrb[116].mxu1 %v4113_v50  ;;  %v4157_v50 = vld [vmem:[%s5827_s0 + $0x2b4] ss:$28 sps:$4 sm:$0xff]  }
 0x12a   :  { %2522 = vmatmul.mubr.bf16.gmra.mrb[20].mxu0 %v4114_v52  ;;  %2143 = vmatprep.mubr.bf16.mxu1 %v4115_v53  ;;  %v4182_v52 = vld [vmem:[%s5826_s1 + $0x1b8] sm:$0xff]  }
 0x12b   :  { %2529 = vmatprep.mubr.bf16.mxu0 %v4117_v56  ;;  %v4159_v56 = vld [vmem:[%s5827_s0 + $0x628] ss:$28 sps:$4 sm:$0xff]  }
 0x12c   :  { %v4940_v57 = vpop.f32.mrb[12].mxu1 }
 0x12d   :  { %v1931_v58 = vpop.f32.mrb[13].mxu1 }
 0x12e   :  { %v4945_v60 = vpop.f32.mrb[14].mxu1 }
 0x12f   :  { %v1934_v63 = vpop.f32.mrb[15].mxu1 }
 0x130   :  { %v4164_v63 = vld [vmem:[%s5827_s0 + $0x2ec] ss:$28 sps:$4 sm:$0xff]  }
 0x131   :  { %2144 = vmatmul.mubr.bf16.gmra.mrb[120].mxu1 %v4119_v59  ;;  %v4160_v59 = vld [vmem:[%s5827_s0 + $0x2b0] ss:$28 sps:$4 sm:$0xff]  }
 0x132   :  { %2530 = vmatmul.mubr.bf16.gmra.mrb[24].mxu0 %v4120_v61  ;;  %2151 = vmatprep.mubr.bf16.mxu1 %v4121_v62  ;;  %v4162_v61 = vld [vmem:[%s5827_s0 + $0x664] ss:$28 sps:$4 sm:$0xff]  }
 0x133   :  { %2537 = vmatprep.mubr.bf16.mxu0 %v4123_v1 }
 0x134   :  { %v4956_v2 = vpop.f32.mrb[16].mxu1 }
 0x135   :  { %v1939_v3 = vpop.f32.mrb[17].mxu1 }
 0x136   :  { %v4961_v5 = vpop.f32.mrb[18].mxu1 }
 0x137   :  { %v1942_v8 = vpop.f32.mrb[19].mxu1 }
 0x138   :  { %v4169_v8 = vld [vmem:[%s5827_s0 + $0x69c] ss:$28 sps:$4 sm:$0xff]  }
 0x139   :  { %2152 = vmatmul.mubr.bf16.gmra.mrb[124].mxu1 %v4125_v4  ;;  %v4166_v4 = vld [vmem:[%s5827_s0 + $0x660] ss:$28 sps:$4 sm:$0xff]  }
 0x13a   :  { %2538 = vmatmul.mubr.bf16.gmra.mrb[28].mxu0 %v4126_v6  ;;  %2384 = vmatprep.mubr.bf16.mxu1 %v4129_v7  ;;  %v4167_v7 = vld [vmem:[%s5827_s0 + $0x2e8] ss:$28 sps:$4 sm:$0xff]  }
 0x13b   :  { %2545 = vmatprep.mubr.bf16.mxu0 %v4130_v9 }
 0x13c   :  { %v4972_v10 = vpop.f32.mrb[20].mxu1 }
 0x13d   :  { %v1947_v11 = vpop.f32.mrb[21].mxu1 }
 0x13e   :  { %v4977_v13 = vpop.f32.mrb[22].mxu1  ;;  %v4171_v11 = vld [vmem:[%s5827_s0 + $0x324] ss:$28 sps:$4 sm:$0xff]  }
 0x13f   :  { %v1950_v15 = vpop.f32.mrb[23].mxu1 }
 0x140   :  { %v4173_v15 = vld [vmem:[%s5827_s0 + $0x698] ss:$28 sps:$4 sm:$0xff]  }
 0x141   :  { %2385 = vmatmul.mubr.bf16.vlgmr.msra.gmra.mrb[96].mxu1 %v4127_v12 }
 0x142   :  { %2546 = vmatmul.mubr.bf16.gmra.mrb[32].mxu0 %v4132_v14  ;;  %3583 = vmatpush3.bf16.msra.mxu1 %v4769_v55  ;;  %v4139_v55 = vld [vmem:[%s5827_s0 + $0x208] ss:$28 sps:$4 sm:$0xff]  }
 0x143   :  { %2392 = vmatprep.mubr.bf16.mxu1 %v4134_v16  ;;  %2553 = vmatprep.mubr.bf16.mxu0 %v4136_v17  ;;  %v4174_v17 = vld [vmem:[%s5827_s0 + $0x320] ss:$28 sps:$4 sm:$0xff]  }
 0x144   :  { %v4995_v20 = vpop.f32.mrb[24].mxu1  ;;  %3584 = vmatprep.subr.bf16.mxu1 %v4140_v18 }
 0x145   :  { %v1955_v21 = vpop.f32.mrb[25].mxu1 }
 0x146   :  { %v5000_v23 = vpop.f32.mrb[26].mxu1  ;;  %3585 = vmatpush3.bf16.msra.mxu1 %v4140_v18  ;;  %v4176_v18 = vld [vmem:[%s5827_s0 + $0x6d4] ss:$28 sps:$4 sm:$0xff]   ;;  %v4178_v21 = vld [vmem:[%s5827_s0 + $0x35c] ss:$28 sps:$4 sm:$0xff]  }
 0x147   :  { %v1958_v25 = vpop.f32.mrb[27].mxu1  ;;  %3586 = vmatprep.subr.bf16.mxu1 %v4147_v19 }
 0x149   :  { %2393 = vmatmul.mubr.bf16.gmra.mrb[100].mxu1 %v4138_v22 }
 0x14a   :  { %2554 = vmatmul.mubr.bf16.gmra.mrb[36].mxu0 %v4139_v55  ;;  %2400 = vmatprep.mubr.bf16.mxu1 %v4141_v24  ;;  %v4180_v24 = vld [vmem:[%s5827_s0 + $0x6d0] ss:$28 sps:$4 sm:$0xff]  }
 0x14b   :  { %2561 = vmatprep.mubr.bf16.mxu0 %v4143_v26  ;;  %3587 = vmatpush3.bf16.msra.mxu1 %v4147_v19  ;;  %v4181_v26 = vld [vmem:[%s5827_s0 + $0x358] ss:$28 sps:$4 sm:$0xff]  }
 0x14c   :  { %v5014_v27 = vpop.f32.mrb[28].mxu1  ;;  %3588 = vmatprep.subr.bf16.mxu1 %v4154_v0 }
 0x14d   :  { %v1963_v29 = vpop.f32.mrb[29].mxu1 }
 0x14e   :  { %v5022_v31 = vpop.f32.mrb[30].mxu1  ;;  %v4183_v29 = vld [vmem:[%s5827_s0 + $0x394] ss:$28 sps:$4 sm:$0xff]  }
 0x14f   :  { %v1966_v36 = vpop.f32.mrb[31].mxu1  ;;  %3589 = vmatpush3.bf16.msra.mxu1 %v4154_v0  ;;  %v4185_v0 = vld [vmem:[%s5827_s0 + $0x18] ss:$28 sps:$4 sm:$0xff]  }
 0x150   :  { %3590 = vmatprep.subr.bf16.mxu1 %v4161_v28 }
 0x151   :  { %2401 = vmatmul.mubr.bf16.gmra.mrb[104].mxu1 %v4145_v30 }
 0x152   :  { %2562 = vmatmul.mubr.bf16.gmra.mrb[40].mxu0 %v4146_v33  ;;  %2408 = vmatprep.mubr.bf16.mxu1 %v4148_v34  ;;  %v4187_v34 = vld [vmem:[%s5827_s0 + $0x50] ss:$28 sps:$4 sm:$0xff]  }
 0x153   :  { %2569 = vmatprep.mubr.bf16.mxu0 %v4150_v37  ;;  %3591 = vmatpush3.bf16.msra.mxu1 %v4161_v28  ;;  %v4186_v37 = vld [vmem:[%s5827_s0 + $0x390] ss:$28 sps:$4 sm:$0xff]  }
 0x154   :  { %v5036_v39 = vpop.f32.mrb[32].mxu1  ;;  %3592 = vmatprep.subr.bf16.mxu1 %v4168_v38 }
 0x155   :  { %v1971_v42 = vpop.f32.mrb[33].mxu1 }
 0x156   :  { %v5044_v45 = vpop.f32.mrb[34].mxu1  ;;  %v4188_v42 = vld [vmem:[%s5827_s0 + $0x3cc] ss:$28 sps:$4 sm:$0xff]  }
 0x157   :  { %v1974_v49 = vpop.f32.mrb[35].mxu1  ;;  %3593 = vmatpush3.bf16.msra.mxu1 %v4168_v38  ;;  %v4190_v38 = vld [vmem:[%s5827_s0 + $0x88] ss:$28 sps:$4 sm:$0xff]  }
 0x158   :  { %3594 = vmatprep.subr.bf16.mxu1 %v4175_v41 }
 0x159   :  { %2409 = vmatmul.mubr.bf16.gmra.mrb[108].mxu1 %v4152_v44 }
 0x15a   :  { %2570 = vmatmul.mubr.bf16.gmra.mrb[44].mxu0 %v4153_v46  ;;  %2416 = vmatprep.mubr.bf16.mxu1 %v4155_v47  ;;  %v4192_v47 = vld [vmem:[%s5827_s0 + $0xc0] ss:$28 sps:$4 sm:$0xff]  }
 0x15b   :  { %2577 = vmatprep.mubr.bf16.mxu0 %v4157_v50  ;;  %3595 = vmatpush3.bf16.msra.mxu1 %v4175_v41  ;;  %v4191_v50 = vld [vmem:[%s5827_s0 + $0x3c8] ss:$28 sps:$4 sm:$0xff]  }
 0x15c   :  { %v5058_v53 = vpop.f32.mrb[36].mxu1  ;;  %3596 = vmatprep.subr.bf16.mxu1 %v4182_v52 }
 0x15d   :  { %v1979_v54 = vpop.f32.mrb[37].mxu1 }
 0x15e   :  { %v5063_v58 = vpop.f32.mrb[38].mxu1 }
 0x15f   :  { %v1982_v62 = vpop.f32.mrb[39].mxu1  ;;  %3597 = vmatpush3.bf16.msra.mxu1 %v4182_v52  ;;  %v4195_v52 = vld [vmem:[%s5827_s0 + $0xf8] ss:$28 sps:$4 sm:$0xff]  }
 0x160   :  { %v4197_v62 = vld [vmem:[%s5827_s0 + $0x130] ss:$28 sps:$4 sm:$0xff]  }
 0x161   :  { %2417 = vmatmul.mubr.bf16.gmra.mrb[112].mxu1 %v4159_v56  ;;  %v4193_v56 = vld [vmem:[%s5827_s0 + $0x404] ss:$28 sps:$4 sm:$0xff]  }
 0x162   :  { %2578 = vmatmul.mubr.bf16.gmra.mrb[48].mxu0 %v4160_v59  ;;  %2424 = vmatprep.mubr.bf16.mxu1 %v4162_v61 }
 0x163   :  { %2585 = vmatprep.mubr.bf16.mxu0 %v4164_v63 }
 0x164   :  { %v5074_v1 = vpop.f32.mrb[40].mxu1 }
 0x165   :  { %v1987_v3 = vpop.f32.mrb[41].mxu1 }
 0x166   :  { %v5079_v6 = vpop.f32.mrb[42].mxu1  ;;  %v4196_v3 = vld [vmem:[%s5827_s0 + $0x400] ss:$28 sps:$4 sm:$0xff]  }
 0x167   :  { %v1990_v9 = vpop.f32.mrb[43].mxu1 }
 0x169   :  { %2425 = vmatmul.mubr.bf16.gmra.mrb[116].mxu1 %v4166_v4  ;;  %v4200_v4 = vld [vmem:[%s5827_s0 + $0x168] ss:$28 sps:$4 sm:$0xff]  }
 0x16a   :  { %2586 = vmatmul.mubr.bf16.gmra.mrb[52].mxu0 %v4167_v7  ;;  %2432 = vmatprep.mubr.bf16.mxu1 %v4169_v8  ;;  %v4198_v8 = vld [vmem:[%s5827_s0 + $0x43c] ss:$28 sps:$4 sm:$0xff]  }
 0x16b   :  { %2593 = vmatprep.mubr.bf16.mxu0 %v4171_v11 }
 0x16c   :  { %v5090_v12 = vpop.f32.mrb[44].mxu1 }
 0x16d   :  { %v1995_v14 = vpop.f32.mrb[45].mxu1 }
 0x16e   :  { %v5095_v16 = vpop.f32.mrb[46].mxu1  ;;  %v4202_v14 = vld [vmem:[%s5827_s0 + $0x1a0] ss:$28 sps:$4 sm:$0xff]  }
 0x16f   :  { %v1998_v19 = vpop.f32.mrb[47].mxu1 }
 0x171   :  { %2433 = vmatmul.mubr.bf16.gmra.mrb[120].mxu1 %v4173_v15 }
 0x172   :  { %2594 = vmatmul.mubr.bf16.gmra.mrb[56].mxu0 %v4174_v17  ;;  %2440 = vmatprep.mubr.bf16.mxu1 %v4176_v18  ;;  %v4201_v17 = vld [vmem:[%s5827_s0 + $0x438] ss:$28 sps:$4 sm:$0xff]  }
 0x173   :  { %2601 = vmatprep.mubr.bf16.mxu0 %v4178_v21  ;;  %v4205_v18 = vld [vmem:[%s5827_s0 + $0x1d8] ss:$28 sps:$4 sm:$0xff]  }
 0x174   :  { %v5106_v22 = vpop.f32.mrb[48].mxu1  ;;  %v4203_v21 = vld [vmem:[%s5827_s0 + $0x474] ss:$28 sps:$4 sm:$0xff]  }
 0x175   :  { %v2003_v55 = vpop.f32.mrb[49].mxu1 }
 0x176   :  { %v5111_v25 = vpop.f32.mrb[50].mxu1 }
 0x177   :  { %v2006_v28 = vpop.f32.mrb[51].mxu1 }
 0x178   :  { %v4206_v28 = vld [vmem:[%s5827_s0 + $0x470] ss:$28 sps:$4 sm:$0xff]  }
 0x179   :  { %2441 = vmatmul.mubr.bf16.gmra.mrb[124].mxu1 %v4180_v24 }
 0x17a   :  { %2602 = vmatmul.mubr.bf16.gmra.mrb[60].mxu0 %v4181_v26  ;;  %3598 = vmatprep.mubr.bf16.mxu1 %v4185_v0  ;;  %v4207_v26 = vld [vmem:[%s5827_s0 + $0x210] ss:$28 sps:$4 sm:$0xff]  }
 0x17b   :  { %2609 = vmatprep.mubr.bf16.mxu0 %v4183_v29  ;;  %v4210_v29 = vld [vmem:[%s5827_s0 + $0x248] ss:$28 sps:$4 sm:$0xff]  }
 0x17c   :  { %v5122_v30 = vpop.f32.mrb[52].mxu1 }
 0x17d   :  { %v2011_v33 = vpop.f32.mrb[53].mxu1 }
 0x17e   :  { %v5127_v36 = vpop.f32.mrb[54].mxu1 }
 0x17f   :  { %v2014_v41 = vpop.f32.mrb[55].mxu1 }
 0x180   :  { %v4212_v41 = vld [vmem:[%s5827_s0 + $0x280] ss:$28 sps:$4 sm:$0xff]  }
 0x181   :  { %3599 = vmatmul.mubr.bf16.vlgmr.msra.gmra.mrb[128].mxu1 %v4187_v34  ;;  %v4208_v34 = vld [vmem:[%s5827_s0 + $0x4ac] ss:$28 sps:$4 sm:$0xff]  }
 0x182   :  { %2610 = vmatmul.mubr.bf16.gmra.mrb[64].mxu0 %v4186_v37  ;;  %3602 = vmatprep.mubr.bf16.mxu1 %v4190_v38 }
 0x183   :  { %2617 = vmatprep.mubr.bf16.mxu0 %v4188_v42 }
 0x184   :  { %v5138_v44 = vpop.f32.mrb[56].mxu1 }
 0x185   :  { %v2019_v46 = vpop.f32.mrb[57].mxu1 }
 0x186   :  { %v5143_v49 = vpop.f32.mrb[58].mxu1  ;;  %v4211_v46 = vld [vmem:[%s5827_s0 + $0x4a8] ss:$28 sps:$4 sm:$0xff]  }
 0x187   :  { %v2022_v54 = vpop.f32.mrb[59].mxu1 }
 0x189   :  { %3603 = vmatmul.mubr.bf16.gmra.mrb[132].mxu1 %v4192_v47  ;;  %v4215_v47 = vld [vmem:[%s5827_s0 + $0x2b8] ss:$28 sps:$4 sm:$0xff]  }
 0x18a   :  { %2618 = vmatmul.mubr.bf16.gmra.mrb[68].mxu0 %v4191_v50  ;;  %3606 = vmatprep.mubr.bf16.mxu1 %v4195_v52  ;;  %v4213_v52 = vld [vmem:[%s5827_s0 + $0x4e4] ss:$28 sps:$4 sm:$0xff]  }
 0x18b   :  { %2625 = vmatprep.mubr.bf16.mxu0 %v4193_v56 }
 0x18c   :  { %v5154_v59 = vpop.f32.mrb[60].mxu1 }
 0x18d   :  { %v2027_v61 = vpop.f32.mrb[61].mxu1 }
 0x18e   :  { %v5159_v63 = vpop.f32.mrb[62].mxu1  ;;  %v4217_v61 = vld [vmem:[%s5827_s0 + $0x2f0] ss:$28 sps:$4 sm:$0xff]  }
 0x18f   :  { %v2030_v7 = vpop.f32.mrb[63].mxu1 }
 0x191   :  { %3607 = vmatmul.mubr.bf16.gmra.mrb[136].mxu1 %v4197_v62 }
 0x192   :  { %2626 = vmatmul.mubr.bf16.gmra.mrb[72].mxu0 %v4196_v3  ;;  %3610 = vmatprep.mubr.bf16.mxu1 %v4200_v4  ;;  %v4216_v3 = vld [vmem:[%s5827_s0 + $0x4e0] ss:$28 sps:$4 sm:$0xff]   ;;  %v4220_v4 = vld [vmem:[%s5827_s0 + $0x328] ss:$28 sps:$4 sm:$0xff]  }
 0x193   :  { %2633 = vmatprep.mubr.bf16.mxu0 %v4198_v8  ;;  %v4218_v8 = vld [vmem:[%s5827_s0 + $0x51c] ss:$28 sps:$4 sm:$0xff]  }
 0x194   :  { %v5170_v9 = vpop.f32.mrb[64].mxu1 }
 0x195   :  { %v2035_v11 = vpop.f32.mrb[65].mxu1 }
 0x196   :  { %v5175_v15 = vpop.f32.mrb[66].mxu1 }
 0x197   :  { %v2038_v19 = vpop.f32.mrb[67].mxu1 }
 0x198   :  { %v4221_v19 = vld [vmem:[%s5827_s0 + $0x518] ss:$28 sps:$4 sm:$0xff]  }
 0x199   :  { %3611 = vmatmul.mubr.bf16.gmra.mrb[140].mxu1 %v4202_v14 }
 0x19a   :  { %2634 = vmatmul.mubr.bf16.gmra.mrb[76].mxu0 %v4201_v17  ;;  %3614 = vmatprep.mubr.bf16.mxu1 %v4205_v18  ;;  %v4222_v17 = vld [vmem:[%s5827_s0 + $0x360] ss:$28 sps:$4 sm:$0xff]  }
 0x19b   :  { %2641 = vmatprep.mubr.bf16.mxu0 %v4203_v21  ;;  %v4225_v21 = vld [vmem:[%s5827_s0 + $0x398] ss:$28 sps:$4 sm:$0xff]  }
 0x19c   :  { %v5186_v55 = vpop.f32.mrb[68].mxu1 }
 0x19d   :  { %v2043_v24 = vpop.f32.mrb[69].mxu1 }
 0x19e   :  { %v5191_v0 = vpop.f32.mrb[70].mxu1 }
 0x19f   :  { %v2046_v33 = vpop.f32.mrb[71].mxu1 }
 0x1a0   :  { %v4227_v33 = vld [vmem:[%s5827_s0 + $0x3d0] ss:$28 sps:$4 sm:$0xff]  }
 0x1a1   :  { %3615 = vmatmul.mubr.bf16.gmra.mrb[144].mxu1 %v4207_v26  ;;  %v4223_v26 = vld [vmem:[%s5827_s0 + $0x554] ss:$28 sps:$4 sm:$0xff]  }
 0x1a2   :  { %2642 = vmatmul.mubr.bf16.gmra.mrb[80].mxu0 %v4206_v28  ;;  %3618 = vmatprep.mubr.bf16.mxu1 %v4210_v29 }
 0x1a3   :  { %2649 = vmatprep.mubr.bf16.mxu0 %v4208_v34 }
 0x1a4   :  { %v5202_v37 = vpop.f32.mrb[72].mxu1 }
 0x1a5   :  { %v2051_v38 = vpop.f32.mrb[73].mxu1 }
 0x1a6   :  { %v5207_v42 = vpop.f32.mrb[74].mxu1  ;;  %v4226_v38 = vld [vmem:[%s5827_s0 + $0x550] ss:$28 sps:$4 sm:$0xff]  }
 0x1a7   :  { %v2054_v50 = vpop.f32.mrb[75].mxu1 }
 0x1a9   :  { %3619 = vmatmul.mubr.bf16.gmra.mrb[148].mxu1 %v4212_v41  ;;  %v4230_v41 = vld [vmem:[%s5827_s0 + $0x408] ss:$28 sps:$4 sm:$0xff]  }
 0x1aa   :  { %2650 = vmatmul.mubr.bf16.gmra.mrb[84].mxu0 %v4211_v46  ;;  %3622 = vmatprep.mubr.bf16.mxu1 %v4215_v47  ;;  %v4228_v47 = vld [vmem:[%s5827_s0 + $0x58c] ss:$28 sps:$4 sm:$0xff]  }
 0x1ab   :  { %2657 = vmatprep.mubr.bf16.mxu0 %v4213_v52 }
 0x1ac   :  { %v5218_v54 = vpop.f32.mrb[76].mxu1 }
 0x1ad   :  { %v2059_v56 = vpop.f32.mrb[77].mxu1 }
 0x1ae   :  { %v5223_v62 = vpop.f32.mrb[78].mxu1  ;;  %v4232_v56 = vld [vmem:[%s5827_s0 + $0x440] ss:$28 sps:$4 sm:$0xff]  }
 0x1af   :  { %v2062_v7 = vpop.f32.mrb[79].mxu1 }
 0x1b1   :  { %3623 = vmatmul.mubr.bf16.gmra.mrb[152].mxu1 %v4217_v61 }
 0x1b2   :  { %2658 = vmatmul.mubr.bf16.gmra.mrb[88].mxu0 %v4216_v3  ;;  %3626 = vmatprep.mubr.bf16.mxu1 %v4220_v4  ;;  %v4231_v3 = vld [vmem:[%s5827_s0 + $0x588] ss:$28 sps:$4 sm:$0xff]   ;;  %v4235_v4 = vld [vmem:[%s5827_s0 + $0x478] ss:$28 sps:$4 sm:$0xff]  }
 0x1b3   :  { %2665 = vmatprep.mubr.bf16.mxu0 %v4218_v8  ;;  %v4233_v8 = vld [vmem:[%s5827_s0 + $0x5c4] ss:$28 sps:$4 sm:$0xff]  }
 0x1b4   :  { %v5234_v11 = vpop.f32.mrb[80].mxu1 }
 0x1b5   :  { %v2067_v14 = vpop.f32.mrb[81].mxu1 }
 0x1b6   :  { %v5239_v18 = vpop.f32.mrb[82].mxu1 }
 0x1b7   :  { %v2070_v24 = vpop.f32.mrb[83].mxu1 }
 0x1b8   :  { %v4236_v24 = vld [vmem:[%s5827_s0 + $0x5c0] ss:$28 sps:$4 sm:$0xff]  }
 0x1b9   :  { %3627 = vmatmul.mubr.bf16.gmra.mrb[156].mxu1 %v4222_v17 }
 0x1ba   :  { %2666 = vmatmul.mubr.bf16.gmra.mrb[92].mxu0 %v4221_v19  ;;  %3630 = vmatprep.mubr.bf16.mxu1 %v4225_v21  ;;  %v4237_v19 = vld [vmem:[%s5827_s0 + $0x4b0] ss:$28 sps:$4 sm:$0xff]  }
 0x1bb   :  { %2673 = vmatprep.mubr.bf16.mxu0 %v4223_v26  ;;  %v4240_v26 = vld [vmem:[%s5827_s0 + $0x4e8] ss:$28 sps:$4 sm:$0xff]  }
 0x1bc   :  { %v5250_v28 = vpop.f32.mrb[84].mxu1 }
 0x1bd   :  { %v2075_v29 = vpop.f32.mrb[85].mxu1 }
 0x1be   :  { %v5255_v34 = vpop.f32.mrb[86].mxu1 }
 0x1bf   :  { %v2078_v46 = vpop.f32.mrb[87].mxu1 }
 0x1c1   :  { %3631 = vmatmul.mubr.bf16.gmra.mrb[160].mxu1 %v4227_v33  ;;  %v4238_v33 = vld [vmem:[%s5827_s0 + $0x5fc] ss:$28 sps:$4 sm:$0xff]  }
 0x1c2   :  { %2674 = vmatmul.mubr.bf16.gmra.mrb[96].mxu0 %v4226_v38  ;;  %3634 = vmatprep.mubr.bf16.mxu1 %v4230_v41  ;;  %v4242_v41 = vld [vmem:[%s5827_s0 + $0x520] ss:$28 sps:$4 sm:$0xff]  }
 0x1c3   :  { %2681 = vmatprep.mubr.bf16.mxu0 %v4228_v47 }
 0x1c4   :  { %v5266_v50 = vpop.f32.mrb[88].mxu1 }
 0x1c5   :  { %v2083_v52 = vpop.f32.mrb[89].mxu1 }
 0x1c6   :  { %v5271_v61 = vpop.f32.mrb[90].mxu1  ;;  %v4241_v52 = vld [vmem:[%s5827_s0 + $0x5f8] ss:$28 sps:$4 sm:$0xff]  }
 0x1c7   :  { %v2086_v7 = vpop.f32.mrb[91].mxu1 }
 0x1c9   :  { %3635 = vmatmul.mubr.bf16.gmra.mrb[164].mxu1 %v4232_v56  ;;  %v4245_v56 = vld [vmem:[%s5827_s0 + $0x558] ss:$28 sps:$4 sm:$0xff]  }
 0x1ca   :  { %2682 = vmatmul.mubr.bf16.gmra.mrb[100].mxu0 %v4231_v3  ;;  %3638 = vmatprep.mubr.bf16.mxu1 %v4235_v4  ;;  %v4243_v4 = vld [vmem:[%s5827_s0 + $0x634] ss:$28 sps:$4 sm:$0xff]  }
 0x1cb   :  { %2689 = vmatprep.mubr.bf16.mxu0 %v4233_v8 }
 0x1cc   :  { %v5282_v14 = vpop.f32.mrb[92].mxu1 }
 0x1cd   :  { %v2091_v17 = vpop.f32.mrb[93].mxu1 }
 0x1ce   :  { %v5287_v21 = vpop.f32.mrb[94].mxu1  ;;  %v4247_v17 = vld [vmem:[%s5827_s0 + $0x590] ss:$28 sps:$4 sm:$0xff]  }
 0x1cf   :  { %v2094_v29 = vpop.f32.mrb[95].mxu1 }
 0x1d1   :  { %3639 = vmatmul.mubr.bf16.gmra.mrb[168].mxu1 %v4237_v19 }
 0x1d2   :  { %2690 = vmatmul.mubr.bf16.gmra.mrb[104].mxu0 %v4236_v24  ;;  %3642 = vmatprep.mubr.bf16.mxu1 %v4240_v26  ;;  %v4246_v26 = vld [vmem:[%s5827_s0 + $0x630] ss:$28 sps:$4 sm:$0xff]  }
 0x1d3   :  { %2697 = vmatprep.mubr.bf16.mxu0 %v4238_v33  ;;  %v4248_v33 = vld [vmem:[%s5827_s0 + $0x66c] ss:$28 sps:$4 sm:$0xff]  }
 0x1d5   :  { %v2483_v38 = vpop.f32.mrb[0].mxu0 }
 0x1d6   :  { %v5302_v46 = vadd.f32 %v2483_v38, %v4892_v32  ;;  %v2485_v47 = vpop.f32.mrb[1].mxu0 }
 0x1d7   :  { %v2486_v3 = vpop.f32.mrb[2].mxu0  ;;  %v4252_v47 = vld [vmem:[%s5827_s0 + $0x600] ss:$28 sps:$4 sm:$0xff]  }
 0x1d8   :  { %v5314_v7 = vadd.f32 %v2486_v3, %v4897_v35  ;;  %v2488_v8 = vpop.f32.mrb[3].mxu0  ;;  %v4250_v35 = vld [vmem:[%s5827_s0 + $0x5c8] ss:$28 sps:$4 sm:$0xff]  }
 0x1d9   :  { %3643 = vmatmul.mubr.bf16.gmra.mrb[172].mxu1 %v4242_v41  ;;  %v4251_v3 = vld [vmem:[%s5827_s0 + $0x668] ss:$28 sps:$4 sm:$0xff]  }
 0x1da   :  { %2698 = vmatmul.mubr.bf16.gmra.mrb[108].mxu0 %v4241_v52  ;;  %3646 = vmatprep.mubr.bf16.mxu1 %v4245_v56  ;;  %v4253_v8 = vld [vmem:[%s5827_s0 + $0x6a4] ss:$28 sps:$4 sm:$0xff]  }
 0x1db   :  { %2705 = vmatprep.mubr.bf16.mxu0 %v4243_v4 }
 0x1dd   :  { %v2491_v32 = vpop.f32.mrb[4].mxu0 }
 0x1de   :  { %v5320_v19 = vadd.f32 %v2491_v32, %v4908_v40  ;;  %v2493_v24 = vpop.f32.mrb[5].mxu0 }
 0x1df   :  { %v2494_v29 = vpop.f32.mrb[6].mxu0  ;;  %v4257_v24 = vld [vmem:[%s5827_s0 + $0x670] ss:$28 sps:$4 sm:$0xff]  }
 0x1e0   :  { %v5332_v38 = vadd.f32 %v2494_v29, %v4913_v43  ;;  %v2496_v41 = vpop.f32.mrb[7].mxu0  ;;  %v4255_v43 = vld [vmem:[%s5827_s0 + $0x638] ss:$28 sps:$4 sm:$0xff]   ;;  %v4256_v29 = vld [vmem:[%s5827_s0 + $0x6a0] ss:$28 sps:$4 sm:$0xff]  }
 0x1e1   :  { %3647 = vmatmul.mubr.bf16.gmra.mrb[176].mxu1 %v4247_v17  ;;  %v4258_v41 = vld [vmem:[%s5827_s0 + $0x6dc] ss:$28 sps:$4 sm:$0xff]  }
 0x1e2   :  { %2706 = vmatmul.mubr.bf16.gmra.mrb[112].mxu0 %v4246_v26  ;;  %3650 = vmatprep.mubr.bf16.mxu1 %v4250_v35 }
 0x1e3   :  { %2713 = vmatprep.mubr.bf16.mxu0 %v4248_v33 }
 0x1e5   :  { %v2499_v40 = vpop.f32.mrb[8].mxu0 }
 0x1e6   :  { %v5338_v52 = vadd.f32 %v2499_v40, %v4924_v48  ;;  %v2501_v56 = vpop.f32.mrb[9].mxu0 }
 0x1e7   :  { %v2502_v4 = vpop.f32.mrb[10].mxu0  ;;  %v4262_v56 = vld [vmem:[%s5827_s0 + $0x6e0] ss:$28 sps:$4 sm:$0xff]  }
 0x1e8   :  { %v5350_v32 = vadd.f32 %v2502_v4, %v4929_v51  ;;  %v2504_v17 = vpop.f32.mrb[11].mxu0  ;;  %v4260_v51 = vld [vmem:[%s5827_s0 + $0x6a8] ss:$28 sps:$4 sm:$0xff]   ;;  %v4261_v4 = vld [vmem:[%s5827_s0 + $0x6d8] ss:$28 sps:$4 sm:$0xff]  }
 0x1e9   :  { %3651 = vmatmul.mubr.bf16.gmra.mrb[180].mxu1 %v4252_v47 }
 0x1ea   :  { %2714 = vmatmul.mubr.bf16.gmra.mrb[116].mxu0 %v4251_v3  ;;  %3654 = vmatprep.mubr.bf16.mxu1 %v4255_v43 }
 0x1eb   :  { %2721 = vmatprep.mubr.bf16.mxu0 %v4253_v8 }
 0x1ed   :  { %v2507_v48 = vpop.f32.mrb[12].mxu0 }
 0x1ee   :  { %v5356_v26 = vadd.f32 %v2507_v48, %v4940_v57  ;;  %v2509_v35 = vpop.f32.mrb[13].mxu0 }
 0x1ef   :  { %v2510_v33 = vpop.f32.mrb[14].mxu0 }
 0x1f0   :  { %v5368_v40 = vadd.f32 %v2510_v33, %v4945_v60  ;;  %v2512_v47 = vpop.f32.mrb[15].mxu0 }
 0x1f1   :  { %3655 = vmatmul.mubr.bf16.gmra.mrb[184].mxu1 %v4257_v24 }
 0x1f2   :  { %2722 = vmatmul.mubr.bf16.gmra.mrb[120].mxu0 %v4256_v29  ;;  %3658 = vmatprep.mubr.bf16.mxu1 %v4260_v51 }
 0x1f3   :  { %2729 = vmatprep.mubr.bf16.mxu0 %v4258_v41 }
 0x1f5   :  { %v2515_v57 = vpop.f32.mrb[16].mxu0 }
 0x1f6   :  { %v5374_v3 = vadd.f32 %v2515_v57, %v4956_v2  ;;  %v2517_v43 = vpop.f32.mrb[17].mxu0 }
 0x1f7   :  { %v2518_v60 = vpop.f32.mrb[18].mxu0 }
 0x1f8   :  { %v5380_v8 = vadd.f32 %v2518_v60, %v4961_v5  ;;  %v2520_v17 = vpop.f32.mrb[19].mxu0 }
 0x1f9   :  { %3659 = vmatmul.mubr.bf16.gmra.mrb[188].mxu1 %v4262_v56 }
 0x1fa   :  { %2730 = vmatmul.mubr.bf16.gmra.mrb[124].mxu0 %v4261_v4 }
 0x1fd   :  { %v2523_v48 = vpop.f32.mrb[20].mxu0 }
 0x1fe   :  { %v5383_v24 = vadd.f32 %v2523_v48, %v4972_v10  ;;  %v2525_v35 = vpop.f32.mrb[21].mxu0 }
 0x1ff   :  { %v2526_v29 = vpop.f32.mrb[22].mxu0 }
 0x200   :  { %v5386_v2 = vadd.f32 %v2526_v29, %v4977_v13  ;;  %v2528_v51 = vpop.f32.mrb[23].mxu0 }
 0x205   :  { %v2531_v33 = vpop.f32.mrb[24].mxu0 }
 0x206   :  { %v5389_v41 = vadd.f32 %v2531_v33, %v4995_v20  ;;  %v2533_v47 = vpop.f32.mrb[25].mxu0 }
 0x207   :  { %v2534_v5 = vpop.f32.mrb[26].mxu0 }
 0x208   :  { %v5392_v57 = vadd.f32 %v2534_v5, %v5000_v23  ;;  %v2536_v56 = vpop.f32.mrb[27].mxu0 }
 0x20d   :  { %v2539_v43 = vpop.f32.mrb[28].mxu0 }
 0x20e   :  { %v5395_v10 = vadd.f32 %v2539_v43, %v5014_v27  ;;  %v2541_v4 = vpop.f32.mrb[29].mxu0 }
 0x20f   :  { %v2542_v60 = vpop.f32.mrb[30].mxu0 }
 0x210   :  { %v5398_v13 = vadd.f32 %v2542_v60, %v5022_v31  ;;  %v2544_v17 = vpop.f32.mrb[31].mxu0 }
 0x214   :  { %v5400_v48 = vpop.f32.mrb[96].mxu1 }
 0x215   :  { %v2547_v20 = vpop.f32.mrb[32].mxu0  ;;  %v2388_v35 = vpop.f32.mrb[97].mxu1 }
 0x216   :  { %v5403_v29 = vadd.f32 %v2547_v20, %v5036_v39  ;;  %v2549_v23 = vpop.f32.mrb[33].mxu0  ;;  %v5405_v51 = vpop.f32.mrb[98].mxu1 }
 0x217   :  { %v2550_v33 = vpop.f32.mrb[34].mxu0  ;;  %v2391_v47 = vpop.f32.mrb[99].mxu1 }
 0x218   :  { %v5408_v27 = vadd.f32 %v2550_v33, %v5044_v45  ;;  %v2552_v5 = vpop.f32.mrb[35].mxu0 }
 0x21c   :  { %v5410_v56 = vpop.f32.mrb[100].mxu1 }
 0x21d   :  { %5838 = vst [vmem:[#allocation2_spill] sm:$0xff] %v5410_v56  ;;  %v2555_v31 = vpop.f32.mrb[36].mxu0  ;;  %v2396_v43 = vpop.f32.mrb[101].mxu1 }
 0x21e   :  { %v5413_v4 = vadd.f32 %v2555_v31, %v5058_v53  ;;  %v2557_v60 = vpop.f32.mrb[37].mxu0  ;;  %v5415_v17 = vpop.f32.mrb[102].mxu1 }
 0x21f   :  { %5839 = vst [vmem:[#allocation3_spill] sm:$0xff] %v5415_v17  ;;  %v2558_v39 = vpop.f32.mrb[38].mxu0  ;;  %v2399_v20 = vpop.f32.mrb[103].mxu1 }
 0x220   :  { %v5418_v35 = vadd.f32 %v2558_v39, %v5063_v58  ;;  %v2560_v23 = vpop.f32.mrb[39].mxu0 }
 0x224   :  { %v5420_v47 = vpop.f32.mrb[104].mxu1 }
 0x225   :  { %5840 = vst [vmem:[#allocation4_spill] sm:$0xff] %v5420_v47  ;;  %v2563_v45 = vpop.f32.mrb[40].mxu0  ;;  %v2404_v33 = vpop.f32.mrb[105].mxu1 }
 0x226   :  { %v5423_v5 = vadd.f32 %v2563_v45, %v5074_v1  ;;  %v2565_v43 = vpop.f32.mrb[41].mxu0  ;;  %v5425_v56 = vpop.f32.mrb[106].mxu1 }
 0x227   :  { %5841 = vst [vmem:[#allocation5_spill] sm:$0xff] %v5425_v56  ;;  %v2566_v53 = vpop.f32.mrb[42].mxu0  ;;  %v2407_v31 = vpop.f32.mrb[107].mxu1 }
 0x228   :  { %v5428_v60 = vadd.f32 %v2566_v53, %v5079_v6  ;;  %v2568_v20 = vpop.f32.mrb[43].mxu0 }
 0x22c   :  { %v5430_v17 = vpop.f32.mrb[108].mxu1 }
 0x22d   :  { %5842 = vst [vmem:[#allocation6_spill] sm:$0xff] %v5430_v17  ;;  %v2571_v58 = vpop.f32.mrb[44].mxu0  ;;  %v2412_v39 = vpop.f32.mrb[109].mxu1 }
 0x22e   :  { %v5433_v23 = vadd.f32 %v2571_v58, %v5090_v12  ;;  %v2573_v33 = vpop.f32.mrb[45].mxu0  ;;  %v5435_v47 = vpop.f32.mrb[110].mxu1 }
 0x22f   :  { %5843 = vst [vmem:[#allocation7_spill] sm:$0xff] %v5435_v47  ;;  %v2574_v1 = vpop.f32.mrb[46].mxu0  ;;  %v2415_v45 = vpop.f32.mrb[111].mxu1 }
 0x230   :  { %v5438_v43 = vadd.f32 %v2574_v1, %v5095_v16  ;;  %v2576_v31 = vpop.f32.mrb[47].mxu0 }
 0x234   :  { %v5440_v56 = vpop.f32.mrb[112].mxu1 }
 0x235   :  { %5844 = vst [vmem:[#allocation8_spill] sm:$0xff] %v5440_v56  ;;  %v2579_v6 = vpop.f32.mrb[48].mxu0  ;;  %v2420_v53 = vpop.f32.mrb[113].mxu1 }
 0x236   :  { %v5443_v20 = vadd.f32 %v2579_v6, %v5106_v22  ;;  %v2581_v39 = vpop.f32.mrb[49].mxu0  ;;  %v5445_v17 = vpop.f32.mrb[114].mxu1 }
 0x237   :  { %5845 = vst [vmem:[#allocation9_spill] sm:$0xff] %v5445_v17  ;;  %v2582_v12 = vpop.f32.mrb[50].mxu0  ;;  %v2423_v58 = vpop.f32.mrb[115].mxu1 }
 0x238   :  { %v5448_v33 = vadd.f32 %v2582_v12, %v5111_v25  ;;  %v2584_v45 = vpop.f32.mrb[51].mxu0 }
 0x23c   :  { %v5450_v47 = vpop.f32.mrb[116].mxu1 }
 0x23d   :  { %5846 = vst [vmem:[#allocation10_spill] sm:$0xff] %v5450_v47  ;;  %v2587_v16 = vpop.f32.mrb[52].mxu0  ;;  %v2428_v1 = vpop.f32.mrb[117].mxu1 }
 0x23e   :  { %v5453_v31 = vadd.f32 %v2587_v16, %v5122_v30  ;;  %v2589_v53 = vpop.f32.mrb[53].mxu0  ;;  %v5455_v56 = vpop.f32.mrb[118].mxu1 }
 0x23f   :  { %5847 = vst [vmem:[#allocation11_spill] sm:$0xff] %v5455_v56  ;;  %v2590_v22 = vpop.f32.mrb[54].mxu0  ;;  %v2431_v6 = vpop.f32.mrb[119].mxu1 }
 0x240   :  { %v5458_v39 = vadd.f32 %v2590_v22, %v5127_v36  ;;  %v2592_v58 = vpop.f32.mrb[55].mxu0 }
 0x244   :  { %v5460_v17 = vpop.f32.mrb[120].mxu1 }
 0x245   :  { %5848 = vst [vmem:[#allocation12_spill] sm:$0xff] %v5460_v17  ;;  %v2595_v25 = vpop.f32.mrb[56].mxu0  ;;  %v2436_v12 = vpop.f32.mrb[121].mxu1 }
 0x246   :  { %v5463_v45 = vadd.f32 %v2595_v25, %v5138_v44  ;;  %v2597_v1 = vpop.f32.mrb[57].mxu0  ;;  %v5465_v47 = vpop.f32.mrb[122].mxu1 }
 0x247   :  { %5849 = vst [vmem:[#allocation13_spill] sm:$0xff] %v5465_v47  ;;  %v2598_v30 = vpop.f32.mrb[58].mxu0  ;;  %v2439_v16 = vpop.f32.mrb[123].mxu1 }
 0x248   :  { %v5468_v53 = vadd.f32 %v2598_v30, %v5143_v49  ;;  %v2600_v6 = vpop.f32.mrb[59].mxu0 }
 0x24c   :  { %v5470_v56 = vpop.f32.mrb[124].mxu1 }
 0x24d   :  { %v2603_v36 = vpop.f32.mrb[60].mxu0  ;;  %v2444_v22 = vpop.f32.mrb[125].mxu1 }
 0x24e   :  { %v5473_v58 = vadd.f32 %v2603_v36, %v5154_v59  ;;  %v2605_v12 = vpop.f32.mrb[61].mxu0  ;;  %v5475_v17 = vpop.f32.mrb[126].mxu1 }
 0x24f   :  { %5850 = vst [vmem:[#allocation14_spill] sm:$0xff] %v5475_v17  ;;  %v2606_v44 = vpop.f32.mrb[62].mxu0  ;;  %v2447_v25 = vpop.f32.mrb[127].mxu1 }
 0x250   :  { %v5478_v1 = vadd.f32 %v2606_v44, %v5159_v63  ;;  %v2608_v16 = vpop.f32.mrb[63].mxu0 }
 0x254   :  { %v3600_v47 = vpop.f32.mrb[128].mxu1 }
 0x255   :  { %v2611_v49 = vpop.f32.mrb[64].mxu0  ;;  %v5481_v30 = vadd.f32 %v5320_v19, %v3600_v47  ;;  %v2772_v6 = vpop.f32.mrb[129].mxu1 }
 0x256   :  { %v5484_v22 = vadd.f32 %v2611_v49, %v5170_v9  ;;  %v2613_v59 = vpop.f32.mrb[65].mxu0  ;;  %v5487_v36 = vadd.f32 %v5302_v46, %v2772_v6  ;;  %v3601_v12 = vpop.f32.mrb[130].mxu1 }
 0x257   :  { %v2614_v17 = vpop.f32.mrb[66].mxu0  ;;  %v5490_v25 = vadd.f32 %v5332_v38, %v3601_v12  ;;  %v2775_v63 = vpop.f32.mrb[131].mxu1 }
 0x258   :  { %v5493_v44 = vadd.f32 %v2614_v17, %v5175_v15  ;;  %v2616_v16 = vpop.f32.mrb[67].mxu0  ;;  %v5496_v19 = vadd.f32 %v5314_v7, %v2775_v63 }
 0x25c   :  { %v3604_v47 = vpop.f32.mrb[132].mxu1 }
 0x25d   :  { %v2619_v9 = vpop.f32.mrb[68].mxu0  ;;  %v5499_v49 = vadd.f32 %v5356_v26, %v3604_v47  ;;  %v2788_v46 = vpop.f32.mrb[133].mxu1 }
 0x25e   :  { %v5502_v6 = vadd.f32 %v2619_v9, %v5186_v55  ;;  %v2621_v59 = vpop.f32.mrb[69].mxu0  ;;  %v5505_v38 = vadd.f32 %v5338_v52, %v2788_v46  ;;  %v3605_v12 = vpop.f32.mrb[134].mxu1 }
 0x25f   :  { %v2622_v15 = vpop.f32.mrb[70].mxu0  ;;  %v5508_v17 = vadd.f32 %v5368_v40, %v3605_v12  ;;  %v2791_v7 = vpop.f32.mrb[135].mxu1 }
 0x260   :  { %v5511_v63 = vadd.f32 %v2622_v15, %v5191_v0  ;;  %v2624_v16 = vpop.f32.mrb[71].mxu0  ;;  %v5514_v26 = vadd.f32 %v5350_v32, %v2791_v7 }
 0x264   :  { %v3608_v47 = vpop.f32.mrb[136].mxu1 }
 0x265   :  { %v2627_v55 = vpop.f32.mrb[72].mxu0  ;;  %v5517_v9 = vadd.f32 %v5383_v24, %v3608_v47  ;;  %v2804_v52 = vpop.f32.mrb[137].mxu1 }
 0x266   :  { %v5520_v46 = vadd.f32 %v2627_v55, %v5202_v37  ;;  %v2629_v59 = vpop.f32.mrb[73].mxu0  ;;  %v5523_v40 = vadd.f32 %v5374_v3, %v2804_v52  ;;  %v3609_v12 = vpop.f32.mrb[138].mxu1 }
 0x267   :  { %v2630_v0 = vpop.f32.mrb[74].mxu0  ;;  %v5526_v15 = vadd.f32 %v5386_v2, %v3609_v12  ;;  %v2807_v32 = vpop.f32.mrb[139].mxu1 }
 0x268   :  { %v5529_v7 = vadd.f32 %v2630_v0, %v5207_v42  ;;  %v2632_v16 = vpop.f32.mrb[75].mxu0  ;;  %v5532_v24 = vadd.f32 %v5380_v8, %v2807_v32 }
 0x26c   :  { %v3612_v47 = vpop.f32.mrb[140].mxu1 }
 0x26d   :  { %v2635_v37 = vpop.f32.mrb[76].mxu0  ;;  %v5535_v55 = vadd.f32 %v5395_v10, %v3612_v47  ;;  %v2820_v3 = vpop.f32.mrb[141].mxu1 }
 0x26e   :  { %v5538_v52 = vadd.f32 %v2635_v37, %v5218_v54  ;;  %v2637_v59 = vpop.f32.mrb[77].mxu0  ;;  %v5541_v2 = vadd.f32 %v5389_v41, %v2820_v3  ;;  %v3613_v12 = vpop.f32.mrb[142].mxu1 }
 0x26f   :  { %5851 = vst [vmem:[#allocation15_spill] sm:$0xff] %v5535_v55  ;;  %v2638_v42 = vpop.f32.mrb[78].mxu0  ;;  %v5544_v0 = vadd.f32 %v5398_v13, %v3613_v12  ;;  %v2823_v8 = vpop.f32.mrb[143].mxu1 }
 0x270   :  { %5852 = vst [vmem:[#allocation16_spill] sm:$0xff] %v5541_v2  ;;  %v5547_v32 = vadd.f32 %v2638_v42, %v5223_v62  ;;  %v2640_v16 = vpop.f32.mrb[79].mxu0  ;;  %v5550_v10 = vadd.f32 %v5392_v57, %v2823_v8 }
 0x271   :  { %5853 = vst [vmem:[#allocation17_spill] sm:$0xff] %v5544_v0 }
 0x272   :  { %5854 = vst [vmem:[#allocation18_spill] sm:$0xff] %v5550_v10 }
 0x274   :  { %v3616_v47 = vpop.f32.mrb[144].mxu1 }
 0x275   :  { %v2643_v54 = vpop.f32.mrb[80].mxu0  ;;  %v5553_v37 = vadd.f32 %v5413_v4, %v3616_v47  ;;  %v2836_v41 = vpop.f32.mrb[145].mxu1 }
 0x276   :  { %v5556_v3 = vadd.f32 %v2643_v54, %v5234_v11  ;;  %v2645_v59 = vpop.f32.mrb[81].mxu0  ;;  %v5559_v13 = vadd.f32 %v5403_v29, %v2836_v41  ;;  %v3617_v12 = vpop.f32.mrb[146].mxu1 }
 0x277   :  { %v2646_v42 = vpop.f32.mrb[82].mxu0  ;;  %v5564_v57 = vadd.f32 %v5418_v35, %v3617_v12  ;;  %v2839_v8 = vpop.f32.mrb[147].mxu1 }
 0x278   :  { %v5569_v16 = vadd.f32 %v2646_v42, %v5239_v18  ;;  %v2648_v11 = vpop.f32.mrb[83].mxu0  ;;  %v5572_v47 = vadd.f32 %v5408_v27, %v2839_v8 }
 0x27c   :  { %v3620_v41 = vpop.f32.mrb[148].mxu1 }
 0x27d   :  { %v2651_v35 = vpop.f32.mrb[84].mxu0  ;;  %v5579_v59 = vadd.f32 %v5433_v23, %v3620_v41  ;;  %v2852_v12 = vpop.f32.mrb[149].mxu1 }
 0x27e   :  { %v5582_v4 = vadd.f32 %v2651_v35, %v5250_v28  ;;  %v2653_v18 = vpop.f32.mrb[85].mxu0  ;;  %v5585_v42 = vadd.f32 %v5423_v5, %v2852_v12  ;;  %v3621_v27 = vpop.f32.mrb[150].mxu1 }
 0x27f   :  { %v2654_v11 = vpop.f32.mrb[86].mxu0  ;;  %v5590_v54 = vadd.f32 %v5438_v43, %v3621_v27  ;;  %v2855_v29 = vpop.f32.mrb[151].mxu1 }
 0x280   :  { %v5595_v41 = vadd.f32 %v2654_v11, %v5255_v34  ;;  %v2656_v28 = vpop.f32.mrb[87].mxu0  ;;  %v5598_v35 = vadd.f32 %v5428_v60, %v2855_v29 }
 0x284   :  { %v3624_v18 = vpop.f32.mrb[152].mxu1 }
 0x285   :  { %v2659_v43 = vpop.f32.mrb[88].mxu0  ;;  %v5605_v27 = vadd.f32 %v5453_v31, %v3624_v18  ;;  %v2868_v8 = vpop.f32.mrb[153].mxu1 }
 0x286   :  { %v5608_v23 = vadd.f32 %v2659_v43, %v5266_v50  ;;  %v2661_v34 = vpop.f32.mrb[89].mxu0  ;;  %v5611_v11 = vadd.f32 %v5443_v20, %v2868_v8  ;;  %v3625_v60 = vpop.f32.mrb[154].mxu1 }
 0x287   :  { %v2662_v28 = vpop.f32.mrb[90].mxu0  ;;  %v5616_v12 = vadd.f32 %v5458_v39, %v3625_v60  ;;  %v2871_v5 = vpop.f32.mrb[155].mxu1 }
 0x288   :  { %v5621_v18 = vadd.f32 %v2662_v28, %v5271_v61  ;;  %v2664_v50 = vpop.f32.mrb[91].mxu0  ;;  %v5624_v43 = vadd.f32 %v5448_v33, %v2871_v5 }
 0x28c   :  { %v3628_v34 = vpop.f32.mrb[156].mxu1 }
 0x28d   :  { %v2667_v39 = vpop.f32.mrb[92].mxu0  ;;  %v5631_v60 = vadd.f32 %v5473_v58, %v3628_v34  ;;  %v2884_v29 = vpop.f32.mrb[157].mxu1 }
 0x28e   :  { %v3740_v31 = vadd.f32 %v2667_v39, %v5282_v14  ;;  %v2669_v61 = vpop.f32.mrb[93].mxu0  ;;  %v5635_v28 = vadd.f32 %v5463_v45, %v2884_v29  ;;  %v3629_v33 = vpop.f32.mrb[158].mxu1 }
 0x28f   :  { %5855 = vst [vmem:[#allocation19_spill] sm:$0xff] %v5631_v60  ;;  %v2670_v50 = vpop.f32.mrb[94].mxu0  ;;  %v5640_v20 = vadd.f32 %v5478_v1, %v3629_v33  ;;  %v2887_v8 = vpop.f32.mrb[159].mxu1 }
 0x290   :  { %5856 = vst [vmem:[#allocation20_spill] sm:$0xff] %v5635_v28  ;;  %v3741_v34 = vadd.f32 %v2670_v50, %v5287_v21  ;;  %v2672_v62 = vpop.f32.mrb[95].mxu0  ;;  %v5646_v14 = vadd.f32 %v5468_v53, %v2887_v8 }
 0x291   :  { %5857 = vst [vmem:[#allocation21_spill] sm:$0xff] %v5640_v20 }
 0x292   :  { %5858 = vst [vmem:[#allocation22_spill] sm:$0xff] %v5646_v14 }
 0x294   :  { %v3632_v39 = vpop.f32.mrb[160].mxu1 }
 0x295   :  { %v2675_v61 = vpop.f32.mrb[96].mxu0  ;;  %v5653_v1 = vadd.f32 %v5502_v6, %v3632_v39  ;;  %v2900_v33 = vpop.f32.mrb[161].mxu1 }
 0x296   :  { %v3742_v5 = vadd.f32 %v2675_v61, %v5400_v48  ;;  %v2677_v58 = vpop.f32.mrb[97].mxu0  ;;  %v5657_v21 = vadd.f32 %v5484_v22, %v2900_v33  ;;  %v3633_v53 = vpop.f32.mrb[162].mxu1  ;;  %v5859_v22 = vld [vmem:[#allocation2_spill] sm:$0xff] }
 0x297   :  { %v2678_v62 = vpop.f32.mrb[98].mxu0  ;;  %v5660_v8 = vadd.f32 %v5511_v63, %v3633_v53  ;;  %v2903_v50 = vpop.f32.mrb[163].mxu1 }
 0x298   :  { %v3743_v45 = vadd.f32 %v2678_v62, %v5405_v51  ;;  %v2680_v29 = vpop.f32.mrb[99].mxu0  ;;  %v5664_v20 = vadd.f32 %v5493_v44, %v2903_v50  ;;  %v5860_v44 = vld [vmem:[#allocation3_spill] sm:$0xff] }
 0x29c   :  { %v3636_v6 = vpop.f32.mrb[164].mxu1 }
 0x29d   :  { %v2683_v39 = vpop.f32.mrb[100].mxu0  ;;  %v5667_v48 = vadd.f32 %v5538_v52, %v3636_v6  ;;  %v2916_v58 = vpop.f32.mrb[165].mxu1 }
 0x29e   :  { %v3744_v61 = vadd.f32 %v2683_v39, %v5859_v22  ;;  %v2685_v33 = vpop.f32.mrb[101].mxu0  ;;  %v5671_v0 = vadd.f32 %v5520_v46, %v2916_v58  ;;  %v3637_v63 = vpop.f32.mrb[166].mxu1  ;;  %v5861_v46 = vld [vmem:[#allocation4_spill] sm:$0xff] }
 0x29f   :  { %v2686_v53 = vpop.f32.mrb[102].mxu0  ;;  %v5674_v51 = vadd.f32 %v5547_v32, %v3637_v63  ;;  %v2919_v29 = vpop.f32.mrb[167].mxu1 }
 0x2a0   :  { %v3745_v62 = vadd.f32 %v2686_v53, %v5860_v44  ;;  %v2688_v50 = vpop.f32.mrb[103].mxu0  ;;  %v5678_v14 = vadd.f32 %v5529_v7, %v2919_v29  ;;  %v5862_v7 = vld [vmem:[#allocation5_spill] sm:$0xff] }
 0x2a4   :  { %v3640_v52 = vpop.f32.mrb[168].mxu1 }
 0x2a5   :  { %v2691_v6 = vpop.f32.mrb[104].mxu0  ;;  %v5681_v39 = vadd.f32 %v5582_v4, %v3640_v52  ;;  %v2932_v22 = vpop.f32.mrb[169].mxu1 }
 0x2a6   :  { %v3746_v58 = vadd.f32 %v2691_v6, %v5861_v46  ;;  %v2693_v33 = vpop.f32.mrb[105].mxu0  ;;  %v5685_v10 = vadd.f32 %v5556_v3, %v2932_v22  ;;  %v3641_v32 = vpop.f32.mrb[170].mxu1  ;;  %v5864_v3 = vld [vmem:[#allocation6_spill] sm:$0xff] }
 0x2a7   :  { %v2694_v63 = vpop.f32.mrb[106].mxu0  ;;  %v5688_v53 = vadd.f32 %v5595_v41, %v3641_v32  ;;  %v2935_v44 = vpop.f32.mrb[171].mxu1 }
 0x2a8   :  { %v5691_v29 = vadd.f32 %v2694_v63, %v5862_v7  ;;  %v2696_v50 = vpop.f32.mrb[107].mxu0  ;;  %v5694_v4 = vadd.f32 %v5569_v16, %v2935_v44  ;;  %v5867_v7 = vld [vmem:[#allocation7_spill] sm:$0xff] }
 0x2ac   :  { %v3644_v52 = vpop.f32.mrb[172].mxu1 }
 0x2ad   :  { %v2699_v60 = vpop.f32.mrb[108].mxu0  ;;  %v5696_v6 = vadd.f32 %v3740_v31, %v3644_v52  ;;  %v2948_v46 = vpop.f32.mrb[173].mxu1 }
 0x2ae   :  { %v3748_v22 = vadd.f32 %v2699_v60, %v5864_v3  ;;  %v2701_v33 = vpop.f32.mrb[109].mxu0  ;;  %v5700_v55 = vadd.f32 %v5608_v23, %v2948_v46  ;;  %v3645_v41 = vpop.f32.mrb[174].mxu1  ;;  %v5868_v60 = vld [vmem:[#allocation8_spill] sm:$0xff] }
 0x2af   :  { %5863 = vst [vmem:[#allocation2_spill] sm:$0xff] %v5696_v6  ;;  %v2702_v32 = vpop.f32.mrb[110].mxu0  ;;  %v5702_v28 = vadd.f32 %v3741_v34, %v3645_v41  ;;  %v2951_v63 = vpop.f32.mrb[175].mxu1 }
 0x2b0   :  { %5865 = vst [vmem:[#allocation3_spill] sm:$0xff] %v5700_v55  ;;  %v3749_v50 = vadd.f32 %v2702_v32, %v5867_v7  ;;  %v2704_v16 = vpop.f32.mrb[111].mxu0  ;;  %v5706_v44 = vadd.f32 %v5621_v18, %v2951_v63  ;;  %v5869_v7 = vld [vmem:[#allocation9_spill] sm:$0xff] }
 0x2b1   :  { %5866 = vst [vmem:[#allocation4_spill] sm:$0xff] %v5702_v28 }
 0x2b4   :  { %v3648_v31 = vpop.f32.mrb[176].mxu1 }
 0x2b5   :  { %v2707_v52 = vpop.f32.mrb[112].mxu0  ;;  %v2973_v2 = vadd.f32 %v3744_v61, %v3648_v31  ;;  %v2964_v6 = vpop.f32.mrb[177].mxu1  ;;  %v5870_v61 = vmax.f32 %v5481_v30, %v5553_v37  ;;  %v5873_v30 = vmax.f32 %v5496_v19, %v5572_v47 }
 0x2b6   :  { %v3750_v3 = vadd.f32 %v2707_v52, %v5868_v60  ;;  %v2709_v33 = vpop.f32.mrb[113].mxu0  ;;  %v2965_v23 = vadd.f32 %v3742_v5, %v2964_v6  ;;  %v3649_v46 = vpop.f32.mrb[178].mxu1  ;;  %v5719_v5 = vld [vmem:[%s5828_s2] ss:$0 sm:$0xff] }
 0x2b7   :  { %v3045_v55 = vmax.f32 %v5653_v1, %v2973_v2  ;;  %v2710_v34 = vpop.f32.mrb[114].mxu0  ;;  %v2976_v41 = vadd.f32 %v3745_v62, %v3649_v46  ;;  %v2967_v28 = vpop.f32.mrb[179].mxu1  ;;  %v5871_v2 = vmax.f32 %v5487_v36, %v5559_v13 }
 0x2b8   :  { %v3043_v32 = vmax.f32 %v5657_v21, %v2965_v23  ;;  %v3751_v16 = vadd.f32 %v2710_v34, %v5869_v7  ;;  %v2712_v18 = vpop.f32.mrb[115].mxu0  ;;  %v2968_v63 = vadd.f32 %v3743_v45, %v2967_v28  ;;  %v5872_v28 = vmax.f32 %v5490_v25, %v5564_v57 }
 0x2b9   :  { %v3061_v31 = vmax.f32 %v5870_v61, %v3045_v55  ;;  %v3046_v52 = vmax.f32 %v5660_v8, %v2976_v41 }
 0x2ba   :  { %v3059_v1 = vmax.f32 %v5871_v2, %v3043_v32  ;;  %v3044_v21 = vmax.f32 %v5664_v20, %v2968_v63  ;;  %v5874_v20 = vld [vmem:[#allocation10_spill] sm:$0xff]  ;;  %v5878_v2 = vmax.f32 %v5508_v17, %v5590_v54 }
 0x2bb   :  { %v3062_v45 = vmax.f32 %v5872_v28, %v3046_v52  ;;  %v3084_v8 = vadd.f32 %v5719_v5, %v3061_v31 }
 0x2bc   :  { %v3060_v55 = vmax.f32 %v5873_v30, %v3044_v21  ;;  %v3652_v37 = vpop.f32.mrb[180].mxu1  ;;  %v3082_v36 = vadd.f32 %v5719_v5, %v3059_v1 }
 0x2bd   :  { %v3085_v62 = vadd.f32 %v5719_v5, %v3062_v45  ;;  %v2715_v6 = vpop.f32.mrb[116].mxu0  ;;  %v2989_v60 = vadd.f32 %v3748_v22, %v3652_v37  ;;  %v2980_v33 = vpop.f32.mrb[181].mxu1  ;;  %v5875_v22 = vld [vmem:[#allocation11_spill] sm:$0xff] }
 0x2be   :  { %v3083_v13 = vadd.f32 %v5719_v5, %v3060_v55  ;;  %v3752_v23 = vadd.f32 %v2715_v6, %v5874_v20  ;;  %v2717_v25 = vpop.f32.mrb[117].mxu0  ;;  %v2981_v57 = vadd.f32 %v3746_v58, %v2980_v33  ;;  %v3653_v46 = vpop.f32.mrb[182].mxu1  ;;  %v5876_v58 = vmax.f32 %v5499_v49, %v5579_v59 }
 0x2bf   :  { %v3503_v34 = vpack.c.bf16 %v3085_v62, %v3084_v8  ;;  %v3049_v19 = vmax.f32 %v5667_v48, %v2989_v60  ;;  %v2718_v47 = vpop.f32.mrb[118].mxu0  ;;  %v2992_v41 = vadd.f32 %v3749_v50, %v3653_v46  ;;  %v2983_v32 = vpop.f32.mrb[183].mxu1  ;;  %v5879_v49 = vmax.f32 %v5514_v26, %v5598_v35 }
 0x2c0   :  { %v3498_v7 = vpack.c.bf16 %v3083_v13, %v3082_v36  ;;  %v3047_v18 = vmax.f32 %v5671_v0, %v2981_v57  ;;  %v3753_v63 = vadd.f32 %v2718_v47, %v5875_v22  ;;  %v2720_v61 = vpop.f32.mrb[119].mxu0  ;;  %v2984_v31 = vadd.f32 %v5691_v29, %v2983_v32  ;;  %v5881_v13 = vld [vmem:[#allocation13_spill] sm:$0xff] }
 0x2c1   :  { %3535 = vst [vmem:[%s5829_s3 + $0x8] sm:$0xff] %v3503_v34   ;;  %v3065_v52 = vmax.f32 %v5876_v58, %v3049_v19  ;;  %v3050_v48 = vmax.f32 %v5674_v51, %v2992_v41  ;;  %v5877_v0 = vmax.f32 %v5505_v38, %v5585_v42  ;;  %v5884_v34 = vmax.f32 %v5526_v15, %v5616_v12 }
 0x2c2   :  { %3499 = vst [vmem:[%s5829_s3] sm:$0xff] %v3498_v7   ;;  %v3048_v29 = vmax.f32 %v5678_v14, %v2984_v31  ;;  %v5880_v14 = vld [vmem:[#allocation12_spill] sm:$0xff]  ;;  %v5886_v31 = vld [vmem:[#allocation3_spill] sm:$0xff] }
 0x2c3   :  { %v3063_v50 = vmax.f32 %v5877_v0, %v3047_v18  ;;  %v3066_v1 = vmax.f32 %v5878_v2, %v3050_v48  ;;  %v3088_v51 = vadd.f32 %v5719_v5, %v3065_v52  ;;  %v5887_v52 = vld [vmem:[#allocation14_spill] sm:$0xff]  ;;  %v5889_v2 = vld [vmem:[#allocation16_spill] sm:$0xff] }
 0x2c4   :  { %v3064_v59 = vmax.f32 %v5879_v49, %v3048_v29  ;;  %v3656_v21 = vpop.f32.mrb[184].mxu1 }
 0x2c5   :  { %v3089_v28 = vadd.f32 %v5719_v5, %v3066_v1  ;;  %v2723_v45 = vpop.f32.mrb[120].mxu0  ;;  %v3005_v30 = vadd.f32 %v3752_v23, %v3656_v21  ;;  %v2996_v55 = vpop.f32.mrb[185].mxu1  ;;  %v3086_v38 = vadd.f32 %v5719_v5, %v3063_v50  ;;  %v5890_v1 = vld [vmem:[#allocation20_spill] sm:$0xff] }
 0x2c6   :  { %v3087_v42 = vadd.f32 %v5719_v5, %v3064_v59  ;;  %v3754_v37 = vadd.f32 %v2723_v45, %v5880_v14  ;;  %v2725_v17 = vpop.f32.mrb[121].mxu0  ;;  %v2997_v54 = vadd.f32 %v3750_v3, %v2996_v55  ;;  %v3657_v8 = vpop.f32.mrb[186].mxu1  ;;  %v5882_v3 = vmax.f32 %v5517_v9, %v5605_v27  ;;  %v5893_v45 = vld [vmem:[#allocation19_spill] sm:$0xff]  ;;  %v5896_v14 = vld [vmem:[#allocation18_spill] sm:$0xff] }
 0x2c7   :  { %v3513_v62 = vpack.c.bf16 %v3089_v28, %v3088_v51  ;;  %v3053_v26 = vmax.f32 %v5681_v39, %v3005_v30  ;;  %v2726_v35 = vpop.f32.mrb[122].mxu0  ;;  %v3008_v6 = vadd.f32 %v3753_v63, %v3657_v8  ;;  %v2999_v60 = vpop.f32.mrb[187].mxu1  ;;  %v5885_v9 = vmax.f32 %v5532_v24, %v5624_v43  ;;  %v5892_v28 = vld [vmem:[#allocation15_spill] sm:$0xff]  ;;  %v5899_v8 = vld [vmem:[#allocation17_spill] sm:$0xff] }
 0x2c8   :  { %v3508_v33 = vpack.c.bf16 %v3087_v42, %v3086_v38  ;;  %v3051_v36 = vmax.f32 %v5685_v10, %v2997_v54  ;;  %v3755_v20 = vadd.f32 %v2726_v35, %v5881_v13  ;;  %v2728_v23 = vpop.f32.mrb[123].mxu0  ;;  %v3000_v25 = vadd.f32 %v3751_v16, %v2999_v60  ;;  %v5895_v38 = vld [vmem:[#allocation4_spill] sm:$0xff] }
 0x2c9   :  { %3537 = vst [vmem:[%s5829_s3 + $0x18] sm:$0xff] %v3513_v62   ;;  %v3069_v57 = vmax.f32 %v5882_v3, %v3053_v26  ;;  %v3054_v39 = vmax.f32 %v5688_v53, %v3008_v6  ;;  %v5883_v10 = vmax.f32 %v5523_v40, %v5611_v11  ;;  %v5891_v49 = vmax.f32 %v5889_v2, %v5890_v1  ;;  %v5900_v62 = vld [vmem:[#allocation21_spill] sm:$0xff] }
 0x2ca   :  { %3536 = vst [vmem:[%s5829_s3 + $0x10] sm:$0xff] %v3508_v33   ;;  %v3052_v16 = vmax.f32 %v5694_v4, %v3000_v25  ;;  %v5894_v30 = vmax.f32 %v5892_v28, %v5893_v45  ;;  %v5901_v26 = vmax.f32 %v5899_v8, %v5900_v62 }
 0x2cb   :  { %v3067_v46 = vmax.f32 %v5883_v10, %v3051_v36  ;;  %v3070_v19 = vmax.f32 %v5884_v34, %v3054_v39  ;;  %v3092_v53 = vadd.f32 %v5719_v5, %v3069_v57 }
 0x2cc   :  { %v3068_v27 = vmax.f32 %v5885_v9, %v3052_v16  ;;  %v3660_v47 = vpop.f32.mrb[188].mxu1 }
 0x2cd   :  { %v3093_v41 = vadd.f32 %v5719_v5, %v3070_v19  ;;  %v2731_v32 = vpop.f32.mrb[124].mxu0  ;;  %v3012_v7 = vpop.f32.mrb[189].mxu1  ;;  %v3090_v40 = vadd.f32 %v5719_v5, %v3067_v46 }
 0x2ce   :  { %v3091_v11 = vadd.f32 %v5719_v5, %v3068_v27  ;;  %v3756_v4 = vadd.f32 %v2731_v32, %v5470_v56  ;;  %v2733_v18 = vpop.f32.mrb[125].mxu0  ;;  %v3013_v15 = vadd.f32 %v3754_v37, %v3012_v7  ;;  %v3661_v12 = vpop.f32.mrb[190].mxu1  ;;  %v5888_v56 = vld [vmem:[#allocation2_spill] sm:$0xff] }
 0x2cf   :  { %v3523_v22 = vpack.c.bf16 %v3093_v41, %v3092_v53  ;;  %v2734_v63 = vpop.f32.mrb[126].mxu0  ;;  %v3015_v24 = vpop.f32.mrb[191].mxu1  ;;  %v5897_v37 = vld [vmem:[#allocation22_spill] sm:$0xff] }
 0x2d0   :  { %v3518_v43 = vpack.c.bf16 %v3091_v11, %v3090_v40  ;;  %v3021_v61 = vadd.f32 %v3756_v4, %v3660_v47  ;;  %v3055_v58 = vmax.f32 %v5886_v31, %v3013_v15  ;;  %v3757_v48 = vadd.f32 %v2734_v63, %v5887_v52  ;;  %v2736_v0 = vpop.f32.mrb[127].mxu0 }
 0x2d1   :  { %3539 = vst [vmem:[%s5829_s3 + $0x28] sm:$0xff] %v3523_v22   ;;  %v3016_v50 = vadd.f32 %v3755_v20, %v3015_v24  ;;  %v5898_v17 = vmax.f32 %v5896_v14, %v5897_v37 }
 0x2d2   :  { %3538 = vst [vmem:[%s5829_s3 + $0x20] sm:$0xff] %v3518_v43   ;;  %v3057_v29 = vmax.f32 %v5888_v56, %v3021_v61  ;;  %v3071_v59 = vmax.f32 %v5891_v49, %v3055_v58  ;;  %v3024_v21 = vadd.f32 %v3757_v48, %v3661_v12 }
 0x2d3   :  { %v3056_v51 = vmax.f32 %v5706_v44, %v3016_v50 }
 0x2d4   :  { %v3073_v55 = vmax.f32 %v5894_v30, %v3057_v29  ;;  %v3058_v42 = vmax.f32 %v5895_v38, %v3024_v21  ;;  %v3094_v6 = vadd.f32 %v5719_v5, %v3071_v59 }
 0x2d5   :  { %v3072_v54 = vmax.f32 %v5898_v17, %v3056_v51 }
 0x2d6   :  { %v3074_v35 = vmax.f32 %v5901_v26, %v3058_v42  ;;  %v3096_v44 = vadd.f32 %v5719_v5, %v3073_v55 }
 0x2d7   :  { %v3095_v60 = vadd.f32 %v5719_v5, %v3072_v54 }
 0x2d8   :  { %v3097_v33 = vadd.f32 %v5719_v5, %v3074_v35 }
 0x2d9   :  { %v3528_v36 = vpack.c.bf16 %v3095_v60, %v3094_v6 }
 0x2da   :  { %v3533_v13 = vpack.c.bf16 %v3097_v33, %v3096_v44 }
 0x2db   :  { %3540 = vst [vmem:[%s5829_s3 + $0x30] sm:$0xff] %v3528_v36  }
 0x2dc   :  { %3541 = vst [vmem:[%s5829_s3 + $0x38] sm:$0xff] %v3533_v13  }

// kernel: tudui_forward.5
= control target key start
LH: loop header
LB: loop body
LE: loop exit
PB: predicated region body
PF: predicated region fallthrough
CT: control target
= control target key end

     0   :  { %v10129_v0 = vmov 0   ;;  %vm10131_vm0 = vmmov 0   ;;  %s13470_s1 = inlined_call_operand.vmem [shape: bf16[896,128], index: 1, kind: input, shape index: {}]   ;;  %s13471_s0 = inlined_call_operand.vmem [shape: bf16[4,256,896], index: 0, kind: input, shape index: {}]   ;;  %s13472_s3 = inlined_call_operand.vmem [shape: bf16[16,128,128], index: 3, kind: input, shape index: {}]   ;;  %s13473_s2 = inlined_call_operand.vmem [shape: f32[1,128], index: 2, kind: input, shape index: {}]   ;;  %s13474_s5 = inlined_call_operand.vmem [shape: bf16[128,128], index: 5, kind: input, shape index: {}]   ;;  %s13475_s4 = inlined_call_operand.vmem [shape: f32[1,128], index: 4, kind: input, shape index: {}]   ;;  %s13476_s6 = inlined_call_operand.vmem [shape: f32[1,128], index: 6, kind: input, shape index: {}]   ;;  %s13477_s7 = inlined_call_operand.vmem [shape: f32[16,128], index: 7, kind: output, shape index: {}]  }
   0x1   :  { %3291 = vmatprep.subr.bf16.mxu0 %v10129_v0  ;;  %v9297_v1 = vld [vmem:[%s13470_s1] sm:$0xff]   ;;  %8844 = vmatprep.subr.bf16.mxu1 %v10129_v0  ;;  %v9298_v2 = vld [vmem:[%s13470_s1 + $0x8] sm:$0xff]   ;;  %v9299_v3 = vld [vmem:[%s13470_s1 + $0x10] sm:$0xff]  }
   0x2   :  { %3292 = vmatpush1.bf16.msra.mxu0 %v9297_v1  ;;  %8860 = vmatpush1.bf16.msra.mxu1 %v9297_v1  ;;  %v9300_v4 = vld [vmem:[%s13470_s1 + $0x18] sm:$0xff]   ;;  %v9301_v5 = vld [vmem:[%s13470_s1 + $0x20] sm:$0xff]   ;;  %v9302_v7 = vld [vmem:[%s13470_s1 + $0x28] sm:$0xff]  }
   0x3   :  { %3293 = vmatprep.subr.bf16.mxu0 %v10129_v0  ;;  %8845 = vmatprep.subr.bf16.mxu1 %v10129_v0  ;;  %v9315_v6 = vld [vmem:[%s13471_s0 + $0x4] ss:$28 sps:$4 sm:$0xff]   ;;  %v9303_v8 = vld [vmem:[%s13470_s1 + $0x30] sm:$0xff]   ;;  %v9304_v9 = vld [vmem:[%s13470_s1 + $0x38] sm:$0xff]  }
   0x4   :  { %3323 = vmatprep.mubr.bf16.mxu0 %v9315_v6  ;;  %v9305_v10 = vld [vmem:[%s13470_s1 + $0x40] sm:$0xff]   ;;  %v9306_v11 = vld [vmem:[%s13470_s1 + $0x48] sm:$0xff]   ;;  %v9307_v12 = vld [vmem:[%s13470_s1 + $0x50] sm:$0xff]  }
   0x5   :  { %v9308_v13 = vld [vmem:[%s13470_s1 + $0x58] sm:$0xff]   ;;  %v9309_v14 = vld [vmem:[%s13470_s1 + $0x60] sm:$0xff]   ;;  %v9310_v15 = vld [vmem:[%s13470_s1 + $0x68] sm:$0xff]  }
   0x6   :  { %3294 = vmatpush1.bf16.msra.mxu0 %v9298_v2  ;;  %8861 = vmatpush1.bf16.msra.mxu1 %v9298_v2  ;;  %v9311_v16 = vld [vmem:[%s13470_s1 + $0x70] sm:$0xff]   ;;  %v9312_v17 = vld [vmem:[%s13470_s1 + $0x78] sm:$0xff]   ;;  %v9316_v19 = vld [vmem:[%s13470_s1 + $0x80] sm:$0xff]  }
   0x7   :  { %3295 = vmatprep.subr.bf16.mxu0 %v10129_v0  ;;  %8846 = vmatprep.subr.bf16.mxu1 %v10129_v0  ;;  %v9313_v18 = vld [vmem:[%s13471_s0] ss:$28 sps:$4 sm:$0xff]   ;;  %v9320_v21 = vld [vmem:[%s13470_s1 + $0x88] sm:$0xff]   ;;  %v9319_v22 = vld [vmem:[%s13471_s0 + $0x38] ss:$28 sps:$4 sm:$0xff]  }
   0x8   :  { %v9317_v20 = vld [vmem:[%s13471_s0 + $0x3c] ss:$28 sps:$4 sm:$0xff]   ;;  %v9321_v23 = vld [vmem:[%s13471_s0 + $0x74] ss:$28 sps:$4 sm:$0xff]   ;;  %v9325_v27 = vld [vmem:[%s13471_s0 + $0xac] ss:$28 sps:$4 sm:$0xff]  }
   0x9   :  { %v9324_v24 = vld [vmem:[%s13470_s1 + $0x90] sm:$0xff]   ;;  %v9328_v25 = vld [vmem:[%s13470_s1 + $0x98] sm:$0xff]   ;;  %v9332_v28 = vld [vmem:[%s13470_s1 + $0xa0] sm:$0xff]  }
   0xa   :  { %3296 = vmatpush1.bf16.msra.mxu0 %v9299_v3  ;;  %8862 = vmatpush1.bf16.msra.mxu1 %v9299_v3  ;;  %v9323_v26 = vld [vmem:[%s13471_s0 + $0x70] ss:$28 sps:$4 sm:$0xff]   ;;  %v9327_v30 = vld [vmem:[%s13471_s0 + $0xa8] ss:$28 sps:$4 sm:$0xff]   ;;  %v9344_v33 = vld [vmem:[%s13470_s1 + $0xb8] sm:$0xff]  }
   0xb   :  { %3297 = vmatprep.subr.bf16.mxu0 %v10129_v0  ;;  %8847 = vmatprep.subr.bf16.mxu1 %v10129_v0  ;;  %v9336_v29 = vld [vmem:[%s13470_s1 + $0xa8] sm:$0xff]   ;;  %v9329_v31 = vld [vmem:[%s13471_s0 + $0xe4] ss:$28 sps:$4 sm:$0xff]   ;;  %v9340_v32 = vld [vmem:[%s13470_s1 + $0xb0] sm:$0xff]  }
   0xc   :  { %v9331_v34 = vld [vmem:[%s13471_s0 + $0xe0] ss:$28 sps:$4 sm:$0xff]   ;;  %v9352_v37 = vld [vmem:[%s13470_s1 + $0xc8] sm:$0xff]   ;;  %v9335_v38 = vld [vmem:[%s13471_s0 + $0x118] ss:$28 sps:$4 sm:$0xff]  }
   0xd   :  { %v9333_v35 = vld [vmem:[%s13471_s0 + $0x11c] ss:$28 sps:$4 sm:$0xff]   ;;  %v9348_v36 = vld [vmem:[%s13470_s1 + $0xc0] sm:$0xff]   ;;  %v9337_v39 = vld [vmem:[%s13471_s0 + $0x154] ss:$28 sps:$4 sm:$0xff]  }
   0xe   :  { %3298 = vmatpush1.bf16.msra.mxu0 %v9300_v4  ;;  %8863 = vmatpush1.bf16.msra.mxu1 %v9300_v4  ;;  %v9356_v40 = vld [vmem:[%s13470_s1 + $0xd0] sm:$0xff]   ;;  %v9362_v41 = vld [vmem:[%s13470_s1 + $0xd8] sm:$0xff]   ;;  %v9341_v43 = vld [vmem:[%s13471_s0 + $0x18c] ss:$28 sps:$4 sm:$0xff]  }
   0xf   :  { %3299 = vmatprep.subr.bf16.mxu0 %v10129_v0  ;;  %8848 = vmatprep.subr.bf16.mxu1 %v10129_v0  ;;  %v9339_v42 = vld [vmem:[%s13471_s0 + $0x150] ss:$28 sps:$4 sm:$0xff]   ;;  %v9366_v44 = vld [vmem:[%s13470_s1 + $0xe0] sm:$0xff]   ;;  %v9379_v49 = vld [vmem:[%s13470_s1 + $0xf8] sm:$0xff]  }
  0x10   :  { %v9371_v45 = vld [vmem:[%s13470_s1 + $0xe8] sm:$0xff]   ;;  %v9345_v47 = vld [vmem:[%s13471_s0 + $0x1c4] ss:$28 sps:$4 sm:$0xff]   ;;  %v9375_v48 = vld [vmem:[%s13470_s1 + $0xf0] sm:$0xff]  }
  0x11   :  { %v9343_v46 = vld [vmem:[%s13471_s0 + $0x188] ss:$28 sps:$4 sm:$0xff]   ;;  %v9347_v50 = vld [vmem:[%s13471_s0 + $0x1c0] ss:$28 sps:$4 sm:$0xff]   ;;  %v9351_v52 = vld [vmem:[%s13471_s0 + $0x1f8] ss:$28 sps:$4 sm:$0xff]  }
  0x12   :  { %3300 = vmatpush1.bf16.msra.mxu0 %v9301_v5  ;;  %8864 = vmatpush1.bf16.msra.mxu1 %v9301_v5  ;;  %v9349_v51 = vld [vmem:[%s13471_s0 + $0x1fc] ss:$28 sps:$4 sm:$0xff]   ;;  %v9353_v53 = vld [vmem:[%s13471_s0 + $0x234] ss:$28 sps:$4 sm:$0xff]   ;;  %v9357_v55 = vld [vmem:[%s13471_s0 + $0x26c] ss:$28 sps:$4 sm:$0xff]  }
  0x13   :  { %3301 = vmatprep.subr.bf16.mxu0 %v10129_v0  ;;  %8849 = vmatprep.subr.bf16.mxu1 %v10129_v0  ;;  %v9355_v54 = vld [vmem:[%s13471_s0 + $0x230] ss:$28 sps:$4 sm:$0xff]   ;;  %v9359_v56 = vld [vmem:[%s13471_s0 + $0x268] ss:$28 sps:$4 sm:$0xff]   ;;  %v9363_v58 = vld [vmem:[%s13471_s0 + $0x2a0] ss:$28 sps:$4 sm:$0xff]  }
  0x14   :  { %v9360_v57 = vld [vmem:[%s13471_s0 + $0x2a4] ss:$28 sps:$4 sm:$0xff]   ;;  %v9364_v59 = vld [vmem:[%s13471_s0 + $0x2dc] ss:$28 sps:$4 sm:$0xff]   ;;  %v9368_v61 = vld [vmem:[%s13471_s0 + $0x314] ss:$28 sps:$4 sm:$0xff]  }
  0x15   :  { %v9367_v60 = vld [vmem:[%s13471_s0 + $0x2d8] ss:$28 sps:$4 sm:$0xff]   ;;  %v9370_v62 = vld [vmem:[%s13471_s0 + $0x310] ss:$28 sps:$4 sm:$0xff]   ;;  %v9374_v1 = vld [vmem:[%s13471_s0 + $0x348] ss:$28 sps:$4 sm:$0xff]  }
  0x16   :  { %3302 = vmatpush1.bf16.msra.mxu0 %v9302_v7  ;;  %8865 = vmatpush1.bf16.msra.mxu1 %v9302_v7  ;;  %v9372_v63 = vld [vmem:[%s13471_s0 + $0x34c] ss:$28 sps:$4 sm:$0xff]   ;;  %v9376_v2 = vld [vmem:[%s13471_s0 + $0x384] ss:$28 sps:$4 sm:$0xff]  }
  0x17   :  { %3303 = vmatprep.subr.bf16.mxu0 %v10129_v0  ;;  %8850 = vmatprep.subr.bf16.mxu1 %v10129_v0  ;;  %v9378_v3 = vld [vmem:[%s13471_s0 + $0x380] ss:$28 sps:$4 sm:$0xff]   ;;  %v9382_v4 = vld [vmem:[%s13471_s0 + $0xc] ss:$28 sps:$4 sm:$0xff]  }
  0x18   :  { %v9380_v5 = vld [vmem:[%s13471_s0 + $0x8] ss:$28 sps:$4 sm:$0xff]  }
  0x19   :  { %v9383_v6 = vld [vmem:[%s13470_s1 + $0x100] sm:$0xff]  }
  0x1a   :  { %3304 = vmatpush1.bf16.msra.mxu0 %v9303_v8  ;;  %8866 = vmatpush1.bf16.msra.mxu1 %v9303_v8  ;;  %v9384_v7 = vld [vmem:[%s13471_s0 + $0x44] ss:$28 sps:$4 sm:$0xff]   ;;  %v9436_v8 = vld [vmem:[%s13471_s0 + $0x3b8] ss:$28 sps:$4 sm:$0xff]  }
  0x1b   :  { %3305 = vmatprep.subr.bf16.mxu0 %v10129_v0  ;;  %8851 = vmatprep.subr.bf16.mxu1 %v10129_v0 }
  0x1e   :  { %3306 = vmatpush1.bf16.msra.mxu0 %v9304_v9  ;;  %8867 = vmatpush1.bf16.msra.mxu1 %v9304_v9  ;;  %v9438_v9 = vld [vmem:[%s13471_s0 + $0x3bc] ss:$28 sps:$4 sm:$0xff]  }
  0x1f   :  { %3307 = vmatprep.subr.bf16.mxu0 %v10129_v0  ;;  %8852 = vmatprep.subr.bf16.mxu1 %v10129_v0 }
  0x20   :  { %3459 = vmatprep.mubr.bf16.mxu1 %v9438_v9  ;;  %v9525_v9 = vld [vmem:[%s13471_s0 + $0x6c8] ss:$28 sps:$4 sm:$0xff]  }
  0x22   :  { %3308 = vmatpush1.bf16.msra.mxu0 %v9305_v10  ;;  %8868 = vmatpush1.bf16.msra.mxu1 %v9305_v10  ;;  %v9396_v10 = vld [vmem:[%s13470_s1 + $0x108] sm:$0xff]  }
  0x23   :  { %3309 = vmatprep.subr.bf16.mxu0 %v10129_v0  ;;  %8853 = vmatprep.subr.bf16.mxu1 %v10129_v0 }
  0x26   :  { %3310 = vmatpush1.bf16.msra.mxu0 %v9306_v11  ;;  %8869 = vmatpush1.bf16.msra.mxu1 %v9306_v11  ;;  %v9386_v11 = vld [vmem:[%s13471_s0 + $0x40] ss:$28 sps:$4 sm:$0xff]  }
  0x27   :  { %3311 = vmatprep.subr.bf16.mxu0 %v10129_v0  ;;  %8854 = vmatprep.subr.bf16.mxu1 %v10129_v0 }
  0x2a   :  { %3312 = vmatpush1.bf16.msra.mxu0 %v9307_v12  ;;  %8870 = vmatpush1.bf16.msra.mxu1 %v9307_v12  ;;  %v9387_v12 = vld [vmem:[%s13471_s0 + $0x7c] ss:$28 sps:$4 sm:$0xff]  }
  0x2b   :  { %3313 = vmatprep.subr.bf16.mxu0 %v10129_v0  ;;  %8855 = vmatprep.subr.bf16.mxu1 %v10129_v0 }
  0x2e   :  { %3314 = vmatpush1.bf16.msra.mxu0 %v9308_v13  ;;  %8871 = vmatpush1.bf16.msra.mxu1 %v9308_v13  ;;  %v9409_v13 = vld [vmem:[%s13470_s1 + $0x110] sm:$0xff]  }
  0x2f   :  { %3315 = vmatprep.subr.bf16.mxu0 %v10129_v0  ;;  %8856 = vmatprep.subr.bf16.mxu1 %v10129_v0 }
  0x32   :  { %3316 = vmatpush1.bf16.msra.mxu0 %v9309_v14  ;;  %8872 = vmatpush1.bf16.msra.mxu1 %v9309_v14  ;;  %v9442_v14 = vld [vmem:[%s13471_s0 + $0x3f4] ss:$28 sps:$4 sm:$0xff]  }
  0x33   :  { %3317 = vmatprep.subr.bf16.mxu0 %v10129_v0  ;;  %8857 = vmatprep.subr.bf16.mxu1 %v10129_v0 }
  0x36   :  { %3318 = vmatpush1.bf16.msra.mxu0 %v9310_v15  ;;  %8873 = vmatpush1.bf16.msra.mxu1 %v9310_v15  ;;  %v9444_v15 = vld [vmem:[%s13471_s0 + $0x3f0] ss:$28 sps:$4 sm:$0xff]  }
  0x37   :  { %3319 = vmatprep.subr.bf16.mxu0 %v10129_v0  ;;  %8858 = vmatprep.subr.bf16.mxu1 %v10129_v0 }
  0x3a   :  { %3320 = vmatpush1.bf16.msra.mxu0 %v9311_v16  ;;  %8874 = vmatpush1.bf16.msra.mxu1 %v9311_v16  ;;  %v9422_v16 = vld [vmem:[%s13470_s1 + $0x118] sm:$0xff]  }
  0x3b   :  { %3321 = vmatprep.subr.bf16.mxu0 %v10129_v0  ;;  %8859 = vmatprep.subr.bf16.mxu1 %v10129_v0 }
  0x3e   :  { %3322 = vmatpush1.bf16.msra.mxu0 %v9312_v17  ;;  %8875 = vmatpush1.bf16.msra.mxu1 %v9312_v17  ;;  %v9389_v17 = vld [vmem:[%s13471_s0 + $0x78] ss:$28 sps:$4 sm:$0xff]  }
  0x3f   :  { %3836 = vmatprep.subr.bf16.mxu0 %v10129_v0 }
  0x41   :  { %3324 = vmatmul.mubr.bf16.vlgmr.msra.gmra.mrb[0].mxu0 %v9313_v18  ;;  %3460 = vmatmul.mubr.bf16.vlgmr.msra.gmra.mrb[0].mxu1 %v9436_v8  ;;  %v9390_v18 = vld [vmem:[%s13471_s0 + $0xb4] ss:$28 sps:$4 sm:$0xff]   ;;  %v9523_v8 = vld [vmem:[%s13471_s0 + $0x6cc] ss:$28 sps:$4 sm:$0xff]  }
  0x42   :  { %3837 = vmatpush1.bf16.msra.mxu0 %v9316_v19  ;;  %3331 = vmatprep.mubr.bf16.mxu0 %v9317_v20  ;;  %v9435_v19 = vld [vmem:[%s13470_s1 + $0x120] sm:$0xff]   ;;  %v9448_v20 = vld [vmem:[%s13471_s0 + $0x42c] ss:$28 sps:$4 sm:$0xff]  }
  0x43   :  { %3838 = vmatprep.subr.bf16.mxu0 %v10129_v0  ;;  %3467 = vmatprep.mubr.bf16.mxu1 %v9442_v14  ;;  %v9434_v14 = vld [vmem:[%s13471_s0 + $0x388] ss:$28 sps:$4 sm:$0xff]  }
  0x46   :  { %3839 = vmatpush1.bf16.msra.mxu0 %v9320_v21  ;;  %v9450_v21 = vld [vmem:[%s13471_s0 + $0x428] ss:$28 sps:$4 sm:$0xff]  }
  0x47   :  { %3840 = vmatprep.subr.bf16.mxu0 %v10129_v0 }
  0x49   :  { %3332 = vmatmul.mubr.bf16.gmra.mrb[4].mxu0 %v9319_v22  ;;  %3468 = vmatmul.mubr.bf16.gmra.mrb[4].mxu1 %v9444_v15  ;;  %v9392_v22 = vld [vmem:[%s13471_s0 + $0xb0] ss:$28 sps:$4 sm:$0xff]   ;;  %v9439_v15 = vld [vmem:[%s13471_s0 + $0x3c4] ss:$28 sps:$4 sm:$0xff]  }
  0x4a   :  { %3339 = vmatprep.mubr.bf16.mxu0 %v9321_v23  ;;  %3841 = vmatpush1.bf16.msra.mxu0 %v9324_v24  ;;  %v9393_v23 = vld [vmem:[%s13471_s0 + $0xec] ss:$28 sps:$4 sm:$0xff]   ;;  %v9454_v24 = vld [vmem:[%s13471_s0 + $0x464] ss:$28 sps:$4 sm:$0xff]  }
  0x4b   :  { %3842 = vmatprep.subr.bf16.mxu0 %v10129_v0  ;;  %3475 = vmatprep.mubr.bf16.mxu1 %v9448_v20  ;;  %v9445_v20 = vld [vmem:[%s13471_s0 + $0x3fc] ss:$28 sps:$4 sm:$0xff]  }
  0x4e   :  { %3843 = vmatpush1.bf16.msra.mxu0 %v9328_v25  ;;  %v9456_v25 = vld [vmem:[%s13471_s0 + $0x460] ss:$28 sps:$4 sm:$0xff]  }
  0x4f   :  { %3844 = vmatprep.subr.bf16.mxu0 %v10129_v0 }
  0x51   :  { %3340 = vmatmul.mubr.bf16.gmra.mrb[8].mxu0 %v9323_v26  ;;  %3476 = vmatmul.mubr.bf16.gmra.mrb[8].mxu1 %v9450_v21  ;;  %v9395_v26 = vld [vmem:[%s13471_s0 + $0xe8] ss:$28 sps:$4 sm:$0xff]   ;;  %v9542_v21 = vld [vmem:[%s13471_s0 + $0x774] ss:$28 sps:$4 sm:$0xff]  }
  0x52   :  { %3347 = vmatprep.mubr.bf16.mxu0 %v9325_v27  ;;  %3845 = vmatpush1.bf16.msra.mxu0 %v9332_v28  ;;  %v9397_v27 = vld [vmem:[%s13471_s0 + $0x124] ss:$28 sps:$4 sm:$0xff]   ;;  %v9460_v28 = vld [vmem:[%s13470_s1 + $0x128] sm:$0xff]  }
  0x53   :  { %3846 = vmatprep.subr.bf16.mxu0 %v10129_v0  ;;  %3483 = vmatprep.mubr.bf16.mxu1 %v9454_v24  ;;  %v9451_v24 = vld [vmem:[%s13471_s0 + $0x434] ss:$28 sps:$4 sm:$0xff]  }
  0x56   :  { %3847 = vmatpush1.bf16.msra.mxu0 %v9336_v29  ;;  %v9461_v29 = vld [vmem:[%s13471_s0 + $0x49c] ss:$28 sps:$4 sm:$0xff]  }
  0x57   :  { %3848 = vmatprep.subr.bf16.mxu0 %v10129_v0 }
  0x59   :  { %3348 = vmatmul.mubr.bf16.gmra.mrb[12].mxu0 %v9327_v30  ;;  %3484 = vmatmul.mubr.bf16.gmra.mrb[12].mxu1 %v9456_v25  ;;  %v9463_v30 = vld [vmem:[%s13471_s0 + $0x498] ss:$28 sps:$4 sm:$0xff]   ;;  %v9548_v25 = vld [vmem:[%s13471_s0 + $0x7ac] ss:$28 sps:$4 sm:$0xff]  }
  0x5a   :  { %3355 = vmatprep.mubr.bf16.mxu0 %v9329_v31  ;;  %3849 = vmatpush1.bf16.msra.mxu0 %v9340_v32  ;;  %v9399_v31 = vld [vmem:[%s13471_s0 + $0x120] ss:$28 sps:$4 sm:$0xff]  }
  0x5b   :  { %3850 = vmatprep.subr.bf16.mxu0 %v10129_v0  ;;  %3491 = vmatprep.mubr.bf16.mxu1 %v9461_v29  ;;  %v9400_v32 = vld [vmem:[%s13471_s0 + $0x15c] ss:$28 sps:$4 sm:$0xff]   ;;  %v9554_v29 = vld [vmem:[%s13471_s0 + $0x7e4] ss:$28 sps:$4 sm:$0xff]  }
  0x5e   :  { %3851 = vmatpush1.bf16.msra.mxu0 %v9344_v33  ;;  %v9467_v33 = vld [vmem:[%s13471_s0 + $0x4d4] ss:$28 sps:$4 sm:$0xff]  }
  0x5f   :  { %3852 = vmatprep.subr.bf16.mxu0 %v10129_v0 }
  0x61   :  { %3356 = vmatmul.mubr.bf16.gmra.mrb[16].mxu0 %v9331_v34  ;;  %3492 = vmatmul.mubr.bf16.gmra.mrb[16].mxu1 %v9463_v30  ;;  %v9469_v34 = vld [vmem:[%s13471_s0 + $0x4d0] ss:$28 sps:$4 sm:$0xff]   ;;  %v9556_v30 = vld [vmem:[%s13471_s0 + $0x7e0] ss:$28 sps:$4 sm:$0xff]  }
  0x62   :  { %3363 = vmatprep.mubr.bf16.mxu0 %v9333_v35  ;;  %3853 = vmatpush1.bf16.msra.mxu0 %v9348_v36  ;;  %v9402_v35 = vld [vmem:[%s13471_s0 + $0x158] ss:$28 sps:$4 sm:$0xff]  }
  0x63   :  { %3854 = vmatprep.subr.bf16.mxu0 %v10129_v0  ;;  %3499 = vmatprep.mubr.bf16.mxu1 %v9467_v33  ;;  %v9403_v36 = vld [vmem:[%s13471_s0 + $0x194] ss:$28 sps:$4 sm:$0xff]   ;;  %v9560_v33 = vld [vmem:[%s13470_s1 + $0x148] sm:$0xff]  }
  0x66   :  { %3855 = vmatpush1.bf16.msra.mxu0 %v9352_v37  ;;  %v9473_v37 = vld [vmem:[%s13471_s0 + $0x50c] ss:$28 sps:$4 sm:$0xff]  }
  0x67   :  { %3856 = vmatprep.subr.bf16.mxu0 %v10129_v0 }
  0x69   :  { %3364 = vmatmul.mubr.bf16.gmra.mrb[20].mxu0 %v9335_v38  ;;  %3500 = vmatmul.mubr.bf16.gmra.mrb[20].mxu1 %v9469_v34  ;;  %v9475_v38 = vld [vmem:[%s13471_s0 + $0x508] ss:$28 sps:$4 sm:$0xff]   ;;  %v9561_v34 = vld [vmem:[%s13471_s0 + $0x81c] ss:$28 sps:$4 sm:$0xff]  }
  0x6a   :  { %3371 = vmatprep.mubr.bf16.mxu0 %v9337_v39  ;;  %3857 = vmatpush1.bf16.msra.mxu0 %v9356_v40  ;;  %v9405_v39 = vld [vmem:[%s13471_s0 + $0x190] ss:$28 sps:$4 sm:$0xff]  }
  0x6b   :  { %3858 = vmatprep.subr.bf16.mxu0 %v10129_v0  ;;  %3507 = vmatprep.mubr.bf16.mxu1 %v9473_v37  ;;  %v9406_v40 = vld [vmem:[%s13471_s0 + $0x1cc] ss:$28 sps:$4 sm:$0xff]   ;;  %v9470_v37 = vld [vmem:[%s13471_s0 + $0x4dc] ss:$28 sps:$4 sm:$0xff]  }
  0x6e   :  { %3859 = vmatpush1.bf16.msra.mxu0 %v9362_v41  ;;  %v9479_v41 = vld [vmem:[%s13471_s0 + $0x544] ss:$28 sps:$4 sm:$0xff]  }
  0x6f   :  { %3860 = vmatprep.subr.bf16.mxu0 %v10129_v0 }
  0x71   :  { %3372 = vmatmul.mubr.bf16.gmra.mrb[24].mxu0 %v9339_v42  ;;  %3508 = vmatmul.mubr.bf16.gmra.mrb[24].mxu1 %v9475_v38  ;;  %v9481_v42 = vld [vmem:[%s13471_s0 + $0x540] ss:$28 sps:$4 sm:$0xff]   ;;  %v9567_v38 = vld [vmem:[%s13471_s0 + $0x854] ss:$28 sps:$4 sm:$0xff]  }
  0x72   :  { %3379 = vmatprep.mubr.bf16.mxu0 %v9341_v43  ;;  %3861 = vmatpush1.bf16.msra.mxu0 %v9366_v44  ;;  %v9408_v43 = vld [vmem:[%s13471_s0 + $0x1c8] ss:$28 sps:$4 sm:$0xff]  }
  0x73   :  { %3862 = vmatprep.subr.bf16.mxu0 %v10129_v0  ;;  %3515 = vmatprep.mubr.bf16.mxu1 %v9479_v41  ;;  %v9410_v44 = vld [vmem:[%s13471_s0 + $0x204] ss:$28 sps:$4 sm:$0xff]   ;;  %v9476_v41 = vld [vmem:[%s13471_s0 + $0x514] ss:$28 sps:$4 sm:$0xff]  }
  0x76   :  { %3863 = vmatpush1.bf16.msra.mxu0 %v9371_v45  ;;  %v9485_v45 = vld [vmem:[%s13470_s1 + $0x130] sm:$0xff]  }
  0x77   :  { %3864 = vmatprep.subr.bf16.mxu0 %v10129_v0 }
  0x79   :  { %3380 = vmatmul.mubr.bf16.gmra.mrb[28].mxu0 %v9343_v46  ;;  %3516 = vmatmul.mubr.bf16.gmra.mrb[28].mxu1 %v9481_v42  ;;  %v9486_v46 = vld [vmem:[%s13471_s0 + $0x57c] ss:$28 sps:$4 sm:$0xff]   ;;  %v9573_v42 = vld [vmem:[%s13471_s0 + $0x88c] ss:$28 sps:$4 sm:$0xff]  }
  0x7a   :  { %3387 = vmatprep.mubr.bf16.mxu0 %v9345_v47  ;;  %3865 = vmatpush1.bf16.msra.mxu0 %v9375_v48  ;;  %v9488_v47 = vld [vmem:[%s13471_s0 + $0x578] ss:$28 sps:$4 sm:$0xff]   ;;  %v9412_v48 = vld [vmem:[%s13471_s0 + $0x200] ss:$28 sps:$4 sm:$0xff]  }
  0x7b   :  { %3866 = vmatprep.subr.bf16.mxu0 %v10129_v0  ;;  %3523 = vmatprep.mubr.bf16.mxu1 %v9486_v46  ;;  %v9579_v46 = vld [vmem:[%s13471_s0 + $0x8c4] ss:$28 sps:$4 sm:$0xff]  }
  0x7e   :  { %3867 = vmatpush1.bf16.msra.mxu0 %v9379_v49  ;;  %v9413_v49 = vld [vmem:[%s13471_s0 + $0x23c] ss:$28 sps:$4 sm:$0xff]  }
  0x7f   :  { %4381 = vmatprep.subr.bf16.mxu0 %v10129_v0 }
  0x81   :  { %3388 = vmatmul.mubr.bf16.gmra.mrb[32].mxu0 %v9347_v50  ;;  %3524 = vmatmul.mubr.bf16.gmra.mrb[32].mxu1 %v9488_v47  ;;  %v9492_v50 = vld [vmem:[%s13471_s0 + $0x5b4] ss:$28 sps:$4 sm:$0xff]   ;;  %v9581_v47 = vld [vmem:[%s13471_s0 + $0x8c0] ss:$28 sps:$4 sm:$0xff]  }
  0x82   :  { %3395 = vmatprep.mubr.bf16.mxu0 %v9349_v51  ;;  %v9494_v51 = vld [vmem:[%s13471_s0 + $0x5b0] ss:$28 sps:$4 sm:$0xff]   ;;  %3531 = vmatprep.mubr.bf16.mxu1 %v9492_v50 }
  0x83   :  { %v9585_v50 = vld [vmem:[%s13470_s1 + $0x150] sm:$0xff]  }
  0x89   :  { %3396 = vmatmul.mubr.bf16.gmra.mrb[36].mxu0 %v9351_v52  ;;  %3532 = vmatmul.mubr.bf16.gmra.mrb[36].mxu1 %v9494_v51  ;;  %v9415_v52 = vld [vmem:[%s13471_s0 + $0x238] ss:$28 sps:$4 sm:$0xff]  }
  0x8a   :  { %3403 = vmatprep.mubr.bf16.mxu0 %v9353_v53  ;;  %v9416_v53 = vld [vmem:[%s13471_s0 + $0x274] ss:$28 sps:$4 sm:$0xff]   ;;  %v9586_v51 = vld [vmem:[%s13471_s0 + $0x8fc] ss:$28 sps:$4 sm:$0xff]  }
  0x91   :  { %3404 = vmatmul.mubr.bf16.gmra.mrb[40].mxu0 %v9355_v54  ;;  %v9498_v54 = vld [vmem:[%s13471_s0 + $0x5ec] ss:$28 sps:$4 sm:$0xff]  }
  0x92   :  { %3411 = vmatprep.mubr.bf16.mxu0 %v9357_v55  ;;  %v9500_v55 = vld [vmem:[%s13471_s0 + $0x5e8] ss:$28 sps:$4 sm:$0xff]   ;;  %3539 = vmatprep.mubr.bf16.mxu1 %v9498_v54  ;;  %v9495_v54 = vld [vmem:[%s13471_s0 + $0x5bc] ss:$28 sps:$4 sm:$0xff]  }
  0x93   :  { %3540 = vmatmul.mubr.bf16.gmra.mrb[40].mxu1 %v9500_v55  ;;  %v9592_v55 = vld [vmem:[%s13470_s1 + $0x180] sm:$0xff]  }
  0x94   :  { %8360 = vmatprep.subr.bf16.mxu1 %v9592_v55 }
  0x95   :  { %8361 = vmatpush3.bf16.msra.mxu1 %v9592_v55  ;;  %v9684_v55 = vld [vmem:[%s13471_s0 + $0xc40] ss:$28 sps:$4 sm:$0xff]  }
  0x99   :  { %3412 = vmatmul.mubr.bf16.gmra.mrb[44].mxu0 %v9359_v56  ;;  %v9418_v56 = vld [vmem:[%s13471_s0 + $0x270] ss:$28 sps:$4 sm:$0xff]  }
  0x9a   :  { %3419 = vmatprep.mubr.bf16.mxu0 %v9360_v57  ;;  %v9419_v57 = vld [vmem:[%s13471_s0 + $0x2ac] ss:$28 sps:$4 sm:$0xff]  }
  0xa1   :  { %3420 = vmatmul.mubr.bf16.gmra.mrb[48].mxu0 %v9363_v58  ;;  %v9504_v58 = vld [vmem:[%s13471_s0 + $0x624] ss:$28 sps:$4 sm:$0xff]  }
  0xa2   :  { %3427 = vmatprep.mubr.bf16.mxu0 %v9364_v59  ;;  %v9506_v59 = vld [vmem:[%s13471_s0 + $0x620] ss:$28 sps:$4 sm:$0xff]   ;;  %3547 = vmatprep.mubr.bf16.mxu1 %v9504_v58  ;;  %v9497_v58 = vld [vmem:[%s13471_s0 + $0x5b8] ss:$28 sps:$4 sm:$0xff]  }
  0xa3   :  { %3548 = vmatmul.mubr.bf16.gmra.mrb[44].mxu1 %v9506_v59  ;;  %v9501_v59 = vld [vmem:[%s13471_s0 + $0x5f4] ss:$28 sps:$4 sm:$0xff]  }
  0xa9   :  { %3428 = vmatmul.mubr.bf16.gmra.mrb[52].mxu0 %v9367_v60  ;;  %v9421_v60 = vld [vmem:[%s13471_s0 + $0x2a8] ss:$28 sps:$4 sm:$0xff]  }
  0xaa   :  { %3435 = vmatprep.mubr.bf16.mxu0 %v9368_v61  ;;  %v9423_v61 = vld [vmem:[%s13471_s0 + $0x2e4] ss:$28 sps:$4 sm:$0xff]  }
  0xb1   :  { %3436 = vmatmul.mubr.bf16.gmra.mrb[56].mxu0 %v9370_v62  ;;  %v9510_v62 = vld [vmem:[%s13470_s1 + $0x138] sm:$0xff]  }
  0xb2   :  { %3443 = vmatprep.mubr.bf16.mxu0 %v9372_v63  ;;  %v9511_v63 = vld [vmem:[%s13471_s0 + $0x65c] ss:$28 sps:$4 sm:$0xff]  }
  0xb3   :  { %3555 = vmatprep.mubr.bf16.mxu1 %v9511_v63  ;;  %v9507_v63 = vld [vmem:[%s13471_s0 + $0x62c] ss:$28 sps:$4 sm:$0xff]  }
  0xb9   :  { %3444 = vmatmul.mubr.bf16.gmra.mrb[60].mxu0 %v9374_v1  ;;  %v9513_v1 = vld [vmem:[%s13471_s0 + $0x658] ss:$28 sps:$4 sm:$0xff]  }
  0xba   :  { %3451 = vmatprep.mubr.bf16.mxu0 %v9376_v2  ;;  %3556 = vmatmul.mubr.bf16.gmra.mrb[48].mxu1 %v9513_v1  ;;  %v9425_v2 = vld [vmem:[%s13471_s0 + $0x2e0] ss:$28 sps:$4 sm:$0xff]  }
  0xbb   :  { %v9605_v1 = vld [vmem:[%s13471_s0 + $0x9a4] ss:$28 sps:$4 sm:$0xff]  }
  0xc1   :  { %3452 = vmatmul.mubr.bf16.gmra.mrb[64].mxu0 %v9378_v3  ;;  %v9426_v3 = vld [vmem:[%s13471_s0 + $0x31c] ss:$28 sps:$4 sm:$0xff]  }
  0xc2   :  { %3868 = vmatprep.mubr.bf16.mxu0 %v9382_v4  ;;  %v9517_v4 = vld [vmem:[%s13471_s0 + $0x694] ss:$28 sps:$4 sm:$0xff]  }
  0xc3   :  { %3563 = vmatprep.mubr.bf16.mxu1 %v9517_v4  ;;  %v9514_v4 = vld [vmem:[%s13471_s0 + $0x664] ss:$28 sps:$4 sm:$0xff]  }
  0xc9   :  { %3869 = vmatmul.mubr.bf16.vlgmr.msra.gmra.mrb[0].mxu0 %v9380_v5  ;;  %v9519_v5 = vld [vmem:[%s13471_s0 + $0x690] ss:$28 sps:$4 sm:$0xff]  }
  0xca   :  { %4382 = vmatpush1.bf16.msra.mxu0 %v9383_v6  ;;  %3876 = vmatprep.mubr.bf16.mxu0 %v9384_v7  ;;  %v9428_v6 = vld [vmem:[%s13471_s0 + $0x318] ss:$28 sps:$4 sm:$0xff]  }
  0xcb   :  { %4383 = vmatprep.subr.bf16.mxu0 %v10129_v0  ;;  %3564 = vmatmul.mubr.bf16.gmra.mrb[52].mxu1 %v9519_v5  ;;  %v9429_v7 = vld [vmem:[%s13471_s0 + $0x354] ss:$28 sps:$4 sm:$0xff]   ;;  %v9611_v5 = vld [vmem:[%s13470_s1 + $0x158] sm:$0xff]  }
  0xcc   :  { %3571 = vmatprep.mubr.bf16.mxu1 %v9523_v8  ;;  %v9516_v8 = vld [vmem:[%s13471_s0 + $0x660] ss:$28 sps:$4 sm:$0xff]  }
  0xce   :  { %4384 = vmatpush1.bf16.msra.mxu0 %v9396_v10  ;;  %v9431_v10 = vld [vmem:[%s13471_s0 + $0x350] ss:$28 sps:$4 sm:$0xff]  }
  0xcf   :  { %4385 = vmatprep.subr.bf16.mxu0 %v10129_v0 }
  0xd1   :  { %3877 = vmatmul.mubr.bf16.gmra.mrb[4].mxu0 %v9386_v11  ;;  %v9432_v11 = vld [vmem:[%s13471_s0 + $0x38c] ss:$28 sps:$4 sm:$0xff]  }
  0xd2   :  { %3884 = vmatprep.mubr.bf16.mxu0 %v9387_v12  ;;  %4386 = vmatpush1.bf16.msra.mxu0 %v9409_v13  ;;  %v9529_v12 = vld [vmem:[%s13471_s0 + $0x704] ss:$28 sps:$4 sm:$0xff]  }
  0xd3   :  { %4387 = vmatprep.subr.bf16.mxu0 %v10129_v0  ;;  %3572 = vmatmul.mubr.bf16.gmra.mrb[56].mxu1 %v9525_v9  ;;  %v9531_v13 = vld [vmem:[%s13471_s0 + $0x700] ss:$28 sps:$4 sm:$0xff]  }
  0xd4   :  { %3579 = vmatprep.mubr.bf16.mxu1 %v9529_v12  ;;  %v9520_v9 = vld [vmem:[%s13471_s0 + $0x69c] ss:$28 sps:$4 sm:$0xff]  }
  0xd5   :  { %v9522_v12 = vld [vmem:[%s13471_s0 + $0x698] ss:$28 sps:$4 sm:$0xff]  }
  0xd6   :  { %4388 = vmatpush1.bf16.msra.mxu0 %v9422_v16  ;;  %v9535_v16 = vld [vmem:[%s13470_s1 + $0x140] sm:$0xff]  }
  0xd7   :  { %4389 = vmatprep.subr.bf16.mxu0 %v10129_v0 }
  0xd9   :  { %3885 = vmatmul.mubr.bf16.gmra.mrb[8].mxu0 %v9389_v17  ;;  %v9536_v17 = vld [vmem:[%s13471_s0 + $0x73c] ss:$28 sps:$4 sm:$0xff]  }
  0xda   :  { %3892 = vmatprep.mubr.bf16.mxu0 %v9390_v18  ;;  %4390 = vmatpush1.bf16.msra.mxu0 %v9435_v19  ;;  %v9538_v18 = vld [vmem:[%s13471_s0 + $0x738] ss:$28 sps:$4 sm:$0xff]   ;;  %v9441_v19 = vld [vmem:[%s13471_s0 + $0x3c0] ss:$28 sps:$4 sm:$0xff]  }
  0xdb   :  { %4391 = vmatprep.subr.bf16.mxu0 %v10129_v0  ;;  %3580 = vmatmul.mubr.bf16.gmra.mrb[60].mxu1 %v9531_v13  ;;  %v9526_v13 = vld [vmem:[%s13471_s0 + $0x6d4] ss:$28 sps:$4 sm:$0xff]  }
  0xdc   :  { %3587 = vmatprep.mubr.bf16.mxu1 %v9536_v17  ;;  %v9532_v17 = vld [vmem:[%s13471_s0 + $0x70c] ss:$28 sps:$4 sm:$0xff]  }
  0xde   :  { %4392 = vmatpush1.bf16.msra.mxu0 %v9460_v28  ;;  %v9457_v28 = vld [vmem:[%s13471_s0 + $0x46c] ss:$28 sps:$4 sm:$0xff]  }
  0xdf   :  { %4393 = vmatprep.subr.bf16.mxu0 %v10129_v0 }
  0xe1   :  { %3893 = vmatmul.mubr.bf16.gmra.mrb[12].mxu0 %v9392_v22  ;;  %v9544_v22 = vld [vmem:[%s13471_s0 + $0x770] ss:$28 sps:$4 sm:$0xff]  }
  0xe2   :  { %3900 = vmatprep.mubr.bf16.mxu0 %v9393_v23  ;;  %4394 = vmatpush1.bf16.msra.mxu0 %v9485_v45  ;;  %v9447_v23 = vld [vmem:[%s13471_s0 + $0x3f8] ss:$28 sps:$4 sm:$0xff]   ;;  %v9482_v45 = vld [vmem:[%s13471_s0 + $0x54c] ss:$28 sps:$4 sm:$0xff]  }
  0xe3   :  { %4395 = vmatprep.subr.bf16.mxu0 %v10129_v0  ;;  %3588 = vmatmul.mubr.bf16.gmra.mrb[64].mxu1 %v9538_v18  ;;  %v9630_v18 = vld [vmem:[%s13470_s1 + $0x188] sm:$0xff]  }
  0xe4   :  { %3595 = vmatprep.mubr.bf16.mxu1 %v9542_v21  ;;  %8362 = vmatprep.subr.bf16.mxu1 %v9630_v18  ;;  %v9534_v21 = vld [vmem:[%s13471_s0 + $0x708] ss:$28 sps:$4 sm:$0xff]  }
  0xe5   :  { %8363 = vmatpush3.bf16.msra.mxu1 %v9630_v18  ;;  %v9723_v18 = vld [vmem:[%s13471_s0 + $0xd90] ss:$28 sps:$4 sm:$0xff]  }
  0xe6   :  { %4396 = vmatpush1.bf16.msra.mxu0 %v9510_v62  ;;  %v9503_v62 = vld [vmem:[%s13471_s0 + $0x5f0] ss:$28 sps:$4 sm:$0xff]  }
  0xe7   :  { %4397 = vmatprep.subr.bf16.mxu0 %v10129_v0 }
  0xe9   :  { %3901 = vmatmul.mubr.bf16.gmra.mrb[16].mxu0 %v9395_v26  ;;  %v9550_v26 = vld [vmem:[%s13471_s0 + $0x7a8] ss:$28 sps:$4 sm:$0xff]  }
  0xea   :  { %3908 = vmatprep.mubr.bf16.mxu0 %v9397_v27  ;;  %4398 = vmatpush1.bf16.msra.mxu0 %v9535_v16  ;;  %v9453_v27 = vld [vmem:[%s13471_s0 + $0x430] ss:$28 sps:$4 sm:$0xff]  }
  0xeb   :  { %4399 = vmatprep.subr.bf16.mxu0 %v10129_v0  ;;  %3596 = vmatmul.mubr.bf16.gmra.mrb[68].mxu1 %v9544_v22  ;;  %v9528_v16 = vld [vmem:[%s13471_s0 + $0x6d0] ss:$28 sps:$4 sm:$0xff]   ;;  %v9539_v22 = vld [vmem:[%s13471_s0 + $0x744] ss:$28 sps:$4 sm:$0xff]  }
  0xec   :  { %3603 = vmatprep.mubr.bf16.mxu1 %v9548_v25  ;;  %v9640_v25 = vld [vmem:[%s13471_s0 + $0xab8] ss:$28 sps:$4 sm:$0xff]  }
  0xee   :  { %4400 = vmatpush1.bf16.msra.mxu0 %v9560_v33  ;;  %v9652_v33 = vld [vmem:[%s13471_s0 + $0xb28] ss:$28 sps:$4 sm:$0xff]  }
  0xef   :  { %4401 = vmatprep.subr.bf16.mxu0 %v10129_v0 }
  0xf1   :  { %3909 = vmatmul.mubr.bf16.gmra.mrb[20].mxu0 %v9399_v31  ;;  %v9459_v31 = vld [vmem:[%s13471_s0 + $0x468] ss:$28 sps:$4 sm:$0xff]  }
  0xf2   :  { %3916 = vmatprep.mubr.bf16.mxu0 %v9400_v32  ;;  %v9464_v32 = vld [vmem:[%s13471_s0 + $0x4a4] ss:$28 sps:$4 sm:$0xff]   ;;  %4402 = vmatpush1.bf16.msra.mxu0 %v9585_v50  ;;  %v9676_v50 = vld [vmem:[%s13471_s0 + $0xc0c] ss:$28 sps:$4 sm:$0xff]  }
  0xf3   :  { %3604 = vmatmul.mubr.bf16.gmra.mrb[72].mxu1 %v9550_v26  ;;  %4403 = vmatprep.subr.bf16.mxu0 %v10129_v0  ;;  %v9541_v26 = vld [vmem:[%s13471_s0 + $0x740] ss:$28 sps:$4 sm:$0xff]  }
  0xf4   :  { %3611 = vmatprep.mubr.bf16.mxu1 %v9554_v29  ;;  %v9646_v29 = vld [vmem:[%s13471_s0 + $0xaf0] ss:$28 sps:$4 sm:$0xff]  }
  0xf6   :  { %4404 = vmatpush1.bf16.msra.mxu0 %v9611_v5  ;;  %v9704_v5 = vld [vmem:[%s13471_s0 + $0xce8] ss:$28 sps:$4 sm:$0xff]  }
  0xf7   :  { %4405 = vmatprep.subr.bf16.mxu0 %v10129_v0 }
  0xf9   :  { %3917 = vmatmul.mubr.bf16.gmra.mrb[24].mxu0 %v9402_v35  ;;  %v9563_v35 = vld [vmem:[%s13471_s0 + $0x818] ss:$28 sps:$4 sm:$0xff]  }
  0xfa   :  { %3924 = vmatprep.mubr.bf16.mxu0 %v9403_v36  ;;  %v9466_v36 = vld [vmem:[%s13471_s0 + $0x4a0] ss:$28 sps:$4 sm:$0xff]  }
  0xfb   :  { %3612 = vmatmul.mubr.bf16.gmra.mrb[76].mxu1 %v9556_v30  ;;  %v9547_v30 = vld [vmem:[%s13471_s0 + $0x778] ss:$28 sps:$4 sm:$0xff]  }
  0xfc   :  { %3619 = vmatprep.mubr.bf16.mxu1 %v9561_v34  ;;  %v9553_v34 = vld [vmem:[%s13471_s0 + $0x7b0] ss:$28 sps:$4 sm:$0xff]  }
 0x101   :  { %3925 = vmatmul.mubr.bf16.gmra.mrb[28].mxu0 %v9405_v39  ;;  %v9569_v39 = vld [vmem:[%s13471_s0 + $0x850] ss:$28 sps:$4 sm:$0xff]  }
 0x102   :  { %3932 = vmatprep.mubr.bf16.mxu0 %v9406_v40  ;;  %v9472_v40 = vld [vmem:[%s13471_s0 + $0x4d8] ss:$28 sps:$4 sm:$0xff]  }
 0x103   :  { %3620 = vmatmul.mubr.bf16.gmra.mrb[80].mxu1 %v9563_v35  ;;  %v9557_v35 = vld [vmem:[%s13471_s0 + $0x7ec] ss:$28 sps:$4 sm:$0xff]  }
 0x104   :  { %3627 = vmatprep.mubr.bf16.mxu1 %v9567_v38  ;;  %v9559_v38 = vld [vmem:[%s13471_s0 + $0x7e8] ss:$28 sps:$4 sm:$0xff]  }
 0x109   :  { %3933 = vmatmul.mubr.bf16.gmra.mrb[32].mxu0 %v9408_v43  ;;  %v9575_v43 = vld [vmem:[%s13471_s0 + $0x888] ss:$28 sps:$4 sm:$0xff]  }
 0x10a   :  { %3940 = vmatprep.mubr.bf16.mxu0 %v9410_v44  ;;  %v9478_v44 = vld [vmem:[%s13471_s0 + $0x510] ss:$28 sps:$4 sm:$0xff]  }
 0x10b   :  { %3628 = vmatmul.mubr.bf16.gmra.mrb[84].mxu1 %v9569_v39  ;;  %v9564_v39 = vld [vmem:[%s13471_s0 + $0x824] ss:$28 sps:$4 sm:$0xff]  }
 0x10c   :  { %3635 = vmatprep.mubr.bf16.mxu1 %v9573_v42  ;;  %v9665_v42 = vld [vmem:[%s13471_s0 + $0xb98] ss:$28 sps:$4 sm:$0xff]  }
 0x111   :  { %3941 = vmatmul.mubr.bf16.gmra.mrb[36].mxu0 %v9412_v48  ;;  %v9484_v48 = vld [vmem:[%s13471_s0 + $0x548] ss:$28 sps:$4 sm:$0xff]  }
 0x112   :  { %3948 = vmatprep.mubr.bf16.mxu0 %v9413_v49  ;;  %v9489_v49 = vld [vmem:[%s13471_s0 + $0x584] ss:$28 sps:$4 sm:$0xff]  }
 0x113   :  { %3636 = vmatmul.mubr.bf16.gmra.mrb[88].mxu1 %v9575_v43  ;;  %v9668_v43 = vld [vmem:[%s13470_s1 + $0x190] sm:$0xff]  }
 0x114   :  { %3643 = vmatprep.mubr.bf16.mxu1 %v9579_v46  ;;  %8364 = vmatprep.subr.bf16.mxu1 %v9668_v43  ;;  %v9670_v46 = vld [vmem:[%s13471_s0 + $0xbd4] ss:$28 sps:$4 sm:$0xff]  }
 0x115   :  { %8365 = vmatpush3.bf16.msra.mxu1 %v9668_v43  ;;  %v9655_v43 = vld [vmem:[%s13471_s0 + $0xb30] ss:$28 sps:$4 sm:$0xff]  }
 0x119   :  { %3949 = vmatmul.mubr.bf16.gmra.mrb[40].mxu0 %v9415_v52  ;;  %v9588_v52 = vld [vmem:[%s13471_s0 + $0x8f8] ss:$28 sps:$4 sm:$0xff]  }
 0x11a   :  { %3956 = vmatprep.mubr.bf16.mxu0 %v9416_v53  ;;  %v9491_v53 = vld [vmem:[%s13471_s0 + $0x580] ss:$28 sps:$4 sm:$0xff]  }
 0x11b   :  { %3644 = vmatmul.mubr.bf16.gmra.mrb[92].mxu1 %v9581_v47  ;;  %v9672_v47 = vld [vmem:[%s13471_s0 + $0xbd0] ss:$28 sps:$4 sm:$0xff]  }
 0x11c   :  { %3651 = vmatprep.mubr.bf16.mxu1 %v9586_v51  ;;  %v9678_v51 = vld [vmem:[%s13471_s0 + $0xc08] ss:$28 sps:$4 sm:$0xff]  }
 0x121   :  { %3957 = vmatmul.mubr.bf16.gmra.mrb[44].mxu0 %v9418_v56  ;;  %v9593_v56 = vld [vmem:[%s13471_s0 + $0x934] ss:$28 sps:$4 sm:$0xff]  }
 0x122   :  { %3964 = vmatprep.mubr.bf16.mxu0 %v9419_v57  ;;  %v9595_v57 = vld [vmem:[%s13471_s0 + $0x930] ss:$28 sps:$4 sm:$0xff]  }
 0x123   :  { %3652 = vmatmul.mubr.bf16.gmra.mrb[96].mxu1 %v9588_v52  ;;  %v9578_v52 = vld [vmem:[%s13471_s0 + $0x890] ss:$28 sps:$4 sm:$0xff]  }
 0x124   :  { %3659 = vmatprep.mubr.bf16.mxu1 %v9593_v56  ;;  %v9584_v56 = vld [vmem:[%s13471_s0 + $0x8c8] ss:$28 sps:$4 sm:$0xff]  }
 0x129   :  { %3965 = vmatmul.mubr.bf16.gmra.mrb[48].mxu0 %v9421_v60  ;;  %v9599_v60 = vld [vmem:[%s13471_s0 + $0x96c] ss:$28 sps:$4 sm:$0xff]  }
 0x12a   :  { %3972 = vmatprep.mubr.bf16.mxu0 %v9423_v61  ;;  %v9601_v61 = vld [vmem:[%s13471_s0 + $0x968] ss:$28 sps:$4 sm:$0xff]  }
 0x12b   :  { %3660 = vmatmul.mubr.bf16.gmra.mrb[100].mxu1 %v9595_v57  ;;  %v9589_v57 = vld [vmem:[%s13471_s0 + $0x904] ss:$28 sps:$4 sm:$0xff]  }
 0x12c   :  { %3667 = vmatprep.mubr.bf16.mxu1 %v9599_v60  ;;  %v9691_v60 = vld [vmem:[%s13471_s0 + $0xc78] ss:$28 sps:$4 sm:$0xff]  }
 0x131   :  { %3973 = vmatmul.mubr.bf16.gmra.mrb[52].mxu0 %v9425_v2  ;;  %v9607_v2 = vld [vmem:[%s13471_s0 + $0x9a0] ss:$28 sps:$4 sm:$0xff]  }
 0x132   :  { %3980 = vmatprep.mubr.bf16.mxu0 %v9426_v3  ;;  %v9509_v3 = vld [vmem:[%s13471_s0 + $0x628] ss:$28 sps:$4 sm:$0xff]  }
 0x133   :  { %3668 = vmatmul.mubr.bf16.gmra.mrb[104].mxu1 %v9601_v61  ;;  %v9591_v61 = vld [vmem:[%s13471_s0 + $0x900] ss:$28 sps:$4 sm:$0xff]  }
 0x134   :  { %3675 = vmatprep.mubr.bf16.mxu1 %v9605_v1  ;;  %v9697_v1 = vld [vmem:[%s13471_s0 + $0xcb0] ss:$28 sps:$4 sm:$0xff]  }
 0x139   :  { %3981 = vmatmul.mubr.bf16.gmra.mrb[56].mxu0 %v9428_v6  ;;  %v9612_v6 = vld [vmem:[%s13471_s0 + $0x9dc] ss:$28 sps:$4 sm:$0xff]  }
 0x13a   :  { %3988 = vmatprep.mubr.bf16.mxu0 %v9429_v7  ;;  %v9614_v7 = vld [vmem:[%s13471_s0 + $0x9d8] ss:$28 sps:$4 sm:$0xff]  }
 0x13b   :  { %3676 = vmatmul.mubr.bf16.gmra.mrb[108].mxu1 %v9607_v2  ;;  %v9602_v2 = vld [vmem:[%s13471_s0 + $0x974] ss:$28 sps:$4 sm:$0xff]  }
 0x13c   :  { %3683 = vmatprep.mubr.bf16.mxu1 %v9612_v6  ;;  %v9604_v6 = vld [vmem:[%s13471_s0 + $0x970] ss:$28 sps:$4 sm:$0xff]  }
 0x141   :  { %3989 = vmatmul.mubr.bf16.gmra.mrb[60].mxu0 %v9431_v10  ;;  %v9618_v10 = vld [vmem:[%s13471_s0 + $0xa14] ss:$28 sps:$4 sm:$0xff]  }
 0x142   :  { %3996 = vmatprep.mubr.bf16.mxu0 %v9432_v11  ;;  %v9620_v11 = vld [vmem:[%s13471_s0 + $0xa10] ss:$28 sps:$4 sm:$0xff]  }
 0x143   :  { %3684 = vmatmul.mubr.bf16.gmra.mrb[112].mxu1 %v9614_v7  ;;  %v9608_v7 = vld [vmem:[%s13471_s0 + $0x9ac] ss:$28 sps:$4 sm:$0xff]  }
 0x144   :  { %3691 = vmatprep.mubr.bf16.mxu1 %v9618_v10  ;;  %v9610_v10 = vld [vmem:[%s13471_s0 + $0x9a8] ss:$28 sps:$4 sm:$0xff]  }
 0x149   :  { %3997 = vmatmul.mubr.bf16.gmra.mrb[64].mxu0 %v9434_v14  ;;  %v9624_v14 = vld [vmem:[%s13471_s0 + $0xa4c] ss:$28 sps:$4 sm:$0xff]  }
 0x14a   :  { %4004 = vmatprep.mubr.bf16.mxu0 %v9439_v15  ;;  %v9626_v15 = vld [vmem:[%s13471_s0 + $0xa48] ss:$28 sps:$4 sm:$0xff]  }
 0x14b   :  { %3692 = vmatmul.mubr.bf16.gmra.mrb[116].mxu1 %v9620_v11  ;;  %v9615_v11 = vld [vmem:[%s13471_s0 + $0x9e4] ss:$28 sps:$4 sm:$0xff]  }
 0x14c   :  { %3699 = vmatprep.mubr.bf16.mxu1 %v9624_v14  ;;  %v9717_v14 = vld [vmem:[%s13471_s0 + $0xd58] ss:$28 sps:$4 sm:$0xff]  }
 0x151   :  { %4005 = vmatmul.mubr.bf16.gmra.mrb[68].mxu0 %v9441_v19  ;;  %v9631_v19 = vld [vmem:[%s13471_s0 + $0xa84] ss:$28 sps:$4 sm:$0xff]  }
 0x152   :  { %4012 = vmatprep.mubr.bf16.mxu0 %v9445_v20  ;;  %v9633_v20 = vld [vmem:[%s13471_s0 + $0xa80] ss:$28 sps:$4 sm:$0xff]  }
 0x153   :  { %3700 = vmatmul.mubr.bf16.gmra.mrb[120].mxu1 %v9626_v15  ;;  %v9617_v15 = vld [vmem:[%s13471_s0 + $0x9e0] ss:$28 sps:$4 sm:$0xff]  }
 0x154   :  { %3707 = vmatprep.mubr.bf16.mxu1 %v9631_v19  ;;  %v9726_v19 = vld [vmem:[%s13470_s1 + $0x1a0] sm:$0xff]  }
 0x159   :  { %4013 = vmatmul.mubr.bf16.gmra.mrb[72].mxu0 %v9447_v23  ;;  %v9637_v23 = vld [vmem:[%s13470_s1 + $0x160] sm:$0xff]  }
 0x15a   :  { %4020 = vmatprep.mubr.bf16.mxu0 %v9451_v24  ;;  %v9638_v24 = vld [vmem:[%s13471_s0 + $0xabc] ss:$28 sps:$4 sm:$0xff]   ;;  %4406 = vmatpush1.bf16.msra.mxu0 %v9637_v23  ;;  %v9729_v23 = vld [vmem:[%s13471_s0 + $0xdcc] ss:$28 sps:$4 sm:$0xff]  }
 0x15b   :  { %3708 = vmatmul.mubr.bf16.gmra.mrb[124].mxu1 %v9633_v20  ;;  %4407 = vmatprep.subr.bf16.mxu0 %v10129_v0  ;;  %v9623_v20 = vld [vmem:[%s13471_s0 + $0xa18] ss:$28 sps:$4 sm:$0xff]  }
 0x15c   :  { %3715 = vmatprep.mubr.bf16.mxu1 %v9638_v24  ;;  %v9731_v24 = vld [vmem:[%s13471_s0 + $0xdc8] ss:$28 sps:$4 sm:$0xff]  }
 0x161   :  { %4021 = vmatmul.mubr.bf16.gmra.mrb[76].mxu0 %v9453_v27  ;;  %v9545_v27 = vld [vmem:[%s13471_s0 + $0x77c] ss:$28 sps:$4 sm:$0xff]  }
 0x162   :  { %4028 = vmatprep.mubr.bf16.mxu0 %v9457_v28  ;;  %v9644_v28 = vld [vmem:[%s13471_s0 + $0xaf4] ss:$28 sps:$4 sm:$0xff]  }
 0x163   :  { %3716 = vmatmul.mubr.bf16.gmra.mrb[128].mxu1 %v9640_v25  ;;  %v9734_v25 = vld [vmem:[%s13470_s1 + $0x1b0] sm:$0xff]  }
 0x164   :  { %3723 = vmatprep.mubr.bf16.mxu1 %v9644_v28  ;;  %v9736_v28 = vld [vmem:[%s13470_s1 + $0x1b8] sm:$0xff]  }
 0x169   :  { %4029 = vmatmul.mubr.bf16.gmra.mrb[80].mxu0 %v9459_v31  ;;  %v9551_v31 = vld [vmem:[%s13471_s0 + $0x7b4] ss:$28 sps:$4 sm:$0xff]  }
 0x16a   :  { %4036 = vmatprep.mubr.bf16.mxu0 %v9464_v32  ;;  %v9650_v32 = vld [vmem:[%s13471_s0 + $0xb2c] ss:$28 sps:$4 sm:$0xff]  }
 0x16b   :  { %3724 = vmatmul.mubr.bf16.gmra.mrb[132].mxu1 %v9646_v29  ;;  %v9737_v29 = vld [vmem:[%s13471_s0 + $0x18] ss:$28 sps:$4 sm:$0xff]  }
 0x16c   :  { %3731 = vmatprep.mubr.bf16.mxu1 %v9650_v32  ;;  %v9641_v32 = vld [vmem:[%s13471_s0 + $0xac4] ss:$28 sps:$4 sm:$0xff]  }
 0x171   :  { %4037 = vmatmul.mubr.bf16.gmra.mrb[84].mxu0 %v9466_v36  ;;  %v9656_v36 = vld [vmem:[%s13471_s0 + $0xb64] ss:$28 sps:$4 sm:$0xff]  }
 0x172   :  { %4044 = vmatprep.mubr.bf16.mxu0 %v9470_v37  ;;  %v9658_v37 = vld [vmem:[%s13471_s0 + $0xb60] ss:$28 sps:$4 sm:$0xff]  }
 0x173   :  { %3732 = vmatmul.mubr.bf16.gmra.mrb[136].mxu1 %v9652_v33  ;;  %v9643_v33 = vld [vmem:[%s13471_s0 + $0xac0] ss:$28 sps:$4 sm:$0xff]  }
 0x174   :  { %3739 = vmatprep.mubr.bf16.mxu1 %v9656_v36  ;;  %v9748_v36 = vld [vmem:[%s13471_s0 + $0xc0] ss:$28 sps:$4 sm:$0xff]  }
 0x179   :  { %4045 = vmatmul.mubr.bf16.gmra.mrb[88].mxu0 %v9472_v40  ;;  %v9662_v40 = vld [vmem:[%s13470_s1 + $0x168] sm:$0xff]  }
 0x17a   :  { %4052 = vmatprep.mubr.bf16.mxu0 %v9476_v41  ;;  %v9663_v41 = vld [vmem:[%s13471_s0 + $0xb9c] ss:$28 sps:$4 sm:$0xff]   ;;  %4408 = vmatpush1.bf16.msra.mxu0 %v9662_v40 }
 0x17b   :  { %3740 = vmatmul.mubr.bf16.gmra.mrb[140].mxu1 %v9658_v37  ;;  %4409 = vmatprep.subr.bf16.mxu0 %v10129_v0  ;;  %v9649_v37 = vld [vmem:[%s13471_s0 + $0xaf8] ss:$28 sps:$4 sm:$0xff]  }
 0x17c   :  { %3747 = vmatprep.mubr.bf16.mxu1 %v9663_v41 }
 0x181   :  { %4053 = vmatmul.mubr.bf16.gmra.mrb[92].mxu0 %v9478_v44  ;;  %v9566_v44 = vld [vmem:[%s13471_s0 + $0x820] ss:$28 sps:$4 sm:$0xff]  }
 0x182   :  { %4060 = vmatprep.mubr.bf16.mxu0 %v9482_v45  ;;  %v9570_v45 = vld [vmem:[%s13471_s0 + $0x85c] ss:$28 sps:$4 sm:$0xff]  }
 0x183   :  { %3748 = vmatmul.mubr.bf16.gmra.mrb[144].mxu1 %v9665_v42 }
 0x184   :  { %3755 = vmatprep.mubr.bf16.mxu1 %v9670_v46  ;;  %v9753_v46 = vld [vmem:[%s13471_s0 + $0xf8] ss:$28 sps:$4 sm:$0xff]  }
 0x189   :  { %4061 = vmatmul.mubr.bf16.gmra.mrb[96].mxu0 %v9484_v48  ;;  %v9572_v48 = vld [vmem:[%s13471_s0 + $0x858] ss:$28 sps:$4 sm:$0xff]  }
 0x18a   :  { %4068 = vmatprep.mubr.bf16.mxu0 %v9489_v49  ;;  %v9576_v49 = vld [vmem:[%s13471_s0 + $0x894] ss:$28 sps:$4 sm:$0xff]  }
 0x18b   :  { %3756 = vmatmul.mubr.bf16.gmra.mrb[148].mxu1 %v9672_v47 }
 0x18c   :  { %3763 = vmatprep.mubr.bf16.mxu1 %v9676_v50 }
 0x191   :  { %4069 = vmatmul.mubr.bf16.gmra.mrb[100].mxu0 %v9491_v53  ;;  %v9582_v53 = vld [vmem:[%s13471_s0 + $0x8cc] ss:$28 sps:$4 sm:$0xff]  }
 0x192   :  { %4076 = vmatprep.mubr.bf16.mxu0 %v9495_v54  ;;  %v9682_v54 = vld [vmem:[%s13471_s0 + $0xc44] ss:$28 sps:$4 sm:$0xff]  }
 0x193   :  { %3764 = vmatmul.mubr.bf16.gmra.mrb[152].mxu1 %v9678_v51  ;;  %v9661_v51 = vld [vmem:[%s13471_s0 + $0xb68] ss:$28 sps:$4 sm:$0xff]  }
 0x194   :  { %3771 = vmatprep.mubr.bf16.mxu1 %v9682_v54 }
 0x199   :  { %4077 = vmatmul.mubr.bf16.gmra.mrb[104].mxu0 %v9497_v58  ;;  %v9688_v58 = vld [vmem:[%s13470_s1 + $0x170] sm:$0xff]  }
 0x19a   :  { %4084 = vmatprep.mubr.bf16.mxu0 %v9501_v59  ;;  %v9689_v59 = vld [vmem:[%s13471_s0 + $0xc7c] ss:$28 sps:$4 sm:$0xff]   ;;  %4410 = vmatpush1.bf16.msra.mxu0 %v9688_v58 }
 0x19b   :  { %3772 = vmatmul.mubr.bf16.gmra.mrb[156].mxu1 %v9684_v55  ;;  %4411 = vmatprep.subr.bf16.mxu0 %v10129_v0  ;;  %v9598_v0 = vld [vmem:[%s13471_s0 + $0x938] ss:$28 sps:$4 sm:$0xff]  }
 0x19c   :  { %3779 = vmatprep.mubr.bf16.mxu1 %v9689_v59 }
 0x1a1   :  { %4085 = vmatmul.mubr.bf16.gmra.mrb[108].mxu0 %v9503_v62  ;;  %v9596_v62 = vld [vmem:[%s13471_s0 + $0x93c] ss:$28 sps:$4 sm:$0xff]  }
 0x1a2   :  { %4092 = vmatprep.mubr.bf16.mxu0 %v9507_v63  ;;  %v9695_v63 = vld [vmem:[%s13471_s0 + $0xcb4] ss:$28 sps:$4 sm:$0xff]  }
 0x1a3   :  { %3780 = vmatmul.mubr.bf16.gmra.mrb[160].mxu1 %v9691_v60 }
 0x1a4   :  { %3787 = vmatprep.mubr.bf16.mxu1 %v9695_v63  ;;  %v9673_v63 = vld [vmem:[%s13471_s0 + $0xbdc] ss:$28 sps:$4 sm:$0xff]  }
 0x1a9   :  { %4093 = vmatmul.mubr.bf16.gmra.mrb[112].mxu0 %v9509_v3  ;;  %v9701_v3 = vld [vmem:[%s13471_s0 + $0xcec] ss:$28 sps:$4 sm:$0xff]  }
 0x1aa   :  { %4100 = vmatprep.mubr.bf16.mxu0 %v9514_v4  ;;  %v9703_v4 = vld [vmem:[%s13470_s1 + $0x198] sm:$0xff]  }
 0x1ab   :  { %3788 = vmatmul.mubr.bf16.gmra.mrb[164].mxu1 %v9697_v1  ;;  %8366 = vmatprep.subr.bf16.mxu1 %v9703_v4 }
 0x1ac   :  { %3795 = vmatprep.mubr.bf16.mxu1 %v9701_v3  ;;  %8367 = vmatpush3.bf16.msra.mxu1 %v9703_v4  ;;  %v9761_v4 = vld [vmem:[%s13471_s0 + $0x168] ss:$28 sps:$4 sm:$0xff]  }
 0x1ad   :  { %8368 = vmatprep.subr.bf16.mxu1 %v9726_v19 }
 0x1b0   :  { %8369 = vmatpush3.bf16.msra.mxu1 %v9726_v19  ;;  %v9681_v19 = vld [vmem:[%s13471_s0 + $0xc10] ss:$28 sps:$4 sm:$0xff]  }
 0x1b1   :  { %4101 = vmatmul.mubr.bf16.gmra.mrb[116].mxu0 %v9516_v8  ;;  %v9708_v8 = vld [vmem:[%s13471_s0 + $0xd24] ss:$28 sps:$4 sm:$0xff]  }
 0x1b2   :  { %4108 = vmatprep.mubr.bf16.mxu0 %v9520_v9  ;;  %v9710_v9 = vld [vmem:[%s13471_s0 + $0xd20] ss:$28 sps:$4 sm:$0xff]  }
 0x1b3   :  { %3796 = vmatmul.mubr.bf16.gmra.mrb[168].mxu1 %v9704_v5 }
 0x1b4   :  { %3803 = vmatprep.mubr.bf16.mxu1 %v9708_v8 }
 0x1b9   :  { %4109 = vmatmul.mubr.bf16.gmra.mrb[120].mxu0 %v9522_v12  ;;  %v9714_v12 = vld [vmem:[%s13470_s1 + $0x178] sm:$0xff]  }
 0x1ba   :  { %4116 = vmatprep.mubr.bf16.mxu0 %v9526_v13  ;;  %v9715_v13 = vld [vmem:[%s13471_s0 + $0xd5c] ss:$28 sps:$4 sm:$0xff]   ;;  %4412 = vmatpush1.bf16.msra.mxu0 %v9714_v12 }
 0x1bb   :  { %3804 = vmatmul.mubr.bf16.gmra.mrb[172].mxu1 %v9710_v9  ;;  %v9675_v9 = vld [vmem:[%s13471_s0 + $0xbd8] ss:$28 sps:$4 sm:$0xff]  }
 0x1bc   :  { %3811 = vmatprep.mubr.bf16.mxu1 %v9715_v13 }
 0x1c1   :  { %4117 = vmatmul.mubr.bf16.gmra.mrb[124].mxu0 %v9528_v16  ;;  %v9621_v16 = vld [vmem:[%s13471_s0 + $0xa1c] ss:$28 sps:$4 sm:$0xff]  }
 0x1c2   :  { %4124 = vmatprep.mubr.bf16.mxu0 %v9532_v17  ;;  %v9721_v17 = vld [vmem:[%s13471_s0 + $0xd94] ss:$28 sps:$4 sm:$0xff]  }
 0x1c3   :  { %3812 = vmatmul.mubr.bf16.gmra.mrb[176].mxu1 %v9717_v14 }
 0x1c4   :  { %3819 = vmatprep.mubr.bf16.mxu1 %v9721_v17 }
 0x1c9   :  { %4125 = vmatmul.mubr.bf16.gmra.mrb[128].mxu0 %v9534_v21  ;;  %v9627_v21 = vld [vmem:[%s13471_s0 + $0xa54] ss:$28 sps:$4 sm:$0xff]  }
 0x1ca   :  { %4132 = vmatprep.mubr.bf16.mxu0 %v9539_v22  ;;  %v9728_v22 = vld [vmem:[%s13470_s1 + $0x1a8] sm:$0xff]  }
 0x1cb   :  { %3820 = vmatmul.mubr.bf16.gmra.mrb[180].mxu1 %v9723_v18  ;;  %8370 = vmatprep.subr.bf16.mxu1 %v9728_v22 }
 0x1cc   :  { %3827 = vmatprep.mubr.bf16.mxu1 %v9729_v23  ;;  %8371 = vmatpush3.bf16.msra.mxu1 %v9728_v22 }
 0x1cd   :  { %8372 = vmatprep.subr.bf16.mxu1 %v9734_v25 }
 0x1d0   :  { %8373 = vmatpush3.bf16.msra.mxu1 %v9734_v25 }
 0x1d1   :  { %4133 = vmatmul.mubr.bf16.gmra.mrb[132].mxu0 %v9541_v26  ;;  %v9629_v26 = vld [vmem:[%s13471_s0 + $0xa50] ss:$28 sps:$4 sm:$0xff]   ;;  %8374 = vmatprep.subr.bf16.mxu1 %v9736_v28 }
 0x1d2   :  { %4140 = vmatprep.mubr.bf16.mxu0 %v9545_v27  ;;  %v9634_v27 = vld [vmem:[%s13471_s0 + $0xa8c] ss:$28 sps:$4 sm:$0xff]  }
 0x1d3   :  { %3828 = vmatmul.mubr.bf16.gmra.mrb[184].mxu1 %v9731_v24 }
 0x1d4   :  { %8376 = vmatprep.mubr.bf16.mxu1 %v9737_v29  ;;  %8375 = vmatpush3.bf16.msra.mxu1 %v9736_v28  ;;  %v9772_v28 = vld [vmem:[%s13471_s0 + $0x210] ss:$28 sps:$4 sm:$0xff]  }
 0x1d9   :  { %4141 = vmatmul.mubr.bf16.gmra.mrb[136].mxu0 %v9547_v30  ;;  %v9741_v30 = vld [vmem:[%s13471_s0 + $0x50] ss:$28 sps:$4 sm:$0xff]  }
 0x1da   :  { %4148 = vmatprep.mubr.bf16.mxu0 %v9551_v31  ;;  %v9636_v31 = vld [vmem:[%s13471_s0 + $0xa88] ss:$28 sps:$4 sm:$0xff]  }
 0x1db   :  { %8377 = vmatmul.mubr.bf16.vlgmr.msra.gmra.mrb[188].mxu1 %v9741_v30 }
 0x1e1   :  { %4149 = vmatmul.mubr.bf16.gmra.mrb[140].mxu0 %v9553_v34  ;;  %v9647_v34 = vld [vmem:[%s13471_s0 + $0xafc] ss:$28 sps:$4 sm:$0xff]  }
 0x1e2   :  { %4156 = vmatprep.mubr.bf16.mxu0 %v9557_v35  ;;  %v9745_v35 = vld [vmem:[%s13471_s0 + $0x88] ss:$28 sps:$4 sm:$0xff]  }
 0x1e3   :  { %8380 = vmatprep.mubr.bf16.mxu1 %v9745_v35 }
 0x1e4   :  { %8381 = vmatmul.mubr.bf16.gmra.mrb[192].mxu1 %v9748_v36 }
 0x1e5   :  { %8384 = vmatprep.mubr.bf16.mxu1 %v9753_v46  ;;  %v9698_v46 = vld [vmem:[%s13471_s0 + $0xcbc] ss:$28 sps:$4 sm:$0xff]  }
 0x1e9   :  { %4157 = vmatmul.mubr.bf16.gmra.mrb[144].mxu0 %v9559_v38  ;;  %v9653_v38 = vld [vmem:[%s13471_s0 + $0xb34] ss:$28 sps:$4 sm:$0xff]  }
 0x1ea   :  { %4164 = vmatprep.mubr.bf16.mxu0 %v9564_v39  ;;  %v11109_v39 = vpop.f32.mrb[0].mxu1 }
 0x1eb   :  { %v3463_v40 = vpop.f32.mrb[1].mxu1 }
 0x1ec   :  { %v11111_v41 = vpop.f32.mrb[2].mxu1 }
 0x1ed   :  { %v3466_v42 = vpop.f32.mrb[3].mxu1 }
 0x1f1   :  { %4165 = vmatmul.mubr.bf16.gmra.mrb[148].mxu0 %v9566_v44  ;;  %v9659_v44 = vld [vmem:[%s13471_s0 + $0xb6c] ss:$28 sps:$4 sm:$0xff]  }
 0x1f2   :  { %4172 = vmatprep.mubr.bf16.mxu0 %v9570_v45  ;;  %v11119_v45 = vpop.f32.mrb[4].mxu1 }
 0x1f3   :  { %v3471_v47 = vpop.f32.mrb[5].mxu1 }
 0x1f9   :  { %4173 = vmatmul.mubr.bf16.gmra.mrb[152].mxu0 %v9572_v48  ;;  %v9756_v48 = vld [vmem:[%s13471_s0 + $0x130] ss:$28 sps:$4 sm:$0xff]  }
 0x1fa   :  { %4180 = vmatprep.mubr.bf16.mxu0 %v9576_v49  ;;  %v11127_v49 = vpop.f32.mrb[6].mxu1  ;;  %8385 = vmatmul.mubr.bf16.gmra.mrb[196].mxu1 %v9756_v48 }
 0x1fb   :  { %v3474_v50 = vpop.f32.mrb[7].mxu1  ;;  %8388 = vmatprep.mubr.bf16.mxu1 %v9761_v4 }
 0x201   :  { %4181 = vmatmul.mubr.bf16.gmra.mrb[156].mxu0 %v9578_v52  ;;  %v11132_v52 = vpop.f32.mrb[8].mxu1 }
 0x202   :  { %4188 = vmatprep.mubr.bf16.mxu0 %v9582_v53  ;;  %v9666_v53 = vld [vmem:[%s13471_s0 + $0xba4] ss:$28 sps:$4 sm:$0xff]   ;;  %v3479_v54 = vpop.f32.mrb[9].mxu1 }
 0x203   :  { %v11137_v55 = vpop.f32.mrb[10].mxu1 }
 0x209   :  { %4189 = vmatmul.mubr.bf16.gmra.mrb[160].mxu0 %v9584_v56  ;;  %v3482_v56 = vpop.f32.mrb[11].mxu1 }
 0x20a   :  { %4196 = vmatprep.mubr.bf16.mxu0 %v9589_v57  ;;  %v11139_v57 = vpop.f32.mrb[12].mxu1  ;;  %v9780_v56 = vld [vmem:[%s13471_s0 + $0x280] ss:$28 sps:$4 sm:$0xff]  }
 0x20b   :  { %v3487_v58 = vpop.f32.mrb[13].mxu1 }
 0x20c   :  { %v11141_v59 = vpop.f32.mrb[14].mxu1 }
 0x20d   :  { %v3490_v60 = vpop.f32.mrb[15].mxu1 }
 0x211   :  { %4197 = vmatmul.mubr.bf16.gmra.mrb[164].mxu0 %v9591_v61  ;;  %v9669_v61 = vld [vmem:[%s13471_s0 + $0xba0] ss:$28 sps:$4 sm:$0xff]  }
 0x212   :  { %4204 = vmatprep.mubr.bf16.mxu0 %v9596_v62  ;;  %v11146_v62 = vpop.f32.mrb[16].mxu1 }
 0x213   :  { %v3495_v1 = vpop.f32.mrb[17].mxu1 }
 0x214   :  { %v9705_v1 = vld [vmem:[%s13471_s0 + $0xcf4] ss:$28 sps:$4 sm:$0xff]  }
 0x219   :  { %4205 = vmatmul.mubr.bf16.gmra.mrb[168].mxu0 %v9598_v0  ;;  %v11151_v0 = vpop.f32.mrb[18].mxu1 }
 0x21a   :  { %4212 = vmatprep.mubr.bf16.mxu0 %v9602_v2  ;;  %13535 = vst [vmem:[#allocation2_spill] sm:$0xff] %v11151_v0  ;;  %v3498_v2 = vpop.f32.mrb[19].mxu1 }
 0x21b   :  { %v11153_v3 = vpop.f32.mrb[20].mxu1 }
 0x21c   :  { %13536 = vst [vmem:[#allocation3_spill] sm:$0xff] %v11153_v3  ;;  %v3503_v5 = vpop.f32.mrb[21].mxu1 }
 0x221   :  { %4213 = vmatmul.mubr.bf16.gmra.mrb[172].mxu0 %v9604_v6  ;;  %v9764_v6 = vld [vmem:[%s13471_s0 + $0x1a0] ss:$28 sps:$4 sm:$0xff]  }
 0x222   :  { %4220 = vmatprep.mubr.bf16.mxu0 %v9608_v7  ;;  %v11161_v7 = vpop.f32.mrb[22].mxu1  ;;  %8389 = vmatmul.mubr.bf16.gmra.mrb[200].mxu1 %v9764_v6 }
 0x223   :  { %13537 = vst [vmem:[#allocation4_spill] sm:$0xff] %v11161_v7  ;;  %v3506_v8 = vpop.f32.mrb[23].mxu1 }
 0x229   :  { %4221 = vmatmul.mubr.bf16.gmra.mrb[176].mxu0 %v9610_v10  ;;  %v11166_v10 = vpop.f32.mrb[24].mxu1 }
 0x22a   :  { %4228 = vmatprep.mubr.bf16.mxu0 %v9615_v11  ;;  %13538 = vst [vmem:[#allocation5_spill] sm:$0xff] %v11166_v10  ;;  %v9679_v11 = vld [vmem:[%s13471_s0 + $0xc14] ss:$28 sps:$4 sm:$0xff]   ;;  %v3511_v12 = vpop.f32.mrb[25].mxu1 }
 0x22b   :  { %v11171_v13 = vpop.f32.mrb[26].mxu1  ;;  %v9707_v12 = vld [vmem:[%s13471_s0 + $0xcf0] ss:$28 sps:$4 sm:$0xff]  }
 0x22c   :  { %13539 = vst [vmem:[#allocation6_spill] sm:$0xff] %v11171_v13  ;;  %v3514_v14 = vpop.f32.mrb[27].mxu1  ;;  %v9925_v13 = vld [vmem:[%s13471_s0 + $0xa28] ss:$28 sps:$4 sm:$0xff]   ;;  %v9865_v10 = vld [vmem:[%s13471_s0 + $0x714] ss:$28 sps:$4 sm:$0xff]  }
 0x231   :  { %4229 = vmatmul.mubr.bf16.gmra.mrb[180].mxu0 %v9617_v15  ;;  %v11173_v15 = vpop.f32.mrb[28].mxu1 }
 0x232   :  { %4236 = vmatprep.mubr.bf16.mxu0 %v9621_v16  ;;  %13540 = vst [vmem:[#allocation7_spill] sm:$0xff] %v11173_v15  ;;  %v3519_v16 = vpop.f32.mrb[29].mxu1 }
 0x233   :  { %v11175_v17 = vpop.f32.mrb[30].mxu1  ;;  %v9711_v16 = vld [vmem:[%s13471_s0 + $0xd2c] ss:$28 sps:$4 sm:$0xff]  }
 0x234   :  { %13541 = vst [vmem:[#allocation8_spill] sm:$0xff] %v11175_v17  ;;  %v3522_v18 = vpop.f32.mrb[31].mxu1 }
 0x239   :  { %4237 = vmatmul.mubr.bf16.gmra.mrb[184].mxu0 %v9623_v20  ;;  %v11180_v20 = vpop.f32.mrb[32].mxu1 }
 0x23a   :  { %4244 = vmatprep.mubr.bf16.mxu0 %v9627_v21  ;;  %13542 = vst [vmem:[#allocation9_spill] sm:$0xff] %v11180_v20  ;;  %v9685_v21 = vld [vmem:[%s13471_s0 + $0xc4c] ss:$28 sps:$4 sm:$0xff]   ;;  %v3527_v22 = vpop.f32.mrb[33].mxu1 }
 0x23b   :  { %v11185_v23 = vpop.f32.mrb[34].mxu1 }
 0x23c   :  { %13543 = vst [vmem:[#allocation10_spill] sm:$0xff] %v11185_v23  ;;  %v3530_v24 = vpop.f32.mrb[35].mxu1  ;;  %v9854_v23 = vld [vmem:[%s13471_s0 + $0x66c] ss:$28 sps:$4 sm:$0xff]  }
 0x23d   :  { %v11187_v25 = vpop.f32.mrb[36].mxu1  ;;  %v9785_v24 = vld [vmem:[%s13471_s0 + $0x2b8] ss:$28 sps:$4 sm:$0xff]  }
 0x23e   :  { %13544 = vst [vmem:[#allocation11_spill] sm:$0xff] %v11187_v25 }
 0x241   :  { %4245 = vmatmul.mubr.bf16.gmra.mrb[188].mxu0 %v9629_v26  ;;  %v9769_v26 = vld [vmem:[%s13471_s0 + $0x1d8] ss:$28 sps:$4 sm:$0xff]  }
 0x242   :  { %4252 = vmatprep.mubr.bf16.mxu0 %v9634_v27  ;;  %v3535_v27 = vpop.f32.mrb[37].mxu1  ;;  %8392 = vmatprep.mubr.bf16.mxu1 %v9769_v26 }
 0x243   :  { %v11195_v29 = vpop.f32.mrb[38].mxu1  ;;  %8393 = vmatmul.mubr.bf16.gmra.mrb[204].mxu1 %v9772_v28  ;;  %v9788_v27 = vld [vmem:[%s13471_s0 + $0x2f0] ss:$28 sps:$4 sm:$0xff]  }
 0x244   :  { %13545 = vst [vmem:[#allocation12_spill] sm:$0xff] %v11195_v29  ;;  %v3538_v30 = vpop.f32.mrb[39].mxu1  ;;  %v9851_v29 = vld [vmem:[%s13471_s0 + $0x630] ss:$28 sps:$4 sm:$0xff]  }
 0x249   :  { %4253 = vmatmul.mubr.bf16.gmra.mrb[192].mxu0 %v9636_v31  ;;  %v9687_v31 = vld [vmem:[%s13471_s0 + $0xc48] ss:$28 sps:$4 sm:$0xff]  }
 0x24a   :  { %4260 = vmatprep.mubr.bf16.mxu0 %v9641_v32  ;;  %v11200_v32 = vpop.f32.mrb[40].mxu1 }
 0x24b   :  { %13546 = vst [vmem:[#allocation13_spill] sm:$0xff] %v11200_v32 }
 0x251   :  { %4261 = vmatmul.mubr.bf16.gmra.mrb[196].mxu0 %v9643_v33  ;;  %v9692_v33 = vld [vmem:[%s13471_s0 + $0xc84] ss:$28 sps:$4 sm:$0xff]  }
 0x252   :  { %4268 = vmatprep.mubr.bf16.mxu0 %v9647_v34  ;;  %v3543_v34 = vpop.f32.mrb[41].mxu1 }
 0x253   :  { %v11205_v35 = vpop.f32.mrb[42].mxu1  ;;  %v9718_v34 = vld [vmem:[%s13471_s0 + $0xd64] ss:$28 sps:$4 sm:$0xff]  }
 0x254   :  { %13547 = vst [vmem:[#allocation14_spill] sm:$0xff] %v11205_v35  ;;  %v3546_v36 = vpop.f32.mrb[43].mxu1 }
 0x259   :  { %4269 = vmatmul.mubr.bf16.gmra.mrb[200].mxu0 %v9649_v37  ;;  %v11207_v37 = vpop.f32.mrb[44].mxu1 }
 0x25a   :  { %4276 = vmatprep.mubr.bf16.mxu0 %v9653_v38  ;;  %13548 = vst [vmem:[#allocation15_spill] sm:$0xff] %v11207_v37  ;;  %v3551_v38 = vpop.f32.mrb[45].mxu1  ;;  %v9848_v37 = vld [vmem:[%s13471_s0 + $0x5f8] ss:$28 sps:$4 sm:$0xff]  }
 0x25b   :  { %v11209_v40 = vpop.f32.mrb[46].mxu1 }
 0x25c   :  { %13549 = vst [vmem:[#allocation16_spill] sm:$0xff] %v11209_v40  ;;  %v3554_v42 = vpop.f32.mrb[47].mxu1 }
 0x261   :  { %4277 = vmatmul.mubr.bf16.gmra.mrb[204].mxu0 %v9655_v43  ;;  %v9694_v43 = vld [vmem:[%s13471_s0 + $0xc80] ss:$28 sps:$4 sm:$0xff]  }
 0x262   :  { %4284 = vmatprep.mubr.bf16.mxu0 %v9659_v44  ;;  %v11214_v44 = vpop.f32.mrb[48].mxu1 }
 0x263   :  { %13550 = vst [vmem:[#allocation17_spill] sm:$0xff] %v11214_v44  ;;  %v3559_v47 = vpop.f32.mrb[49].mxu1 }
 0x264   :  { %v11219_v48 = vpop.f32.mrb[50].mxu1 }
 0x265   :  { %13551 = vst [vmem:[#allocation18_spill] sm:$0xff] %v11219_v48  ;;  %v3562_v50 = vpop.f32.mrb[51].mxu1 }
 0x269   :  { %4285 = vmatmul.mubr.bf16.gmra.mrb[208].mxu0 %v9661_v51  ;;  %v11221_v51 = vpop.f32.mrb[52].mxu1 }
 0x26a   :  { %4292 = vmatprep.mubr.bf16.mxu0 %v9666_v53  ;;  %13552 = vst [vmem:[#allocation19_spill] sm:$0xff] %v11221_v51  ;;  %v9777_v53 = vld [vmem:[%s13471_s0 + $0x248] ss:$28 sps:$4 sm:$0xff]   ;;  %v3567_v54 = vpop.f32.mrb[53].mxu1 }
 0x26b   :  { %v11229_v58 = vpop.f32.mrb[54].mxu1  ;;  %8396 = vmatprep.mubr.bf16.mxu1 %v9777_v53  ;;  %v9720_v53 = vld [vmem:[%s13471_s0 + $0xd60] ss:$28 sps:$4 sm:$0xff]  }
 0x26c   :  { %13553 = vst [vmem:[#allocation20_spill] sm:$0xff] %v11229_v58  ;;  %v3570_v60 = vpop.f32.mrb[55].mxu1  ;;  %8397 = vmatmul.mubr.bf16.gmra.mrb[208].mxu1 %v9780_v56  ;;  %v9724_v56 = vld [vmem:[%s13471_s0 + $0xd9c] ss:$28 sps:$4 sm:$0xff]   ;;  %v9841_v58 = vld [vmem:[%s13471_s0 + $0x5c4] ss:$28 sps:$4 sm:$0xff]  }
 0x26d   :  { %8400 = vmatprep.mubr.bf16.mxu1 %v9785_v24  ;;  %v9732_v24 = vld [vmem:[%s13471_s0 + $0xdd4] ss:$28 sps:$4 sm:$0xff]  }
 0x271   :  { %4293 = vmatmul.mubr.bf16.gmra.mrb[212].mxu0 %v9669_v61  ;;  %v9700_v61 = vld [vmem:[%s13471_s0 + $0xcb8] ss:$28 sps:$4 sm:$0xff]  }
 0x272   :  { %4300 = vmatprep.mubr.bf16.mxu0 %v9673_v63  ;;  %v11234_v63 = vpop.f32.mrb[56].mxu1 }
 0x273   :  { %13554 = vst [vmem:[#allocation21_spill] sm:$0xff] %v11234_v63  ;;  %v3575_v2 = vpop.f32.mrb[57].mxu1 }
 0x274   :  { %v11239_v4 = vpop.f32.mrb[58].mxu1  ;;  %8401 = vmatmul.mubr.bf16.gmra.mrb[212].mxu1 %v9788_v27 }
 0x275   :  { %13555 = vst [vmem:[#allocation22_spill] sm:$0xff] %v11239_v4  ;;  %v3578_v5 = vpop.f32.mrb[59].mxu1  ;;  %v9840_v4 = vld [vmem:[%s13471_s0 + $0x588] ss:$28 sps:$4 sm:$0xff]  }
 0x276   :  { %v11241_v6 = vpop.f32.mrb[60].mxu1  ;;  %v9793_v5 = vld [vmem:[%s13471_s0 + $0x328] ss:$28 sps:$4 sm:$0xff]  }
 0x277   :  { %13556 = vst [vmem:[#allocation23_spill] sm:$0xff] %v11241_v6  ;;  %v3583_v8 = vpop.f32.mrb[61].mxu1  ;;  %8404 = vmatprep.mubr.bf16.mxu1 %v9793_v5 }
 0x279   :  { %4301 = vmatmul.mubr.bf16.gmra.mrb[216].mxu0 %v9675_v9  ;;  %v11243_v9 = vpop.f32.mrb[62].mxu1 }
 0x27a   :  { %4308 = vmatprep.mubr.bf16.mxu0 %v9679_v11  ;;  %13557 = vst [vmem:[#allocation24_spill] sm:$0xff] %v11243_v9  ;;  %v3586_v11 = vpop.f32.mrb[63].mxu1  ;;  %v9833_v9 = vld [vmem:[%s13471_s0 + $0x554] ss:$28 sps:$4 sm:$0xff]  }
 0x27b   :  { %v11248_v14 = vpop.f32.mrb[64].mxu1  ;;  %v9796_v11 = vld [vmem:[%s13471_s0 + $0x360] ss:$28 sps:$4 sm:$0xff]  }
 0x27c   :  { %13558 = vst [vmem:[#allocation25_spill] sm:$0xff] %v11248_v14  ;;  %v3591_v18 = vpop.f32.mrb[65].mxu1  ;;  %8405 = vmatmul.mubr.bf16.gmra.mrb[216].mxu1 %v9796_v11 }
 0x27d   :  { %v9727_v18 = vld [vmem:[%s13471_s0 + $0xd98] ss:$28 sps:$4 sm:$0xff]  }
 0x281   :  { %4309 = vmatmul.mubr.bf16.gmra.mrb[220].mxu0 %v9681_v19  ;;  %v11253_v19 = vpop.f32.mrb[66].mxu1 }
 0x282   :  { %4316 = vmatprep.mubr.bf16.mxu0 %v9685_v21  ;;  %13559 = vst [vmem:[#allocation26_spill] sm:$0xff] %v11253_v19  ;;  %v3594_v21 = vpop.f32.mrb[67].mxu1  ;;  %v9832_v19 = vld [vmem:[%s13471_s0 + $0x518] ss:$28 sps:$4 sm:$0xff]  }
 0x283   :  { %v11255_v22 = vpop.f32.mrb[68].mxu1 }
 0x284   :  { %13560 = vst [vmem:[#allocation27_spill] sm:$0xff] %v11255_v22  ;;  %v3599_v26 = vpop.f32.mrb[69].mxu1 }
 0x285   :  { %v11263_v28 = vpop.f32.mrb[70].mxu1 }
 0x286   :  { %13561 = vst [vmem:[#allocation28_spill] sm:$0xff] %v11263_v28  ;;  %v3602_v30 = vpop.f32.mrb[71].mxu1  ;;  %v9825_v28 = vld [vmem:[%s13471_s0 + $0x4e4] ss:$28 sps:$4 sm:$0xff]  }
 0x289   :  { %4317 = vmatmul.mubr.bf16.gmra.mrb[224].mxu0 %v9687_v31  ;;  %v9713_v31 = vld [vmem:[%s13471_s0 + $0xd28] ss:$28 sps:$4 sm:$0xff]  }
 0x28a   :  { %4324 = vmatprep.mubr.bf16.mxu0 %v9692_v33  ;;  %v11268_v33 = vpop.f32.mrb[72].mxu1 }
 0x28b   :  { %13562 = vst [vmem:[#allocation29_spill] sm:$0xff] %v11268_v33  ;;  %v3607_v36 = vpop.f32.mrb[73].mxu1 }
 0x28c   :  { %v11273_v38 = vpop.f32.mrb[74].mxu1 }
 0x28d   :  { %13563 = vst [vmem:[#allocation30_spill] sm:$0xff] %v11273_v38  ;;  %v3610_v42 = vpop.f32.mrb[75].mxu1  ;;  %v9824_v38 = vld [vmem:[%s13471_s0 + $0x4a8] ss:$28 sps:$4 sm:$0xff]  }
 0x291   :  { %4325 = vmatmul.mubr.bf16.gmra.mrb[228].mxu0 %v9694_v43  ;;  %v11275_v43 = vpop.f32.mrb[76].mxu1 }
 0x292   :  { %4332 = vmatprep.mubr.bf16.mxu0 %v9698_v46  ;;  %13564 = vst [vmem:[#allocation31_spill] sm:$0xff] %v11275_v43  ;;  %v3615_v46 = vpop.f32.mrb[77].mxu1 }
 0x293   :  { %v11277_v47 = vpop.f32.mrb[78].mxu1  ;;  %v9735_v46 = vld [vmem:[%s13471_s0 + $0xdd0] ss:$28 sps:$4 sm:$0xff]  }
 0x294   :  { %13565 = vst [vmem:[#allocation32_spill] sm:$0xff] %v11277_v47  ;;  %v3618_v50 = vpop.f32.mrb[79].mxu1  ;;  %v9817_v47 = vld [vmem:[%s13471_s0 + $0x474] ss:$28 sps:$4 sm:$0xff]  }
 0x295   :  { %v11282_v54 = vpop.f32.mrb[80].mxu1 }
 0x296   :  { %13566 = vst [vmem:[#allocation33_spill] sm:$0xff] %v11282_v54  ;;  %v3623_v60 = vpop.f32.mrb[81].mxu1 }
 0x299   :  { %4333 = vmatmul.mubr.bf16.gmra.mrb[232].mxu0 %v9700_v61  ;;  %v11287_v61 = vpop.f32.mrb[82].mxu1 }
 0x29a   :  { %4340 = vmatprep.mubr.bf16.mxu0 %v9705_v1  ;;  %13567 = vst [vmem:[#allocation34_spill] sm:$0xff] %v11287_v61  ;;  %v3626_v1 = vpop.f32.mrb[83].mxu1  ;;  %v9816_v61 = vld [vmem:[%s13471_s0 + $0x438] ss:$28 sps:$4 sm:$0xff]  }
 0x29b   :  { %v11289_v2 = vpop.f32.mrb[84].mxu1 }
 0x29c   :  { %13568 = vst [vmem:[#allocation35_spill] sm:$0xff] %v11289_v2  ;;  %v3631_v8 = vpop.f32.mrb[85].mxu1 }
 0x29d   :  { %v9801_v8 = vld [vmem:[%s13471_s0 + $0x398] ss:$28 sps:$4 sm:$0xff]  }
 0x29e   :  { %8408 = vmatprep.mubr.bf16.mxu1 %v9801_v8 }
 0x2a1   :  { %4341 = vmatmul.mubr.bf16.gmra.mrb[236].mxu0 %v9707_v12  ;;  %v11297_v12 = vpop.f32.mrb[86].mxu1 }
 0x2a2   :  { %4348 = vmatprep.mubr.bf16.mxu0 %v9711_v16  ;;  %13569 = vst [vmem:[#allocation36_spill] sm:$0xff] %v11297_v12  ;;  %v3634_v16 = vpop.f32.mrb[87].mxu1  ;;  %v9809_v12 = vld [vmem:[%s13471_s0 + $0x404] ss:$28 sps:$4 sm:$0xff]  }
 0x2a3   :  { %v11302_v21 = vpop.f32.mrb[88].mxu1  ;;  %v9804_v16 = vld [vmem:[%s13471_s0 + $0x3d0] ss:$28 sps:$4 sm:$0xff]  }
 0x2a4   :  { %13570 = vst [vmem:[#allocation37_spill] sm:$0xff] %v11302_v21  ;;  %v3639_v26 = vpop.f32.mrb[89].mxu1  ;;  %8409 = vmatmul.mubr.bf16.gmra.mrb[220].mxu1 %v9804_v16  ;;  %v9744_v16 = vld [vmem:[%s13471_s0 + $0x48] ss:$28 sps:$4 sm:$0xff]  }
 0x2a5   :  { %v11307_v27 = vpop.f32.mrb[90].mxu1  ;;  %v9738_v26 = vld [vmem:[%s13471_s0 + $0x10] ss:$28 sps:$4 sm:$0xff]  }
 0x2a6   :  { %13571 = vst [vmem:[#allocation38_spill] sm:$0xff] %v11307_v27  ;;  %v3642_v30 = vpop.f32.mrb[91].mxu1  ;;  %v9808_v27 = vld [vmem:[%s13471_s0 + $0x3c8] ss:$28 sps:$4 sm:$0xff]  }
 0x2a9   :  { %4349 = vmatmul.mubr.bf16.gmra.mrb[240].mxu0 %v9713_v31  ;;  %v11309_v31 = vpop.f32.mrb[92].mxu1 }
 0x2aa   :  { %4356 = vmatprep.mubr.bf16.mxu0 %v9718_v34  ;;  %13572 = vst [vmem:[#allocation39_spill] sm:$0xff] %v11309_v31  ;;  %v3647_v34 = vpop.f32.mrb[93].mxu1 }
 0x2ab   :  { %v11311_v36 = vpop.f32.mrb[94].mxu1  ;;  %v9742_v34 = vld [vmem:[%s13471_s0 + $0x4c] ss:$28 sps:$4 sm:$0xff]  }
 0x2ac   :  { %13573 = vst [vmem:[#allocation40_spill] sm:$0xff] %v11311_v36  ;;  %v3650_v42 = vpop.f32.mrb[95].mxu1  ;;  %v9802_v36 = vld [vmem:[%s13471_s0 + $0x394] ss:$28 sps:$4 sm:$0xff]  }
 0x2ad   :  { %v11316_v50 = vpop.f32.mrb[96].mxu1 }
 0x2ae   :  { %13574 = vst [vmem:[#allocation41_spill] sm:$0xff] %v11316_v50 }
 0x2b1   :  { %4357 = vmatmul.mubr.bf16.gmra.mrb[244].mxu0 %v9720_v53  ;;  %v9740_v53 = vld [vmem:[%s13471_s0 + $0x14] ss:$28 sps:$4 sm:$0xff]  }
 0x2b2   :  { %4364 = vmatprep.mubr.bf16.mxu0 %v9724_v56  ;;  %v3655_v56 = vpop.f32.mrb[97].mxu1 }
 0x2b3   :  { %v11321_v60 = vpop.f32.mrb[98].mxu1 }
 0x2b4   :  { %13575 = vst [vmem:[#allocation42_spill] sm:$0xff] %v11321_v60  ;;  %v3658_v1 = vpop.f32.mrb[99].mxu1  ;;  %v9800_v60 = vld [vmem:[%s13471_s0 + $0x358] ss:$28 sps:$4 sm:$0xff]  }
 0x2b5   :  { %v11323_v5 = vpop.f32.mrb[100].mxu1 }
 0x2b6   :  { %13576 = vst [vmem:[#allocation43_spill] sm:$0xff] %v11323_v5  ;;  %v3663_v11 = vpop.f32.mrb[101].mxu1 }
 0x2b9   :  { %4365 = vmatmul.mubr.bf16.gmra.mrb[248].mxu0 %v9727_v18  ;;  %v11331_v18 = vpop.f32.mrb[102].mxu1 }
 0x2ba   :  { %4372 = vmatprep.mubr.bf16.mxu0 %v9732_v24  ;;  %13577 = vst [vmem:[#allocation44_spill] sm:$0xff] %v11331_v18  ;;  %v3666_v24 = vpop.f32.mrb[103].mxu1  ;;  %v9794_v18 = vld [vmem:[%s13471_s0 + $0x324] ss:$28 sps:$4 sm:$0xff]  }
 0x2bb   :  { %v11336_v30 = vpop.f32.mrb[104].mxu1 }
 0x2bc   :  { %13578 = vst [vmem:[#allocation45_spill] sm:$0xff] %v11336_v30  ;;  %v3671_v42 = vpop.f32.mrb[105].mxu1 }
 0x2bd   :  { %v9746_v42 = vld [vmem:[%s13471_s0 + $0x84] ss:$28 sps:$4 sm:$0xff]  }
 0x2c1   :  { %4373 = vmatmul.mubr.bf16.gmra.mrb[252].mxu0 %v9735_v46  ;;  %v11341_v46 = vpop.f32.mrb[106].mxu1 }
 0x2c2   :  { %4413 = vmatprep.mubr.bf16.mxu0 %v9740_v53  ;;  %13579 = vst [vmem:[#allocation46_spill] sm:$0xff] %v11341_v46  ;;  %v3674_v53 = vpop.f32.mrb[107].mxu1 }
 0x2c3   :  { %v11343_v56 = vpop.f32.mrb[108].mxu1 }
 0x2c4   :  { %13580 = vst [vmem:[#allocation47_spill] sm:$0xff] %v11343_v56  ;;  %v3679_v1 = vpop.f32.mrb[109].mxu1 }
 0x2c5   :  { %v11345_v8 = vpop.f32.mrb[110].mxu1 }
 0x2c6   :  { %13581 = vst [vmem:[#allocation48_spill] sm:$0xff] %v11345_v8  ;;  %v3682_v11 = vpop.f32.mrb[111].mxu1 }
 0x2c7   :  { %v11350_v24 = vpop.f32.mrb[112].mxu1 }
 0x2c8   :  { %13582 = vst [vmem:[#allocation49_spill] sm:$0xff] %v11350_v24  ;;  %v3687_v46 = vpop.f32.mrb[113].mxu1  ;;  %v9749_v24 = vld [vmem:[%s13471_s0 + $0x80] ss:$28 sps:$4 sm:$0xff]  }
 0x2c9   :  { %4414 = vmatmul.mubr.bf16.vlgmr.msra.gmra.mrb[0].mxu0 %v9738_v26  ;;  %v11355_v53 = vpop.f32.mrb[114].mxu1  ;;  %v9750_v46 = vld [vmem:[%s13471_s0 + $0xbc] ss:$28 sps:$4 sm:$0xff]  }
 0x2ca   :  { %4421 = vmatprep.mubr.bf16.mxu0 %v9742_v34  ;;  %13583 = vst [vmem:[#allocation50_spill] sm:$0xff] %v11355_v53  ;;  %v3690_v26 = vpop.f32.mrb[115].mxu1 }
 0x2cb   :  { %v11357_v34 = vpop.f32.mrb[116].mxu1 }
 0x2cc   :  { %13584 = vst [vmem:[#allocation51_spill] sm:$0xff] %v11357_v34  ;;  %v3695_v1 = vpop.f32.mrb[117].mxu1 }
 0x2cd   :  { %v11359_v11 = vpop.f32.mrb[118].mxu1 }
 0x2ce   :  { %13585 = vst [vmem:[#allocation52_spill] sm:$0xff] %v11359_v11  ;;  %v3698_v8 = vpop.f32.mrb[119].mxu1 }
 0x2cf   :  { %v11364_v56 = vpop.f32.mrb[120].mxu1  ;;  %v9813_v8 = vld [vmem:[%s13471_s0 + $0x440] ss:$28 sps:$4 sm:$0xff]  }
 0x2d0   :  { %13586 = vst [vmem:[#allocation53_spill] sm:$0xff] %v11364_v56  ;;  %v3703_v53 = vpop.f32.mrb[121].mxu1 }
 0x2d1   :  { %4422 = vmatmul.mubr.bf16.gmra.mrb[4].mxu0 %v9744_v16  ;;  %v11369_v26 = vpop.f32.mrb[122].mxu1  ;;  %v9812_v16 = vld [vmem:[%s13471_s0 + $0x408] ss:$28 sps:$4 sm:$0xff]  }
 0x2d2   :  { %4429 = vmatprep.mubr.bf16.mxu0 %v9746_v42  ;;  %13587 = vst [vmem:[#allocation54_spill] sm:$0xff] %v11369_v26  ;;  %v3706_v42 = vpop.f32.mrb[123].mxu1  ;;  %8412 = vmatprep.mubr.bf16.mxu1 %v9812_v16  ;;  %v9752_v26 = vld [vmem:[%s13471_s0 + $0xb8] ss:$28 sps:$4 sm:$0xff]  }
 0x2d3   :  { %v11377_v1 = vpop.f32.mrb[124].mxu1  ;;  %8413 = vmatmul.mubr.bf16.gmra.mrb[224].mxu1 %v9813_v8  ;;  %v9754_v42 = vld [vmem:[%s13471_s0 + $0xf4] ss:$28 sps:$4 sm:$0xff]  }
 0x2d4   :  { %13588 = vst [vmem:[#allocation55_spill] sm:$0xff] %v11377_v1  ;;  %v3711_v56 = vpop.f32.mrb[125].mxu1 }
 0x2d5   :  { %v11379_v11 = vpop.f32.mrb[126].mxu1 }
 0x2d6   :  { %13589 = vst [vmem:[#allocation56_spill] sm:$0xff] %v11379_v11  ;;  %v3714_v53 = vpop.f32.mrb[127].mxu1 }
 0x2d7   :  { %v11384_v34 = vpop.f32.mrb[128].mxu1 }
 0x2d8   :  { %13590 = vst [vmem:[#allocation57_spill] sm:$0xff] %v11384_v34  ;;  %v9757_v34 = vld [vmem:[%s13471_s0 + $0xf0] ss:$28 sps:$4 sm:$0xff]  }
 0x2d9   :  { %4430 = vmatmul.mubr.bf16.gmra.mrb[8].mxu0 %v9749_v24  ;;  %v3719_v24 = vpop.f32.mrb[129].mxu1 }
 0x2da   :  { %4437 = vmatprep.mubr.bf16.mxu0 %v9750_v46  ;;  %v11389_v16 = vpop.f32.mrb[130].mxu1  ;;  %v9758_v24 = vld [vmem:[%s13471_s0 + $0x12c] ss:$28 sps:$4 sm:$0xff]  }
 0x2db   :  { %13591 = vst [vmem:[#allocation58_spill] sm:$0xff] %v11389_v16  ;;  %v3722_v1 = vpop.f32.mrb[131].mxu1 }
 0x2dc   :  { %v11391_v46 = vpop.f32.mrb[132].mxu1 }
 0x2dd   :  { %13592 = vst [vmem:[#allocation59_spill] sm:$0xff] %v11391_v46  ;;  %v3727_v56 = vpop.f32.mrb[133].mxu1 }
 0x2de   :  { %v11393_v8 = vpop.f32.mrb[134].mxu1  ;;  %v9821_v56 = vld [vmem:[%s13471_s0 + $0x4b0] ss:$28 sps:$4 sm:$0xff]  }
 0x2df   :  { %13593 = vst [vmem:[#allocation60_spill] sm:$0xff] %v11393_v8  ;;  %v3730_v53 = vpop.f32.mrb[135].mxu1 }
 0x2e0   :  { %v11398_v11 = vpop.f32.mrb[136].mxu1 }
 0x2e1   :  { %4438 = vmatmul.mubr.bf16.gmra.mrb[12].mxu0 %v9752_v26  ;;  %13594 = vst [vmem:[#allocation61_spill] sm:$0xff] %v11398_v11  ;;  %v3735_v16 = vpop.f32.mrb[137].mxu1  ;;  %v9820_v26 = vld [vmem:[%s13471_s0 + $0x478] ss:$28 sps:$4 sm:$0xff]  }
 0x2e2   :  { %4445 = vmatprep.mubr.bf16.mxu0 %v9754_v42  ;;  %v11403_v1 = vpop.f32.mrb[138].mxu1  ;;  %8416 = vmatprep.mubr.bf16.mxu1 %v9820_v26 }
 0x2e3   :  { %13595 = vst [vmem:[#allocation62_spill] sm:$0xff] %v11403_v1  ;;  %v3738_v42 = vpop.f32.mrb[139].mxu1  ;;  %8417 = vmatmul.mubr.bf16.gmra.mrb[228].mxu1 %v9821_v56  ;;  %v9760_v1 = vld [vmem:[%s13471_s0 + $0x128] ss:$28 sps:$4 sm:$0xff]  }
 0x2e4   :  { %v11411_v53 = vpop.f32.mrb[140].mxu1  ;;  %v9762_v42 = vld [vmem:[%s13471_s0 + $0x164] ss:$28 sps:$4 sm:$0xff]  }
 0x2e5   :  { %13596 = vst [vmem:[#allocation63_spill] sm:$0xff] %v11411_v53  ;;  %v3743_v11 = vpop.f32.mrb[141].mxu1 }
 0x2e6   :  { %v11413_v8 = vpop.f32.mrb[142].mxu1 }
 0x2e7   :  { %13597 = vst [vmem:[#allocation64_spill] sm:$0xff] %v11413_v8  ;;  %v3746_v16 = vpop.f32.mrb[143].mxu1 }
 0x2e8   :  { %v11418_v46 = vpop.f32.mrb[144].mxu1 }
 0x2e9   :  { %4446 = vmatmul.mubr.bf16.gmra.mrb[16].mxu0 %v9757_v34  ;;  %13598 = vst [vmem:[#allocation65_spill] sm:$0xff] %v11418_v46  ;;  %v3751_v34 = vpop.f32.mrb[145].mxu1  ;;  %v9765_v46 = vld [vmem:[%s13471_s0 + $0x160] ss:$28 sps:$4 sm:$0xff]  }
 0x2ea   :  { %4453 = vmatprep.mubr.bf16.mxu0 %v9758_v24  ;;  %v11423_v26 = vpop.f32.mrb[146].mxu1  ;;  %v9766_v34 = vld [vmem:[%s13471_s0 + $0x19c] ss:$28 sps:$4 sm:$0xff]  }
 0x2eb   :  { %13599 = vst [vmem:[#allocation66_spill] sm:$0xff] %v11423_v26  ;;  %v3754_v53 = vpop.f32.mrb[147].mxu1 }
 0x2ec   :  { %v11425_v24 = vpop.f32.mrb[148].mxu1 }
 0x2ed   :  { %13600 = vst [vmem:[#allocation67_spill] sm:$0xff] %v11425_v24  ;;  %v3759_v11 = vpop.f32.mrb[149].mxu1 }
 0x2ee   :  { %v11427_v56 = vpop.f32.mrb[150].mxu1  ;;  %v9829_v11 = vld [vmem:[%s13471_s0 + $0x520] ss:$28 sps:$4 sm:$0xff]  }
 0x2ef   :  { %13601 = vst [vmem:[#allocation68_spill] sm:$0xff] %v11427_v56  ;;  %v3762_v16 = vpop.f32.mrb[151].mxu1 }
 0x2f0   :  { %v11432_v8 = vpop.f32.mrb[152].mxu1 }
 0x2f1   :  { %4454 = vmatmul.mubr.bf16.gmra.mrb[20].mxu0 %v9760_v1  ;;  %13602 = vst [vmem:[#allocation69_spill] sm:$0xff] %v11432_v8  ;;  %v3767_v26 = vpop.f32.mrb[153].mxu1  ;;  %v9828_v1 = vld [vmem:[%s13471_s0 + $0x4e8] ss:$28 sps:$4 sm:$0xff]  }
 0x2f2   :  { %4461 = vmatprep.mubr.bf16.mxu0 %v9762_v42  ;;  %v11437_v53 = vpop.f32.mrb[154].mxu1  ;;  %8420 = vmatprep.mubr.bf16.mxu1 %v9828_v1 }
 0x2f3   :  { %13603 = vst [vmem:[#allocation70_spill] sm:$0xff] %v11437_v53  ;;  %v3770_v42 = vpop.f32.mrb[155].mxu1  ;;  %8421 = vmatmul.mubr.bf16.gmra.mrb[232].mxu1 %v9829_v11  ;;  %v9768_v53 = vld [vmem:[%s13471_s0 + $0x198] ss:$28 sps:$4 sm:$0xff]  }
 0x2f4   :  { %v11445_v16 = vpop.f32.mrb[156].mxu1  ;;  %v9770_v42 = vld [vmem:[%s13471_s0 + $0x1d4] ss:$28 sps:$4 sm:$0xff]  }
 0x2f5   :  { %13604 = vst [vmem:[#allocation71_spill] sm:$0xff] %v11445_v16  ;;  %v3775_v8 = vpop.f32.mrb[157].mxu1 }
 0x2f6   :  { %v11447_v56 = vpop.f32.mrb[158].mxu1 }
 0x2f7   :  { %13605 = vst [vmem:[#allocation72_spill] sm:$0xff] %v11447_v56  ;;  %v3778_v26 = vpop.f32.mrb[159].mxu1 }
 0x2f8   :  { %v11452_v24 = vpop.f32.mrb[160].mxu1 }
 0x2f9   :  { %4462 = vmatmul.mubr.bf16.gmra.mrb[24].mxu0 %v9765_v46  ;;  %13606 = vst [vmem:[#allocation73_spill] sm:$0xff] %v11452_v24  ;;  %v3783_v46 = vpop.f32.mrb[161].mxu1  ;;  %v9773_v24 = vld [vmem:[%s13471_s0 + $0x1d0] ss:$28 sps:$4 sm:$0xff]  }
 0x2fa   :  { %4469 = vmatprep.mubr.bf16.mxu0 %v9766_v34  ;;  %v11457_v1 = vpop.f32.mrb[162].mxu1  ;;  %v9774_v46 = vld [vmem:[%s13471_s0 + $0x20c] ss:$28 sps:$4 sm:$0xff]  }
 0x2fb   :  { %13607 = vst [vmem:[#allocation74_spill] sm:$0xff] %v11457_v1  ;;  %v3786_v16 = vpop.f32.mrb[163].mxu1 }
 0x2fc   :  { %v11459_v34 = vpop.f32.mrb[164].mxu1 }
 0x2fd   :  { %13608 = vst [vmem:[#allocation75_spill] sm:$0xff] %v11459_v34  ;;  %v3791_v8 = vpop.f32.mrb[165].mxu1 }
 0x2fe   :  { %v11461_v11 = vpop.f32.mrb[166].mxu1  ;;  %v9837_v8 = vld [vmem:[%s13471_s0 + $0x590] ss:$28 sps:$4 sm:$0xff]  }
 0x2ff   :  { %13609 = vst [vmem:[#allocation76_spill] sm:$0xff] %v11461_v11  ;;  %v3794_v26 = vpop.f32.mrb[167].mxu1 }
 0x300   :  { %v11466_v56 = vpop.f32.mrb[168].mxu1 }
 0x301   :  { %4470 = vmatmul.mubr.bf16.gmra.mrb[28].mxu0 %v9768_v53  ;;  %13610 = vst [vmem:[#allocation77_spill] sm:$0xff] %v11466_v56  ;;  %v3799_v1 = vpop.f32.mrb[169].mxu1  ;;  %v9836_v53 = vld [vmem:[%s13471_s0 + $0x558] ss:$28 sps:$4 sm:$0xff]  }
 0x302   :  { %4477 = vmatprep.mubr.bf16.mxu0 %v9770_v42  ;;  %v11471_v16 = vpop.f32.mrb[170].mxu1  ;;  %8424 = vmatprep.mubr.bf16.mxu1 %v9836_v53 }
 0x303   :  { %13611 = vst [vmem:[#allocation78_spill] sm:$0xff] %v11471_v16  ;;  %v3802_v42 = vpop.f32.mrb[171].mxu1  ;;  %8425 = vmatmul.mubr.bf16.gmra.mrb[236].mxu1 %v9837_v8  ;;  %v9776_v16 = vld [vmem:[%s13471_s0 + $0x208] ss:$28 sps:$4 sm:$0xff]  }
 0x304   :  { %v11479_v26 = vpop.f32.mrb[172].mxu1  ;;  %v9778_v42 = vld [vmem:[%s13471_s0 + $0x244] ss:$28 sps:$4 sm:$0xff]  }
 0x305   :  { %13612 = vst [vmem:[#allocation79_spill] sm:$0xff] %v11479_v26  ;;  %v3807_v56 = vpop.f32.mrb[173].mxu1 }
 0x306   :  { %v11481_v11 = vpop.f32.mrb[174].mxu1 }
 0x307   :  { %13613 = vst [vmem:[#allocation80_spill] sm:$0xff] %v11481_v11  ;;  %v3810_v1 = vpop.f32.mrb[175].mxu1 }
 0x308   :  { %v11486_v34 = vpop.f32.mrb[176].mxu1 }
 0x309   :  { %4478 = vmatmul.mubr.bf16.gmra.mrb[32].mxu0 %v9773_v24  ;;  %13614 = vst [vmem:[#allocation81_spill] sm:$0xff] %v11486_v34  ;;  %v3815_v24 = vpop.f32.mrb[177].mxu1  ;;  %v9781_v34 = vld [vmem:[%s13471_s0 + $0x240] ss:$28 sps:$4 sm:$0xff]  }
 0x30a   :  { %4485 = vmatprep.mubr.bf16.mxu0 %v9774_v46  ;;  %v11491_v53 = vpop.f32.mrb[178].mxu1  ;;  %v9782_v24 = vld [vmem:[%s13471_s0 + $0x27c] ss:$28 sps:$4 sm:$0xff]  }
 0x30b   :  { %13615 = vst [vmem:[#allocation82_spill] sm:$0xff] %v11491_v53  ;;  %v3818_v26 = vpop.f32.mrb[179].mxu1 }
 0x30c   :  { %v11493_v46 = vpop.f32.mrb[180].mxu1 }
 0x30d   :  { %13616 = vst [vmem:[#allocation83_spill] sm:$0xff] %v11493_v46  ;;  %v3823_v56 = vpop.f32.mrb[181].mxu1  ;;  %v9792_v46 = vld [vmem:[%s13471_s0 + $0x2e8] ss:$28 sps:$4 sm:$0xff]  }
 0x30e   :  { %v11495_v8 = vpop.f32.mrb[182].mxu1  ;;  %v9845_v56 = vld [vmem:[%s13471_s0 + $0x600] ss:$28 sps:$4 sm:$0xff]  }
 0x30f   :  { %13617 = vst [vmem:[#allocation84_spill] sm:$0xff] %v11495_v8  ;;  %v3826_v1 = vpop.f32.mrb[183].mxu1 }
 0x310   :  { %v11500_v11 = vpop.f32.mrb[184].mxu1 }
 0x311   :  { %4486 = vmatmul.mubr.bf16.gmra.mrb[36].mxu0 %v9776_v16  ;;  %13618 = vst [vmem:[#allocation85_spill] sm:$0xff] %v11500_v11  ;;  %v3831_v53 = vpop.f32.mrb[185].mxu1  ;;  %v9844_v16 = vld [vmem:[%s13471_s0 + $0x5c8] ss:$28 sps:$4 sm:$0xff]  }
 0x312   :  { %4493 = vmatprep.mubr.bf16.mxu0 %v9778_v42  ;;  %v11505_v26 = vpop.f32.mrb[186].mxu1  ;;  %8428 = vmatprep.mubr.bf16.mxu1 %v9844_v16  ;;  %v9784_v53 = vld [vmem:[%s13471_s0 + $0x278] ss:$28 sps:$4 sm:$0xff]  }
 0x313   :  { %13619 = vst [vmem:[#allocation86_spill] sm:$0xff] %v11505_v26  ;;  %v3834_v42 = vpop.f32.mrb[187].mxu1  ;;  %8429 = vmatmul.mubr.bf16.gmra.mrb[240].mxu1 %v9845_v56  ;;  %v9852_v16 = vld [vmem:[%s13471_s0 + $0x638] ss:$28 sps:$4 sm:$0xff]   ;;  %v9853_v56 = vld [vmem:[%s13471_s0 + $0x670] ss:$28 sps:$4 sm:$0xff]  }
 0x314   :  { %v11513_v1 = vpop.f32.mrb[188].mxu1  ;;  %v9786_v42 = vld [vmem:[%s13471_s0 + $0x2b4] ss:$28 sps:$4 sm:$0xff]   ;;  %8432 = vmatprep.mubr.bf16.mxu1 %v9852_v16  ;;  %v9860_v16 = vld [vmem:[%s13471_s0 + $0x6a8] ss:$28 sps:$4 sm:$0xff]  }
 0x315   :  { %v11515_v11 = vpop.f32.mrb[189].mxu1 }
 0x316   :  { %v11520_v26 = vpop.f32.mrb[190].mxu1 }
 0x317   :  { %v11525_v8 = vpop.f32.mrb[191].mxu1 }
 0x319   :  { %4494 = vmatmul.mubr.bf16.gmra.mrb[40].mxu0 %v9781_v34  ;;  %v9789_v34 = vld [vmem:[%s13471_s0 + $0x2b0] ss:$28 sps:$4 sm:$0xff]  }
 0x31a   :  { %4501 = vmatprep.mubr.bf16.mxu0 %v9782_v24  ;;  %v9790_v24 = vld [vmem:[%s13471_s0 + $0x2ec] ss:$28 sps:$4 sm:$0xff]  }
 0x31b   :  { %8433 = vmatmul.mubr.bf16.gmra.mrb[244].mxu1 %v9853_v56  ;;  %v9861_v56 = vld [vmem:[%s13471_s0 + $0x6e0] ss:$28 sps:$4 sm:$0xff]  }
 0x31c   :  { %8436 = vmatprep.mubr.bf16.mxu1 %v9860_v16  ;;  %v9868_v16 = vld [vmem:[%s13471_s0 + $0x718] ss:$28 sps:$4 sm:$0xff]  }
 0x321   :  { %4502 = vmatmul.mubr.bf16.gmra.mrb[44].mxu0 %v9784_v53  ;;  %v11539_v53 = vpop.f32.mrb[192].mxu1 }
 0x322   :  { %4509 = vmatprep.mubr.bf16.mxu0 %v9786_v42  ;;  %v11541_v42 = vpop.f32.mrb[193].mxu1 }
 0x323   :  { %v11546_v30 = vpop.f32.mrb[194].mxu1  ;;  %8437 = vmatmul.mubr.bf16.gmra.mrb[248].mxu1 %v9861_v56  ;;  %v9869_v56 = vld [vmem:[%s13471_s0 + $0x750] ss:$28 sps:$4 sm:$0xff]  }
 0x324   :  { %v11551_v5 = vpop.f32.mrb[195].mxu1  ;;  %8440 = vmatprep.mubr.bf16.mxu1 %v9868_v16  ;;  %v9876_v16 = vld [vmem:[%s13471_s0 + $0x788] ss:$28 sps:$4 sm:$0xff]  }
 0x329   :  { %4510 = vmatmul.mubr.bf16.gmra.mrb[48].mxu0 %v9789_v34  ;;  %v9797_v34 = vld [vmem:[%s13471_s0 + $0x320] ss:$28 sps:$4 sm:$0xff]  }
 0x32a   :  { %4517 = vmatprep.mubr.bf16.mxu0 %v9790_v24  ;;  %v9798_v24 = vld [vmem:[%s13471_s0 + $0x35c] ss:$28 sps:$4 sm:$0xff]  }
 0x32b   :  { %8441 = vmatmul.mubr.bf16.gmra.mrb[252].mxu1 %v9869_v56  ;;  %v9877_v56 = vld [vmem:[%s13471_s0 + $0x7c0] ss:$28 sps:$4 sm:$0xff]  }
 0x32c   :  { %8444 = vmatprep.mubr.bf16.mxu1 %v9876_v16  ;;  %v9884_v16 = vld [vmem:[%s13471_s0 + $0x7f8] ss:$28 sps:$4 sm:$0xff]  }
 0x331   :  { %4518 = vmatmul.mubr.bf16.gmra.mrb[52].mxu0 %v9792_v46  ;;  %v11565_v46 = vpop.f32.mrb[196].mxu1 }
 0x332   :  { %4525 = vmatprep.mubr.bf16.mxu0 %v9794_v18  ;;  %v11567_v18 = vpop.f32.mrb[197].mxu1 }
 0x333   :  { %v11572_v50 = vpop.f32.mrb[198].mxu1  ;;  %8445 = vmatmul.mubr.bf16.gmra.mrb[0].mxu1 %v9877_v56  ;;  %v9885_v56 = vld [vmem:[%s13471_s0 + $0x830] ss:$28 sps:$4 sm:$0xff]  }
 0x334   :  { %v11577_v31 = vpop.f32.mrb[199].mxu1  ;;  %8448 = vmatprep.mubr.bf16.mxu1 %v9884_v16  ;;  %v9892_v16 = vld [vmem:[%s13471_s0 + $0x868] ss:$28 sps:$4 sm:$0xff]  }
 0x339   :  { %4526 = vmatmul.mubr.bf16.gmra.mrb[56].mxu0 %v9797_v34  ;;  %v9805_v34 = vld [vmem:[%s13471_s0 + $0x390] ss:$28 sps:$4 sm:$0xff]  }
 0x33a   :  { %4533 = vmatprep.mubr.bf16.mxu0 %v9798_v24  ;;  %v9806_v24 = vld [vmem:[%s13471_s0 + $0x3cc] ss:$28 sps:$4 sm:$0xff]  }
 0x33b   :  { %8449 = vmatmul.mubr.bf16.gmra.mrb[4].mxu1 %v9885_v56  ;;  %v9893_v56 = vld [vmem:[%s13471_s0 + $0x8a0] ss:$28 sps:$4 sm:$0xff]  }
 0x33c   :  { %8452 = vmatprep.mubr.bf16.mxu1 %v9892_v16  ;;  %v9900_v16 = vld [vmem:[%s13471_s0 + $0x8d8] ss:$28 sps:$4 sm:$0xff]  }
 0x341   :  { %4534 = vmatmul.mubr.bf16.gmra.mrb[60].mxu0 %v9800_v60  ;;  %v11591_v60 = vpop.f32.mrb[200].mxu1 }
 0x342   :  { %4541 = vmatprep.mubr.bf16.mxu0 %v9802_v36  ;;  %v11593_v36 = vpop.f32.mrb[201].mxu1 }
 0x343   :  { %v11598_v21 = vpop.f32.mrb[202].mxu1  ;;  %8453 = vmatmul.mubr.bf16.gmra.mrb[8].mxu1 %v9893_v56  ;;  %v9901_v56 = vld [vmem:[%s13471_s0 + $0x910] ss:$28 sps:$4 sm:$0xff]  }
 0x344   :  { %v11603_v2 = vpop.f32.mrb[203].mxu1  ;;  %8456 = vmatprep.mubr.bf16.mxu1 %v9900_v16  ;;  %v9908_v16 = vld [vmem:[%s13471_s0 + $0x948] ss:$28 sps:$4 sm:$0xff]  }
 0x349   :  { %4542 = vmatmul.mubr.bf16.gmra.mrb[64].mxu0 %v9805_v34  ;;  %v9811_v34 = vld [vmem:[%s13471_s0 + $0x400] ss:$28 sps:$4 sm:$0xff]  }
 0x34a   :  { %4549 = vmatprep.mubr.bf16.mxu0 %v9806_v24  ;;  %v9814_v24 = vld [vmem:[%s13471_s0 + $0x43c] ss:$28 sps:$4 sm:$0xff]  }
 0x34b   :  { %8457 = vmatmul.mubr.bf16.gmra.mrb[12].mxu1 %v9901_v56  ;;  %v9909_v56 = vld [vmem:[%s13471_s0 + $0x980] ss:$28 sps:$4 sm:$0xff]  }
 0x34c   :  { %8460 = vmatprep.mubr.bf16.mxu1 %v9908_v16 }
 0x351   :  { %4550 = vmatmul.mubr.bf16.gmra.mrb[68].mxu0 %v9808_v27  ;;  %v11617_v27 = vpop.f32.mrb[204].mxu1 }
 0x352   :  { %4557 = vmatprep.mubr.bf16.mxu0 %v9809_v12  ;;  %v11619_v12 = vpop.f32.mrb[205].mxu1 }
 0x353   :  { %v11624_v54 = vpop.f32.mrb[206].mxu1  ;;  %8461 = vmatmul.mubr.bf16.gmra.mrb[16].mxu1 %v9909_v56 }
 0x354   :  { %v11629_v43 = vpop.f32.mrb[207].mxu1 }
 0x359   :  { %4558 = vmatmul.mubr.bf16.gmra.mrb[72].mxu0 %v9811_v34  ;;  %v9819_v34 = vld [vmem:[%s13471_s0 + $0x470] ss:$28 sps:$4 sm:$0xff]  }
 0x35a   :  { %4565 = vmatprep.mubr.bf16.mxu0 %v9814_v24  ;;  %v9822_v24 = vld [vmem:[%s13471_s0 + $0x4ac] ss:$28 sps:$4 sm:$0xff]  }
 0x361   :  { %4566 = vmatmul.mubr.bf16.gmra.mrb[76].mxu0 %v9816_v61  ;;  %v11643_v61 = vpop.f32.mrb[208].mxu1 }
 0x362   :  { %4573 = vmatprep.mubr.bf16.mxu0 %v9817_v47  ;;  %v11645_v47 = vpop.f32.mrb[209].mxu1 }
 0x363   :  { %v11650_v33 = vpop.f32.mrb[210].mxu1 }
 0x364   :  { %v11655_v22 = vpop.f32.mrb[211].mxu1 }
 0x369   :  { %4574 = vmatmul.mubr.bf16.gmra.mrb[80].mxu0 %v9819_v34  ;;  %v9827_v34 = vld [vmem:[%s13471_s0 + $0x4e0] ss:$28 sps:$4 sm:$0xff]  }
 0x36a   :  { %4581 = vmatprep.mubr.bf16.mxu0 %v9822_v24  ;;  %v9830_v24 = vld [vmem:[%s13471_s0 + $0x51c] ss:$28 sps:$4 sm:$0xff]  }
 0x371   :  { %4582 = vmatmul.mubr.bf16.gmra.mrb[84].mxu0 %v9824_v38  ;;  %v11669_v38 = vpop.f32.mrb[212].mxu1 }
 0x372   :  { %4589 = vmatprep.mubr.bf16.mxu0 %v9825_v28  ;;  %v11671_v28 = vpop.f32.mrb[213].mxu1 }
 0x373   :  { %v11676_v14 = vpop.f32.mrb[214].mxu1 }
 0x374   :  { %v11681_v6 = vpop.f32.mrb[215].mxu1 }
 0x379   :  { %4590 = vmatmul.mubr.bf16.gmra.mrb[88].mxu0 %v9827_v34  ;;  %v9835_v34 = vld [vmem:[%s13471_s0 + $0x550] ss:$28 sps:$4 sm:$0xff]  }
 0x37a   :  { %4597 = vmatprep.mubr.bf16.mxu0 %v9830_v24  ;;  %v9838_v24 = vld [vmem:[%s13471_s0 + $0x58c] ss:$28 sps:$4 sm:$0xff]  }
 0x381   :  { %4598 = vmatmul.mubr.bf16.gmra.mrb[92].mxu0 %v9832_v19  ;;  %v11695_v19 = vpop.f32.mrb[216].mxu1 }
 0x382   :  { %4605 = vmatprep.mubr.bf16.mxu0 %v9833_v9  ;;  %v11697_v9 = vpop.f32.mrb[217].mxu1 }
 0x383   :  { %v11702_v63 = vpop.f32.mrb[218].mxu1 }
 0x384   :  { %v11707_v51 = vpop.f32.mrb[219].mxu1 }
 0x389   :  { %4606 = vmatmul.mubr.bf16.gmra.mrb[96].mxu0 %v9835_v34  ;;  %v9843_v34 = vld [vmem:[%s13471_s0 + $0x5c0] ss:$28 sps:$4 sm:$0xff]  }
 0x38a   :  { %4613 = vmatprep.mubr.bf16.mxu0 %v9838_v24  ;;  %v9846_v24 = vld [vmem:[%s13471_s0 + $0x5fc] ss:$28 sps:$4 sm:$0xff]  }
 0x391   :  { %4614 = vmatmul.mubr.bf16.gmra.mrb[100].mxu0 %v9840_v4  ;;  %v11721_v4 = vpop.f32.mrb[220].mxu1 }
 0x392   :  { %4621 = vmatprep.mubr.bf16.mxu0 %v9841_v58  ;;  %v11723_v48 = vpop.f32.mrb[221].mxu1 }
 0x393   :  { %v11731_v35 = vpop.f32.mrb[222].mxu1 }
 0x399   :  { %4622 = vmatmul.mubr.bf16.gmra.mrb[104].mxu0 %v9843_v34  ;;  %v9849_v34 = vld [vmem:[%s13471_s0 + $0x634] ss:$28 sps:$4 sm:$0xff]  }
 0x39a   :  { %4629 = vmatprep.mubr.bf16.mxu0 %v9846_v24  ;;  %v11736_v24 = vpop.f32.mrb[223].mxu1 }
 0x39c   :  { %v4415_v58 = vpop.f32.mrb[0].mxu0 }
 0x39d   :  { %v11726_v44 = vadd.f32 %v11515_v11, %v4415_v58  ;;  %v4417_v40 = vpop.f32.mrb[1].mxu0 }
 0x39e   :  { %v4418_v32 = vpop.f32.mrb[2].mxu0 }
 0x39f   :  { %v11739_v16 = vadd.f32 %v11525_v8, %v4418_v32  ;;  %v4420_v56 = vpop.f32.mrb[3].mxu0 }
 0x3a1   :  { %4630 = vmatmul.mubr.bf16.gmra.mrb[108].mxu0 %v9848_v37  ;;  %v9916_v37 = vld [vmem:[%s13471_s0 + $0x9b8] ss:$28 sps:$4 sm:$0xff]  }
 0x3a2   :  { %4637 = vmatprep.mubr.bf16.mxu0 %v9849_v34  ;;  %8464 = vmatprep.mubr.bf16.mxu1 %v9916_v37 }
 0x3a4   :  { %v4423_v40 = vpop.f32.mrb[4].mxu0 }
 0x3a5   :  { %v11742_v11 = vadd.f32 %v11513_v1, %v4423_v40  ;;  %v4425_v58 = vpop.f32.mrb[5].mxu0  ;;  %v9917_v1 = vld [vmem:[%s13471_s0 + $0x9f0] ss:$28 sps:$4 sm:$0xff]  }
 0x3a6   :  { %v4426_v25 = vpop.f32.mrb[6].mxu0  ;;  %8465 = vmatmul.mubr.bf16.gmra.mrb[20].mxu1 %v9917_v1 }
 0x3a7   :  { %v11751_v32 = vadd.f32 %v11520_v26, %v4426_v25  ;;  %v4428_v8 = vpop.f32.mrb[7].mxu0  ;;  %v9856_v25 = vld [vmem:[%s13471_s0 + $0x668] ss:$28 sps:$4 sm:$0xff]   ;;  %v11765_v26 = vpop.f32.mrb[224].mxu1  ;;  %8468 = vmatprep.mubr.bf16.mxu1 %v9925_v13 }
 0x3a8   :  { %v9857_v8 = vld [vmem:[%s13471_s0 + $0x6a4] ss:$28 sps:$4 sm:$0xff]  }
 0x3a9   :  { %4638 = vmatmul.mubr.bf16.gmra.mrb[112].mxu0 %v9851_v29  ;;  %v13478_v29 = vmov 0.0  }
 0x3aa   :  { %4645 = vmatprep.mubr.bf16.mxu0 %v9854_v23  ;;  %8504 = vmatprep.subr.bf16.mxu1 %v13478_v29  ;;  %v11771_v23 = vpop.f32.mrb[225].mxu1  ;;  %v9859_v29 = vld [vmem:[%s13471_s0 + $0x6a0] ss:$28 sps:$4 sm:$0xff]  }
 0x3ab   :  { %v11776_v1 = vpop.f32.mrb[226].mxu1 }
 0x3ac   :  { %v4431_v34 = vpop.f32.mrb[8].mxu0 }
 0x3ad   :  { %v11760_v56 = vadd.f32 %v11541_v42, %v4431_v34  ;;  %v4433_v40 = vpop.f32.mrb[9].mxu0  ;;  %v11778_v34 = vpop.f32.mrb[227].mxu1 }
 0x3ae   :  { %v4434_v58 = vpop.f32.mrb[10].mxu0  ;;  %v9918_v40 = vld [vmem:[%s13472_s3] sm:$0xff]  }
 0x3af   :  { %v11774_v42 = vadd.f32 %v11551_v5, %v4434_v58  ;;  %v4436_v37 = vpop.f32.mrb[11].mxu0  ;;  %8505 = vmatpush3.bf16.msra.mxu1 %v9918_v40 }
 0x3b0   :  { %v13621_v37 = vmov 0.0  }
 0x3b1   :  { %4646 = vmatmul.mubr.bf16.gmra.mrb[116].mxu0 %v9856_v25  ;;  %8506 = vmatprep.subr.bf16.mxu1 %v13621_v37  ;;  %v9862_v25 = vld [vmem:[%s13471_s0 + $0x6dc] ss:$28 sps:$4 sm:$0xff]  }
 0x3b2   :  { %4653 = vmatprep.mubr.bf16.mxu0 %v9857_v8 }
 0x3b4   :  { %v4439_v20 = vpop.f32.mrb[12].mxu0 }
 0x3b5   :  { %v11787_v5 = vadd.f32 %v11539_v53, %v4439_v20  ;;  %v4441_v58 = vpop.f32.mrb[13].mxu0  ;;  %v9926_v20 = vld [vmem:[%s13471_s0 + $0xa60] ss:$28 sps:$4 sm:$0xff]   ;;  %v9864_v53 = vld [vmem:[%s13471_s0 + $0x6d8] ss:$28 sps:$4 sm:$0xff]  }
 0x3b6   :  { %v4442_v17 = vpop.f32.mrb[14].mxu0  ;;  %8469 = vmatmul.mubr.bf16.gmra.mrb[24].mxu1 %v9926_v20 }
 0x3b7   :  { %13620 = vst [vmem:[#allocation87_spill] sm:$0xff] %v11787_v5  ;;  %v11794_v8 = vadd.f32 %v11546_v30, %v4442_v17  ;;  %v4444_v15 = vpop.f32.mrb[15].mxu0  ;;  %v11808_v30 = vpop.f32.mrb[228].mxu1 }
 0x3b8   :  { %13624 = vst [vmem:[#allocation90_spill] sm:$0xff] %v11808_v30 }
 0x3b9   :  { %13622 = vst [vmem:[#allocation88_spill] sm:$0xff] %v11794_v8  ;;  %4654 = vmatmul.mubr.bf16.gmra.mrb[120].mxu0 %v9859_v29  ;;  %v11813_v29 = vpop.f32.mrb[229].mxu1 }
 0x3ba   :  { %4661 = vmatprep.mubr.bf16.mxu0 %v9862_v25  ;;  %v11818_v20 = vpop.f32.mrb[230].mxu1 }
 0x3bb   :  { %13626 = vst [vmem:[#allocation92_spill] sm:$0xff] %v11818_v20  ;;  %v11820_v7 = vpop.f32.mrb[231].mxu1 }
 0x3bc   :  { %v4447_v40 = vpop.f32.mrb[16].mxu0 }
 0x3bd   :  { %v11806_v17 = vadd.f32 %v11567_v18, %v4447_v40  ;;  %v4449_v15 = vpop.f32.mrb[17].mxu0  ;;  %v9867_v18 = vld [vmem:[%s13471_s0 + $0x710] ss:$28 sps:$4 sm:$0xff]  }
 0x3be   :  { %v4450_v58 = vpop.f32.mrb[18].mxu0  ;;  %v9930_v15 = vld [vmem:[%s13471_s0 + $0xa98] ss:$28 sps:$4 sm:$0xff]  }
 0x3bf   :  { %13623 = vst [vmem:[#allocation89_spill] sm:$0xff] %v11806_v17  ;;  %v11816_v13 = vadd.f32 %v11577_v31, %v4450_v58  ;;  %v4452_v25 = vpop.f32.mrb[19].mxu0  ;;  %v9933_v58 = vld [vmem:[%s13471_s0 + $0xad0] ss:$28 sps:$4 sm:$0xff]   ;;  %8472 = vmatprep.mubr.bf16.mxu1 %v9930_v15 }
 0x3c0   :  { %8473 = vmatmul.mubr.bf16.gmra.mrb[28].mxu1 %v9933_v58  ;;  %v13672_v17 = vld [vmem:[#allocation3_spill] sm:$0xff] }
 0x3c1   :  { %13625 = vst [vmem:[#allocation91_spill] sm:$0xff] %v11816_v13  ;;  %4662 = vmatmul.mubr.bf16.gmra.mrb[124].mxu0 %v9864_v53 }
 0x3c2   :  { %4669 = vmatprep.mubr.bf16.mxu0 %v9865_v10  ;;  %v9870_v10 = vld [vmem:[%s13471_s0 + $0x74c] ss:$28 sps:$4 sm:$0xff]  }
 0x3c4   :  { %v4455_v40 = vpop.f32.mrb[20].mxu0 }
 0x3c5   :  { %v11829_v3 = vadd.f32 %v11565_v46, %v4455_v40  ;;  %v4457_v31 = vpop.f32.mrb[21].mxu0  ;;  %v9872_v46 = vld [vmem:[%s13471_s0 + $0x748] ss:$28 sps:$4 sm:$0xff]  }
 0x3c6   :  { %v4458_v25 = vpop.f32.mrb[22].mxu0  ;;  %v11846_v0 = vpop.f32.mrb[232].mxu1 }
 0x3c7   :  { %13627 = vst [vmem:[#allocation93_spill] sm:$0xff] %v11829_v3  ;;  %v11838_v53 = vadd.f32 %v11572_v50, %v4458_v25  ;;  %v4460_v20 = vpop.f32.mrb[23].mxu0  ;;  %v9873_v50 = vld [vmem:[%s13471_s0 + $0x784] ss:$28 sps:$4 sm:$0xff]  }
 0x3c8   :  { %v11851_v20 = vpop.f32.mrb[233].mxu1 }
 0x3c9   :  { %13628 = vst [vmem:[#allocation94_spill] sm:$0xff] %v11838_v53  ;;  %4670 = vmatmul.mubr.bf16.gmra.mrb[128].mxu0 %v9867_v18  ;;  %v11856_v58 = vpop.f32.mrb[234].mxu1 }
 0x3ca   :  { %4677 = vmatprep.mubr.bf16.mxu0 %v9870_v10  ;;  %13631 = vst [vmem:[#allocation97_spill] sm:$0xff] %v11856_v58  ;;  %v11858_v25 = vpop.f32.mrb[235].mxu1  ;;  %v9943_v58 = vld [vmem:[%s13471_s0 + $0xb40] ss:$28 sps:$4 sm:$0xff]  }
 0x3cc   :  { %v4463_v40 = vpop.f32.mrb[24].mxu0 }
 0x3cd   :  { %v11844_v31 = vadd.f32 %v11593_v36, %v4463_v40  ;;  %v4465_v3 = vpop.f32.mrb[25].mxu0  ;;  %v9875_v36 = vld [vmem:[%s13471_s0 + $0x780] ss:$28 sps:$4 sm:$0xff]  }
 0x3ce   :  { %v4466_v30 = vpop.f32.mrb[26].mxu0  ;;  %v9935_v3 = vld [vmem:[%s13472_s3 + $0x8] sm:$0xff]  }
 0x3cf   :  { %13629 = vst [vmem:[#allocation95_spill] sm:$0xff] %v11844_v31  ;;  %v11854_v18 = vadd.f32 %v11603_v2, %v4466_v30  ;;  %v4468_v15 = vpop.f32.mrb[27].mxu0  ;;  %8507 = vmatpush3.bf16.msra.mxu1 %v9935_v3  ;;  %v9942_v3 = vld [vmem:[%s13471_s0 + $0xb08] ss:$28 sps:$4 sm:$0xff]  }
 0x3d0   :  { %8508 = vmatprep.subr.bf16.mxu1 %v13621_v37  ;;  %8476 = vmatprep.mubr.bf16.mxu1 %v9942_v3  ;;  %v13683_v31 = vld [vmem:[#allocation7_spill] sm:$0xff] }
 0x3d1   :  { %13630 = vst [vmem:[#allocation96_spill] sm:$0xff] %v11854_v18  ;;  %4678 = vmatmul.mubr.bf16.gmra.mrb[132].mxu0 %v9872_v46  ;;  %v9878_v46 = vld [vmem:[%s13471_s0 + $0x7bc] ss:$28 sps:$4 sm:$0xff]   ;;  %8477 = vmatmul.mubr.bf16.gmra.mrb[32].mxu1 %v9943_v58  ;;  %v9953_v18 = vld [vmem:[%s13471_s0 + $0xbac] ss:$28 sps:$4 sm:$0xff]  }
 0x3d2   :  { %4685 = vmatprep.mubr.bf16.mxu0 %v9873_v50 }
 0x3d4   :  { %v4471_v10 = vpop.f32.mrb[28].mxu0 }
 0x3d5   :  { %v11868_v2 = vadd.f32 %v11591_v60, %v4471_v10  ;;  %v4473_v30 = vpop.f32.mrb[29].mxu0  ;;  %v9880_v60 = vld [vmem:[%s13471_s0 + $0x7b8] ss:$28 sps:$4 sm:$0xff]  }
 0x3d6   :  { %v4474_v40 = vpop.f32.mrb[30].mxu0 }
 0x3d7   :  { %13632 = vst [vmem:[#allocation98_spill] sm:$0xff] %v11868_v2  ;;  %v11874_v15 = vadd.f32 %v11598_v21, %v4474_v40  ;;  %v4476_v50 = vpop.f32.mrb[31].mxu0  ;;  %v11888_v40 = vpop.f32.mrb[236].mxu1 }
 0x3d8   :  { %13635 = vst [vmem:[#allocation101_spill] sm:$0xff] %v11888_v40 }
 0x3d9   :  { %13633 = vst [vmem:[#allocation99_spill] sm:$0xff] %v11874_v15  ;;  %4686 = vmatmul.mubr.bf16.gmra.mrb[136].mxu0 %v9875_v36  ;;  %v9881_v15 = vld [vmem:[%s13471_s0 + $0x7f4] ss:$28 sps:$4 sm:$0xff]   ;;  %v11893_v36 = vpop.f32.mrb[237].mxu1 }
 0x3da   :  { %4693 = vmatprep.mubr.bf16.mxu0 %v9878_v46  ;;  %v11898_v3 = vpop.f32.mrb[238].mxu1 }
 0x3db   :  { %13637 = vst [vmem:[#allocation103_spill] sm:$0xff] %v11898_v3  ;;  %v11900_v2 = vpop.f32.mrb[239].mxu1 }
 0x3dc   :  { %v4479_v10 = vpop.f32.mrb[32].mxu0 }
 0x3dd   :  { %v11886_v21 = vadd.f32 %v11619_v12, %v4479_v10  ;;  %v4481_v30 = vpop.f32.mrb[33].mxu0  ;;  %v9883_v12 = vld [vmem:[%s13471_s0 + $0x7f0] ss:$28 sps:$4 sm:$0xff]  }
 0x3de   :  { %v4482_v50 = vpop.f32.mrb[34].mxu0 }
 0x3df   :  { %13634 = vst [vmem:[#allocation100_spill] sm:$0xff] %v11886_v21  ;;  %v11896_v58 = vadd.f32 %v11629_v43, %v4482_v50  ;;  %v4484_v46 = vpop.f32.mrb[35].mxu0  ;;  %v9886_v43 = vld [vmem:[%s13471_s0 + $0x82c] ss:$28 sps:$4 sm:$0xff]  }
 0x3e1   :  { %13636 = vst [vmem:[#allocation102_spill] sm:$0xff] %v11896_v58  ;;  %4694 = vmatmul.mubr.bf16.gmra.mrb[140].mxu0 %v9880_v60  ;;  %v9951_v60 = vld [vmem:[%s13471_s0 + $0xbb0] ss:$28 sps:$4 sm:$0xff]  }
 0x3e2   :  { %4701 = vmatprep.mubr.bf16.mxu0 %v9881_v15  ;;  %v9950_v15 = vld [vmem:[%s13471_s0 + $0xb78] ss:$28 sps:$4 sm:$0xff]  }
 0x3e3   :  { %8480 = vmatprep.mubr.bf16.mxu1 %v9950_v15 }
 0x3e4   :  { %v4487_v10 = vpop.f32.mrb[36].mxu0  ;;  %8481 = vmatmul.mubr.bf16.gmra.mrb[36].mxu1 %v9951_v60 }
 0x3e5   :  { %v11906_v30 = vadd.f32 %v11617_v27, %v4487_v10  ;;  %v4489_v40 = vpop.f32.mrb[37].mxu0  ;;  %v9888_v27 = vld [vmem:[%s13471_s0 + $0x828] ss:$28 sps:$4 sm:$0xff]  }
 0x3e6   :  { %v4490_v21 = vpop.f32.mrb[38].mxu0  ;;  %v11926_v10 = vpop.f32.mrb[240].mxu1 }
 0x3e7   :  { %13638 = vst [vmem:[#allocation104_spill] sm:$0xff] %v11906_v30  ;;  %v11912_v50 = vadd.f32 %v11624_v54, %v4490_v21  ;;  %v4492_v46 = vpop.f32.mrb[39].mxu0  ;;  %13641 = vst [vmem:[#allocation107_spill] sm:$0xff] %v11926_v10  ;;  %v9960_v10 = vld [vmem:[%s13471_s0 + $0xc20] ss:$28 sps:$4 sm:$0xff]  }
 0x3e9   :  { %13639 = vst [vmem:[#allocation105_spill] sm:$0xff] %v11912_v50  ;;  %4702 = vmatmul.mubr.bf16.gmra.mrb[144].mxu0 %v9883_v12  ;;  %v9889_v50 = vld [vmem:[%s13471_s0 + $0x864] ss:$28 sps:$4 sm:$0xff]   ;;  %v11931_v12 = vpop.f32.mrb[241].mxu1 }
 0x3ea   :  { %4709 = vmatprep.mubr.bf16.mxu0 %v9886_v43  ;;  %v11936_v60 = vpop.f32.mrb[242].mxu1 }
 0x3eb   :  { %13643 = vst [vmem:[#allocation109_spill] sm:$0xff] %v11936_v60  ;;  %v11938_v3 = vpop.f32.mrb[243].mxu1 }
 0x3ec   :  { %v4495_v40 = vpop.f32.mrb[40].mxu0 }
 0x3ed   :  { %v11924_v54 = vadd.f32 %v11645_v47, %v4495_v40  ;;  %v4497_v21 = vpop.f32.mrb[41].mxu0  ;;  %v9952_v47 = vld [vmem:[%s13472_s3 + $0x10] sm:$0xff]   ;;  %v9891_v40 = vld [vmem:[%s13471_s0 + $0x860] ss:$28 sps:$4 sm:$0xff]  }
 0x3ee   :  { %v4498_v46 = vpop.f32.mrb[42].mxu0  ;;  %8509 = vmatpush3.bf16.msra.mxu1 %v9952_v47  ;;  %v9959_v47 = vld [vmem:[%s13471_s0 + $0xbe8] ss:$28 sps:$4 sm:$0xff]  }
 0x3ef   :  { %13640 = vst [vmem:[#allocation106_spill] sm:$0xff] %v11924_v54  ;;  %v11934_v43 = vadd.f32 %v11655_v22, %v4498_v46  ;;  %v4500_v15 = vpop.f32.mrb[43].mxu0  ;;  %8510 = vmatprep.subr.bf16.mxu1 %v13621_v37  ;;  %8484 = vmatprep.mubr.bf16.mxu1 %v9959_v47 }
 0x3f0   :  { %8485 = vmatmul.mubr.bf16.gmra.mrb[40].mxu1 %v9960_v10 }
 0x3f1   :  { %13642 = vst [vmem:[#allocation108_spill] sm:$0xff] %v11934_v43  ;;  %4710 = vmatmul.mubr.bf16.gmra.mrb[148].mxu0 %v9888_v27  ;;  %v9894_v27 = vld [vmem:[%s13471_s0 + $0x89c] ss:$28 sps:$4 sm:$0xff]   ;;  %v9970_v43 = vld [vmem:[%s13471_s0 + $0xc8c] ss:$28 sps:$4 sm:$0xff]  }
 0x3f2   :  { %4717 = vmatprep.mubr.bf16.mxu0 %v9889_v50 }
 0x3f4   :  { %v4503_v21 = vpop.f32.mrb[44].mxu0 }
 0x3f5   :  { %v11948_v22 = vadd.f32 %v11643_v61, %v4503_v21  ;;  %v4505_v46 = vpop.f32.mrb[45].mxu0  ;;  %v9896_v61 = vld [vmem:[%s13471_s0 + $0x898] ss:$28 sps:$4 sm:$0xff]  }
 0x3f6   :  { %v4506_v15 = vpop.f32.mrb[46].mxu0 }
 0x3f7   :  { %13644 = vst [vmem:[#allocation110_spill] sm:$0xff] %v11948_v22  ;;  %v11954_v60 = vadd.f32 %v11650_v33, %v4506_v15  ;;  %v4508_v50 = vpop.f32.mrb[47].mxu0  ;;  %v11968_v15 = vpop.f32.mrb[244].mxu1 }
 0x3f8   :  { %13647 = vst [vmem:[#allocation113_spill] sm:$0xff] %v11968_v15 }
 0x3f9   :  { %13645 = vst [vmem:[#allocation111_spill] sm:$0xff] %v11954_v60  ;;  %4718 = vmatmul.mubr.bf16.gmra.mrb[152].mxu0 %v9891_v40  ;;  %v9897_v60 = vld [vmem:[%s13471_s0 + $0x8d4] ss:$28 sps:$4 sm:$0xff]   ;;  %v11973_v40 = vpop.f32.mrb[245].mxu1 }
 0x3fa   :  { %4725 = vmatprep.mubr.bf16.mxu0 %v9894_v27  ;;  %v11978_v47 = vpop.f32.mrb[246].mxu1 }
 0x3fb   :  { %13649 = vst [vmem:[#allocation115_spill] sm:$0xff] %v11978_v47  ;;  %v11980_v22 = vpop.f32.mrb[247].mxu1 }
 0x3fc   :  { %v4511_v21 = vpop.f32.mrb[48].mxu0 }
 0x3fd   :  { %v11966_v33 = vadd.f32 %v11671_v28, %v4511_v21  ;;  %v4513_v46 = vpop.f32.mrb[49].mxu0  ;;  %v9899_v28 = vld [vmem:[%s13471_s0 + $0x8d0] ss:$28 sps:$4 sm:$0xff]  }
 0x3fe   :  { %v4514_v50 = vpop.f32.mrb[50].mxu0 }
 0x3ff   :  { %13646 = vst [vmem:[#allocation112_spill] sm:$0xff] %v11966_v33  ;;  %v11976_v10 = vadd.f32 %v11681_v6, %v4514_v50  ;;  %v4516_v27 = vpop.f32.mrb[51].mxu0  ;;  %v9902_v6 = vld [vmem:[%s13471_s0 + $0x90c] ss:$28 sps:$4 sm:$0xff]  }
 0x401   :  { %13648 = vst [vmem:[#allocation114_spill] sm:$0xff] %v11976_v10  ;;  %4726 = vmatmul.mubr.bf16.gmra.mrb[156].mxu0 %v9896_v61  ;;  %v9968_v61 = vld [vmem:[%s13471_s0 + $0xc90] ss:$28 sps:$4 sm:$0xff]  }
 0x402   :  { %4733 = vmatprep.mubr.bf16.mxu0 %v9897_v60  ;;  %v9967_v60 = vld [vmem:[%s13471_s0 + $0xc58] ss:$28 sps:$4 sm:$0xff]  }
 0x403   :  { %8488 = vmatprep.mubr.bf16.mxu1 %v9967_v60 }
 0x404   :  { %v4519_v21 = vpop.f32.mrb[52].mxu0  ;;  %8489 = vmatmul.mubr.bf16.gmra.mrb[44].mxu1 %v9968_v61 }
 0x405   :  { %v11986_v46 = vadd.f32 %v11669_v38, %v4519_v21  ;;  %v4521_v15 = vpop.f32.mrb[53].mxu0  ;;  %v9904_v38 = vld [vmem:[%s13471_s0 + $0x908] ss:$28 sps:$4 sm:$0xff]   ;;  %v12006_v21 = vpop.f32.mrb[248].mxu1 }
 0x406   :  { %v4522_v33 = vpop.f32.mrb[54].mxu0  ;;  %13653 = vst [vmem:[#allocation119_spill] sm:$0xff] %v12006_v21  ;;  %v9977_v21 = vld [vmem:[%s13471_s0 + $0xd00] ss:$28 sps:$4 sm:$0xff]  }
 0x407   :  { %13650 = vst [vmem:[#allocation116_spill] sm:$0xff] %v11986_v46  ;;  %v11992_v50 = vadd.f32 %v11676_v14, %v4522_v33  ;;  %v4524_v27 = vpop.f32.mrb[55].mxu0 }
 0x409   :  { %13651 = vst [vmem:[#allocation117_spill] sm:$0xff] %v11992_v50  ;;  %4734 = vmatmul.mubr.bf16.gmra.mrb[160].mxu0 %v9899_v28  ;;  %v9905_v50 = vld [vmem:[%s13471_s0 + $0x944] ss:$28 sps:$4 sm:$0xff]   ;;  %v12011_v28 = vpop.f32.mrb[249].mxu1 }
 0x40a   :  { %4741 = vmatprep.mubr.bf16.mxu0 %v9902_v6  ;;  %v12016_v61 = vpop.f32.mrb[250].mxu1 }
 0x40b   :  { %13655 = vst [vmem:[#allocation121_spill] sm:$0xff] %v12016_v61  ;;  %v12018_v47 = vpop.f32.mrb[251].mxu1 }
 0x40c   :  { %v4527_v15 = vpop.f32.mrb[56].mxu0 }
 0x40d   :  { %v12004_v14 = vadd.f32 %v11697_v9, %v4527_v15  ;;  %v4529_v33 = vpop.f32.mrb[57].mxu0  ;;  %v9969_v9 = vld [vmem:[%s13472_s3 + $0x18] sm:$0xff]  }
 0x40e   :  { %v4530_v27 = vpop.f32.mrb[58].mxu0  ;;  %v9907_v15 = vld [vmem:[%s13471_s0 + $0x940] ss:$28 sps:$4 sm:$0xff]   ;;  %8511 = vmatpush3.bf16.msra.mxu1 %v9969_v9  ;;  %v9976_v9 = vld [vmem:[%s13471_s0 + $0xcc8] ss:$28 sps:$4 sm:$0xff]  }
 0x40f   :  { %13652 = vst [vmem:[#allocation118_spill] sm:$0xff] %v12004_v14  ;;  %v12014_v6 = vadd.f32 %v11707_v51, %v4530_v27  ;;  %v4532_v60 = vpop.f32.mrb[59].mxu0  ;;  %8512 = vmatprep.subr.bf16.mxu1 %v13621_v37  ;;  %8492 = vmatprep.mubr.bf16.mxu1 %v9976_v9  ;;  %v13732_v14 = vld [vmem:[#allocation24_spill] sm:$0xff] }
 0x410   :  { %8493 = vmatmul.mubr.bf16.gmra.mrb[48].mxu1 %v9977_v21 }
 0x411   :  { %13654 = vst [vmem:[#allocation120_spill] sm:$0xff] %v12014_v6  ;;  %4742 = vmatmul.mubr.bf16.gmra.mrb[164].mxu0 %v9904_v38  ;;  %v9910_v38 = vld [vmem:[%s13471_s0 + $0x97c] ss:$28 sps:$4 sm:$0xff]  }
 0x412   :  { %4749 = vmatprep.mubr.bf16.mxu0 %v9905_v50 }
 0x414   :  { %v4535_v33 = vpop.f32.mrb[60].mxu0 }
 0x415   :  { %v12028_v51 = vadd.f32 %v11695_v19, %v4535_v33  ;;  %v4537_v27 = vpop.f32.mrb[61].mxu0  ;;  %v9912_v19 = vld [vmem:[%s13471_s0 + $0x978] ss:$28 sps:$4 sm:$0xff]  }
 0x416   :  { %v4538_v60 = vpop.f32.mrb[62].mxu0 }
 0x417   :  { %13656 = vst [vmem:[#allocation122_spill] sm:$0xff] %v12028_v51  ;;  %v12034_v61 = vadd.f32 %v11702_v63, %v4538_v60  ;;  %v4540_v50 = vpop.f32.mrb[63].mxu0  ;;  %v12048_v60 = vpop.f32.mrb[252].mxu1 }
 0x418   :  { %13659 = vst [vmem:[#allocation125_spill] sm:$0xff] %v12048_v60 }
 0x419   :  { %13657 = vst [vmem:[#allocation123_spill] sm:$0xff] %v12034_v61  ;;  %4750 = vmatmul.mubr.bf16.gmra.mrb[168].mxu0 %v9907_v15  ;;  %v9913_v61 = vld [vmem:[%s13471_s0 + $0x9b4] ss:$28 sps:$4 sm:$0xff]   ;;  %v12053_v15 = vpop.f32.mrb[253].mxu1 }
 0x41a   :  { %4757 = vmatprep.mubr.bf16.mxu0 %v9910_v38  ;;  %v12060_v51 = vpop.f32.mrb[254].mxu1 }
 0x41c   :  { %v4543_v33 = vpop.f32.mrb[64].mxu0 }
 0x41d   :  { %v12046_v63 = vadd.f32 %v11723_v48, %v4543_v33  ;;  %v4545_v27 = vpop.f32.mrb[65].mxu0  ;;  %v12062_v48 = vpop.f32.mrb[255].mxu1 }
 0x41e   :  { %v4546_v50 = vpop.f32.mrb[66].mxu0  ;;  %v9915_v27 = vld [vmem:[%s13471_s0 + $0x9b0] ss:$28 sps:$4 sm:$0xff]  }
 0x41f   :  { %13658 = vst [vmem:[#allocation124_spill] sm:$0xff] %v12046_v63  ;;  %v12058_v38 = vadd.f32 %v11736_v24, %v4546_v50  ;;  %v4548_v9 = vpop.f32.mrb[67].mxu0  ;;  %v9919_v50 = vld [vmem:[%s13471_s0 + $0x9ec] ss:$28 sps:$4 sm:$0xff]  }
 0x421   :  { %13660 = vst [vmem:[#allocation126_spill] sm:$0xff] %v12058_v38  ;;  %4758 = vmatmul.mubr.bf16.gmra.mrb[172].mxu0 %v9912_v19  ;;  %v12094_v38 = vpop.f32.mrb[0].mxu1 }
 0x422   :  { %4765 = vmatprep.mubr.bf16.mxu0 %v9913_v61  ;;  %v9984_v61 = vld [vmem:[%s13471_s0 + $0xd38] ss:$28 sps:$4 sm:$0xff]  }
 0x423   :  { %8496 = vmatprep.mubr.bf16.mxu1 %v9984_v61 }
 0x424   :  { %v4551_v60 = vpop.f32.mrb[68].mxu0 }
 0x425   :  { %v8876_v21 = vadd.f32 %v4551_v60, %v11109_v39  ;;  %v4553_v63 = vpop.f32.mrb[69].mxu0  ;;  %v9985_v39 = vld [vmem:[%s13471_s0 + $0xd70] ss:$28 sps:$4 sm:$0xff]  }
 0x426   :  { %v4554_v24 = vpop.f32.mrb[70].mxu0  ;;  %8497 = vmatmul.mubr.bf16.gmra.mrb[52].mxu1 %v9985_v39 }
 0x427   :  { %v12074_v9 = vadd.f32 %v8876_v21, %v11721_v4  ;;  %v8877_v33 = vadd.f32 %v4554_v24, %v11111_v41  ;;  %v4556_v19 = vpop.f32.mrb[71].mxu0  ;;  %v9921_v4 = vld [vmem:[%s13471_s0 + $0x9e8] ss:$28 sps:$4 sm:$0xff]  }
 0x429   :  { %v12086_v60 = vadd.f32 %v8877_v33, %v11731_v35  ;;  %4766 = vmatmul.mubr.bf16.gmra.mrb[176].mxu0 %v9915_v27  ;;  %v9922_v35 = vld [vmem:[%s13471_s0 + $0xa24] ss:$28 sps:$4 sm:$0xff]   ;;  %v12099_v33 = vpop.f32.mrb[1].mxu1 }
 0x42a   :  { %4773 = vmatprep.mubr.bf16.mxu0 %v9919_v50  ;;  %v12108_v39 = vpop.f32.mrb[2].mxu1 }
 0x42c   :  { %v4559_v21 = vpop.f32.mrb[72].mxu0 }
 0x42d   :  { %v8878_v24 = vadd.f32 %v4559_v21, %v11119_v45  ;;  %v4561_v19 = vpop.f32.mrb[73].mxu0  ;;  %v9986_v45 = vld [vmem:[%s13472_s3 + $0x20] sm:$0xff]   ;;  %v12110_v21 = vpop.f32.mrb[3].mxu1 }
 0x42e   :  { %v4562_v63 = vpop.f32.mrb[74].mxu0  ;;  %8513 = vmatpush3.bf16.msra.mxu1 %v9986_v45  ;;  %v9994_v45 = vld [vmem:[%s13471_s0 + $0xde0] ss:$28 sps:$4 sm:$0xff]  }
 0x42f   :  { %v8879_v27 = vadd.f32 %v4562_v63, %v11127_v49  ;;  %v12103_v50 = vadd.f32 %v8878_v24, %v11771_v23  ;;  %v4564_v61 = vpop.f32.mrb[75].mxu0  ;;  %8514 = vmatprep.subr.bf16.mxu1 %v13621_v37  ;;  %v12148_v49 = vpop.f32.mrb[4].mxu1 }
 0x430   :  { %v9924_v61 = vld [vmem:[%s13471_s0 + $0xa20] ss:$28 sps:$4 sm:$0xff]  }
 0x431   :  { %v12115_v41 = vadd.f32 %v8879_v27, %v11778_v34  ;;  %4774 = vmatmul.mubr.bf16.gmra.mrb[180].mxu0 %v9921_v4  ;;  %v9927_v34 = vld [vmem:[%s13471_s0 + $0xa5c] ss:$28 sps:$4 sm:$0xff]  }
 0x432   :  { %4781 = vmatprep.mubr.bf16.mxu0 %v9922_v35 }
 0x433   :  { %13661 = vst [vmem:[#allocation127_spill] sm:$0xff] %v12115_v41 }
 0x434   :  { %v4567_v23 = vpop.f32.mrb[76].mxu0 }
 0x435   :  { %v8880_v63 = vadd.f32 %v4567_v23, %v11132_v52  ;;  %v4569_v24 = vpop.f32.mrb[77].mxu0  ;;  %v9993_v52 = vld [vmem:[%s13471_s0 + $0xda8] ss:$28 sps:$4 sm:$0xff]  }
 0x436   :  { %v4570_v19 = vpop.f32.mrb[78].mxu0  ;;  %8500 = vmatprep.mubr.bf16.mxu1 %v9993_v52 }
 0x437   :  { %v12128_v4 = vadd.f32 %v8880_v63, %v11765_v26  ;;  %v8881_v35 = vadd.f32 %v4570_v19, %v11137_v55  ;;  %v4572_v27 = vpop.f32.mrb[79].mxu0  ;;  %8501 = vmatmul.mubr.bf16.gmra.mrb[56].mxu1 %v9994_v45  ;;  %v13740_v55 = vld [vmem:[#allocation29_spill] sm:$0xff] }
 0x438   :  { %v9929_v27 = vld [vmem:[%s13471_s0 + $0xa58] ss:$28 sps:$4 sm:$0xff]   ;;  %8520 = vmatprep.mubr.msk.bf16.mxu1 %vm10131_vm0, %v13621_v37 }
 0x439   :  { %13662 = vst [vmem:[#allocation128_spill] sm:$0xff] %v12128_v4  ;;  %v12140_v24 = vadd.f32 %v8881_v35, %v11776_v1  ;;  %4782 = vmatmul.mubr.bf16.gmra.mrb[184].mxu0 %v9924_v61  ;;  %v9931_v1 = vld [vmem:[%s13471_s0 + $0xa94] ss:$28 sps:$4 sm:$0xff]   ;;  %v12153_v61 = vpop.f32.mrb[5].mxu1 }
 0x43a   :  { %4789 = vmatprep.mubr.bf16.mxu0 %v9927_v34  ;;  %v12159_v52 = vpop.f32.mrb[6].mxu1 }
 0x43b   :  { %13663 = vst [vmem:[#allocation129_spill] sm:$0xff] %v12140_v24  ;;  %v12161_v45 = vpop.f32.mrb[7].mxu1 }
 0x43c   :  { %v4575_v26 = vpop.f32.mrb[80].mxu0 }
 0x43d   :  { %v8882_v19 = vadd.f32 %v4575_v26, %v11139_v57  ;;  %v4577_v63 = vpop.f32.mrb[81].mxu0  ;;  %v9936_v26 = vld [vmem:[%s13471_s0 + $0xacc] ss:$28 sps:$4 sm:$0xff]  }
 0x43e   :  { %v4578_v23 = vpop.f32.mrb[82].mxu0 }
 0x43f   :  { %v8883_v34 = vadd.f32 %v4578_v23, %v11141_v59  ;;  %v12157_v35 = vadd.f32 %v8882_v19, %v11813_v29  ;;  %v4580_v57 = vpop.f32.mrb[83].mxu0  ;;  %v9934_v19 = vld [vmem:[%s13471_s0 + $0xa90] ss:$28 sps:$4 sm:$0xff]  }
 0x441   :  { %13664 = vst [vmem:[#allocation130_spill] sm:$0xff] %v12157_v35  ;;  %v12166_v63 = vadd.f32 %v8883_v34, %v11820_v7  ;;  %4790 = vmatmul.mubr.bf16.gmra.mrb[188].mxu0 %v9929_v27  ;;  %v13666_v7 = vld [vmem:[#allocation90_spill] sm:$0xff] }
 0x442   :  { %4797 = vmatprep.mubr.bf16.mxu0 %v9931_v1  ;;  %v13668_v27 = vld [vmem:[#allocation2_spill] sm:$0xff] }
 0x443   :  { %13665 = vst [vmem:[#allocation131_spill] sm:$0xff] %v12166_v63 }
 0x444   :  { %v4583_v59 = vpop.f32.mrb[84].mxu0 }
 0x445   :  { %v8884_v29 = vadd.f32 %v4583_v59, %v11146_v62  ;;  %v4585_v23 = vpop.f32.mrb[85].mxu0  ;;  %v13670_v62 = vld [vmem:[#allocation92_spill] sm:$0xff] }
 0x446   :  { %v4586_v57 = vpop.f32.mrb[86].mxu0 }
 0x447   :  { %v12178_v34 = vadd.f32 %v8884_v29, %v13666_v7  ;;  %v8885_v1 = vadd.f32 %v4586_v57, %v13668_v27  ;;  %v4588_v35 = vpop.f32.mrb[87].mxu0  ;;  %v9938_v29 = vld [vmem:[%s13471_s0 + $0xac8] ss:$28 sps:$4 sm:$0xff]  }
 0x448   :  { %v12192_v35 = vpop.f32.mrb[8].mxu1  ;;  %v9939_v7 = vld [vmem:[%s13471_s0 + $0xb04] ss:$28 sps:$4 sm:$0xff]  }
 0x449   :  { %13667 = vst [vmem:[#allocation90_spill] sm:$0xff] %v12178_v34  ;;  %v12184_v59 = vadd.f32 %v8885_v1, %v13670_v62  ;;  %4798 = vmatmul.mubr.bf16.gmra.mrb[192].mxu0 %v9934_v19  ;;  %v12197_v19 = vpop.f32.mrb[9].mxu1 }
 0x44a   :  { %4805 = vmatprep.mubr.bf16.mxu0 %v9936_v26  ;;  %v13673_v26 = vld [vmem:[#allocation4_spill] sm:$0xff] }
 0x44b   :  { %13671 = vst [vmem:[#allocation2_spill] sm:$0xff] %v12184_v59  ;;  %v9941_v59 = vld [vmem:[%s13471_s0 + $0xb00] ss:$28 sps:$4 sm:$0xff]  }
 0x44c   :  { %v4591_v13 = vpop.f32.mrb[88].mxu0 }
 0x44d   :  { %v8886_v24 = vadd.f32 %v4591_v13, %v13672_v17  ;;  %v4593_v8 = vpop.f32.mrb[89].mxu0  ;;  %v12206_v13 = vpop.f32.mrb[10].mxu1 }
 0x44e   :  { %v4594_v57 = vpop.f32.mrb[90].mxu0  ;;  %v9998_v8 = vld [vmem:[%s13472_s3 + $0x28] sm:$0xff]   ;;  %v12208_v62 = vpop.f32.mrb[11].mxu1 }
 0x44f   :  { %v8887_v27 = vadd.f32 %v4594_v57, %v13673_v26  ;;  %v12201_v1 = vadd.f32 %v8886_v24, %v11851_v20  ;;  %v4596_v17 = vpop.f32.mrb[91].mxu0  ;;  %8515 = vmatpush3.bf16.msra.mxu1 %v9998_v8  ;;  %v13676_v57 = vld [vmem:[#allocation5_spill] sm:$0xff] }
 0x450   :  { %8516 = vmatprep.subr.bf16.mxu1 %v13621_v37 }
 0x451   :  { %13674 = vst [vmem:[#allocation92_spill] sm:$0xff] %v12201_v1  ;;  %v12213_v63 = vadd.f32 %v8887_v27, %v11858_v25  ;;  %4806 = vmatmul.mubr.bf16.gmra.mrb[196].mxu0 %v9938_v29  ;;  %v9944_v25 = vld [vmem:[%s13471_s0 + $0xb3c] ss:$28 sps:$4 sm:$0xff]  }
 0x452   :  { %4813 = vmatprep.mubr.bf16.mxu0 %v9939_v7  ;;  %v13678_v7 = vld [vmem:[#allocation6_spill] sm:$0xff] }
 0x453   :  { %13675 = vst [vmem:[#allocation3_spill] sm:$0xff] %v12213_v63 }
 0x454   :  { %v4599_v24 = vpop.f32.mrb[92].mxu0 }
 0x455   :  { %v8888_v26 = vadd.f32 %v4599_v24, %v13676_v57  ;;  %v4601_v17 = vpop.f32.mrb[93].mxu0  ;;  %v13680_v24 = vld [vmem:[#allocation97_spill] sm:$0xff] }
 0x456   :  { %v4602_v23 = vpop.f32.mrb[94].mxu0 }
 0x457   :  { %v12226_v29 = vadd.f32 %v8888_v26, %v11846_v0  ;;  %v8889_v27 = vadd.f32 %v4602_v23, %v13678_v7  ;;  %v4604_v8 = vpop.f32.mrb[95].mxu0  ;;  %v9946_v0 = vld [vmem:[%s13471_s0 + $0xb38] ss:$28 sps:$4 sm:$0xff]   ;;  %v12240_v23 = vpop.f32.mrb[12].mxu1 }
 0x458   :  { %v9947_v7 = vld [vmem:[%s13471_s0 + $0xb74] ss:$28 sps:$4 sm:$0xff]  }
 0x459   :  { %13677 = vst [vmem:[#allocation4_spill] sm:$0xff] %v12226_v29  ;;  %v12232_v57 = vadd.f32 %v8889_v27, %v13680_v24  ;;  %4814 = vmatmul.mubr.bf16.gmra.mrb[200].mxu0 %v9941_v59  ;;  %v12245_v59 = vpop.f32.mrb[13].mxu1  ;;  %v13695_v24 = vld [vmem:[#allocation11_spill] sm:$0xff] }
 0x45a   :  { %4821 = vmatprep.mubr.bf16.mxu0 %v9944_v25  ;;  %v13684_v25 = vld [vmem:[#allocation8_spill] sm:$0xff] }
 0x45b   :  { %13681 = vst [vmem:[#allocation5_spill] sm:$0xff] %v12232_v57 }
 0x45c   :  { %v4607_v1 = vpop.f32.mrb[96].mxu0 }
 0x45d   :  { %v8890_v53 = vadd.f32 %v4607_v1, %v13683_v31  ;;  %v4609_v34 = vpop.f32.mrb[97].mxu0 }
 0x45e   :  { %v4610_v26 = vpop.f32.mrb[98].mxu0  ;;  %v12251_v34 = vpop.f32.mrb[14].mxu1 }
 0x45f   :  { %v8891_v27 = vadd.f32 %v4610_v26, %v13684_v25  ;;  %v12249_v8 = vadd.f32 %v8890_v53, %v11893_v36  ;;  %v4612_v31 = vpop.f32.mrb[99].mxu0  ;;  %v12253_v1 = vpop.f32.mrb[15].mxu1  ;;  %v13688_v25 = vld [vmem:[#allocation9_spill] sm:$0xff] }
 0x460   :  { %v9949_v31 = vld [vmem:[%s13471_s0 + $0xb70] ss:$28 sps:$4 sm:$0xff]  }
 0x461   :  { %13685 = vst [vmem:[#allocation6_spill] sm:$0xff] %v12249_v8  ;;  %v12258_v63 = vadd.f32 %v8891_v27, %v11900_v2  ;;  %4822 = vmatmul.mubr.bf16.gmra.mrb[204].mxu0 %v9946_v0  ;;  %v13689_v2 = vld [vmem:[#allocation101_spill] sm:$0xff]  ;;  %v13691_v0 = vld [vmem:[#allocation10_spill] sm:$0xff] }
 0x462   :  { %4829 = vmatprep.mubr.bf16.mxu0 %v9947_v7 }
 0x463   :  { %13687 = vst [vmem:[#allocation97_spill] sm:$0xff] %v12258_v63 }
 0x464   :  { %v4615_v26 = vpop.f32.mrb[100].mxu0 }
 0x465   :  { %v8892_v53 = vadd.f32 %v4615_v26, %v13688_v25  ;;  %v4617_v36 = vpop.f32.mrb[101].mxu0  ;;  %v13692_v26 = vld [vmem:[#allocation103_spill] sm:$0xff] }
 0x466   :  { %v4618_v17 = vpop.f32.mrb[102].mxu0  ;;  %v13707_v36 = vld [vmem:[#allocation15_spill] sm:$0xff] }
 0x467   :  { %v12270_v27 = vadd.f32 %v8892_v53, %v13689_v2  ;;  %v8893_v7 = vadd.f32 %v4618_v17, %v13691_v0  ;;  %v4620_v8 = vpop.f32.mrb[103].mxu0  ;;  %v9955_v17 = vld [vmem:[%s13471_s0 + $0xba8] ss:$28 sps:$4 sm:$0xff]  }
 0x468   :  { %v12284_v8 = vpop.f32.mrb[16].mxu1  ;;  %v9956_v2 = vld [vmem:[%s13471_s0 + $0xbe4] ss:$28 sps:$4 sm:$0xff]  }
 0x469   :  { %13690 = vst [vmem:[#allocation7_spill] sm:$0xff] %v12270_v27  ;;  %v12276_v25 = vadd.f32 %v8893_v7, %v13692_v26  ;;  %4830 = vmatmul.mubr.bf16.gmra.mrb[208].mxu0 %v9949_v31  ;;  %v12289_v31 = vpop.f32.mrb[17].mxu1 }
 0x46a   :  { %4837 = vmatprep.mubr.bf16.mxu0 %v9953_v18  ;;  %v13696_v18 = vld [vmem:[#allocation12_spill] sm:$0xff] }
 0x46b   :  { %13693 = vst [vmem:[#allocation8_spill] sm:$0xff] %v12276_v25  ;;  %v9958_v25 = vld [vmem:[%s13471_s0 + $0xbe0] ss:$28 sps:$4 sm:$0xff]  }
 0x46c   :  { %v4623_v58 = vpop.f32.mrb[104].mxu0 }
 0x46d   :  { %v8894_v29 = vadd.f32 %v4623_v58, %v13695_v24  ;;  %v4625_v20 = vpop.f32.mrb[105].mxu0  ;;  %v12298_v24 = vpop.f32.mrb[18].mxu1 }
 0x46e   :  { %v4626_v53 = vpop.f32.mrb[106].mxu0  ;;  %v9999_v20 = vld [vmem:[%s13472_s3 + $0x30] sm:$0xff]   ;;  %v12300_v26 = vpop.f32.mrb[19].mxu1 }
 0x46f   :  { %v8895_v0 = vadd.f32 %v4626_v53, %v13696_v18  ;;  %v12293_v7 = vadd.f32 %v8894_v29, %v11931_v12  ;;  %v4628_v58 = vpop.f32.mrb[107].mxu0  ;;  %8517 = vmatpush3.bf16.msra.mxu1 %v9999_v20  ;;  %v13699_v53 = vld [vmem:[#allocation13_spill] sm:$0xff] }
 0x470   :  { %8518 = vmatprep.subr.bf16.mxu1 %v13621_v37 }
 0x471   :  { %13697 = vst [vmem:[#allocation9_spill] sm:$0xff] %v12293_v7  ;;  %v12305_v57 = vadd.f32 %v8895_v0, %v11938_v3  ;;  %4838 = vmatmul.mubr.bf16.gmra.mrb[212].mxu0 %v9955_v17  ;;  %v9961_v3 = vld [vmem:[%s13471_s0 + $0xc1c] ss:$28 sps:$4 sm:$0xff]   ;;  %v13700_v17 = vld [vmem:[#allocation107_spill] sm:$0xff]  ;;  %v13702_v0 = vld [vmem:[#allocation14_spill] sm:$0xff] }
 0x472   :  { %4845 = vmatprep.mubr.bf16.mxu0 %v9956_v2 }
 0x473   :  { %13698 = vst [vmem:[#allocation101_spill] sm:$0xff] %v12305_v57 }
 0x474   :  { %v4631_v29 = vpop.f32.mrb[108].mxu0 }
 0x475   :  { %v8896_v18 = vadd.f32 %v4631_v29, %v13699_v53  ;;  %v4633_v58 = vpop.f32.mrb[109].mxu0  ;;  %v13704_v29 = vld [vmem:[#allocation109_spill] sm:$0xff] }
 0x476   :  { %v4634_v63 = vpop.f32.mrb[110].mxu0 }
 0x477   :  { %v12318_v2 = vadd.f32 %v8896_v18, %v13700_v17  ;;  %v8897_v20 = vadd.f32 %v4634_v63, %v13702_v0  ;;  %v4636_v7 = vpop.f32.mrb[111].mxu0  ;;  %v9963_v63 = vld [vmem:[%s13471_s0 + $0xc18] ss:$28 sps:$4 sm:$0xff]  }
 0x478   :  { %v9964_v17 = vld [vmem:[%s13471_s0 + $0xc54] ss:$28 sps:$4 sm:$0xff]  }
 0x479   :  { %13701 = vst [vmem:[#allocation10_spill] sm:$0xff] %v12318_v2  ;;  %v12324_v53 = vadd.f32 %v8897_v20, %v13704_v29  ;;  %4846 = vmatmul.mubr.bf16.gmra.mrb[216].mxu0 %v9958_v25  ;;  %v12332_v7 = vpop.f32.mrb[20].mxu1  ;;  %v13719_v29 = vld [vmem:[#allocation19_spill] sm:$0xff] }
 0x47a   :  { %4853 = vmatprep.mubr.bf16.mxu0 %v9961_v3  ;;  %v12337_v25 = vpop.f32.mrb[21].mxu1  ;;  %v13708_v3 = vld [vmem:[#allocation16_spill] sm:$0xff] }
 0x47b   :  { %13705 = vst [vmem:[#allocation103_spill] sm:$0xff] %v12324_v53 }
 0x47c   :  { %v4639_v54 = vpop.f32.mrb[112].mxu0 }
 0x47d   :  { %v8898_v27 = vadd.f32 %v4639_v54, %v13707_v36  ;;  %v4641_v30 = vpop.f32.mrb[113].mxu0 }
 0x47e   :  { %v4642_v18 = vpop.f32.mrb[114].mxu0  ;;  %v12343_v30 = vpop.f32.mrb[22].mxu1 }
 0x47f   :  { %v8899_v0 = vadd.f32 %v4642_v18, %v13708_v3  ;;  %v12341_v20 = vadd.f32 %v8898_v27, %v11973_v40  ;;  %v4644_v54 = vpop.f32.mrb[115].mxu0  ;;  %v12345_v36 = vpop.f32.mrb[23].mxu1  ;;  %v13712_v3 = vld [vmem:[#allocation17_spill] sm:$0xff] }
 0x480   :  { %v9966_v54 = vld [vmem:[%s13471_s0 + $0xc50] ss:$28 sps:$4 sm:$0xff]  }
 0x481   :  { %13709 = vst [vmem:[#allocation11_spill] sm:$0xff] %v12341_v20  ;;  %v12350_v57 = vadd.f32 %v8899_v0, %v11980_v22  ;;  %4854 = vmatmul.mubr.bf16.gmra.mrb[220].mxu0 %v9963_v63  ;;  %v13713_v22 = vld [vmem:[#allocation113_spill] sm:$0xff]  ;;  %v13715_v63 = vld [vmem:[#allocation18_spill] sm:$0xff] }
 0x482   :  { %4861 = vmatprep.mubr.bf16.mxu0 %v9964_v17 }
 0x483   :  { %13711 = vst [vmem:[#allocation12_spill] sm:$0xff] %v12350_v57 }
 0x484   :  { %v4647_v18 = vpop.f32.mrb[116].mxu0 }
 0x485   :  { %v8900_v40 = vadd.f32 %v4647_v18, %v13712_v3  ;;  %v4649_v27 = vpop.f32.mrb[117].mxu0  ;;  %v13716_v18 = vld [vmem:[#allocation115_spill] sm:$0xff] }
 0x486   :  { %v4650_v58 = vpop.f32.mrb[118].mxu0 }
 0x487   :  { %v12362_v0 = vadd.f32 %v8900_v40, %v13713_v22  ;;  %v8901_v17 = vadd.f32 %v4650_v58, %v13715_v63  ;;  %v4652_v20 = vpop.f32.mrb[119].mxu0  ;;  %v9972_v58 = vld [vmem:[%s13471_s0 + $0xc88] ss:$28 sps:$4 sm:$0xff]  }
 0x488   :  { %v9973_v22 = vld [vmem:[%s13471_s0 + $0xcc4] ss:$28 sps:$4 sm:$0xff]  }
 0x489   :  { %13714 = vst [vmem:[#allocation13_spill] sm:$0xff] %v12362_v0  ;;  %v12368_v3 = vadd.f32 %v8901_v17, %v13716_v18  ;;  %4862 = vmatmul.mubr.bf16.gmra.mrb[224].mxu0 %v9966_v54  ;;  %v12376_v20 = vpop.f32.mrb[24].mxu1  ;;  %v9983_v0 = vld [vmem:[%s13471_s0 + $0xd30] ss:$28 sps:$4 sm:$0xff]  }
 0x48a   :  { %4869 = vmatprep.mubr.bf16.mxu0 %v9970_v43  ;;  %v12381_v54 = vpop.f32.mrb[25].mxu1  ;;  %v13720_v43 = vld [vmem:[#allocation20_spill] sm:$0xff] }
 0x48b   :  { %13717 = vst [vmem:[#allocation107_spill] sm:$0xff] %v12368_v3  ;;  %v9975_v3 = vld [vmem:[%s13471_s0 + $0xcc0] ss:$28 sps:$4 sm:$0xff]  }
 0x48c   :  { %v4655_v10 = vpop.f32.mrb[120].mxu0 }
 0x48d   :  { %v8902_v2 = vadd.f32 %v4655_v10, %v13719_v29  ;;  %v4657_v12 = vpop.f32.mrb[121].mxu0  ;;  %v12390_v29 = vpop.f32.mrb[26].mxu1 }
 0x48e   :  { %v4658_v40 = vpop.f32.mrb[122].mxu0  ;;  %v10000_v12 = vld [vmem:[%s13472_s3 + $0x38] sm:$0xff]   ;;  %v12392_v18 = vpop.f32.mrb[27].mxu1 }
 0x48f   :  { %v8903_v63 = vadd.f32 %v4658_v40, %v13720_v43  ;;  %v12385_v17 = vadd.f32 %v8902_v2, %v12011_v28  ;;  %v4660_v10 = vpop.f32.mrb[123].mxu0  ;;  %8519 = vmatpush3.bf16.msra.mxu1 %v10000_v12  ;;  %v13723_v40 = vld [vmem:[#allocation21_spill] sm:$0xff] }
 0x490   :  { %8524 = vmatprep.subr.bf16.mxu1 %v13621_v37 }
 0x491   :  { %13721 = vst [vmem:[#allocation14_spill] sm:$0xff] %v12385_v17  ;;  %v12397_v53 = vadd.f32 %v8903_v63, %v12018_v47  ;;  %4870 = vmatmul.mubr.bf16.gmra.mrb[228].mxu0 %v9972_v58  ;;  %v9978_v47 = vld [vmem:[%s13471_s0 + $0xcfc] ss:$28 sps:$4 sm:$0xff]   ;;  %v13724_v58 = vld [vmem:[#allocation119_spill] sm:$0xff]  ;;  %v13726_v63 = vld [vmem:[#allocation22_spill] sm:$0xff] }
 0x492   :  { %4877 = vmatprep.mubr.bf16.mxu0 %v9973_v22 }
 0x493   :  { %13722 = vst [vmem:[#allocation109_spill] sm:$0xff] %v12397_v53 }
 0x494   :  { %v4663_v2 = vpop.f32.mrb[124].mxu0 }
 0x495   :  { %v8904_v43 = vadd.f32 %v4663_v2, %v13723_v40  ;;  %v4665_v10 = vpop.f32.mrb[125].mxu0  ;;  %v13728_v2 = vld [vmem:[#allocation121_spill] sm:$0xff] }
 0x496   :  { %v4666_v57 = vpop.f32.mrb[126].mxu0  ;;  %v12418_v10 = vpop.f32.mrb[28].mxu1 }
 0x497   :  { %v12410_v22 = vadd.f32 %v8904_v43, %v13724_v58  ;;  %v8905_v12 = vadd.f32 %v4666_v57, %v13726_v63  ;;  %v4668_v17 = vpop.f32.mrb[127].mxu0  ;;  %v12422_v27 = vpop.f32.mrb[29].mxu1  ;;  %v13731_v57 = vld [vmem:[#allocation23_spill] sm:$0xff] }
 0x498   :  { %v12424_v58 = vpop.f32.mrb[30].mxu1 }
 0x499   :  { %13725 = vst [vmem:[#allocation15_spill] sm:$0xff] %v12410_v22  ;;  %v12416_v40 = vadd.f32 %v8905_v12, %v13728_v2  ;;  %4878 = vmatmul.mubr.bf16.gmra.mrb[232].mxu0 %v9975_v3  ;;  %v9980_v12 = vld [vmem:[%s13471_s0 + $0xcf8] ss:$28 sps:$4 sm:$0xff]   ;;  %v12430_v2 = vpop.f32.mrb[31].mxu1 }
 0x49a   :  { %4885 = vmatprep.mubr.bf16.mxu0 %v9978_v47  ;;  %v9981_v47 = vld [vmem:[%s13471_s0 + $0xd34] ss:$28 sps:$4 sm:$0xff]  }
 0x49b   :  { %13729 = vst [vmem:[#allocation16_spill] sm:$0xff] %v12416_v40 }
 0x49c   :  { %v4671_v43 = vpop.f32.mrb[128].mxu0 }
 0x49d   :  { %v8906_v17 = vadd.f32 %v4671_v43, %v13731_v57  ;;  %v4673_v63 = vpop.f32.mrb[129].mxu0 }
 0x49e   :  { %v4674_v3 = vpop.f32.mrb[130].mxu0  ;;  %v13733_v63 = vld [vmem:[#allocation25_spill] sm:$0xff] }
 0x49f   :  { %v8907_v53 = vadd.f32 %v4674_v3, %v13732_v14  ;;  %v12437_v40 = vadd.f32 %v8906_v17, %v12053_v15  ;;  %v4676_v6 = vpop.f32.mrb[131].mxu0  ;;  %v9987_v14 = vld [vmem:[%s13471_s0 + $0xd6c] ss:$28 sps:$4 sm:$0xff]   ;;  %v13734_v15 = vld [vmem:[#allocation125_spill] sm:$0xff] }
 0x4a0   :  { %v13736_v3 = vld [vmem:[#allocation27_spill] sm:$0xff] }
 0x4a1   :  { %v12440_v43 = vadd.f32 %v8907_v53, %v12062_v48  ;;  %4886 = vmatmul.mubr.bf16.gmra.mrb[236].mxu0 %v9980_v12  ;;  %v13735_v48 = vld [vmem:[#allocation26_spill] sm:$0xff] }
 0x4a2   :  { %4893 = vmatprep.mubr.bf16.mxu0 %v9981_v47 }
 0x4a4   :  { %v4679_v57 = vpop.f32.mrb[132].mxu0 }
 0x4a5   :  { %v8908_v22 = vadd.f32 %v4679_v57, %v13733_v63  ;;  %v4681_v28 = vpop.f32.mrb[133].mxu0  ;;  %v12462_v63 = vpop.f32.mrb[32].mxu1 }
 0x4a6   :  { %v4682_v46 = vpop.f32.mrb[134].mxu0  ;;  %13737 = vst [vmem:[#allocation17_spill] sm:$0xff] %v12462_v63 }
 0x4a7   :  { %v12450_v6 = vadd.f32 %v8908_v22, %v13734_v15  ;;  %v8909_v53 = vadd.f32 %v4682_v46, %v13735_v48  ;;  %v4684_v17 = vpop.f32.mrb[135].mxu0  ;;  %v9989_v22 = vld [vmem:[%s13471_s0 + $0xd68] ss:$28 sps:$4 sm:$0xff]  }
 0x4a9   :  { %v12454_v12 = vadd.f32 %v8909_v53, %v12060_v51  ;;  %4894 = vmatmul.mubr.bf16.gmra.mrb[240].mxu0 %v9983_v0  ;;  %v9990_v51 = vld [vmem:[%s13471_s0 + $0xda4] ss:$28 sps:$4 sm:$0xff]   ;;  %v13738_v0 = vld [vmem:[#allocation28_spill] sm:$0xff]  ;;  %v12471_v53 = vpop.f32.mrb[33].mxu1 }
 0x4aa   :  { %4901 = vmatprep.mubr.bf16.mxu0 %v9987_v14  ;;  %v12473_v17 = vpop.f32.mrb[34].mxu1 }
 0x4ab   :  { %13739 = vst [vmem:[#allocation113_spill] sm:$0xff] %v12473_v17  ;;  %v9997_v17 = vld [vmem:[%s13471_s0 + $0xdd8] ss:$28 sps:$4 sm:$0xff]  }
 0x4ac   :  { %v4687_v28 = vpop.f32.mrb[136].mxu0 }
 0x4ad   :  { %v8910_v47 = vadd.f32 %v4687_v28, %v13736_v3  ;;  %v4689_v57 = vpop.f32.mrb[137].mxu0  ;;  %v12478_v3 = vpop.f32.mrb[35].mxu1 }
 0x4ae   :  { %v4690_v46 = vpop.f32.mrb[138].mxu0 }
 0x4af   :  { %v8911_v14 = vadd.f32 %v4690_v46, %v13738_v0  ;;  %v12469_v15 = vadd.f32 %v8910_v47, %v12099_v33  ;;  %v4692_v48 = vpop.f32.mrb[139].mxu0  ;;  %v9992_v33 = vld [vmem:[%s13471_s0 + $0xda0] ss:$28 sps:$4 sm:$0xff]  }
 0x4b0   :  { %v9995_v46 = vld [vmem:[%s13471_s0 + $0xddc] ss:$28 sps:$4 sm:$0xff]  }
 0x4b1   :  { %v12476_v28 = vadd.f32 %v8911_v14, %v12110_v21  ;;  %4902 = vmatmul.mubr.bf16.gmra.mrb[244].mxu0 %v9989_v22  ;;  %v13741_v22 = vld [vmem:[#allocation30_spill] sm:$0xff] }
 0x4b2   :  { %4909 = vmatprep.mubr.bf16.mxu0 %v9990_v51 }
 0x4b4   :  { %v4695_v57 = vpop.f32.mrb[140].mxu0 }
 0x4b5   :  { %v8912_v4 = vadd.f32 %v4695_v57, %v13740_v55  ;;  %v4697_v5 = vpop.f32.mrb[141].mxu0  ;;  %v13742_v55 = vld [vmem:[#allocation31_spill] sm:$0xff] }
 0x4b6   :  { %v4698_v47 = vpop.f32.mrb[142].mxu0 }
 0x4b7   :  { %v12488_v21 = vadd.f32 %v8912_v4, %v12094_v38  ;;  %v8913_v0 = vadd.f32 %v4698_v47, %v13741_v22  ;;  %v4700_v14 = vpop.f32.mrb[143].mxu0  ;;  %v12498_v41 = vpop.f32.mrb[36].mxu1  ;;  %v13744_v38 = vld [vmem:[#allocation32_spill] sm:$0xff] }
 0x4b8   :  { %13743 = vst [vmem:[#allocation18_spill] sm:$0xff] %v12498_v41  ;;  %v12504_v22 = vpop.f32.mrb[37].mxu1 }
 0x4b9   :  { %v12492_v51 = vadd.f32 %v8913_v0, %v12108_v39  ;;  %4910 = vmatmul.mubr.bf16.gmra.mrb[248].mxu0 %v9992_v33  ;;  %v12506_v33 = vpop.f32.mrb[38].mxu1 }
 0x4ba   :  { %4917 = vmatprep.mubr.bf16.mxu0 %v9995_v46  ;;  %13746 = vst [vmem:[#allocation19_spill] sm:$0xff] %v12506_v33  ;;  %v12511_v0 = vpop.f32.mrb[39].mxu1 }
 0x4bb   :  { %13748 = vst [vmem:[#allocation21_spill] sm:$0xff] %v12511_v0 }
 0x4bc   :  { %v4703_v5 = vpop.f32.mrb[144].mxu0 }
 0x4bd   :  { %v8914_v48 = vadd.f32 %v4703_v5, %v13742_v55  ;;  %v4705_v57 = vpop.f32.mrb[145].mxu0  ;;  %v13749_v5 = vld [vmem:[#allocation33_spill] sm:$0xff] }
 0x4be   :  { %v4706_v63 = vpop.f32.mrb[146].mxu0 }
 0x4bf   :  { %v8915_v4 = vadd.f32 %v4706_v63, %v13744_v38  ;;  %v12502_v47 = vadd.f32 %v8914_v48, %v12153_v61  ;;  %v4708_v39 = vpop.f32.mrb[147].mxu0  ;;  %v13750_v61 = vld [vmem:[#allocation34_spill] sm:$0xff] }
 0x4c1   :  { %13745 = vst [vmem:[#allocation115_spill] sm:$0xff] %v12502_v47  ;;  %v12509_v46 = vadd.f32 %v8915_v4, %v12161_v45  ;;  %4918 = vmatmul.mubr.bf16.gmra.mrb[252].mxu0 %v9997_v17  ;;  %v13751_v45 = vld [vmem:[#allocation35_spill] sm:$0xff]  ;;  %v13753_v47 = vld [vmem:[#allocation36_spill] sm:$0xff] }
 0x4c3   :  { %13747 = vst [vmem:[#allocation20_spill] sm:$0xff] %v12509_v46  ;;  %v12522_v0 = vpop.f32.mrb[40].mxu1 }
 0x4c4   :  { %v4711_v14 = vpop.f32.mrb[148].mxu0  ;;  %13752 = vst [vmem:[#allocation119_spill] sm:$0xff] %v12522_v0 }
 0x4c5   :  { %v8916_v55 = vadd.f32 %v4711_v14, %v13749_v5  ;;  %v4713_v57 = vpop.f32.mrb[149].mxu0 }
 0x4c6   :  { %v4714_v41 = vpop.f32.mrb[150].mxu0 }
 0x4c7   :  { %v12515_v63 = vadd.f32 %v8916_v55, %v12148_v49  ;;  %v8917_v48 = vadd.f32 %v4714_v41, %v13750_v61  ;;  %v4716_v38 = vpop.f32.mrb[151].mxu0  ;;  %v12528_v55 = vpop.f32.mrb[41].mxu1  ;;  %v13757_v61 = vld [vmem:[#allocation37_spill] sm:$0xff] }
 0x4c8   :  { %v12530_v41 = vpop.f32.mrb[42].mxu1 }
 0x4c9   :  { %v12519_v39 = vadd.f32 %v8917_v48, %v12159_v52  ;;  %13754 = vst [vmem:[#allocation22_spill] sm:$0xff] %v12530_v41  ;;  %v12535_v57 = vpop.f32.mrb[43].mxu1  ;;  %v13759_v41 = vld [vmem:[#allocation39_spill] sm:$0xff] }
 0x4ca   :  { %13756 = vst [vmem:[#allocation23_spill] sm:$0xff] %v12535_v57  ;;  %v13761_v57 = vld [vmem:[#allocation40_spill] sm:$0xff] }
 0x4cc   :  { %v4719_v33 = vpop.f32.mrb[152].mxu0 }
 0x4cd   :  { %v8918_v4 = vadd.f32 %v4719_v33, %v13751_v45  ;;  %v4721_v17 = vpop.f32.mrb[153].mxu0 }
 0x4ce   :  { %v4722_v46 = vpop.f32.mrb[154].mxu0 }
 0x4cf   :  { %v8919_v14 = vadd.f32 %v4722_v46, %v13753_v47  ;;  %v12526_v5 = vadd.f32 %v8918_v4, %v12197_v19  ;;  %v4724_v49 = vpop.f32.mrb[155].mxu0  ;;  %v13758_v19 = vld [vmem:[#allocation38_spill] sm:$0xff] }
 0x4d1   :  { %v12533_v52 = vadd.f32 %v8919_v14, %v12208_v62 }
 0x4d3   :  { %13755 = vst [vmem:[#allocation121_spill] sm:$0xff] %v12533_v52 }
 0x4d4   :  { %v4727_v33 = vpop.f32.mrb[156].mxu0 }
 0x4d5   :  { %v8920_v48 = vadd.f32 %v4727_v33, %v13757_v61  ;;  %v4729_v38 = vpop.f32.mrb[157].mxu0 }
 0x4d6   :  { %v4730_v45 = vpop.f32.mrb[158].mxu0 }
 0x4d7   :  { %v12539_v47 = vadd.f32 %v8920_v48, %v12192_v35  ;;  %v8921_v46 = vadd.f32 %v4730_v45, %v13758_v19  ;;  %v4732_v4 = vpop.f32.mrb[159].mxu0  ;;  %v12546_v52 = vpop.f32.mrb[44].mxu1  ;;  %v13765_v19 = vld [vmem:[#allocation41_spill] sm:$0xff] }
 0x4d8   :  { %13760 = vst [vmem:[#allocation24_spill] sm:$0xff] %v12546_v52  ;;  %v12552_v48 = vpop.f32.mrb[45].mxu1 }
 0x4d9   :  { %v12543_v17 = vadd.f32 %v8921_v46, %v12206_v13  ;;  %v12554_v38 = vpop.f32.mrb[46].mxu1 }
 0x4da   :  { %13762 = vst [vmem:[#allocation25_spill] sm:$0xff] %v12554_v38  ;;  %v12559_v45 = vpop.f32.mrb[47].mxu1  ;;  %v13767_v38 = vld [vmem:[#allocation43_spill] sm:$0xff] }
 0x4db   :  { %13764 = vst [vmem:[#allocation26_spill] sm:$0xff] %v12559_v45  ;;  %v13769_v45 = vld [vmem:[#allocation44_spill] sm:$0xff] }
 0x4dc   :  { %v4735_v49 = vpop.f32.mrb[160].mxu0 }
 0x4dd   :  { %v8922_v62 = vadd.f32 %v4735_v49, %v13759_v41  ;;  %v4737_v14 = vpop.f32.mrb[161].mxu0 }
 0x4de   :  { %v4738_v0 = vpop.f32.mrb[162].mxu0 }
 0x4df   :  { %v8923_v33 = vadd.f32 %v4738_v0, %v13761_v57  ;;  %v12550_v61 = vadd.f32 %v8922_v62, %v12245_v59  ;;  %v4740_v35 = vpop.f32.mrb[163].mxu0  ;;  %v13766_v59 = vld [vmem:[#allocation42_spill] sm:$0xff] }
 0x4e1   :  { %v12557_v13 = vadd.f32 %v8923_v33, %v12253_v1 }
 0x4e3   :  { %13763 = vst [vmem:[#allocation125_spill] sm:$0xff] %v12557_v13  ;;  %v12570_v13 = vpop.f32.mrb[48].mxu1 }
 0x4e4   :  { %v4743_v41 = vpop.f32.mrb[164].mxu0  ;;  %13768 = vst [vmem:[#allocation27_spill] sm:$0xff] %v12570_v13 }
 0x4e5   :  { %v8924_v46 = vadd.f32 %v4743_v41, %v13765_v19  ;;  %v4745_v4 = vpop.f32.mrb[165].mxu0 }
 0x4e6   :  { %v4746_v49 = vpop.f32.mrb[166].mxu0 }
 0x4e7   :  { %v12563_v0 = vadd.f32 %v8924_v46, %v12240_v23  ;;  %v8925_v57 = vadd.f32 %v4746_v49, %v13766_v59  ;;  %v4748_v62 = vpop.f32.mrb[167].mxu0  ;;  %v12576_v46 = vpop.f32.mrb[49].mxu1  ;;  %v13773_v59 = vld [vmem:[#allocation45_spill] sm:$0xff] }
 0x4e8   :  { %v12578_v4 = vpop.f32.mrb[50].mxu1 }
 0x4e9   :  { %v12567_v14 = vadd.f32 %v8925_v57, %v12251_v34  ;;  %13770 = vst [vmem:[#allocation28_spill] sm:$0xff] %v12578_v4  ;;  %v12583_v49 = vpop.f32.mrb[51].mxu1  ;;  %v13775_v4 = vld [vmem:[#allocation47_spill] sm:$0xff] }
 0x4ea   :  { %13772 = vst [vmem:[#allocation30_spill] sm:$0xff] %v12583_v49  ;;  %v13777_v49 = vld [vmem:[#allocation48_spill] sm:$0xff] }
 0x4ec   :  { %v4751_v35 = vpop.f32.mrb[168].mxu0 }
 0x4ed   :  { %v8926_v1 = vadd.f32 %v4751_v35, %v13767_v38  ;;  %v4753_v33 = vpop.f32.mrb[169].mxu0 }
 0x4ee   :  { %v4754_v52 = vpop.f32.mrb[170].mxu0 }
 0x4ef   :  { %v8927_v41 = vadd.f32 %v4754_v52, %v13769_v45  ;;  %v12574_v19 = vadd.f32 %v8926_v1, %v12289_v31  ;;  %v4756_v23 = vpop.f32.mrb[171].mxu0  ;;  %v13774_v31 = vld [vmem:[#allocation46_spill] sm:$0xff] }
 0x4f1   :  { %v12581_v34 = vadd.f32 %v8927_v41, %v12300_v26 }
 0x4f3   :  { %13771 = vst [vmem:[#allocation29_spill] sm:$0xff] %v12581_v34 }
 0x4f4   :  { %v4759_v38 = vpop.f32.mrb[172].mxu0 }
 0x4f5   :  { %v8928_v57 = vadd.f32 %v4759_v38, %v13773_v59  ;;  %v4761_v62 = vpop.f32.mrb[173].mxu0 }
 0x4f6   :  { %v4762_v35 = vpop.f32.mrb[174].mxu0 }
 0x4f7   :  { %v12587_v52 = vadd.f32 %v8928_v57, %v12284_v8  ;;  %v8929_v45 = vadd.f32 %v4762_v35, %v13774_v31  ;;  %v4764_v1 = vpop.f32.mrb[175].mxu0  ;;  %v13781_v31 = vld [vmem:[#allocation49_spill] sm:$0xff] }
 0x4f9   :  { %v12591_v33 = vadd.f32 %v8929_v45, %v12298_v24  ;;  %v12594_v34 = vpop.f32.mrb[52].mxu1 }
 0x4fa   :  { %13776 = vst [vmem:[#allocation31_spill] sm:$0xff] %v12594_v34  ;;  %v12600_v57 = vpop.f32.mrb[53].mxu1 }
 0x4fb   :  { %v12602_v62 = vpop.f32.mrb[54].mxu1 }
 0x4fc   :  { %v4767_v23 = vpop.f32.mrb[176].mxu0  ;;  %13778 = vst [vmem:[#allocation32_spill] sm:$0xff] %v12602_v62  ;;  %v12607_v35 = vpop.f32.mrb[55].mxu1  ;;  %v13783_v62 = vld [vmem:[#allocation51_spill] sm:$0xff] }
 0x4fd   :  { %v8930_v26 = vadd.f32 %v4767_v23, %v13775_v4  ;;  %v4769_v41 = vpop.f32.mrb[177].mxu0  ;;  %13780 = vst [vmem:[#allocation34_spill] sm:$0xff] %v12607_v35  ;;  %v13785_v35 = vld [vmem:[#allocation52_spill] sm:$0xff] }
 0x4fe   :  { %v4770_v13 = vpop.f32.mrb[178].mxu0 }
 0x4ff   :  { %v8931_v38 = vadd.f32 %v4770_v13, %v13777_v49  ;;  %v12598_v59 = vadd.f32 %v8930_v26, %v12337_v25  ;;  %v4772_v8 = vpop.f32.mrb[179].mxu0  ;;  %v13782_v25 = vld [vmem:[#allocation50_spill] sm:$0xff] }
 0x501   :  { %v12605_v24 = vadd.f32 %v8931_v38, %v12345_v36 }
 0x503   :  { %13779 = vst [vmem:[#allocation33_spill] sm:$0xff] %v12605_v24 }
 0x504   :  { %v4775_v4 = vpop.f32.mrb[180].mxu0 }
 0x505   :  { %v8932_v45 = vadd.f32 %v4775_v4, %v13781_v31  ;;  %v4777_v1 = vpop.f32.mrb[181].mxu0 }
 0x506   :  { %v4778_v23 = vpop.f32.mrb[182].mxu0 }
 0x507   :  { %v12611_v13 = vadd.f32 %v8932_v45, %v12332_v7  ;;  %v8933_v49 = vadd.f32 %v4778_v23, %v13782_v25  ;;  %v4780_v26 = vpop.f32.mrb[183].mxu0  ;;  %v13789_v25 = vld [vmem:[#allocation53_spill] sm:$0xff] }
 0x509   :  { %v12615_v41 = vadd.f32 %v8933_v49, %v12343_v30 }
 0x50a   :  { %v12618_v24 = vpop.f32.mrb[56].mxu1 }
 0x50b   :  { %13784 = vst [vmem:[#allocation35_spill] sm:$0xff] %v12618_v24  ;;  %v12624_v45 = vpop.f32.mrb[57].mxu1 }
 0x50c   :  { %v4783_v8 = vpop.f32.mrb[184].mxu0  ;;  %v12626_v1 = vpop.f32.mrb[58].mxu1 }
 0x50d   :  { %v8934_v36 = vadd.f32 %v4783_v8, %v13783_v62  ;;  %v4785_v38 = vpop.f32.mrb[185].mxu0  ;;  %13786 = vst [vmem:[#allocation36_spill] sm:$0xff] %v12626_v1  ;;  %v12631_v23 = vpop.f32.mrb[59].mxu1  ;;  %v13791_v1 = vld [vmem:[#allocation55_spill] sm:$0xff] }
 0x50e   :  { %v4786_v34 = vpop.f32.mrb[186].mxu0  ;;  %13788 = vst [vmem:[#allocation38_spill] sm:$0xff] %v12631_v23  ;;  %v13792_v23 = vld [vmem:[#allocation56_spill] sm:$0xff] }
 0x50f   :  { %v8935_v4 = vadd.f32 %v4786_v34, %v13785_v35  ;;  %v12622_v31 = vadd.f32 %v8934_v36, %v12381_v54  ;;  %v4788_v7 = vpop.f32.mrb[187].mxu0  ;;  %v13790_v54 = vld [vmem:[#allocation54_spill] sm:$0xff] }
 0x511   :  { %v12629_v30 = vadd.f32 %v8935_v4, %v12392_v18 }
 0x513   :  { %13787 = vst [vmem:[#allocation37_spill] sm:$0xff] %v12629_v30 }
 0x514   :  { %v4791_v62 = vpop.f32.mrb[188].mxu0 }
 0x515   :  { %v8936_v49 = vadd.f32 %v4791_v62, %v13789_v25  ;;  %v4793_v26 = vpop.f32.mrb[189].mxu0 }
 0x516   :  { %v4794_v8 = vpop.f32.mrb[190].mxu0 }
 0x517   :  { %v12635_v34 = vadd.f32 %v8936_v49, %v12376_v20  ;;  %v8937_v35 = vadd.f32 %v4794_v8, %v13790_v54  ;;  %v4796_v36 = vpop.f32.mrb[191].mxu0  ;;  %v12649_v49 = vld [vmem:[%s13473_s2] ss:$0 sm:$0xff] }
 0x519   :  { %v12639_v38 = vadd.f32 %v8937_v35, %v12390_v29  ;;  %v13793_v29 = vld [vmem:[#allocation124_spill] sm:$0xff] }
 0x51a   :  { %v13794_v8 = vmax.f32 %v11726_v44, %v13793_v29 }
 0x51c   :  { %v4799_v7 = vpop.f32.mrb[192].mxu0 }
 0x51d   :  { %v8938_v18 = vadd.f32 %v4799_v7, %v13791_v1  ;;  %v4801_v4 = vpop.f32.mrb[193].mxu0 }
 0x51e   :  { %v4802_v24 = vpop.f32.mrb[194].mxu0 }
 0x51f   :  { %v5345_v30 = vadd.f32 %v8938_v18, %v12422_v27  ;;  %v8939_v62 = vadd.f32 %v4802_v24, %v13792_v23  ;;  %v4804_v25 = vpop.f32.mrb[195].mxu0  ;;  %v13795_v24 = vld [vmem:[#allocation126_spill] sm:$0xff] }
 0x520   :  { %v13796_v23 = vmax.f32 %v11739_v16, %v13795_v24  ;;  %v10001_v16 = vld [vmem:[%s13472_s3 + $0x40] sm:$0xff]  }
 0x521   :  { %v5503_v26 = vmax.f32 %v12437_v40, %v5345_v30  ;;  %v5348_v20 = vadd.f32 %v8939_v62, %v12430_v2  ;;  %v13797_v30 = vld [vmem:[#allocation57_spill] sm:$0xff]  ;;  %v13798_v62 = vld [vmem:[#allocation58_spill] sm:$0xff] }
 0x523   :  { %v5535_v1 = vmax.f32 %v13794_v8, %v5503_v26  ;;  %v5504_v54 = vmax.f32 %v12440_v43, %v5348_v20 }
 0x524   :  { %v4807_v35 = vpop.f32.mrb[196].mxu0 }
 0x525   :  { %v5574_v27 = vadd.f32 %v12649_v49, %v5535_v1  ;;  %v5536_v40 = vmax.f32 %v13796_v23, %v5504_v54  ;;  %v8940_v2 = vadd.f32 %v4807_v35, %v13797_v30  ;;  %v4809_v36 = vpop.f32.mrb[197].mxu0  ;;  %v13799_v1 = vmax.f32 %v11742_v11, %v12074_v9  ;;  %v13801_v23 = vld [vmem:[#allocation59_spill] sm:$0xff] }
 0x526   :  { %v4810_v7 = vpop.f32.mrb[198].mxu0  ;;  %v10002_v11 = vld [vmem:[%s13472_s3 + $0x48] sm:$0xff]  }
 0x527   :  { %v5575_v18 = vadd.f32 %v12649_v49, %v5536_v40  ;;  %v5353_v4 = vadd.f32 %v8940_v2, %v12418_v10  ;;  %v8941_v44 = vadd.f32 %v4810_v7, %v13798_v62  ;;  %v4812_v25 = vpop.f32.mrb[199].mxu0  ;;  %v5606_v26 = vmax.f32 %v5574_v27, 0.0  ;;  %v10003_v62 = vld [vmem:[%s13472_s3 + $0x50] sm:$0xff]  }
 0x528   :  { %v13800_v27 = vmax.f32 %v11751_v32, %v12086_v60  ;;  %v13803_v25 = vmax.f32 %v11760_v56, %v12103_v50  ;;  %v10004_v56 = vld [vmem:[%s13472_s3 + $0x58] sm:$0xff]  }
 0x529   :  { %v5607_v43 = vmax.f32 %v5575_v18, 0.0  ;;  %v5505_v20 = vmax.f32 %v12450_v6, %v5353_v4  ;;  %v5356_v29 = vadd.f32 %v8941_v44, %v12424_v58 }
 0x52b   :  { %v5638_v8 = vpack.c.bf16 %v5607_v43, %v5606_v26  ;;  %v5537_v54 = vmax.f32 %v13799_v1, %v5505_v20  ;;  %v5506_v10 = vmax.f32 %v12454_v12, %v5356_v29  ;;  %v13802_v12 = vld [vmem:[#allocation60_spill] sm:$0xff] }
 0x52c   :  { %v4815_v35 = vpop.f32.mrb[200].mxu0 }
 0x52d   :  { %v5576_v24 = vadd.f32 %v12649_v49, %v5537_v54  ;;  %v5538_v6 = vmax.f32 %v13800_v27, %v5506_v10  ;;  %v8942_v58 = vadd.f32 %v4815_v35, %v13801_v23  ;;  %v4817_v40 = vpop.f32.mrb[201].mxu0  ;;  %8521 = vmatmul.mubr.bf16.vlgmr.msra.gmra.mrb[60].mxu1 %v5638_v8  ;;  %v13808_v35 = vld [vmem:[#allocation62_spill] sm:$0xff] }
 0x52e   :  { %8525 = vmatpush3.bf16.msra.mxu1 %v10001_v16  ;;  %v4818_v30 = vpop.f32.mrb[202].mxu0  ;;  %8540 = vmatprep.mubr.msk.bf16.mxu1 %vm10131_vm0, %v13621_v37  ;;  %v13806_v16 = vld [vmem:[#allocation61_spill] sm:$0xff] }
 0x52f   :  { %v5577_v9 = vadd.f32 %v12649_v49, %v5538_v6  ;;  %v8943_v2 = vadd.f32 %v4818_v30, %v13802_v12  ;;  %v5361_v32 = vadd.f32 %v8942_v58, %v12471_v53  ;;  %v4820_v60 = vpop.f32.mrb[203].mxu0  ;;  %8526 = vmatprep.subr.bf16.mxu1 %v13621_v37  ;;  %v5608_v36 = vmax.f32 %v5576_v24, 0.0  ;;  %v13809_v58 = vld [vmem:[#allocation113_spill] sm:$0xff]  ;;  %v10005_v30 = vld [vmem:[%s13472_s3 + $0x60] sm:$0xff]   ;;  %v13811_v12 = vld [vmem:[#allocation128_spill] sm:$0xff] }
 0x531   :  { %v5609_v7 = vmax.f32 %v5577_v9, 0.0  ;;  %v5507_v18 = vmax.f32 %v12469_v15, %v5361_v32  ;;  %v5364_v4 = vadd.f32 %v8943_v2, %v12478_v3  ;;  %v13804_v3 = vld [vmem:[#allocation127_spill] sm:$0xff] }
 0x532   :  { %8527 = vmatpush3.bf16.msra.mxu1 %v10002_v11  ;;  %v13805_v20 = vmax.f32 %v11774_v42, %v13804_v3  ;;  %v13810_v9 = vld [vmem:[#allocation87_spill] sm:$0xff]  ;;  %v13817_v3 = vld [vmem:[#allocation64_spill] sm:$0xff] }
 0x533   :  { %v12691_v44 = vpack.c.bf16 %v5609_v7, %v5608_v36  ;;  %v5539_v53 = vmax.f32 %v13803_v25, %v5507_v18  ;;  %v5508_v26 = vmax.f32 %v12476_v28, %v5364_v4  ;;  %8528 = vmatprep.subr.bf16.mxu1 %v13621_v37  ;;  %v13807_v28 = vld [vmem:[#allocation17_spill] sm:$0xff]  ;;  %v13812_v2 = vmax.f32 %v13810_v9, %v13811_v12  ;;  %v13813_v7 = vld [vmem:[#allocation88_spill] sm:$0xff]  ;;  %v13816_v25 = vld [vmem:[#allocation63_spill] sm:$0xff] }
 0x534   :  { %v4823_v43 = vpop.f32.mrb[204].mxu0  ;;  %v13814_v18 = vld [vmem:[#allocation129_spill] sm:$0xff]  ;;  %v13825_v9 = vld [vmem:[#allocation131_spill] sm:$0xff] }
 0x535   :  { %v5578_v15 = vadd.f32 %v12649_v49, %v5539_v53  ;;  %v5540_v29 = vmax.f32 %v13805_v20, %v5508_v26  ;;  %v8944_v8 = vadd.f32 %v4823_v43, %v13806_v16  ;;  %v4825_v1 = vpop.f32.mrb[205].mxu0  ;;  %v13815_v4 = vmax.f32 %v13813_v7, %v13814_v18  ;;  %v10008_v7 = vld [vmem:[%s13472_s3 + $0x78] sm:$0xff]  }
 0x536   :  { %8529 = vmatpush3.bf16.msra.mxu1 %v10003_v62  ;;  %v4826_v54 = vpop.f32.mrb[206].mxu0 }
 0x537   :  { %v5579_v50 = vadd.f32 %v12649_v49, %v5540_v29  ;;  %v5369_v10 = vadd.f32 %v8944_v8, %v13807_v28  ;;  %v8945_v24 = vadd.f32 %v4826_v54, %v13808_v35  ;;  %v4828_v27 = vpop.f32.mrb[207].mxu0  ;;  %8530 = vmatprep.subr.bf16.mxu1 %v13621_v37  ;;  %v5610_v42 = vmax.f32 %v5578_v15, 0.0  ;;  %v10006_v15 = vld [vmem:[%s13472_s3 + $0x68] sm:$0xff]  }
 0x538   :  { %v13818_v54 = vld [vmem:[#allocation115_spill] sm:$0xff]  ;;  %v13821_v27 = vld [vmem:[#allocation130_spill] sm:$0xff] }
 0x539   :  { %v5611_v6 = vmax.f32 %v5579_v50, 0.0  ;;  %v5509_v23 = vmax.f32 %v12488_v21, %v5369_v10  ;;  %v5372_v40 = vadd.f32 %v8945_v24, %v13809_v58  ;;  %v13819_v50 = vld [vmem:[#allocation21_spill] sm:$0xff]  ;;  %v10007_v10 = vld [vmem:[%s13472_s3 + $0x70] sm:$0xff]  }
 0x53a   :  { %8531 = vmatpush3.bf16.msra.mxu1 %v10004_v56  ;;  %v13820_v24 = vld [vmem:[#allocation89_spill] sm:$0xff] }
 0x53b   :  { %v12715_v11 = vpack.c.bf16 %v5611_v6, %v5610_v42  ;;  %v5541_v32 = vmax.f32 %v13812_v2, %v5509_v23  ;;  %v5510_v60 = vmax.f32 %v12492_v51, %v5372_v40  ;;  %8532 = vmatprep.subr.bf16.mxu1 %v13621_v37  ;;  %v13822_v42 = vmax.f32 %v13820_v24, %v13821_v27  ;;  %v13823_v6 = vld [vmem:[#allocation20_spill] sm:$0xff]  ;;  %v13835_v24 = vld [vmem:[#allocation2_spill] sm:$0xff] }
 0x53c   :  { %v4831_v36 = vpop.f32.mrb[208].mxu0 }
 0x53d   :  { %v5580_v21 = vadd.f32 %v12649_v49, %v5541_v32  ;;  %v5542_v62 = vmax.f32 %v13815_v4, %v5510_v60  ;;  %v8946_v53 = vadd.f32 %v4831_v36, %v13816_v25  ;;  %v4833_v26 = vpop.f32.mrb[209].mxu0  ;;  %v13827_v32 = vld [vmem:[#allocation65_spill] sm:$0xff]  ;;  %v13828_v4 = vld [vmem:[#allocation18_spill] sm:$0xff] }
 0x53e   :  { %8533 = vmatpush3.bf16.msra.mxu1 %v10005_v30  ;;  %v4834_v43 = vpop.f32.mrb[210].mxu0  ;;  %v13824_v30 = vld [vmem:[#allocation91_spill] sm:$0xff]  ;;  %v13829_v25 = vld [vmem:[#allocation66_spill] sm:$0xff] }
 0x53f   :  { %v5581_v51 = vadd.f32 %v12649_v49, %v5542_v62  ;;  %v8947_v20 = vadd.f32 %v4834_v43, %v13817_v3  ;;  %v5377_v29 = vadd.f32 %v8946_v53, %v12504_v22  ;;  %v4836_v16 = vpop.f32.mrb[211].mxu0  ;;  %8534 = vmatprep.subr.bf16.mxu1 %v13621_v37  ;;  %v5612_v8 = vmax.f32 %v5580_v21, 0.0  ;;  %v13830_v3 = vld [vmem:[#allocation19_spill] sm:$0xff] }
 0x540   :  { %v13826_v12 = vmax.f32 %v13824_v30, %v13825_v9  ;;  %v13838_v30 = vld [vmem:[#allocation68_spill] sm:$0xff] }
 0x541   :  { %v5613_v1 = vmax.f32 %v5581_v51, 0.0  ;;  %v5511_v56 = vmax.f32 %v13818_v54, %v5377_v29  ;;  %v5380_v28 = vadd.f32 %v8947_v20, %v13819_v50  ;;  %v10009_v29 = vld [vmem:[%s13472_s3 + $0x80] sm:$0xff]  }
 0x542   :  { %8535 = vmatpush3.bf16.msra.mxu1 %v10006_v15 }
 0x543   :  { %v12739_v35 = vpack.c.bf16 %v5613_v1, %v5612_v8  ;;  %v5543_v22 = vmax.f32 %v13822_v42, %v5511_v56  ;;  %v5512_v23 = vmax.f32 %v13823_v6, %v5380_v28  ;;  %8536 = vmatprep.subr.bf16.mxu1 %v13621_v37  ;;  %v13831_v8 = vld [vmem:[#allocation93_spill] sm:$0xff]  ;;  %v13832_v1 = vld [vmem:[#allocation90_spill] sm:$0xff] }
 0x544   :  { %v4839_v58 = vpop.f32.mrb[212].mxu0  ;;  %v13833_v54 = vmax.f32 %v13831_v8, %v13832_v1 }
 0x545   :  { %v5582_v40 = vadd.f32 %v12649_v49, %v5543_v22  ;;  %v5544_v2 = vmax.f32 %v13826_v12, %v5512_v23  ;;  %v8948_v60 = vadd.f32 %v4839_v58, %v13827_v32  ;;  %v4841_v36 = vpop.f32.mrb[213].mxu0  ;;  %v13837_v22 = vld [vmem:[#allocation67_spill] sm:$0xff] }
 0x546   :  { %8537 = vmatpush3.bf16.msra.mxu1 %v10007_v10  ;;  %v4842_v21 = vpop.f32.mrb[214].mxu0  ;;  %v13834_v10 = vld [vmem:[#allocation94_spill] sm:$0xff]  ;;  %v13839_v36 = vld [vmem:[#allocation23_spill] sm:$0xff] }
 0x547   :  { %v5583_v18 = vadd.f32 %v12649_v49, %v5544_v2  ;;  %v5385_v62 = vadd.f32 %v8948_v60, %v13828_v4  ;;  %v8949_v53 = vadd.f32 %v4842_v21, %v13829_v25  ;;  %v4844_v26 = vpop.f32.mrb[215].mxu0  ;;  %8538 = vmatprep.subr.bf16.mxu1 %v13621_v37  ;;  %v5614_v43 = vmax.f32 %v5582_v40, 0.0  ;;  %v13840_v4 = vld [vmem:[#allocation95_spill] sm:$0xff] }
 0x548   :  { %v13836_v27 = vmax.f32 %v13834_v10, %v13835_v24  ;;  %v13849_v10 = vld [vmem:[#allocation70_spill] sm:$0xff] }
 0x549   :  { %v5615_v15 = vmax.f32 %v5583_v18, 0.0  ;;  %v5513_v51 = vmax.f32 %v12515_v63, %v5385_v62  ;;  %v5388_v20 = vadd.f32 %v8949_v53, %v13830_v3  ;;  %v13841_v62 = vld [vmem:[#allocation92_spill] sm:$0xff]  ;;  %v13843_v53 = vld [vmem:[#allocation121_spill] sm:$0xff] }
 0x54a   :  { %8539 = vmatpush3.bf16.msra.mxu1 %v10008_v7  ;;  %v10011_v7 = vld [vmem:[%s13472_s3 + $0x90] sm:$0xff]   ;;  %v13842_v25 = vmax.f32 %v13840_v4, %v13841_v62  ;;  %v13857_v4 = vld [vmem:[#allocation71_spill] sm:$0xff] }
 0x54b   :  { %v12763_v16 = vpack.c.bf16 %v5615_v15, %v5614_v43  ;;  %v5545_v56 = vmax.f32 %v13833_v54, %v5513_v51  ;;  %v5514_v50 = vmax.f32 %v12519_v39, %v5388_v20  ;;  %8544 = vmatprep.subr.bf16.mxu1 %v13621_v37  ;;  %v10010_v39 = vld [vmem:[%s13472_s3 + $0x88] sm:$0xff]   ;;  %v13844_v15 = vld [vmem:[#allocation96_spill] sm:$0xff] }
 0x54c   :  { %v4847_v28 = vpop.f32.mrb[216].mxu0  ;;  %v13845_v51 = vld [vmem:[#allocation3_spill] sm:$0xff] }
 0x54d   :  { %v5584_v63 = vadd.f32 %v12649_v49, %v5545_v56  ;;  %v5546_v42 = vmax.f32 %v13836_v27, %v5514_v50  ;;  %v8950_v6 = vadd.f32 %v4847_v28, %v13837_v22  ;;  %8541 = vmatmul.mubr.bf16.vlgmr.msra.gmra.mrb[64].mxu1 %v12691_v44  ;;  %v4849_v23 = vpop.f32.mrb[217].mxu0  ;;  %v13846_v3 = vmax.f32 %v13844_v15, %v13845_v51  ;;  %v10012_v56 = vld [vmem:[%s13472_s3 + $0x98] sm:$0xff]   ;;  %v13848_v28 = vld [vmem:[#allocation119_spill] sm:$0xff] }
 0x54e   :  { %8545 = vmatpush3.bf16.msra.mxu1 %v10009_v29  ;;  %v4850_v58 = vpop.f32.mrb[218].mxu0  ;;  %8560 = vmatprep.mubr.msk.bf16.mxu1 %vm10131_vm0, %v13621_v37  ;;  %v13847_v29 = vld [vmem:[#allocation69_spill] sm:$0xff]  ;;  %v13850_v23 = vld [vmem:[#allocation22_spill] sm:$0xff] }
 0x54f   :  { %v5585_v40 = vadd.f32 %v12649_v49, %v5546_v42  ;;  %v8951_v9 = vadd.f32 %v4850_v58, %v13838_v30  ;;  %v5393_v12 = vadd.f32 %v8950_v6, %v12528_v55  ;;  %v4852_v2 = vpop.f32.mrb[219].mxu0  ;;  %8546 = vmatprep.subr.bf16.mxu1 %v13621_v37  ;;  %v5616_v44 = vmax.f32 %v5584_v63, 0.0  ;;  %v13851_v30 = vld [vmem:[#allocation98_spill] sm:$0xff] }
 0x551   :  { %v5617_v32 = vmax.f32 %v5585_v40, 0.0  ;;  %v5515_v60 = vmax.f32 %v12526_v5, %v5393_v12  ;;  %v5396_v21 = vadd.f32 %v8951_v9, %v13839_v36  ;;  %v13852_v9 = vld [vmem:[#allocation4_spill] sm:$0xff]  ;;  %v13855_v36 = vld [vmem:[#allocation5_spill] sm:$0xff] }
 0x552   :  { %8547 = vmatpush3.bf16.msra.mxu1 %v10010_v39  ;;  %v10013_v39 = vld [vmem:[%s13472_s3 + $0xa0] sm:$0xff]   ;;  %v13853_v12 = vmax.f32 %v13851_v30, %v13852_v9  ;;  %v10016_v9 = vld [vmem:[%s13472_s3 + $0xb8] sm:$0xff]  }
 0x553   :  { %v12790_v18 = vpack.c.bf16 %v5617_v32, %v5616_v44  ;;  %v5547_v55 = vmax.f32 %v13842_v25, %v5515_v60  ;;  %v5516_v26 = vmax.f32 %v13843_v53, %v5396_v21  ;;  %8548 = vmatprep.subr.bf16.mxu1 %v13621_v37  ;;  %v13854_v60 = vld [vmem:[#allocation99_spill] sm:$0xff] }
 0x554   :  { %v4855_v43 = vpop.f32.mrb[220].mxu0  ;;  %v13856_v21 = vmax.f32 %v13854_v60, %v13855_v36  ;;  %v10014_v53 = vld [vmem:[%s13472_s3 + $0xa8] sm:$0xff]  }
 0x555   :  { %v5586_v5 = vadd.f32 %v12649_v49, %v5547_v55  ;;  %v5548_v20 = vmax.f32 %v13846_v3, %v5516_v26  ;;  %v8952_v8 = vadd.f32 %v4855_v43, %v13847_v29  ;;  %v4857_v1 = vpop.f32.mrb[221].mxu0  ;;  %v13858_v26 = vld [vmem:[#allocation72_spill] sm:$0xff]  ;;  %v13859_v29 = vld [vmem:[#allocation26_spill] sm:$0xff] }
 0x556   :  { %8549 = vmatpush3.bf16.msra.mxu1 %v10011_v7  ;;  %v4858_v54 = vpop.f32.mrb[222].mxu0  ;;  %v10015_v1 = vld [vmem:[%s13472_s3 + $0xb0] sm:$0xff]  }
 0x557   :  { %v5587_v50 = vadd.f32 %v12649_v49, %v5548_v20  ;;  %v5401_v63 = vadd.f32 %v8952_v8, %v13848_v28  ;;  %v8953_v24 = vadd.f32 %v4858_v54, %v13849_v10  ;;  %v4860_v27 = vpop.f32.mrb[223].mxu0  ;;  %8550 = vmatprep.subr.bf16.mxu1 %v13621_v37  ;;  %v5618_v42 = vmax.f32 %v5586_v5, 0.0 }
 0x558   :  { %v13864_v27 = vld [vmem:[#allocation102_spill] sm:$0xff] }
 0x559   :  { %v5619_v22 = vmax.f32 %v5587_v50, 0.0  ;;  %v5517_v6 = vmax.f32 %v12539_v47, %v5401_v63  ;;  %v5404_v58 = vadd.f32 %v8953_v24, %v13850_v23  ;;  %v13861_v50 = vld [vmem:[#allocation6_spill] sm:$0xff]  ;;  %v13863_v63 = vld [vmem:[#allocation125_spill] sm:$0xff] }
 0x55a   :  { %8551 = vmatpush3.bf16.msra.mxu1 %v10012_v56  ;;  %v13860_v56 = vld [vmem:[#allocation100_spill] sm:$0xff]  ;;  %v13867_v23 = vld [vmem:[#allocation73_spill] sm:$0xff] }
 0x55b   :  { %v12814_v40 = vpack.c.bf16 %v5619_v22, %v5618_v42  ;;  %v5549_v2 = vmax.f32 %v13853_v12, %v5517_v6  ;;  %v5518_v44 = vmax.f32 %v12543_v17, %v5404_v58  ;;  %8552 = vmatprep.subr.bf16.mxu1 %v13621_v37  ;;  %v13862_v28 = vmax.f32 %v13860_v56, %v13861_v50  ;;  %v13865_v42 = vld [vmem:[#allocation97_spill] sm:$0xff] }
 0x55c   :  { %v4863_v32 = vpop.f32.mrb[224].mxu0  ;;  %v13866_v22 = vmax.f32 %v13864_v27, %v13865_v42  ;;  %v13879_v42 = vld [vmem:[#allocation30_spill] sm:$0xff] }
 0x55d   :  { %v5588_v47 = vadd.f32 %v12649_v49, %v5549_v2  ;;  %v5550_v7 = vmax.f32 %v13856_v21, %v5518_v44  ;;  %v8954_v62 = vadd.f32 %v4863_v32, %v13857_v4  ;;  %v4865_v25 = vpop.f32.mrb[225].mxu0  ;;  %v13868_v2 = vld [vmem:[#allocation24_spill] sm:$0xff]  ;;  %v13869_v32 = vld [vmem:[#allocation74_spill] sm:$0xff]  ;;  %v13870_v4 = vld [vmem:[#allocation25_spill] sm:$0xff] }
 0x55e   :  { %8553 = vmatpush3.bf16.msra.mxu1 %v10013_v39  ;;  %v4866_v55 = vpop.f32.mrb[226].mxu0  ;;  %v10017_v25 = vld [vmem:[%s13472_s3 + $0xc0] sm:$0xff]  }
 0x55f   :  { %v5589_v17 = vadd.f32 %v12649_v49, %v5550_v7  ;;  %v8955_v43 = vadd.f32 %v4866_v55, %v13858_v26  ;;  %v5409_v5 = vadd.f32 %v8954_v62, %v12552_v48  ;;  %v4868_v15 = vpop.f32.mrb[227].mxu0  ;;  %8554 = vmatprep.subr.bf16.mxu1 %v13621_v37  ;;  %v5620_v51 = vmax.f32 %v5588_v47, 0.0 }
 0x561   :  { %v5621_v3 = vmax.f32 %v5589_v17, 0.0  ;;  %v5519_v20 = vmax.f32 %v12550_v61, %v5409_v5  ;;  %v5412_v8 = vadd.f32 %v8955_v43, %v13859_v29  ;;  %v13872_v17 = vld [vmem:[#allocation7_spill] sm:$0xff] }
 0x562   :  { %8555 = vmatpush3.bf16.msra.mxu1 %v10014_v53  ;;  %v13871_v53 = vld [vmem:[#allocation104_spill] sm:$0xff] }
 0x563   :  { %v12838_v54 = vpack.c.bf16 %v5621_v3, %v5620_v51  ;;  %v5551_v48 = vmax.f32 %v13862_v28, %v5519_v20  ;;  %v5520_v10 = vmax.f32 %v13863_v63, %v5412_v8  ;;  %8556 = vmatprep.subr.bf16.mxu1 %v13621_v37  ;;  %v13873_v26 = vmax.f32 %v13871_v53, %v13872_v17  ;;  %v13874_v51 = vld [vmem:[#allocation105_spill] sm:$0xff]  ;;  %v13875_v3 = vld [vmem:[#allocation8_spill] sm:$0xff]  ;;  %v13877_v8 = vld [vmem:[#allocation75_spill] sm:$0xff] }
 0x564   :  { %v4871_v24 = vpop.f32.mrb[228].mxu0  ;;  %v13876_v20 = vmax.f32 %v13874_v51, %v13875_v3  ;;  %v13888_v53 = vld [vmem:[#allocation27_spill] sm:$0xff]  ;;  %v13890_v3 = vld [vmem:[#allocation28_spill] sm:$0xff] }
 0x565   :  { %v5590_v61 = vadd.f32 %v12649_v49, %v5551_v48  ;;  %v5552_v6 = vmax.f32 %v13866_v22, %v5520_v10  ;;  %v8956_v58 = vadd.f32 %v4871_v24, %v13867_v23  ;;  %v4873_v39 = vpop.f32.mrb[229].mxu0  ;;  %v13878_v48 = vld [vmem:[#allocation76_spill] sm:$0xff] }
 0x566   :  { %8557 = vmatpush3.bf16.msra.mxu1 %v10015_v1  ;;  %v4874_v30 = vpop.f32.mrb[230].mxu0  ;;  %v13881_v39 = vld [vmem:[#allocation9_spill] sm:$0xff] }
 0x567   :  { %v5591_v12 = vadd.f32 %v12649_v49, %v5552_v6  ;;  %v5417_v44 = vadd.f32 %v8956_v58, %v13868_v2  ;;  %v8957_v47 = vadd.f32 %v4874_v30, %v13869_v32  ;;  %v4876_v60 = vpop.f32.mrb[231].mxu0  ;;  %8558 = vmatprep.subr.bf16.mxu1 %v13621_v37  ;;  %v5622_v36 = vmax.f32 %v5590_v61, 0.0  ;;  %v10019_v6 = vld [vmem:[%s13472_s3 + $0xd0] sm:$0xff]   ;;  %v13880_v58 = vld [vmem:[#allocation106_spill] sm:$0xff]  ;;  %v13885_v32 = vld [vmem:[#allocation101_spill] sm:$0xff] }
 0x568   :  { %v13882_v30 = vmax.f32 %v13880_v58, %v13881_v39  ;;  %v13898_v58 = vld [vmem:[#allocation80_spill] sm:$0xff] }
 0x569   :  { %v5623_v21 = vmax.f32 %v5591_v12, 0.0  ;;  %v5521_v7 = vmax.f32 %v12563_v0, %v5417_v44  ;;  %v5420_v62 = vadd.f32 %v8957_v47, %v13870_v4  ;;  %v13884_v44 = vld [vmem:[#allocation108_spill] sm:$0xff] }
 0x56a   :  { %8559 = vmatpush3.bf16.msra.mxu1 %v10016_v9  ;;  %v13883_v9 = vld [vmem:[#allocation29_spill] sm:$0xff]  ;;  %v13886_v47 = vmax.f32 %v13884_v44, %v13885_v32  ;;  %v10023_v32 = vld [vmem:[%s13472_s3 + $0xf0] sm:$0xff]  }
 0x56b   :  { %v12862_v55 = vpack.c.bf16 %v5623_v21, %v5622_v36  ;;  %v5553_v43 = vmax.f32 %v13873_v26, %v5521_v7  ;;  %v5522_v5 = vmax.f32 %v12567_v14, %v5420_v62  ;;  %8564 = vmatprep.subr.bf16.mxu1 %v13621_v37  ;;  %v10018_v14 = vld [vmem:[%s13472_s3 + $0xc8] sm:$0xff]   ;;  %v13887_v36 = vld [vmem:[#allocation77_spill] sm:$0xff]  ;;  %v13889_v26 = vld [vmem:[#allocation78_spill] sm:$0xff] }
 0x56c   :  { %v4879_v15 = vpop.f32.mrb[232].mxu0  ;;  %v10020_v62 = vld [vmem:[%s13472_s3 + $0xd8] sm:$0xff]  }
 0x56d   :  { %v5592_v0 = vadd.f32 %v12649_v49, %v5553_v43  ;;  %v5554_v29 = vmax.f32 %v13876_v20, %v5522_v5  ;;  %v8958_v1 = vadd.f32 %v4879_v15, %v13877_v8  ;;  %8561 = vmatmul.mubr.bf16.vlgmr.msra.gmra.mrb[68].mxu1 %v12715_v11  ;;  %v4881_v56 = vpop.f32.mrb[233].mxu0 }
 0x56e   :  { %8565 = vmatpush3.bf16.msra.mxu1 %v10017_v25  ;;  %v4882_v50 = vpop.f32.mrb[234].mxu0  ;;  %8580 = vmatprep.mubr.msk.bf16.mxu1 %vm10131_vm0, %v13621_v37  ;;  %v13892_v56 = vld [vmem:[#allocation10_spill] sm:$0xff] }
 0x56f   :  { %v5593_v28 = vadd.f32 %v12649_v49, %v5554_v29  ;;  %v8959_v63 = vadd.f32 %v4882_v50, %v13878_v48  ;;  %v5425_v10 = vadd.f32 %v8958_v1, %v12576_v46  ;;  %v4884_v24 = vpop.f32.mrb[235].mxu0  ;;  %8566 = vmatprep.subr.bf16.mxu1 %v13621_v37  ;;  %v5624_v11 = vmax.f32 %v5592_v0, 0.0  ;;  %v10021_v29 = vld [vmem:[%s13472_s3 + $0xe0] sm:$0xff]  }
 0x570   :  { %v13891_v1 = vld [vmem:[#allocation110_spill] sm:$0xff] }
 0x571   :  { %v5625_v61 = vmax.f32 %v5593_v28, 0.0  ;;  %v5523_v27 = vmax.f32 %v12574_v19, %v5425_v10  ;;  %v5428_v22 = vadd.f32 %v8959_v63, %v13879_v42  ;;  %v13893_v50 = vmax.f32 %v13891_v1, %v13892_v56  ;;  %v13894_v63 = vld [vmem:[#allocation111_spill] sm:$0xff]  ;;  %v13909_v1 = vld [vmem:[#allocation82_spill] sm:$0xff] }
 0x572   :  { %8567 = vmatpush3.bf16.msra.mxu1 %v10018_v14  ;;  %v13895_v10 = vld [vmem:[#allocation103_spill] sm:$0xff] }
 0x573   :  { %v12889_v23 = vpack.c.bf16 %v5625_v61, %v5624_v11  ;;  %v5555_v46 = vmax.f32 %v13882_v30, %v5523_v27  ;;  %v5524_v12 = vmax.f32 %v13883_v9, %v5428_v22  ;;  %8568 = vmatprep.subr.bf16.mxu1 %v13621_v37  ;;  %v13896_v24 = vmax.f32 %v13894_v63, %v13895_v10  ;;  %v13897_v61 = vld [vmem:[#allocation79_spill] sm:$0xff]  ;;  %v10025_v10 = vld [vmem:[%s13472_s3 + $0x100] sm:$0xff]  }
 0x574   :  { %v4887_v2 = vpop.f32.mrb[236].mxu0 }
 0x575   :  { %v5594_v19 = vadd.f32 %v12649_v49, %v5555_v46  ;;  %v5556_v60 = vmax.f32 %v13886_v47, %v5524_v12  ;;  %v8960_v21 = vadd.f32 %v4887_v2, %v13887_v36  ;;  %v4889_v7 = vpop.f32.mrb[237].mxu0  ;;  %v13901_v36 = vld [vmem:[#allocation11_spill] sm:$0xff] }
 0x576   :  { %8569 = vmatpush3.bf16.msra.mxu1 %v10019_v6  ;;  %v4890_v4 = vpop.f32.mrb[238].mxu0  ;;  %v10022_v6 = vld [vmem:[%s13472_s3 + $0xe8] sm:$0xff]   ;;  %v13903_v7 = vld [vmem:[#allocation33_spill] sm:$0xff] }
 0x577   :  { %v5595_v25 = vadd.f32 %v12649_v49, %v5556_v60  ;;  %v5433_v17 = vadd.f32 %v8960_v21, %v13888_v53  ;;  %v8961_v43 = vadd.f32 %v4890_v4, %v13889_v26  ;;  %v4892_v5 = vpop.f32.mrb[239].mxu0  ;;  %8570 = vmatprep.subr.bf16.mxu1 %v13621_v37  ;;  %v5626_v15 = vmax.f32 %v5594_v19, 0.0  ;;  %v13899_v19 = vld [vmem:[#allocation34_spill] sm:$0xff]  ;;  %v13900_v60 = vld [vmem:[#allocation112_spill] sm:$0xff] }
 0x578   :  { %v13902_v21 = vmax.f32 %v13900_v60, %v13901_v36  ;;  %v13905_v53 = vld [vmem:[#allocation12_spill] sm:$0xff] }
 0x579   :  { %v5627_v0 = vmax.f32 %v5595_v25, 0.0  ;;  %v5525_v51 = vmax.f32 %v12587_v52, %v5433_v17  ;;  %v5436_v20 = vadd.f32 %v8961_v43, %v13890_v3  ;;  %v13904_v25 = vld [vmem:[#allocation114_spill] sm:$0xff]  ;;  %v13907_v43 = vld [vmem:[#allocation81_spill] sm:$0xff] }
 0x57a   :  { %8571 = vmatpush3.bf16.msra.mxu1 %v10020_v62  ;;  %v13906_v17 = vmax.f32 %v13904_v25, %v13905_v53  ;;  %v13920_v25 = vld [vmem:[#allocation118_spill] sm:$0xff] }
 0x57b   :  { %v12913_v8 = vpack.c.bf16 %v5627_v0, %v5626_v15  ;;  %v5557_v14 = vmax.f32 %v13893_v50, %v5525_v51  ;;  %v5526_v28 = vmax.f32 %v12591_v33, %v5436_v20  ;;  %8572 = vmatprep.subr.bf16.mxu1 %v13621_v37  ;;  %v10024_v51 = vld [vmem:[%s13472_s3 + $0xf8] sm:$0xff]   ;;  %v13908_v20 = vld [vmem:[#allocation31_spill] sm:$0xff]  ;;  %v13921_v53 = vld [vmem:[#allocation14_spill] sm:$0xff] }
 0x57c   :  { %v4895_v48 = vpop.f32.mrb[240].mxu0 }
 0x57d   :  { %v5596_v52 = vadd.f32 %v12649_v49, %v5557_v14  ;;  %v5558_v11 = vmax.f32 %v13896_v24, %v5526_v28  ;;  %v8962_v27 = vadd.f32 %v4895_v48, %v13897_v61  ;;  %v4897_v42 = vpop.f32.mrb[241].mxu0  ;;  %v13912_v61 = vld [vmem:[#allocation13_spill] sm:$0xff] }
 0x57e   :  { %8573 = vmatpush3.bf16.msra.mxu1 %v10021_v29  ;;  %v4898_v22 = vpop.f32.mrb[242].mxu0 }
 0x57f   :  { %v5597_v33 = vadd.f32 %v12649_v49, %v5558_v11  ;;  %v8963_v39 = vadd.f32 %v4898_v22, %v13898_v58  ;;  %v5441_v30 = vadd.f32 %v8962_v27, %v12600_v57  ;;  %v4900_v46 = vpop.f32.mrb[243].mxu0  ;;  %8574 = vmatprep.subr.bf16.mxu1 %v13621_v37  ;;  %v5628_v9 = vmax.f32 %v5596_v52, 0.0  ;;  %v13910_v52 = vld [vmem:[#allocation32_spill] sm:$0xff]  ;;  %v13915_v58 = vld [vmem:[#allocation107_spill] sm:$0xff] }
 0x580   :  { %v13911_v11 = vld [vmem:[#allocation116_spill] sm:$0xff]  ;;  %v13917_v46 = vld [vmem:[#allocation83_spill] sm:$0xff] }
 0x581   :  { %v5629_v12 = vmax.f32 %v5597_v33, 0.0  ;;  %v5527_v2 = vmax.f32 %v12598_v59, %v5441_v30  ;;  %v5444_v44 = vadd.f32 %v8963_v39, %v13899_v19  ;;  %v13913_v27 = vmax.f32 %v13911_v11, %v13912_v61  ;;  %v13914_v33 = vld [vmem:[#allocation117_spill] sm:$0xff] }
 0x582   :  { %8575 = vmatpush3.bf16.msra.mxu1 %v10022_v6  ;;  %v13916_v39 = vmax.f32 %v13914_v33, %v13915_v58  ;;  %v13931_v33 = vld [vmem:[#allocation122_spill] sm:$0xff]  ;;  %v13932_v58 = vld [vmem:[#allocation15_spill] sm:$0xff] }
 0x583   :  { %v12937_v47 = vpack.c.bf16 %v5629_v12, %v5628_v9  ;;  %v5559_v57 = vmax.f32 %v13902_v21, %v5527_v2  ;;  %v5528_v4 = vmax.f32 %v13903_v7, %v5444_v44  ;;  %8576 = vmatprep.subr.bf16.mxu1 %v13621_v37  ;;  %v13918_v44 = vld [vmem:[#allocation84_spill] sm:$0xff]  ;;  %v13919_v7 = vld [vmem:[#allocation38_spill] sm:$0xff] }
 0x584   :  { %v4903_v62 = vpop.f32.mrb[244].mxu0 }
 0x585   :  { %v5598_v59 = vadd.f32 %v12649_v49, %v5559_v57  ;;  %v5560_v26 = vmax.f32 %v13906_v17, %v5528_v4  ;;  %v8964_v5 = vadd.f32 %v4903_v62, %v13907_v43  ;;  %v4905_v15 = vpop.f32.mrb[245].mxu0  ;;  %v10027_v62 = vld [vmem:[%s13472_s3 + $0x110] sm:$0xff]   ;;  %v13922_v17 = vmax.f32 %v13920_v25, %v13921_v53  ;;  %v10040_v25 = vld [vmem:[%s13472_s3 + $0x178] sm:$0xff]   ;;  %v10041_v53 = vld [vmem:[%s13472_s3 + $0x180] sm:$0xff]  }
 0x586   :  { %8577 = vmatpush3.bf16.msra.mxu1 %v10023_v32  ;;  %v4906_v0 = vpop.f32.mrb[246].mxu0  ;;  %v13924_v15 = vld [vmem:[#allocation120_spill] sm:$0xff] }
 0x587   :  { %v5599_v3 = vadd.f32 %v12649_v49, %v5560_v26  ;;  %v5449_v29 = vadd.f32 %v8964_v5, %v13908_v20  ;;  %v8965_v56 = vadd.f32 %v4906_v0, %v13909_v1  ;;  %v4908_v50 = vpop.f32.mrb[247].mxu0  ;;  %8578 = vmatprep.subr.bf16.mxu1 %v13621_v37  ;;  %v5630_v14 = vmax.f32 %v5598_v59, 0.0  ;;  %v13923_v26 = vld [vmem:[#allocation37_spill] sm:$0xff] }
 0x588   :  { %v13925_v0 = vld [vmem:[#allocation109_spill] sm:$0xff] }
 0x589   :  { %v5631_v28 = vmax.f32 %v5599_v3, 0.0  ;;  %v5529_v48 = vmax.f32 %v12611_v13, %v5449_v29  ;;  %v5452_v63 = vadd.f32 %v8965_v56, %v13910_v52  ;;  %v13927_v20 = vld [vmem:[#allocation85_spill] sm:$0xff]  ;;  %v13929_v52 = vld [vmem:[#allocation86_spill] sm:$0xff] }
 0x58a   :  { %8579 = vmatpush3.bf16.msra.mxu1 %v10024_v51  ;;  %v13926_v51 = vmax.f32 %v13924_v15, %v13925_v0  ;;  %v10028_v50 = vld [vmem:[%s13472_s3 + $0x118] sm:$0xff]   ;;  %v10049_v15 = vld [vmem:[%s13472_s3 + $0x1c0] sm:$0xff]   ;;  %v10050_v0 = vld [vmem:[%s13472_s3 + $0x1c8] sm:$0xff]  }
 0x58b   :  { %v12961_v24 = vpack.c.bf16 %v5631_v28, %v5630_v14  ;;  %v5561_v42 = vmax.f32 %v13913_v27, %v5529_v48  ;;  %v5530_v22 = vmax.f32 %v12615_v41, %v5452_v63  ;;  %8584 = vmatprep.subr.bf16.mxu1 %v13621_v37  ;;  %v10026_v41 = vld [vmem:[%s13472_s3 + $0x108] sm:$0xff]  }
 0x58c   :  { %v4911_v6 = vpop.f32.mrb[248].mxu0  ;;  %v13928_v28 = vld [vmem:[#allocation35_spill] sm:$0xff] }
 0x58d   :  { %v5600_v13 = vadd.f32 %v12649_v49, %v5561_v42  ;;  %v5562_v30 = vmax.f32 %v13916_v39, %v5530_v22  ;;  %v8966_v9 = vadd.f32 %v4911_v6, %v13917_v46  ;;  %8581 = vmatmul.mubr.bf16.vlgmr.msra.gmra.mrb[72].mxu1 %v12739_v35  ;;  %v4913_v12 = vpop.f32.mrb[249].mxu0  ;;  %v13930_v42 = vld [vmem:[#allocation36_spill] sm:$0xff]  ;;  %v10029_v6 = vld [vmem:[%s13472_s3 + $0x120] sm:$0xff]   ;;  %v13933_v39 = vmax.f32 %v13931_v33, %v13932_v58 }
 0x58e   :  { %8585 = vmatpush3.bf16.msra.mxu1 %v10025_v10  ;;  %v4914_v2 = vpop.f32.mrb[250].mxu0  ;;  %8600 = vmatprep.mubr.msk.bf16.mxu1 %vm10131_vm0, %v13621_v37  ;;  %v13935_v12 = vld [vmem:[#allocation16_spill] sm:$0xff] }
 0x58f   :  { %v5601_v19 = vadd.f32 %v12649_v49, %v5562_v30  ;;  %v8967_v32 = vadd.f32 %v4914_v2, %v13918_v44  ;;  %v5457_v60 = vadd.f32 %v8966_v9, %v12624_v45  ;;  %v4916_v36 = vpop.f32.mrb[251].mxu0  ;;  %8586 = vmatprep.subr.bf16.mxu1 %v13621_v37  ;;  %v5632_v35 = vmax.f32 %v5600_v13, 0.0 }
 0x591   :  { %v5633_v21 = vmax.f32 %v5601_v19, 0.0  ;;  %v5531_v57 = vmax.f32 %v12622_v31, %v5457_v60  ;;  %v5460_v4 = vadd.f32 %v8967_v32, %v13919_v7  ;;  %v10030_v19 = vld [vmem:[%s13472_s3 + $0x128] sm:$0xff]   ;;  %v10037_v7 = vld [vmem:[%s13472_s3 + $0x160] sm:$0xff]  }
 0x592   :  { %8587 = vmatpush3.bf16.msra.mxu1 %v10026_v41 }
 0x593   :  { %v12988_v59 = vpack.c.bf16 %v5633_v21, %v5632_v35  ;;  %v5563_v45 = vmax.f32 %v13922_v17, %v5531_v57  ;;  %v5532_v43 = vmax.f32 %v13923_v26, %v5460_v4  ;;  %8588 = vmatprep.subr.bf16.mxu1 %v13621_v37  ;;  %v10032_v35 = vld [vmem:[%s13472_s3 + $0x138] sm:$0xff]   ;;  %v10034_v21 = vld [vmem:[%s13472_s3 + $0x148] sm:$0xff]   ;;  %v10035_v57 = vld [vmem:[%s13472_s3 + $0x150] sm:$0xff]  }
 0x594   :  { %v4919_v5 = vpop.f32.mrb[252].mxu0  ;;  %v10038_v4 = vld [vmem:[%s13472_s3 + $0x168] sm:$0xff]   ;;  %v10045_v26 = vld [vmem:[%s13472_s3 + $0x1a0] sm:$0xff]  }
 0x595   :  { %v5602_v31 = vadd.f32 %v12649_v49, %v5563_v45  ;;  %v5564_v3 = vmax.f32 %v13926_v51, %v5532_v43  ;;  %v8968_v29 = vadd.f32 %v4919_v5, %v13927_v20  ;;  %v4921_v1 = vpop.f32.mrb[253].mxu0  ;;  %v10042_v17 = vld [vmem:[%s13472_s3 + $0x188] sm:$0xff]   ;;  %v10043_v45 = vld [vmem:[%s13472_s3 + $0x190] sm:$0xff]  }
 0x596   :  { %8589 = vmatpush3.bf16.msra.mxu1 %v10027_v62  ;;  %v4922_v56 = vpop.f32.mrb[254].mxu0  ;;  %v10039_v62 = vld [vmem:[%s13472_s3 + $0x170] sm:$0xff]   ;;  %v10046_v43 = vld [vmem:[%s13472_s3 + $0x1a8] sm:$0xff]  }
 0x597   :  { %v5603_v14 = vadd.f32 %v12649_v49, %v5564_v3  ;;  %v5465_v48 = vadd.f32 %v8968_v29, %v13928_v28  ;;  %v8969_v63 = vadd.f32 %v4922_v56, %v13929_v52  ;;  %v4924_v10 = vpop.f32.mrb[255].mxu0  ;;  %8590 = vmatprep.subr.bf16.mxu1 %v13621_v37  ;;  %v5634_v11 = vmax.f32 %v5602_v31, 0.0  ;;  %v10047_v5 = vld [vmem:[%s13472_s3 + $0x1b0] sm:$0xff]   ;;  %v10048_v31 = vld [vmem:[%s13472_s3 + $0x1b8] sm:$0xff]   ;;  %v10053_v3 = vld [vmem:[%s13472_s3 + $0x1e0] sm:$0xff]  }
 0x598   :  { %v10051_v51 = vld [vmem:[%s13472_s3 + $0x1d0] sm:$0xff]   ;;  %v10054_v20 = vld [vmem:[%s13472_s3 + $0x1e8] sm:$0xff]   ;;  %v10056_v28 = vld [vmem:[%s13472_s3 + $0x1f8] sm:$0xff]  }
 0x599   :  { %v5635_v61 = vmax.f32 %v5603_v14, 0.0  ;;  %v5533_v27 = vmax.f32 %v12635_v34, %v5465_v48  ;;  %v5468_v22 = vadd.f32 %v8969_v63, %v13930_v42  ;;  %v13934_v34 = vld [vmem:[#allocation123_spill] sm:$0xff]  ;;  %v10057_v48 = vld [vmem:[%s13472_s3 + $0x200] sm:$0xff]   ;;  %v10059_v63 = vld [vmem:[%s13472_s3 + $0x210] sm:$0xff]  }
 0x59a   :  { %8591 = vmatpush3.bf16.msra.mxu1 %v10028_v50  ;;  %v13936_v2 = vmax.f32 %v13934_v34, %v13935_v12  ;;  %v10055_v50 = vld [vmem:[%s13472_s3 + $0x1f0] sm:$0xff]   ;;  %v10058_v52 = vld [vmem:[%s13472_s3 + $0x208] sm:$0xff]   ;;  %v10061_v10 = vld [vmem:[%s13472_s3 + $0x220] sm:$0xff]  }
 0x59b   :  { %v13012_v13 = vpack.c.bf16 %v5635_v61, %v5634_v11  ;;  %v5565_v30 = vmax.f32 %v13933_v39, %v5533_v27  ;;  %v5534_v46 = vmax.f32 %v12639_v38, %v5468_v22  ;;  %8592 = vmatprep.subr.bf16.mxu1 %v13621_v37  ;;  %v10031_v38 = vld [vmem:[%s13472_s3 + $0x130] sm:$0xff]   ;;  %v10062_v11 = vld [vmem:[%s13472_s3 + $0x228] sm:$0xff]   ;;  %v10064_v39 = vld [vmem:[%s13472_s3 + $0x238] sm:$0xff]  }
 0x59c   :  { %v10069_v34 = vld [vmem:[%s13472_s3 + $0x260] sm:$0xff]   ;;  %v10070_v12 = vld [vmem:[%s13472_s3 + $0x268] sm:$0xff]  }
 0x59d   :  { %v5604_v9 = vadd.f32 %v12649_v49, %v5565_v30  ;;  %v5566_v41 = vmax.f32 %v13936_v2, %v5534_v46  ;;  %v10065_v30 = vld [vmem:[%s13472_s3 + $0x240] sm:$0xff]   ;;  %v10066_v46 = vld [vmem:[%s13472_s3 + $0x248] sm:$0xff]  }
 0x59e   :  { %8593 = vmatpush3.bf16.msra.mxu1 %v10029_v6  ;;  %v10063_v6 = vld [vmem:[%s13472_s3 + $0x230] sm:$0xff]  }
 0x59f   :  { %v5605_v44 = vadd.f32 %v12649_v49, %v5566_v41  ;;  %8594 = vmatprep.subr.bf16.mxu1 %v13621_v37  ;;  %v5636_v32 = vmax.f32 %v5604_v9, 0.0  ;;  %v10033_v49 = vld [vmem:[%s13472_s3 + $0x140] sm:$0xff]   ;;  %v10067_v9 = vld [vmem:[%s13472_s3 + $0x250] sm:$0xff]  }
 0x5a1   :  { %v5637_v60 = vmax.f32 %v5605_v44, 0.0 }
 0x5a2   :  { %8595 = vmatpush3.bf16.msra.mxu1 %v10030_v19 }
 0x5a3   :  { %v13031_v36 = vpack.c.bf16 %v5637_v60, %v5636_v32  ;;  %8596 = vmatprep.subr.bf16.mxu1 %v13621_v37  ;;  %v10071_v32 = vld [vmem:[%s13472_s3 + $0x270] sm:$0xff]  }
 0x5a6   :  { %8597 = vmatpush3.bf16.msra.mxu1 %v10031_v38 }
 0x5a7   :  { %8598 = vmatprep.subr.bf16.mxu1 %v13621_v37 }
 0x5aa   :  { %8599 = vmatpush3.bf16.msra.mxu1 %v10032_v35  ;;  %v10072_v35 = vld [vmem:[%s13472_s3 + $0x278] sm:$0xff]  }
 0x5ab   :  { %8604 = vmatprep.subr.bf16.mxu1 %v13621_v37 }
 0x5ad   :  { %8601 = vmatmul.mubr.bf16.vlgmr.msra.gmra.mrb[76].mxu1 %v12763_v16  ;;  %v10036_v16 = vld [vmem:[%s13472_s3 + $0x158] sm:$0xff]  }
 0x5ae   :  { %8605 = vmatpush3.bf16.msra.mxu1 %v10033_v49  ;;  %8620 = vmatprep.mubr.msk.bf16.mxu1 %vm10131_vm0, %v13621_v37  ;;  %v10073_v49 = vld [vmem:[%s13472_s3 + $0x280] sm:$0xff]  }
 0x5af   :  { %8606 = vmatprep.subr.bf16.mxu1 %v13621_v37 }
 0x5b2   :  { %8607 = vmatpush3.bf16.msra.mxu1 %v10034_v21  ;;  %v10074_v21 = vld [vmem:[%s13472_s3 + $0x288] sm:$0xff]  }
 0x5b3   :  { %8608 = vmatprep.subr.bf16.mxu1 %v13621_v37 }
 0x5b6   :  { %8609 = vmatpush3.bf16.msra.mxu1 %v10035_v57  ;;  %v10075_v57 = vld [vmem:[%s13472_s3 + $0x290] sm:$0xff]  }
 0x5b7   :  { %8610 = vmatprep.subr.bf16.mxu1 %v13621_v37 }
 0x5ba   :  { %8611 = vmatpush3.bf16.msra.mxu1 %v10036_v16  ;;  %v10077_v16 = vld [vmem:[%s13472_s3 + $0x2a0] sm:$0xff]  }
 0x5bb   :  { %8612 = vmatprep.subr.bf16.mxu1 %v13621_v37 }
 0x5be   :  { %8613 = vmatpush3.bf16.msra.mxu1 %v10037_v7  ;;  %v10078_v7 = vld [vmem:[%s13472_s3 + $0x2a8] sm:$0xff]  }
 0x5bf   :  { %8614 = vmatprep.subr.bf16.mxu1 %v13621_v37 }
 0x5c2   :  { %8615 = vmatpush3.bf16.msra.mxu1 %v10038_v4 }
 0x5c3   :  { %8616 = vmatprep.subr.bf16.mxu1 %v13621_v37 }
 0x5c6   :  { %8617 = vmatpush3.bf16.msra.mxu1 %v10039_v62 }
 0x5c7   :  { %8618 = vmatprep.subr.bf16.mxu1 %v13621_v37 }
 0x5ca   :  { %8619 = vmatpush3.bf16.msra.mxu1 %v10040_v25 }
 0x5cb   :  { %8624 = vmatprep.subr.bf16.mxu1 %v13621_v37 }
 0x5cd   :  { %8621 = vmatmul.mubr.bf16.vlgmr.msra.gmra.mrb[80].mxu1 %v12790_v18  ;;  %v10044_v18 = vld [vmem:[%s13472_s3 + $0x198] sm:$0xff]  }
 0x5ce   :  { %8625 = vmatpush3.bf16.msra.mxu1 %v10041_v53  ;;  %8640 = vmatprep.mubr.msk.bf16.mxu1 %vm10131_vm0, %v13621_v37 }
 0x5cf   :  { %8626 = vmatprep.subr.bf16.mxu1 %v13621_v37 }
 0x5d2   :  { %8627 = vmatpush3.bf16.msra.mxu1 %v10042_v17  ;;  %v10079_v17 = vld [vmem:[%s13472_s3 + $0x2b0] sm:$0xff]  }
 0x5d3   :  { %8628 = vmatprep.subr.bf16.mxu1 %v13621_v37 }
 0x5d6   :  { %8629 = vmatpush3.bf16.msra.mxu1 %v10043_v45 }
 0x5d7   :  { %8630 = vmatprep.subr.bf16.mxu1 %v13621_v37 }
 0x5da   :  { %8631 = vmatpush3.bf16.msra.mxu1 %v10044_v18 }
 0x5db   :  { %8632 = vmatprep.subr.bf16.mxu1 %v13621_v37 }
 0x5de   :  { %8633 = vmatpush3.bf16.msra.mxu1 %v10045_v26  ;;  %v10080_v26 = vld [vmem:[%s13472_s3 + $0x2b8] sm:$0xff]  }
 0x5df   :  { %8634 = vmatprep.subr.bf16.mxu1 %v13621_v37 }
 0x5e2   :  { %8635 = vmatpush3.bf16.msra.mxu1 %v10046_v43  ;;  %v10081_v43 = vld [vmem:[%s13472_s3 + $0x2c0] sm:$0xff]  }
 0x5e3   :  { %8636 = vmatprep.subr.bf16.mxu1 %v13621_v37 }
 0x5e6   :  { %8637 = vmatpush3.bf16.msra.mxu1 %v10047_v5  ;;  %v10082_v5 = vld [vmem:[%s13472_s3 + $0x2c8] sm:$0xff]  }
 0x5e7   :  { %8638 = vmatprep.subr.bf16.mxu1 %v13621_v37 }
 0x5ea   :  { %8639 = vmatpush3.bf16.msra.mxu1 %v10048_v31  ;;  %v10083_v31 = vld [vmem:[%s13472_s3 + $0x2d0] sm:$0xff]  }
 0x5eb   :  { %8644 = vmatprep.subr.bf16.mxu1 %v13621_v37 }
 0x5ed   :  { %8641 = vmatmul.mubr.bf16.vlgmr.msra.gmra.mrb[84].mxu1 %v12814_v40  ;;  %v10052_v40 = vld [vmem:[%s13472_s3 + $0x1d8] sm:$0xff]  }
 0x5ee   :  { %8645 = vmatpush3.bf16.msra.mxu1 %v10049_v15  ;;  %8660 = vmatprep.mubr.msk.bf16.mxu1 %vm10131_vm0, %v13621_v37  ;;  %v10085_v15 = vld [vmem:[%s13472_s3 + $0x2e0] sm:$0xff]  }
 0x5ef   :  { %8646 = vmatprep.subr.bf16.mxu1 %v13621_v37 }
 0x5f2   :  { %8647 = vmatpush3.bf16.msra.mxu1 %v10050_v0  ;;  %v10086_v0 = vld [vmem:[%s13472_s3 + $0x2e8] sm:$0xff]  }
 0x5f3   :  { %8648 = vmatprep.subr.bf16.mxu1 %v13621_v37 }
 0x5f6   :  { %8649 = vmatpush3.bf16.msra.mxu1 %v10051_v51 }
 0x5f7   :  { %8650 = vmatprep.subr.bf16.mxu1 %v13621_v37 }
 0x5fa   :  { %8651 = vmatpush3.bf16.msra.mxu1 %v10052_v40 }
 0x5fb   :  { %8652 = vmatprep.subr.bf16.mxu1 %v13621_v37 }
 0x5fe   :  { %8653 = vmatpush3.bf16.msra.mxu1 %v10053_v3 }
 0x5ff   :  { %8654 = vmatprep.subr.bf16.mxu1 %v13621_v37 }
 0x600   :  { %v5992_v29 = vpop.f32.mrb[60].mxu1 }
 0x601   :  { %v8522_v1 = vpop.f32.mrb[61].mxu1 }
 0x602   :  { %8655 = vmatpush3.bf16.msra.mxu1 %v10054_v20  ;;  %v5995_v56 = vpop.f32.mrb[62].mxu1 }
 0x603   :  { %v8523_v14 = vpop.f32.mrb[63].mxu1  ;;  %8656 = vmatprep.subr.bf16.mxu1 %v13621_v37 }
 0x604   :  { %v10089_v14 = vld [vmem:[%s13472_s3 + $0x300] sm:$0xff]  }
 0x606   :  { %8657 = vmatpush3.bf16.msra.mxu1 %v10055_v50  ;;  %v10088_v50 = vld [vmem:[%s13472_s3 + $0x2f8] sm:$0xff]  }
 0x607   :  { %8658 = vmatprep.subr.bf16.mxu1 %v13621_v37 }
 0x60a   :  { %8659 = vmatpush3.bf16.msra.mxu1 %v10056_v28  ;;  %v10090_v28 = vld [vmem:[%s13472_s3 + $0x308] sm:$0xff]  }
 0x60b   :  { %8664 = vmatprep.subr.bf16.mxu1 %v13621_v37 }
 0x60d   :  { %8661 = vmatmul.mubr.bf16.vlgmr.msra.gmra.mrb[88].mxu1 %v12838_v54  ;;  %v10060_v54 = vld [vmem:[%s13472_s3 + $0x218] sm:$0xff]  }
 0x60e   :  { %8665 = vmatpush3.bf16.msra.mxu1 %v10057_v48  ;;  %8680 = vmatprep.mubr.msk.bf16.mxu1 %vm10131_vm0, %v13621_v37  ;;  %v10091_v48 = vld [vmem:[%s13472_s3 + $0x310] sm:$0xff]  }
 0x60f   :  { %8666 = vmatprep.subr.bf16.mxu1 %v13621_v37 }
 0x612   :  { %8667 = vmatpush3.bf16.msra.mxu1 %v10058_v52  ;;  %v10093_v52 = vld [vmem:[%s13472_s3 + $0x320] sm:$0xff]  }
 0x613   :  { %8668 = vmatprep.subr.bf16.mxu1 %v13621_v37 }
 0x616   :  { %8669 = vmatpush3.bf16.msra.mxu1 %v10059_v63  ;;  %v10094_v63 = vld [vmem:[%s13472_s3 + $0x328] sm:$0xff]  }
 0x617   :  { %8670 = vmatprep.subr.bf16.mxu1 %v13621_v37 }
 0x61a   :  { %8671 = vmatpush3.bf16.msra.mxu1 %v10060_v54 }
 0x61b   :  { %8672 = vmatprep.subr.bf16.mxu1 %v13621_v37 }
 0x61e   :  { %8673 = vmatpush3.bf16.msra.mxu1 %v10061_v10 }
 0x61f   :  { %8674 = vmatprep.subr.bf16.mxu1 %v13621_v37 }
 0x620   :  { %v6081_v61 = vpop.f32.mrb[64].mxu1 }
 0x621   :  { %v7334_v27 = vadd.f32 %v6081_v61, %v5992_v29  ;;  %v8542_v42 = vpop.f32.mrb[65].mxu1  ;;  %v10087_v29 = vld [vmem:[%s13472_s3 + $0x2f0] sm:$0xff]  }
 0x622   :  { %v6084_v22 = vpop.f32.mrb[66].mxu1  ;;  %8675 = vmatpush3.bf16.msra.mxu1 %v10062_v11 }
 0x623   :  { %v7349_v33 = vadd.f32 %v6084_v22, %v5995_v56  ;;  %v8543_v58 = vpop.f32.mrb[67].mxu1  ;;  %8676 = vmatprep.subr.bf16.mxu1 %v13621_v37 }
 0x624   :  { %v10098_v58 = vld [vmem:[%s13472_s3 + $0x348] sm:$0xff]  }
 0x626   :  { %8677 = vmatpush3.bf16.msra.mxu1 %v10063_v6  ;;  %v10096_v6 = vld [vmem:[%s13472_s3 + $0x338] sm:$0xff]  }
 0x627   :  { %8678 = vmatprep.subr.bf16.mxu1 %v13621_v37 }
 0x62a   :  { %8679 = vmatpush3.bf16.msra.mxu1 %v10064_v39  ;;  %v10099_v39 = vld [vmem:[%s13472_s3 + $0x350] sm:$0xff]  }
 0x62b   :  { %8684 = vmatprep.subr.bf16.mxu1 %v13621_v37 }
 0x62d   :  { %8681 = vmatmul.mubr.bf16.vlgmr.msra.gmra.mrb[92].mxu1 %v12862_v55  ;;  %v10068_v55 = vld [vmem:[%s13472_s3 + $0x258] sm:$0xff]  }
 0x62e   :  { %8685 = vmatpush3.bf16.msra.mxu1 %v10065_v30  ;;  %8700 = vmatprep.mubr.msk.bf16.mxu1 %vm10131_vm0, %v13621_v37  ;;  %v10101_v30 = vld [vmem:[%s13472_s3 + $0x360] sm:$0xff]  }
 0x62f   :  { %8686 = vmatprep.subr.bf16.mxu1 %v13621_v37 }
 0x632   :  { %8687 = vmatpush3.bf16.msra.mxu1 %v10066_v46  ;;  %v10102_v46 = vld [vmem:[%s13472_s3 + $0x368] sm:$0xff]  }
 0x633   :  { %8688 = vmatprep.subr.bf16.mxu1 %v13621_v37 }
 0x636   :  { %8689 = vmatpush3.bf16.msra.mxu1 %v10067_v9 }
 0x637   :  { %8690 = vmatprep.subr.bf16.mxu1 %v13621_v37 }
 0x63a   :  { %8691 = vmatpush3.bf16.msra.mxu1 %v10068_v55 }
 0x63b   :  { %8692 = vmatprep.subr.bf16.mxu1 %v13621_v37 }
 0x63e   :  { %8693 = vmatpush3.bf16.msra.mxu1 %v10069_v34 }
 0x63f   :  { %8694 = vmatprep.subr.bf16.mxu1 %v13621_v37 }
 0x640   :  { %v6170_v2 = vpop.f32.mrb[68].mxu1 }
 0x641   :  { %v7335_v41 = vadd.f32 %v7334_v27, %v6170_v2  ;;  %v8562_v19 = vpop.f32.mrb[69].mxu1  ;;  %v10095_v27 = vld [vmem:[%s13472_s3 + $0x330] sm:$0xff]  }
 0x642   :  { %v6173_v44 = vpop.f32.mrb[70].mxu1  ;;  %8695 = vmatpush3.bf16.msra.mxu1 %v10070_v12  ;;  %v10103_v2 = vld [vmem:[%s13472_s3 + $0x370] sm:$0xff]  }
 0x643   :  { %v7350_v60 = vadd.f32 %v7349_v33, %v6173_v44  ;;  %v8563_v38 = vpop.f32.mrb[71].mxu1  ;;  %8696 = vmatprep.subr.bf16.mxu1 %v13621_v37  ;;  %v10097_v33 = vld [vmem:[%s13472_s3 + $0x340] sm:$0xff]   ;;  %v10104_v44 = vld [vmem:[%s13472_s3 + $0x378] sm:$0xff]  }
 0x644   :  { %v10107_v38 = vld [vmem:[%s13472_s3 + $0x390] sm:$0xff]  }
 0x646   :  { %8697 = vmatpush3.bf16.msra.mxu1 %v10071_v32  ;;  %v10105_v32 = vld [vmem:[%s13472_s3 + $0x380] sm:$0xff]  }
 0x647   :  { %8698 = vmatprep.subr.bf16.mxu1 %v13621_v37 }
 0x64a   :  { %8699 = vmatpush3.bf16.msra.mxu1 %v10072_v35  ;;  %v10109_v35 = vld [vmem:[%s13472_s3 + $0x3a0] sm:$0xff]  }
 0x64b   :  { %8704 = vmatprep.subr.bf16.mxu1 %v13621_v37 }
 0x64d   :  { %8701 = vmatmul.mubr.bf16.vlgmr.msra.gmra.mrb[96].mxu1 %v12889_v23  ;;  %v10076_v23 = vld [vmem:[%s13472_s3 + $0x298] sm:$0xff]  }
 0x64e   :  { %8705 = vmatpush3.bf16.msra.mxu1 %v10073_v49  ;;  %8720 = vmatprep.mubr.msk.bf16.mxu1 %vm10131_vm0, %v13621_v37  ;;  %v10110_v49 = vld [vmem:[%s13472_s3 + $0x3a8] sm:$0xff]  }
 0x64f   :  { %8706 = vmatprep.subr.bf16.mxu1 %v13621_v37 }
 0x652   :  { %8707 = vmatpush3.bf16.msra.mxu1 %v10074_v21 }
 0x653   :  { %8708 = vmatprep.subr.bf16.mxu1 %v13621_v37 }
 0x656   :  { %8709 = vmatpush3.bf16.msra.mxu1 %v10075_v57 }
 0x657   :  { %8710 = vmatprep.subr.bf16.mxu1 %v13621_v37 }
 0x65a   :  { %8711 = vmatpush3.bf16.msra.mxu1 %v10076_v23 }
 0x65b   :  { %8712 = vmatprep.subr.bf16.mxu1 %v13621_v37 }
 0x65e   :  { %8713 = vmatpush3.bf16.msra.mxu1 %v10077_v16 }
 0x65f   :  { %8714 = vmatprep.subr.bf16.mxu1 %v13621_v37 }
 0x660   :  { %v6259_v4 = vpop.f32.mrb[72].mxu1 }
 0x661   :  { %v7336_v62 = vadd.f32 %v7335_v41, %v6259_v4  ;;  %v8582_v25 = vpop.f32.mrb[73].mxu1 }
 0x662   :  { %v6262_v53 = vpop.f32.mrb[74].mxu1  ;;  %8715 = vmatpush3.bf16.msra.mxu1 %v10078_v7  ;;  %v10111_v7 = vld [vmem:[%s13472_s3 + $0x3b0] sm:$0xff]   ;;  %v10112_v25 = vld [vmem:[%s13472_s3 + $0x3b8] sm:$0xff]  }
 0x663   :  { %v7351_v45 = vadd.f32 %v7350_v60, %v6262_v53  ;;  %v8583_v18 = vpop.f32.mrb[75].mxu1  ;;  %8716 = vmatprep.subr.bf16.mxu1 %v13621_v37  ;;  %v10106_v60 = vld [vmem:[%s13472_s3 + $0x388] sm:$0xff]   ;;  %v10113_v53 = vld [vmem:[%s13472_s3 + $0x3c0] sm:$0xff]  }
 0x664   :  { %v10117_v18 = vld [vmem:[%s13472_s3 + $0x3e0] sm:$0xff]  }
 0x666   :  { %8717 = vmatpush3.bf16.msra.mxu1 %v10079_v17  ;;  %v10114_v17 = vld [vmem:[%s13472_s3 + $0x3c8] sm:$0xff]  }
 0x667   :  { %8718 = vmatprep.subr.bf16.mxu1 %v13621_v37 }
 0x66a   :  { %8719 = vmatpush3.bf16.msra.mxu1 %v10080_v26  ;;  %v10118_v26 = vld [vmem:[%s13472_s3 + $0x3e8] sm:$0xff]  }
 0x66b   :  { %8724 = vmatprep.subr.bf16.mxu1 %v13621_v37 }
 0x66d   :  { %8721 = vmatmul.mubr.bf16.vlgmr.msra.gmra.mrb[100].mxu1 %v12913_v8  ;;  %v10084_v8 = vld [vmem:[%s13472_s3 + $0x2d8] sm:$0xff]  }
 0x66e   :  { %8725 = vmatpush3.bf16.msra.mxu1 %v10081_v43  ;;  %8740 = vmatprep.mubr.msk.bf16.mxu1 %vm10131_vm0, %v13621_v37 }
 0x66f   :  { %8726 = vmatprep.subr.bf16.mxu1 %v13621_v37 }
 0x672   :  { %8727 = vmatpush3.bf16.msra.mxu1 %v10082_v5 }
 0x673   :  { %8728 = vmatprep.subr.bf16.mxu1 %v13621_v37 }
 0x676   :  { %8729 = vmatpush3.bf16.msra.mxu1 %v10083_v31 }
 0x677   :  { %8730 = vmatprep.subr.bf16.mxu1 %v13621_v37 }
 0x67a   :  { %8731 = vmatpush3.bf16.msra.mxu1 %v10084_v8 }
 0x67b   :  { %8732 = vmatprep.subr.bf16.mxu1 %v13621_v37 }
 0x67e   :  { %8733 = vmatpush3.bf16.msra.mxu1 %v10085_v15  ;;  %v10119_v15 = vld [vmem:[%s13472_s3 + $0x3f0] sm:$0xff]  }
 0x67f   :  { %8734 = vmatprep.subr.bf16.mxu1 %v13621_v37 }
 0x680   :  { %v6348_v51 = vpop.f32.mrb[76].mxu1 }
 0x681   :  { %v7337_v40 = vadd.f32 %v7336_v62, %v6348_v51  ;;  %v8602_v3 = vpop.f32.mrb[77].mxu1 }
 0x682   :  { %v6351_v20 = vpop.f32.mrb[78].mxu1  ;;  %8735 = vmatpush3.bf16.msra.mxu1 %v10086_v0 }
 0x683   :  { %v7352_v1 = vadd.f32 %v7351_v45, %v6351_v20  ;;  %v8603_v56 = vpop.f32.mrb[79].mxu1  ;;  %8736 = vmatprep.subr.bf16.mxu1 %v13621_v37  ;;  %v10115_v45 = vld [vmem:[%s13472_s3 + $0x3d0] sm:$0xff]  }
 0x686   :  { %8737 = vmatpush3.bf16.msra.mxu1 %v10087_v29 }
 0x687   :  { %8738 = vmatprep.subr.bf16.mxu1 %v13621_v37 }
 0x68a   :  { %8739 = vmatpush3.bf16.msra.mxu1 %v10088_v50 }
 0x68b   :  { %8744 = vmatprep.subr.bf16.mxu1 %v13621_v37 }
 0x68d   :  { %8741 = vmatmul.mubr.bf16.vlgmr.msra.gmra.mrb[104].mxu1 %v12937_v47  ;;  %v10092_v47 = vld [vmem:[%s13472_s3 + $0x318] sm:$0xff]  }
 0x68e   :  { %8745 = vmatpush3.bf16.msra.mxu1 %v10089_v14  ;;  %8760 = vmatprep.mubr.msk.bf16.mxu1 %vm10131_vm0, %v13621_v37 }
 0x68f   :  { %8746 = vmatprep.subr.bf16.mxu1 %v13621_v37 }
 0x692   :  { %8747 = vmatpush3.bf16.msra.mxu1 %v10090_v28 }
 0x693   :  { %8748 = vmatprep.subr.bf16.mxu1 %v13621_v37 }
 0x696   :  { %8749 = vmatpush3.bf16.msra.mxu1 %v10091_v48 }
 0x697   :  { %8750 = vmatprep.subr.bf16.mxu1 %v13621_v37 }
 0x69a   :  { %8751 = vmatpush3.bf16.msra.mxu1 %v10092_v47 }
 0x69b   :  { %8752 = vmatprep.subr.bf16.mxu1 %v13621_v37 }
 0x69e   :  { %8753 = vmatpush3.bf16.msra.mxu1 %v10093_v52 }
 0x69f   :  { %8754 = vmatprep.subr.bf16.mxu1 %v13621_v37 }
 0x6a0   :  { %v6437_v54 = vpop.f32.mrb[80].mxu1 }
 0x6a1   :  { %v7338_v10 = vadd.f32 %v7337_v40, %v6437_v54  ;;  %v8622_v11 = vpop.f32.mrb[81].mxu1  ;;  %v10120_v40 = vld [vmem:[%s13472_s3 + $0x3f8] sm:$0xff]   ;;  %v10121_v54 = vld [vmem:[%s13474_s5] sm:$0xff]  }
 0x6a2   :  { %v6440_v61 = vpop.f32.mrb[82].mxu1  ;;  %8755 = vmatpush3.bf16.msra.mxu1 %v10094_v63  ;;  %v10124_v11 = vld [vmem:[%s13474_s5 + $0x18] sm:$0xff]  }
 0x6a3   :  { %v7353_v42 = vadd.f32 %v7352_v1, %v6440_v61  ;;  %v8623_v22 = vpop.f32.mrb[83].mxu1  ;;  %8756 = vmatprep.subr.bf16.mxu1 %v13621_v37  ;;  %v10125_v61 = vld [vmem:[%s13474_s5 + $0x20] sm:$0xff]  }
 0x6a4   :  { %v10127_v22 = vld [vmem:[%s13474_s5 + $0x30] sm:$0xff]  }
 0x6a6   :  { %8757 = vmatpush3.bf16.msra.mxu1 %v10095_v27  ;;  %v10126_v27 = vld [vmem:[%s13474_s5 + $0x28] sm:$0xff]  }
 0x6a7   :  { %8758 = vmatprep.subr.bf16.mxu1 %v13621_v37 }
 0x6aa   :  { %8759 = vmatpush3.bf16.msra.mxu1 %v10096_v6 }
 0x6ab   :  { %8764 = vmatprep.subr.bf16.mxu1 %v13621_v37 }
 0x6ad   :  { %8761 = vmatmul.mubr.bf16.vlgmr.msra.gmra.mrb[108].mxu1 %v12961_v24  ;;  %v10100_v24 = vld [vmem:[%s13472_s3 + $0x358] sm:$0xff]  }
 0x6ae   :  { %8765 = vmatpush3.bf16.msra.mxu1 %v10097_v33  ;;  %8780 = vmatprep.mubr.msk.bf16.mxu1 %vm10131_vm0, %v13621_v37 }
 0x6af   :  { %8766 = vmatprep.subr.bf16.mxu1 %v13621_v37 }
 0x6b2   :  { %8767 = vmatpush3.bf16.msra.mxu1 %v10098_v58 }
 0x6b3   :  { %8768 = vmatprep.subr.bf16.mxu1 %v13621_v37 }
 0x6b6   :  { %8769 = vmatpush3.bf16.msra.mxu1 %v10099_v39 }
 0x6b7   :  { %8770 = vmatprep.subr.bf16.mxu1 %v13621_v37 }
 0x6ba   :  { %8771 = vmatpush3.bf16.msra.mxu1 %v10100_v24 }
 0x6bb   :  { %8772 = vmatprep.subr.bf16.mxu1 %v13621_v37 }
 0x6be   :  { %8773 = vmatpush3.bf16.msra.mxu1 %v10101_v30  ;;  %v10128_v30 = vld [vmem:[%s13474_s5 + $0x38] sm:$0xff]  }
 0x6bf   :  { %8774 = vmatprep.subr.bf16.mxu1 %v13621_v37 }
 0x6c0   :  { %v6526_v9 = vpop.f32.mrb[84].mxu1 }
 0x6c1   :  { %v7339_v55 = vadd.f32 %v7338_v10, %v6526_v9  ;;  %v8642_v34 = vpop.f32.mrb[85].mxu1  ;;  %v10123_v10 = vld [vmem:[%s13474_s5 + $0x10] sm:$0xff]  }
 0x6c2   :  { %v6529_v12 = vpop.f32.mrb[86].mxu1  ;;  %8775 = vmatpush3.bf16.msra.mxu1 %v10102_v46 }
 0x6c3   :  { %v7354_v41 = vadd.f32 %v7353_v42, %v6529_v12  ;;  %v8643_v19 = vpop.f32.mrb[87].mxu1  ;;  %8776 = vmatprep.subr.bf16.mxu1 %v13621_v37 }
 0x6c6   :  { %8777 = vmatpush3.bf16.msra.mxu1 %v10103_v2 }
 0x6c7   :  { %8778 = vmatprep.subr.bf16.mxu1 %v13621_v37 }
 0x6ca   :  { %8779 = vmatpush3.bf16.msra.mxu1 %v10104_v44 }
 0x6cb   :  { %8784 = vmatprep.subr.bf16.mxu1 %v13621_v37 }
 0x6cd   :  { %8781 = vmatmul.mubr.bf16.vlgmr.msra.gmra.mrb[112].mxu1 %v12988_v59  ;;  %v10108_v59 = vld [vmem:[%s13472_s3 + $0x398] sm:$0xff]  }
 0x6ce   :  { %8785 = vmatpush3.bf16.msra.mxu1 %v10105_v32  ;;  %8800 = vmatprep.mubr.msk.bf16.mxu1 %vm10131_vm0, %v13621_v37 }
 0x6cf   :  { %8786 = vmatprep.subr.bf16.mxu1 %v13621_v37 }
 0x6d2   :  { %8787 = vmatpush3.bf16.msra.mxu1 %v10106_v60 }
 0x6d3   :  { %8788 = vmatprep.subr.bf16.mxu1 %v13621_v37 }
 0x6d6   :  { %8789 = vmatpush3.bf16.msra.mxu1 %v10107_v38 }
 0x6d7   :  { %8790 = vmatprep.subr.bf16.mxu1 %v13621_v37 }
 0x6da   :  { %8791 = vmatpush3.bf16.msra.mxu1 %v10108_v59 }
 0x6db   :  { %8792 = vmatprep.subr.bf16.mxu1 %v13621_v37 }
 0x6de   :  { %8793 = vmatpush3.bf16.msra.mxu1 %v10109_v35 }
 0x6df   :  { %8794 = vmatprep.subr.bf16.mxu1 %v13621_v37 }
 0x6e0   :  { %v6615_v21 = vpop.f32.mrb[88].mxu1 }
 0x6e1   :  { %v7340_v57 = vadd.f32 %v7339_v55, %v6615_v21  ;;  %v8662_v23 = vpop.f32.mrb[89].mxu1 }
 0x6e2   :  { %v6618_v16 = vpop.f32.mrb[90].mxu1  ;;  %8795 = vmatpush3.bf16.msra.mxu1 %v10110_v49 }
 0x6e3   :  { %v7355_v4 = vadd.f32 %v7354_v41, %v6618_v16  ;;  %v8663_v62 = vpop.f32.mrb[91].mxu1  ;;  %8796 = vmatprep.subr.bf16.mxu1 %v13621_v37 }
 0x6e6   :  { %8797 = vmatpush3.bf16.msra.mxu1 %v10111_v7 }
 0x6e7   :  { %8798 = vmatprep.subr.bf16.mxu1 %v13621_v37 }
 0x6ea   :  { %8799 = vmatpush3.bf16.msra.mxu1 %v10112_v25 }
 0x6eb   :  { %8804 = vmatprep.subr.bf16.mxu1 %v13621_v37 }
 0x6ed   :  { %8801 = vmatmul.mubr.bf16.vlgmr.msra.gmra.mrb[116].mxu1 %v13012_v13  ;;  %v10116_v13 = vld [vmem:[%s13472_s3 + $0x3d8] sm:$0xff]  }
 0x6ee   :  { %8805 = vmatpush3.bf16.msra.mxu1 %v10113_v53  ;;  %8820 = vmatprep.mubr.msk.bf16.mxu1 %vm10131_vm0, %v13621_v37 }
 0x6ef   :  { %8806 = vmatprep.subr.bf16.mxu1 %v13621_v37 }
 0x6f2   :  { %8807 = vmatpush3.bf16.msra.mxu1 %v10114_v17 }
 0x6f3   :  { %8808 = vmatprep.subr.bf16.mxu1 %v13621_v37 }
 0x6f6   :  { %8809 = vmatpush3.bf16.msra.mxu1 %v10115_v45 }
 0x6f7   :  { %8810 = vmatprep.subr.bf16.mxu1 %v13621_v37 }
 0x6fa   :  { %8811 = vmatpush3.bf16.msra.mxu1 %v10116_v13 }
 0x6fb   :  { %8812 = vmatprep.subr.bf16.mxu1 %v13621_v37 }
 0x6fe   :  { %8813 = vmatpush3.bf16.msra.mxu1 %v10117_v18  ;;  %v8126_v18 = vld [vmem:[%s13476_s6] ss:$0 sm:$0xff] }
 0x6ff   :  { %8814 = vmatprep.subr.bf16.mxu1 %v13621_v37 }
 0x700   :  { %v6704_v43 = vpop.f32.mrb[92].mxu1 }
 0x701   :  { %v7341_v5 = vadd.f32 %v7340_v57, %v6704_v43  ;;  %v8682_v31 = vpop.f32.mrb[93].mxu1 }
 0x702   :  { %v6707_v8 = vpop.f32.mrb[94].mxu1  ;;  %8815 = vmatpush3.bf16.msra.mxu1 %v10118_v26 }
 0x703   :  { %v7356_v0 = vadd.f32 %v7355_v4, %v6707_v8  ;;  %v8683_v51 = vpop.f32.mrb[95].mxu1  ;;  %8816 = vmatprep.subr.bf16.mxu1 %v13621_v37  ;;  %v8125_v4 = vld [vmem:[%s13475_s4] ss:$0 sm:$0xff] }
 0x706   :  { %8817 = vmatpush3.bf16.msra.mxu1 %v10119_v15 }
 0x707   :  { %8818 = vmatprep.subr.bf16.mxu1 %v13621_v37 }
 0x70a   :  { %8819 = vmatpush3.bf16.msra.mxu1 %v10120_v40 }
 0x70b   :  { %8824 = vmatprep.subr.bf16.mxu1 %v13621_v37 }
 0x70d   :  { %8821 = vmatmul.mubr.bf16.vlgmr.msra.gmra.mrb[120].mxu1 %v13031_v36  ;;  %v10122_v36 = vld [vmem:[%s13474_s5 + $0x8] sm:$0xff]  }
 0x70e   :  { %8840 = vmatprep.mubr.msk.bf16.mxu1 %vm10131_vm0, %v13621_v37  ;;  %8825 = vmatpush3.bf16.msra.mxu1 %v10121_v54 }
 0x70f   :  { %8826 = vmatprep.subr.bf16.mxu1 %v13621_v37 }
 0x712   :  { %8827 = vmatpush3.bf16.msra.mxu1 %v10122_v36 }
 0x713   :  { %8828 = vmatprep.subr.bf16.mxu1 %v13621_v37 }
 0x716   :  { %8829 = vmatpush3.bf16.msra.mxu1 %v10123_v10 }
 0x717   :  { %8830 = vmatprep.subr.bf16.mxu1 %v13621_v37 }
 0x71a   :  { %8831 = vmatpush3.bf16.msra.mxu1 %v10124_v11 }
 0x71b   :  { %8832 = vmatprep.subr.bf16.mxu1 %v13621_v37 }
 0x71e   :  { %8833 = vmatpush3.bf16.msra.mxu1 %v10125_v61 }
 0x71f   :  { %8834 = vmatprep.subr.bf16.mxu1 %v13621_v37 }
 0x720   :  { %v6793_v3 = vpop.f32.mrb[96].mxu1 }
 0x721   :  { %v7342_v20 = vadd.f32 %v7341_v5, %v6793_v3  ;;  %v8702_v29 = vpop.f32.mrb[97].mxu1 }
 0x722   :  { %v6796_v1 = vpop.f32.mrb[98].mxu1  ;;  %8835 = vmatpush3.bf16.msra.mxu1 %v10126_v27 }
 0x723   :  { %v7357_v56 = vadd.f32 %v7356_v0, %v6796_v1  ;;  %v8703_v50 = vpop.f32.mrb[99].mxu1  ;;  %8836 = vmatprep.subr.bf16.mxu1 %v13621_v37 }
 0x726   :  { %8837 = vmatpush3.bf16.msra.mxu1 %v10127_v22 }
 0x727   :  { %8838 = vmatprep.subr.bf16.mxu1 %v13621_v37 }
 0x72a   :  { %8839 = vmatpush3.bf16.msra.mxu1 %v10128_v30 }
 0x740   :  { %v6882_v14 = vpop.f32.mrb[100].mxu1 }
 0x741   :  { %v7343_v28 = vadd.f32 %v7342_v20, %v6882_v14  ;;  %v8722_v48 = vpop.f32.mrb[101].mxu1 }
 0x742   :  { %v6885_v47 = vpop.f32.mrb[102].mxu1 }
 0x743   :  { %v7358_v52 = vadd.f32 %v7357_v56, %v6885_v47  ;;  %v8723_v63 = vpop.f32.mrb[103].mxu1 }
 0x760   :  { %v6971_v42 = vpop.f32.mrb[104].mxu1 }
 0x761   :  { %v7344_v6 = vadd.f32 %v7343_v28, %v6971_v42  ;;  %v8742_v33 = vpop.f32.mrb[105].mxu1 }
 0x762   :  { %v6974_v58 = vpop.f32.mrb[106].mxu1 }
 0x763   :  { %v7359_v39 = vadd.f32 %v7358_v52, %v6974_v58  ;;  %v8743_v24 = vpop.f32.mrb[107].mxu1 }
 0x780   :  { %v7060_v46 = vpop.f32.mrb[108].mxu1 }
 0x781   :  { %v7345_v9 = vadd.f32 %v7344_v6, %v7060_v46  ;;  %v8762_v55 = vpop.f32.mrb[109].mxu1 }
 0x782   :  { %v7063_v34 = vpop.f32.mrb[110].mxu1 }
 0x783   :  { %v7360_v12 = vadd.f32 %v7359_v39, %v7063_v34  ;;  %v8763_v2 = vpop.f32.mrb[111].mxu1 }
 0x7a0   :  { %v7149_v41 = vpop.f32.mrb[112].mxu1 }
 0x7a1   :  { %v7346_v19 = vadd.f32 %v7345_v9, %v7149_v41  ;;  %v8782_v44 = vpop.f32.mrb[113].mxu1 }
 0x7a2   :  { %v7152_v32 = vpop.f32.mrb[114].mxu1 }
 0x7a3   :  { %v7361_v60 = vadd.f32 %v7360_v12, %v7152_v32  ;;  %v8783_v38 = vpop.f32.mrb[115].mxu1 }
 0x7c0   :  { %v7238_v59 = vpop.f32.mrb[116].mxu1 }
 0x7c1   :  { %v7347_v35 = vadd.f32 %v7346_v19, %v7238_v59  ;;  %v8802_v37 = vpop.f32.mrb[117].mxu1 }
 0x7c2   :  { %v7241_v49 = vpop.f32.mrb[118].mxu1 }
 0x7c3   :  { %v7362_v21 = vadd.f32 %v7361_v60, %v7241_v49  ;;  %v8803_v57 = vpop.f32.mrb[119].mxu1 }
 0x7e0   :  { %v7327_v23 = vpop.f32.mrb[120].mxu1 }
 0x7e1   :  { %v7348_v16 = vadd.f32 %v7347_v35, %v7327_v23  ;;  %v8822_v7 = vpop.f32.mrb[121].mxu1 }
 0x7e2   :  { %v7330_v62 = vpop.f32.mrb[122].mxu1 }
 0x7e3   :  { %v7363_v25 = vadd.f32 %v7362_v21, %v7330_v62  ;;  %v8823_v53 = vpop.f32.mrb[123].mxu1  ;;  %v7371_v17 = vadd.f32 %v8125_v4, %v7348_v16 }
 0x7e5   :  { %v7372_v45 = vadd.f32 %v8125_v4, %v7363_v25 }
 0x7e7   :  { %v7373_v13 = vpack.c.bf16 %v7372_v45, %v7371_v17 }
 0x7e9   :  { %8841 = vmatmul.mubr.bf16.vlgmr.msra.gmra.mrb[124].mxu1 %v7373_v13 }
 0x8bc   :  { %v7479_v26 = vpop.f32.mrb[124].mxu1 }
 0x8bd   :  { %v7480_v43 = vadd.f32 %v8126_v18, %v7479_v26  ;;  %v8842_v5 = vpop.f32.mrb[125].mxu1 }
 0x8be   :  { %v7482_v31 = vpop.f32.mrb[126].mxu1 }
 0x8bf   :  { %7486 = vst [vmem:[%s13477_s7] sm:$0xff] %v7480_v43  ;;  %v7483_v8 = vadd.f32 %v8126_v18, %v7482_v31  ;;  %v8843_v15 = vpop.f32.mrb[127].mxu1 }
 0x8c1   :  { %7487 = vst [vmem:[%s13477_s7 + $0x8] sm:$0xff] %v7483_v8 }

</bundles_post_ra>
